<compile_context>
chip_gen: v7x
topology: tpu7x:2x2x1
jax: 0.10.0
libtpu: 0.0.40
codegen_flags: <defaults>
</compile_context>

<pallas_src>
import functools
import math

import jax
import jax.numpy as jnp
from jax import lax
from jax.experimental import pallas as pl
from jax.experimental.pallas import tpu as pltpu


def _sinkhorn_match_kernel(pts_ref, loss_ref, grad_t_ref,
                           f_ref, g_ref, x2_ref, y2t_ref, *,
                           n, tile, n_tiles, match_weight, blur,
                           n_iters, eps0, bf16_exp):
    """Tiled (flash-style) entropic-OT solve + transport-plan gradient.

    pts_ref   : (2, N, 8) f32 VMEM   [0]=source x (clamped/scaled render_6d),
                                     [1]=target y (clamped/scaled gt_rgbd + pos)
    loss_ref  : (1, 1)    f32 SMEM   mean(grad[:, :6]**2)  (== torch.mean(disp**2))
    grad_t_ref: (8, N)    f32 VMEM   lane-dense transposed gradient (rgbd already /w)
    f_ref/x2_ref : (N, 1) VMEM scratch;  g_ref/y2t_ref : (1, N) VMEM scratch.
    """
    f32 = jnp.float32
    T = tile
    R = n_tiles
    log_w = f32(-math.log(n))          # log(1/N), uniform weights a = b = 1/N
    eps_final = f32(blur * blur)       # geomloss: eps = blur ** p with p = 2

    if bf16_exp:
        # v6e / v7x: EUP has a ~2x bf16 path; post-shift args are <= 0, bf16 is benign.
        def _exp(v):
            return jnp.exp(v.astype(jnp.bfloat16)).astype(f32)
    else:
        _exp = jnp.exp

    def _off(i):
        return pl.multiple_of(i * T, T)

    def _xxt(a, b):                    # a (Ta,8), b (Tb,8) -> a @ b.T  (Ta, Tb)
        return lax.dot_general(a, b, (((1,), (1,)), ((), ())),
                               preferred_element_type=f32)

    def _load_x(r):
        o = _off(r)
        return pts_ref[0, pl.ds(o, T), :], x2_ref[pl.ds(o, T), :]

    def _load_y(c):
        o = _off(c)
        return pts_ref[1, pl.ds(o, T), :], y2t_ref[:, pl.ds(o, T)]

    def _cost(x, x2, y, y2t):          # 0.5 * ||x_i - y_j||^2, one (T,T) tile
        return (x2 + y2t) - _xxt(x, y)

    ones8 = jnp.ones((1, 8), f32)

    # ---- init: zero potentials, precompute 0.5*||.||^2 per tile -------------
    def _init(i, carry):
        o = _off(i)
        x = pts_ref[0, pl.ds(o, T), :]
        y = pts_ref[1, pl.ds(o, T), :]
        x2_ref[pl.ds(o, T), :] = 0.5 * jnp.sum(x * x, axis=-1, keepdims=True)
        # (1,T) row of 0.5*||y_j||^2 via a tiny MXU dot (avoids an XLU transpose)
        y2t_ref[:, pl.ds(o, T)] = 0.5 * _xxt(ones8, y * y)
        f_ref[pl.ds(o, T), :] = jnp.zeros((T, 1), f32)
        g_ref[:, pl.ds(o, T)] = jnp.zeros((1, T), f32)
        return carry

    lax.fori_loop(0, R, _init, 0)

    # ---- log-domain Sinkhorn with eps-annealing (streaming/online LSE) ------
    def _sink_iter(t, carry):
        eps = jnp.maximum(f32(eps0) * jnp.exp2(-t.astype(f32)), eps_final)
        inv_eps = 1.0 / eps            # one scalar divide per iteration
        neg_eps = -eps

        # g_j <- -eps*(LSE_i[(f_i - C_ij)/eps] + log 1/N): stream over row tiles
        def _g_tile(c, cc):
            y, y2t = _load_y(c)

            def _rows(r, ms):
                m, s = ms
                x, x2 = _load_x(r)
                a = (f_ref[pl.ds(_off(r), T), :] - _cost(x, x2, y, y2t)) * inv_eps
                bm = jnp.max(a, axis=0, keepdims=True)            # (1, T)
                nm = jnp.maximum(m, bm)
                s = s * _exp(m - nm) + jnp.sum(_exp(a - nm), axis=0, keepdims=True)
                return nm, s

            m, s = lax.fori_loop(0, R, _rows,
                                 (jnp.full((1, T), -jnp.inf, f32),
                                  jnp.zeros((1, T), f32)))
            g_ref[:, pl.ds(_off(c), T)] = neg_eps * (m + jnp.log(s) + log_w)
            return cc

        lax.fori_loop(0, R, _g_tile, 0)

        # f_i <- -eps*(LSE_j[(g_j - C_ij)/eps] + log 1/N): stream over col tiles
        def _f_tile(r, cc):
            x, x2 = _load_x(r)

            def _cols(c, ms):
                m, s = ms
                y, y2t = _load_y(c)
                a = (g_ref[:, pl.ds(_off(c), T)] - _cost(x, x2, y, y2t)) * inv_eps
                bm = jnp.max(a, axis=1, keepdims=True)            # (T, 1)
                nm = jnp.maximum(m, bm)
                s = s * _exp(m - nm) + jnp.sum(_exp(a - nm), axis=1, keepdims=True)
                return nm, s

            m, s = lax.fori_loop(0, R, _cols,
                                 (jnp.full((T, 1), -jnp.inf, f32),
                                  jnp.zeros((T, 1), f32)))
            f_ref[pl.ds(_off(r), T), :] = neg_eps * (m + jnp.log(s) + log_w)
            return cc

        lax.fori_loop(0, R, _f_tile, 0)
        return carry

    lax.fori_loop(0, n_iters, _sink_iter, 0)

    # ---- transport-plan gradient, streamed over column tiles ----------------
    inv_eps_f = 1.0 / eps_final
    ch = lax.broadcasted_iota(jnp.int32, (1, 8), 1)
    inv_scale = jnp.where(ch < 4, f32(1.0 / match_weight), f32(1.0))   # g[..,:4] /= w
    eye8 = (lax.broadcasted_iota(jnp.int32, (8, 8), 0)
            == lax.broadcasted_iota(jnp.int32, (8, 8), 1)).astype(f32)

    def _grad_tile(r, loss_acc):
        x, x2 = _load_x(r)
        f_t = f_ref[pl.ds(_off(r), T), :]

        def _cols(c, carry):
            rs, py = carry
            y, y2t = _load_y(c)
            g_t = g_ref[:, pl.ds(_off(c), T)]
            # log(N * pi_ij); <= 0 at the optimum, clamp so exp never overflows
            logit = jnp.minimum(
                (f_t + g_t - _cost(x, x2, y, y2t)) * inv_eps_f + log_w, f32(0.0))
            piN = _exp(logit)                                        # (T, T)
            rs = rs + jnp.sum(piN, axis=1, keepdims=True)            # (T, 1)
            py = py + jnp.dot(piN, y, preferred_element_type=f32)    # (T, 8)
            return rs, py

        rs, py = lax.fori_loop(0, R, _cols,
                               (jnp.zeros((T, 1), f32), jnp.zeros((T, 8), f32)))
        # d(N*OT)/dx_i = sum_j N*pi_ij (x_i - y_j); the *N is pointloss*resolution^2
        grad = (rs * x - py) * inv_scale                             # (T, 8)
        # lane-dense (8, T) store; transpose done on the MXU via identity matmul
        grad_t_ref[:, pl.ds(_off(r), T)] = lax.dot_general(
            eye8, grad, (((1,), (1,)), ((), ())), preferred_element_type=f32)
        # pad channels 6,7 are exactly zero, so summing 8 channels == summing the 6 valid
        return loss_acc + jnp.sum(grad * grad)

    loss_sum = lax.fori_loop(0, R, _grad_tile, f32(0.0))
    loss_ref[0, 0] = loss_sum / f32(n * 6)       # torch.mean(disp ** 2) over (1,H,W,6)


def _pick_tile(n):
    for t in (512, 256, 128):
        if n >= t and n % t == 0:
            return t
    return n


def point_loss_6d_forward(images, pos, msk, render_depth, gt_rgb, gt_depth, *,
                          resolution, match_weight=1.0, blur=0.01):
    """JAX/Pallas equivalent of PointLossFunction6D loss given renderer/depth outputs.

    images:       (1, H, W, 3)  render_res['images']
    pos:          (1, H, W, 2)  render_res['pos'] in [-1, 1]
    msk:          (1, H, W, 1)  render_res['msk'] (bool)
    render_depth: (1, H, W, 1)  get_depth_map(render_rgb)   [external DPT model]
    gt_rgb:       (1, H, W, 3)  ground-truth rgb for this view
    gt_depth:     (1, H, W, 1)  get_depth_map(gt_rgb)       [external DPT model]
    Returns (loss_scalar, match_point_6d of shape (1, H, W, 6)).
    """
    f32 = jnp.float32
    H = W = resolution
    N = H * W
    w = float(match_weight)

    # self.pos : torch.meshgrid(x, y) 'ij', cat([pos[1], pos[0]])
    lin = jnp.linspace(0.0, 1.0, resolution, dtype=f32)
    gx, gy = jnp.meshgrid(lin, lin, indexing="ij")
    mesh = jnp.stack([gy, gx], axis=-1).reshape(N, 2)

    rgb = images[0, ..., :3].reshape(N, 3).astype(f32)
    dep = render_depth[0].reshape(N, 1).astype(f32)
    p = pos[0].reshape(N, 2).astype(f32)
    m = msk[0].reshape(N, 1).astype(f32)
    rpos = jnp.where(m > 0.5, (p + 1.0) * 0.5, mesh)        # render_pos[~haspos] = self.pos

    render_6d = jnp.concatenate([rgb, dep, rpos], axis=-1)  # (N, 6): rgb, depth, pos
    gt_rgbd = jnp.concatenate(
        [gt_rgb[0, ..., :3].reshape(N, 3).astype(f32),
         gt_depth[0].reshape(N, 1).astype(f32)], axis=-1)   # (N, 4)

    # Source/target point clouds: rgbd channels weighted by match_weight, padded to
    # 8 lanes, packed into a single lane-contiguous slab (one dense input DMA).
    scale = jnp.concatenate([jnp.full((1, 4), w, f32), jnp.ones((1, 2), f32)], axis=-1)
    x6 = jnp.clip(render_6d, 0.0, 1.0) * scale
    y6 = jnp.concatenate([jnp.clip(gt_rgbd, 0.0, 1.0) * w, rpos], axis=-1)
    pad = jnp.zeros((N, 2), f32)
    pts = jnp.stack([jnp.concatenate([x6, pad], axis=-1),
                     jnp.concatenate([y6, pad], axis=-1)], axis=0)      # (2, N, 8)

    tile = _pick_tile(N)

    kind = jax.devices()[0].device_kind.lower()
    is_v7 = "v7" in kind
    bf16_exp = ("v6" in kind) or is_v7        # v5e has no bf16 EUP path: keep f32 there
    if is_v7:
        vmem_limit = 48 << 20                 # leave headroom out of 64 MiB physical
    elif ("v6" in kind) or ("v5" in kind):
        vmem_limit = 100 << 20                # 128 MiB physical on v5e/v6e
    else:
        vmem_limit = 64 << 20

    kernel = functools.partial(
        _sinkhorn_match_kernel,
        n=N, tile=tile, n_tiles=N // tile,
        match_weight=w, blur=float(blur),
        n_iters=18,       # eps0 * 0.5^t reaches blur^2 at t ~ 15.3; a few iters at floor
        eps0=4.0,         # > max pairwise half-squared distance for 6-D points in [0,1]
        bf16_exp=bf16_exp)

    vmem = pl.BlockSpec(memory_space=pltpu.MemorySpace.VMEM)
    smem = pl.BlockSpec(memory_space=pltpu.MemorySpace.SMEM)
    loss, grad_t = pl.pallas_call(
        kernel,
        out_shape=(jax.ShapeDtypeStruct((1, 1), f32),        # scalar loss (SMEM)
                   jax.ShapeDtypeStruct((8, N), f32)),        # lane-dense grad^T
        in_specs=[vmem],
        out_specs=(smem, vmem),
        scratch_shapes=[pltpu.VMEM((N, 1), f32),              # f potential
                        pltpu.VMEM((1, N), f32),              # g potential
                        pltpu.VMEM((N, 1), f32),              # 0.5*||x_i||^2
                        pltpu.VMEM((1, N), f32)],             # 0.5*||y_j||^2
        compiler_params=pltpu.CompilerParams(vmem_limit_bytes=vmem_limit),
    )(pts)

    grad6 = jnp.transpose(grad_t[:6, :])                      # (N, 6)
    match_point_6d = (render_6d - grad6).reshape(1, H, W, 6)  # match_Sinkhorn output
    return loss[0, 0], match_point_6d


if __name__ == "__main__":
    # TODO(synk): renderer.render(...) and the DPT depth model (get_depth_map) are
    # external components; their outputs are synthesized deterministically here and
    # fed to the kernel as inputs.
    resolution = 16
    H = W = resolution

    key = jax.random.PRNGKey(0)
    k1, k2, k3, k4, k5, k6 = jax.random.split(key, 6)
    images = jax.random.uniform(k1, (1, H, W, 3), jnp.float32)                           # rendered rgb
    rpos = jax.random.uniform(k2, (1, H, W, 2), jnp.float32, minval=-1.0, maxval=1.0)    # rendered pos
    msk = jax.random.uniform(k3, (1, H, W, 1), jnp.float32) > 0.3                        # haspos mask
    render_depth = jax.random.uniform(k4, (1, H, W, 1), jnp.float32)                     # DPT(render)
    gt_rgb = jax.random.uniform(k5, (1, H, W, 3), jnp.float32)                           # ground truth
    gt_depth = jax.random.uniform(k6, (1, H, W, 1), jnp.float32)                         # DPT(gt)

    loss, match_point_6d = point_loss_6d_forward(
        images, rpos, msk, render_depth, gt_rgb, gt_depth,
        resolution=resolution, match_weight=1.0, blur=0.01)
    jax.block_until_ready((loss, match_point_6d))
    assert match_point_6d.shape == (1, H, W, 6)
    assert loss.shape == ()
    assert bool(jnp.isfinite(loss))
    print("KERNEL_OK")
</pallas_src>

<mosaic_0001>
module attributes {stable_mosaic.version = 11 : i64} {
  func.func @_sinkhorn_match_kernel(%arg0: memref<2x256x8xf32, #tpu.memory_space<vmem>>, %arg1: memref<1x1xf32, #tpu.memory_space<smem>>, %arg2: memref<8x256xf32, #tpu.memory_space<vmem>>, %arg3: memref<256x1xf32, #tpu.memory_space<vmem>>, %arg4: memref<1x256xf32, #tpu.memory_space<vmem>>, %arg5: memref<256x1xf32, #tpu.memory_space<vmem>>, %arg6: memref<1x256xf32, #tpu.memory_space<vmem>>) attributes {dimension_semantics = [], scalar_prefetch = 0 : i64, scratch_operands = 4 : i64, tpu.core_type = #tpu.core_type<tc>} {
    %cst = arith.constant 1.000000e+00 : f32
    %0 = vector.broadcast %cst : f32 to vector<1x8xf32>
    %c0_i32 = arith.constant 0 : i32
    %c256_i32 = arith.constant 256 : i32
    %1 = arith.muli %c0_i32, %c256_i32 : i32
    %2 = tpu.assume_multiple %1, 256 : i32
    %c0 = arith.constant 0 : index
    %3 = arith.index_cast %2 : i32 to index
    %c0_0 = arith.constant 0 : index
    %4 = vector.load %arg0[%c0, %3, %c0_0] : memref<2x256x8xf32, #tpu.memory_space<vmem>>, vector<1x256x8xf32>
    %5 = vector.shape_cast %4 : vector<1x256x8xf32> to vector<256x8xf32>
    %c1 = arith.constant 1 : index
    %6 = arith.index_cast %2 : i32 to index
    %c0_1 = arith.constant 0 : index
    %7 = vector.load %arg0[%c1, %6, %c0_1] : memref<2x256x8xf32, #tpu.memory_space<vmem>>, vector<1x256x8xf32>
    %8 = vector.shape_cast %7 : vector<1x256x8xf32> to vector<256x8xf32>
    %9 = arith.mulf %5, %5 : vector<256x8xf32>
    %cst_2 = arith.constant dense<0.000000e+00> : vector<256xf32>
    %10 = vector.multi_reduction <add>, %9, %cst_2 [1] : vector<256x8xf32> to vector<256xf32>
    %11 = vector.shape_cast %10 : vector<256xf32> to vector<256x1xf32>
    %cst_3 = arith.constant 5.000000e-01 : f32
    %12 = vector.broadcast %cst_3 : f32 to vector<256x1xf32>
    %13 = arith.mulf %12, %11 : vector<256x1xf32>
    %14 = arith.index_cast %2 : i32 to index
    %c0_4 = arith.constant 0 : index
    %15 = vector.load %arg5[%14, %c0_4] : memref<256x1xf32, #tpu.memory_space<vmem>>, vector<256x1xf32>
    tpu.vector_store %arg5[%14, %c0_4], %13 {strides = array<i32>} : memref<256x1xf32, #tpu.memory_space<vmem>>, vector<256x1xf32>,
    %16 = arith.mulf %8, %8 : vector<256x8xf32>
    %cst_5 = arith.constant dense<0.000000e+00> : vector<1x256xf32>
    %17 = tpu.matmul %0, %16, %cst_5 {dimension_numbers = #tpu.dot_dimension_numbers<[1], [1], [0], [0], [0, 0, 1, 0], [], []>} : vector<1x8xf32>, vector<256x8xf32>, vector<1x256xf32> -> vector<1x256xf32>
    %cst_6 = arith.constant 5.000000e-01 : f32
    %18 = vector.broadcast %cst_6 : f32 to vector<1x256xf32>
    %19 = arith.mulf %18, %17 : vector<1x256xf32>
    %c0_7 = arith.constant 0 : index
    %20 = arith.index_cast %2 : i32 to index
    %21 = vector.load %arg6[%c0_7, %20] : memref<1x256xf32, #tpu.memory_space<vmem>>, vector<1x256xf32>
    tpu.vector_store %arg6[%c0_7, %20], %19 {strides = array<i32>} : memref<1x256xf32, #tpu.memory_space<vmem>>, vector<1x256xf32>,
    %cst_8 = arith.constant 0.000000e+00 : f32
    %22 = vector.broadcast %cst_8 : f32 to vector<256x1xf32>
    %23 = arith.index_cast %2 : i32 to index
    %c0_9 = arith.constant 0 : index
    %24 = vector.load %arg3[%23, %c0_9] : memref<256x1xf32, #tpu.memory_space<vmem>>, vector<256x1xf32>
    tpu.vector_store %arg3[%23, %c0_9], %22 {strides = array<i32>} : memref<256x1xf32, #tpu.memory_space<vmem>>, vector<256x1xf32>,
    %cst_10 = arith.constant 0.000000e+00 : f32
    %25 = vector.broadcast %cst_10 : f32 to vector<1x256xf32>
    %c0_11 = arith.constant 0 : index
    %26 = arith.index_cast %2 : i32 to index
    %27 = vector.load %arg4[%c0_11, %26] : memref<1x256xf32, #tpu.memory_space<vmem>>, vector<1x256xf32>
    tpu.vector_store %arg4[%c0_11, %26], %25 {strides = array<i32>} : memref<1x256xf32, #tpu.memory_space<vmem>>, vector<1x256xf32>,
    %c1_i32 = arith.constant 1 : i32
    %cst_12 = arith.constant 9.99999974E-5 : f32
    %cst_13 = arith.constant -5.54517746 : f32
    %c0_i32_14 = arith.constant 0 : i32
    %c18_i32 = arith.constant 18 : i32
    %28 = arith.addi %c0_i32_14, %c18_i32 : i32
    %c1_i32_15 = arith.constant 1 : i32
    scf.for %arg7 = %c0_i32_14 to %28 step %c1_i32_15  : i32 {
      %104 = arith.sitofp %arg7 : i32 to f32
      %cst_52 = arith.constant 0.000000e+00 : f32
      %105 = arith.subf %cst_52, %104 : f32
      %106 = math.exp2 %105 : f32
      %cst_53 = arith.constant 4.000000e+00 : f32
      %107 = arith.mulf %cst_53, %106 : f32
      %108 = arith.maximumf %107, %cst_12 : f32
      %cst_54 = arith.constant 1.000000e+00 : f32
      %109 = arith.divf %cst_54, %108 : f32
      %cst_55 = arith.constant 0.000000e+00 : f32
      %110 = arith.subf %cst_55, %108 : f32
      %c0_i32_56 = arith.constant 0 : i32
      %c256_i32_57 = arith.constant 256 : i32
      %111 = arith.muli %c0_i32_56, %c256_i32_57 : i32
      %112 = tpu.assume_multiple %111, 256 : i32
      %c1_58 = arith.constant 1 : index
      %113 = arith.index_cast %112 : i32 to index
      %c0_59 = arith.constant 0 : index
      %114 = vector.load %arg0[%c1_58, %113, %c0_59] : memref<2x256x8xf32, #tpu.memory_space<vmem>>, vector<1x256x8xf32>
      %115 = vector.shape_cast %114 : vector<1x256x8xf32> to vector<256x8xf32>
      %c0_60 = arith.constant 0 : index
      %116 = arith.index_cast %112 : i32 to index
      %117 = vector.load %arg6[%c0_60, %116] : memref<1x256xf32, #tpu.memory_space<vmem>>, vector<1x256xf32>
      %cst_61 = arith.constant 0xFF800000 : f32
      %118 = vector.broadcast %cst_61 : f32 to vector<1x256xf32>
      %cst_62 = arith.constant 0.000000e+00 : f32
      %119 = vector.broadcast %cst_62 : f32 to vector<1x256xf32>
      %c0_i32_63 = arith.constant 0 : i32
      %c256_i32_64 = arith.constant 256 : i32
      %120 = arith.muli %c0_i32_63, %c256_i32_64 : i32
      %121 = tpu.assume_multiple %120, 256 : i32
      %c0_65 = arith.constant 0 : index
      %122 = arith.index_cast %121 : i32 to index
      %c0_66 = arith.constant 0 : index
      %123 = vector.load %arg0[%c0_65, %122, %c0_66] : memref<2x256x8xf32, #tpu.memory_space<vmem>>, vector<1x256x8xf32>
      %124 = vector.shape_cast %123 : vector<1x256x8xf32> to vector<256x8xf32>
      %125 = arith.index_cast %121 : i32 to index
      %c0_67 = arith.constant 0 : index
      %126 = vector.load %arg5[%125, %c0_67] : memref<256x1xf32, #tpu.memory_space<vmem>>, vector<256x1xf32>
      %c256_i32_68 = arith.constant 256 : i32
      %127 = arith.muli %c0_i32_63, %c256_i32_68 : i32
      %128 = tpu.assume_multiple %127, 256 : i32
      %129 = arith.index_cast %128 : i32 to index
      %c0_69 = arith.constant 0 : index
      %130 = vector.load %arg3[%129, %c0_69] : memref<256x1xf32, #tpu.memory_space<vmem>>, vector<256x1xf32>
      %131 = vector.broadcast %126 : vector<256x1xf32> to vector<256x256xf32>
      %132 = vector.broadcast %117 : vector<1x256xf32> to vector<256x256xf32>
      %133 = arith.addf %131, %132 : vector<256x256xf32>
      %cst_70 = arith.constant dense<0.000000e+00> : vector<256x256xf32>
      %134 = tpu.matmul %124, %115, %cst_70 {dimension_numbers = #tpu.dot_dimension_numbers<[1], [1], [0], [0], [0, 0, 1, 0], [], []>} : vector<256x8xf32>, vector<256x8xf32>, vector<256x256xf32> -> vector<256x256xf32>
      %135 = arith.subf %133, %134 : vector<256x256xf32>
      %136 = vector.broadcast %130 : vector<256x1xf32> to vector<256x256xf32>
      %137 = arith.subf %136, %135 : vector<256x256xf32>
      %138 = vector.broadcast %109 : f32 to vector<256x256xf32>
      %139 = arith.mulf %137, %138 : vector<256x256xf32>
      %cst_71 = arith.constant dense<0xFF800000> : vector<256xf32>
      %140 = vector.multi_reduction <maximumf>, %139, %cst_71 [0] : vector<256x256xf32> to vector<256xf32>
      %141 = vector.shape_cast %140 : vector<256xf32> to vector<1x256xf32>
      %142 = arith.maximumf %118, %141 : vector<1x256xf32>
      %143 = arith.subf %118, %142 : vector<1x256xf32>
      %144 = math.exp %143 : vector<1x256xf32>
      %145 = arith.mulf %119, %144 : vector<1x256xf32>
      %146 = vector.broadcast %142 : vector<1x256xf32> to vector<256x256xf32>
      %147 = arith.subf %139, %146 : vector<256x256xf32>
      %148 = math.exp %147 : vector<256x256xf32>
      %cst_72 = arith.constant dense<0.000000e+00> : vector<256xf32>
      %149 = vector.multi_reduction <add>, %148, %cst_72 [0] : vector<256x256xf32> to vector<256xf32>
      %150 = vector.shape_cast %149 : vector<256xf32> to vector<1x256xf32>
      %151 = arith.addf %145, %150 : vector<1x256xf32>
      %c1_i32_73 = arith.constant 1 : i32
      %152 = math.log %151 : vector<1x256xf32>
      %153 = arith.addf %142, %152 : vector<1x256xf32>
      %154 = vector.broadcast %cst_13 : f32 to vector<1x256xf32>
      %155 = arith.addf %153, %154 : vector<1x256xf32>
      %156 = vector.broadcast %110 : f32 to vector<1x256xf32>
      %157 = arith.mulf %156, %155 : vector<1x256xf32>
      %c256_i32_74 = arith.constant 256 : i32
      %158 = arith.muli %c0_i32_56, %c256_i32_74 : i32
      %159 = tpu.assume_multiple %158, 256 : i32
      %c0_75 = arith.constant 0 : index
      %160 = arith.index_cast %159 : i32 to index
      %161 = vector.load %arg4[%c0_75, %160] : memref<1x256xf32, #tpu.memory_space<vmem>>, vector<1x256xf32>
      tpu.vector_store %arg4[%c0_75, %160], %157 {strides = array<i32>} : memref<1x256xf32, #tpu.memory_space<vmem>>, vector<1x256xf32>,
      %c1_i32_76 = arith.constant 1 : i32
      %c0_i32_77 = arith.constant 0 : i32
      %c256_i32_78 = arith.constant 256 : i32
      %162 = arith.muli %c0_i32_77, %c256_i32_78 : i32
      %163 = tpu.assume_multiple %162, 256 : i32
      %c0_79 = arith.constant 0 : index
      %164 = arith.index_cast %163 : i32 to index
      %c0_80 = arith.constant 0 : index
      %165 = vector.load %arg0[%c0_79, %164, %c0_80] : memref<2x256x8xf32, #tpu.memory_space<vmem>>, vector<1x256x8xf32>
      %166 = vector.shape_cast %165 : vector<1x256x8xf32> to vector<256x8xf32>
      %167 = arith.index_cast %163 : i32 to index
      %c0_81 = arith.constant 0 : index
      %168 = vector.load %arg5[%167, %c0_81] : memref<256x1xf32, #tpu.memory_space<vmem>>, vector<256x1xf32>
      %cst_82 = arith.constant 0xFF800000 : f32
      %169 = vector.broadcast %cst_82 : f32 to vector<256x1xf32>
      %cst_83 = arith.constant 0.000000e+00 : f32
      %170 = vector.broadcast %cst_83 : f32 to vector<256x1xf32>
      %c0_i32_84 = arith.constant 0 : i32
      %c256_i32_85 = arith.constant 256 : i32
      %171 = arith.muli %c0_i32_84, %c256_i32_85 : i32
      %172 = tpu.assume_multiple %171, 256 : i32
      %c1_86 = arith.constant 1 : index
      %173 = arith.index_cast %172 : i32 to index
      %c0_87 = arith.constant 0 : index
      %174 = vector.load %arg0[%c1_86, %173, %c0_87] : memref<2x256x8xf32, #tpu.memory_space<vmem>>, vector<1x256x8xf32>
      %175 = vector.shape_cast %174 : vector<1x256x8xf32> to vector<256x8xf32>
      %c0_88 = arith.constant 0 : index
      %176 = arith.index_cast %172 : i32 to index
      %177 = vector.load %arg6[%c0_88, %176] : memref<1x256xf32, #tpu.memory_space<vmem>>, vector<1x256xf32>
      %c256_i32_89 = arith.constant 256 : i32
      %178 = arith.muli %c0_i32_84, %c256_i32_89 : i32
      %179 = tpu.assume_multiple %178, 256 : i32
      %c0_90 = arith.constant 0 : index
      %180 = arith.index_cast %179 : i32 to index
      %181 = vector.load %arg4[%c0_90, %180] : memref<1x256xf32, #tpu.memory_space<vmem>>, vector<1x256xf32>
      %182 = vector.broadcast %168 : vector<256x1xf32> to vector<256x256xf32>
      %183 = vector.broadcast %177 : vector<1x256xf32> to vector<256x256xf32>
      %184 = arith.addf %182, %183 : vector<256x256xf32>
      %cst_91 = arith.constant dense<0.000000e+00> : vector<256x256xf32>
      %185 = tpu.matmul %166, %175, %cst_91 {dimension_numbers = #tpu.dot_dimension_numbers<[1], [1], [0], [0], [0, 0, 1, 0], [], []>} : vector<256x8xf32>, vector<256x8xf32>, vector<256x256xf32> -> vector<256x256xf32>
      %186 = arith.subf %184, %185 : vector<256x256xf32>
      %187 = vector.broadcast %181 : vector<1x256xf32> to vector<256x256xf32>
      %188 = arith.subf %187, %186 : vector<256x256xf32>
      %189 = vector.broadcast %109 : f32 to vector<256x256xf32>
      %190 = arith.mulf %188, %189 : vector<256x256xf32>
      %cst_92 = arith.constant dense<0xFF800000> : vector<256xf32>
      %191 = vector.multi_reduction <maximumf>, %190, %cst_92 [1] : vector<256x256xf32> to vector<256xf32>
      %192 = vector.shape_cast %191 : vector<256xf32> to vector<256x1xf32>
      %193 = arith.maximumf %169, %192 : vector<256x1xf32>
      %194 = arith.subf %169, %193 : vector<256x1xf32>
      %195 = math.exp %194 : vector<256x1xf32>
      %196 = arith.mulf %170, %195 : vector<256x1xf32>
      %197 = vector.broadcast %193 : vector<256x1xf32> to vector<256x256xf32>
      %198 = arith.subf %190, %197 : vector<256x256xf32>
      %199 = math.exp %198 : vector<256x256xf32>
      %cst_93 = arith.constant dense<0.000000e+00> : vector<256xf32>
      %200 = vector.multi_reduction <add>, %199, %cst_93 [1] : vector<256x256xf32> to vector<256xf32>
      %201 = vector.shape_cast %200 : vector<256xf32> to vector<256x1xf32>
      %202 = arith.addf %196, %201 : vector<256x1xf32>
      %c1_i32_94 = arith.constant 1 : i32
      %203 = math.log %202 : vector<256x1xf32>
      %204 = arith.addf %193, %203 : vector<256x1xf32>
      %205 = vector.broadcast %cst_13 : f32 to vector<256x1xf32>
      %206 = arith.addf %204, %205 : vector<256x1xf32>
      %207 = vector.broadcast %110 : f32 to vector<256x1xf32>
      %208 = arith.mulf %207, %206 : vector<256x1xf32>
      %c256_i32_95 = arith.constant 256 : i32
      %209 = arith.muli %c0_i32_77, %c256_i32_95 : i32
      %210 = tpu.assume_multiple %209, 256 : i32
      %211 = arith.index_cast %210 : i32 to index
      %c0_96 = arith.constant 0 : index
      %212 = vector.load %arg3[%211, %c0_96] : memref<256x1xf32, #tpu.memory_space<vmem>>, vector<256x1xf32>
      tpu.vector_store %arg3[%211, %c0_96], %208 {strides = array<i32>} : memref<256x1xf32, #tpu.memory_space<vmem>>, vector<256x1xf32>,
      %c1_i32_97 = arith.constant 1 : i32
    }
    %c18_i32_16 = arith.constant 18 : i32
    %cst_17 = arith.constant 1.000000e+00 : f32
    %cst_18 = arith.constant 9.99999974E-5 : f32
    %29 = arith.divf %cst_17, %cst_18 : f32
    %30 = tpu.iota {dimensions = array<i32: 1>} : vector<1x8xi32>
    %c4_i32 = arith.constant 4 : i32
    %31 = vector.broadcast %c4_i32 : i32 to vector<1x8xi32>
    %32 = arith.cmpi slt, %30, %31 : vector<1x8xi32>
    %cst_19 = arith.constant 1.000000e+00 : f32
    %cst_20 = arith.constant 1.000000e+00 : f32
    %33 = vector.broadcast %cst_19 : f32 to vector<1x8xf32>
    %34 = vector.broadcast %cst_20 : f32 to vector<1x8xf32>
    %35 = arith.select %32, %33, %34 : vector<1x8xi1>, vector<1x8xf32>
    %36 = tpu.iota {dimensions = array<i32: 0>} : vector<8x8xi32>
    %37 = tpu.iota {dimensions = array<i32: 1>} : vector<8x8xi32>
    %38 = arith.cmpi eq, %36, %37 : vector<8x8xi32>
    %39 = arith.extui %38 : vector<8x8xi1> to vector<8x8xi32>
    %40 = arith.sitofp %39 : vector<8x8xi32> to vector<8x8xf32>
    %cst_21 = arith.constant -5.54517746 : f32
    %cst_22 = arith.constant 0.000000e+00 : f32
    %c0_i32_23 = arith.constant 0 : i32
    %c256_i32_24 = arith.constant 256 : i32
    %41 = arith.muli %c0_i32_23, %c256_i32_24 : i32
    %42 = tpu.assume_multiple %41, 256 : i32
    %c0_25 = arith.constant 0 : index
    %43 = arith.index_cast %42 : i32 to index
    %c0_26 = arith.constant 0 : index
    %44 = vector.load %arg0[%c0_25, %43, %c0_26] : memref<2x256x8xf32, #tpu.memory_space<vmem>>, vector<1x256x8xf32>
    %45 = vector.shape_cast %44 : vector<1x256x8xf32> to vector<256x8xf32>
    %46 = arith.index_cast %42 : i32 to index
    %c0_27 = arith.constant 0 : index
    %47 = vector.load %arg5[%46, %c0_27] : memref<256x1xf32, #tpu.memory_space<vmem>>, vector<256x1xf32>
    %c256_i32_28 = arith.constant 256 : i32
    %48 = arith.muli %c0_i32_23, %c256_i32_28 : i32
    %49 = tpu.assume_multiple %48, 256 : i32
    %50 = arith.index_cast %49 : i32 to index
    %c0_29 = arith.constant 0 : index
    %51 = vector.load %arg3[%50, %c0_29] : memref<256x1xf32, #tpu.memory_space<vmem>>, vector<256x1xf32>
    %cst_30 = arith.constant 0.000000e+00 : f32
    %52 = vector.broadcast %cst_30 : f32 to vector<256x1xf32>
    %cst_31 = arith.constant 0.000000e+00 : f32
    %53 = vector.broadcast %cst_31 : f32 to vector<256x8xf32>
    %c0_i32_32 = arith.constant 0 : i32
    %c256_i32_33 = arith.constant 256 : i32
    %54 = arith.muli %c0_i32_32, %c256_i32_33 : i32
    %55 = tpu.assume_multiple %54, 256 : i32
    %c1_34 = arith.constant 1 : index
    %56 = arith.index_cast %55 : i32 to index
    %c0_35 = arith.constant 0 : index
    %57 = vector.load %arg0[%c1_34, %56, %c0_35] : memref<2x256x8xf32, #tpu.memory_space<vmem>>, vector<1x256x8xf32>
    %58 = vector.shape_cast %57 : vector<1x256x8xf32> to vector<256x8xf32>
    %c0_36 = arith.constant 0 : index
    %59 = arith.index_cast %55 : i32 to index
    %60 = vector.load %arg6[%c0_36, %59] : memref<1x256xf32, #tpu.memory_space<vmem>>, vector<1x256xf32>
    %c256_i32_37 = arith.constant 256 : i32
    %61 = arith.muli %c0_i32_32, %c256_i32_37 : i32
    %62 = tpu.assume_multiple %61, 256 : i32
    %c0_38 = arith.constant 0 : index
    %63 = arith.index_cast %62 : i32 to index
    %64 = vector.load %arg4[%c0_38, %63] : memref<1x256xf32, #tpu.memory_space<vmem>>, vector<1x256xf32>
    %65 = vector.broadcast %51 : vector<256x1xf32> to vector<256x256xf32>
    %66 = vector.broadcast %64 : vector<1x256xf32> to vector<256x256xf32>
    %67 = arith.addf %65, %66 : vector<256x256xf32>
    %68 = vector.broadcast %47 : vector<256x1xf32> to vector<256x256xf32>
    %69 = vector.broadcast %60 : vector<1x256xf32> to vector<256x256xf32>
    %70 = arith.addf %68, %69 : vector<256x256xf32>
    %cst_39 = arith.constant dense<0.000000e+00> : vector<256x256xf32>
    %71 = tpu.matmul %45, %58, %cst_39 {dimension_numbers = #tpu.dot_dimension_numbers<[1], [1], [0], [0], [0, 0, 1, 0], [], []>} : vector<256x8xf32>, vector<256x8xf32>, vector<256x256xf32> -> vector<256x256xf32>
    %72 = arith.subf %70, %71 : vector<256x256xf32>
    %73 = arith.subf %67, %72 : vector<256x256xf32>
    %74 = vector.broadcast %29 : f32 to vector<256x256xf32>
    %75 = arith.mulf %73, %74 : vector<256x256xf32>
    %76 = vector.broadcast %cst_21 : f32 to vector<256x256xf32>
    %77 = arith.addf %75, %76 : vector<256x256xf32>
    %cst_40 = arith.constant 0.000000e+00 : f32
    %78 = vector.broadcast %cst_40 : f32 to vector<256x256xf32>
    %79 = arith.minimumf %77, %78 : vector<256x256xf32>
    %80 = math.exp %79 : vector<256x256xf32>
    %cst_41 = arith.constant dense<0.000000e+00> : vector<256xf32>
    %81 = vector.multi_reduction <add>, %80, %cst_41 [1] : vector<256x256xf32> to vector<256xf32>
    %82 = vector.shape_cast %81 : vector<256xf32> to vector<256x1xf32>
    %83 = arith.addf %52, %82 : vector<256x1xf32>
    %cst_42 = arith.constant dense<0.000000e+00> : vector<256x8xf32>
    %84 = tpu.matmul %80, %58, %cst_42 {dimension_numbers = #tpu.dot_dimension_numbers<[1], [0], [0], [1], [0, 0, 1, 1], [], []>} : vector<256x256xf32>, vector<256x8xf32>, vector<256x8xf32> -> vector<256x8xf32>
    %85 = arith.addf %53, %84 : vector<256x8xf32>
    %c1_i32_43 = arith.constant 1 : i32
    %86 = vector.broadcast %83 : vector<256x1xf32> to vector<256x8xf32>
    %87 = arith.mulf %86, %45 : vector<256x8xf32>
    %88 = arith.subf %87, %85 : vector<256x8xf32>
    %89 = vector.broadcast %35 : vector<1x8xf32> to vector<256x8xf32>
    %90 = arith.mulf %88, %89 : vector<256x8xf32>
    %cst_44 = arith.constant dense<0.000000e+00> : vector<8x256xf32>
    %91 = tpu.matmul %40, %90, %cst_44 {dimension_numbers = #tpu.dot_dimension_numbers<[1], [1], [0], [0], [0, 0, 1, 0], [], []>} : vector<8x8xf32>, vector<256x8xf32>, vector<8x256xf32> -> vector<8x256xf32>
    %c256_i32_45 = arith.constant 256 : i32
    %92 = arith.muli %c0_i32_23, %c256_i32_45 : i32
    %93 = tpu.assume_multiple %92, 256 : i32
    %c0_46 = arith.constant 0 : index
    %94 = arith.index_cast %93 : i32 to index
    %95 = vector.load %arg2[%c0_46, %94] : memref<8x256xf32, #tpu.memory_space<vmem>>, vector<8x256xf32>
    tpu.vector_store %arg2[%c0_46, %94], %91 {strides = array<i32>} : memref<8x256xf32, #tpu.memory_space<vmem>>, vector<8x256xf32>,
    %96 = arith.mulf %90, %90 : vector<256x8xf32>
    %97 = vector.shape_cast %96 : vector<256x8xf32> to vector<1x256x8xf32>
    %cst_47 = arith.constant dense<0.000000e+00> : vector<1xf32>
    %98 = vector.multi_reduction <add>, %97, %cst_47 [1, 2] : vector<1x256x8xf32> to vector<1xf32>
    %99 = vector.shape_cast %98 : vector<1xf32> to vector<1x1x1xf32>
    %100 = vector.extract %99[0, 0, 0] : f32 from vector<1x1x1xf32>
    %101 = arith.addf %cst_22, %100 : f32
    %c1_i32_48 = arith.constant 1 : i32
    %cst_49 = arith.constant 1.536000e+03 : f32
    %102 = arith.divf %101, %cst_49 : f32
    %c0_50 = arith.constant 0 : index
    %c0_51 = arith.constant 0 : index
    %103 = memref.load %arg1[%c0_50, %c0_51] : memref<1x1xf32, #tpu.memory_space<smem>>
    memref.store %102, %arg1[%c0_50, %c0_51] : memref<1x1xf32, #tpu.memory_space<smem>>
    return
  }
}

</mosaic_0001>

<bundles_post_ra>
// kernel: tpu_custom_call.1
= control target key start
LH: loop header
LB: loop body
LE: loop exit
PB: predicated region body
PF: predicated region fallthrough
CT: control target
= control target key end

     0   :  { %8 = vsyncpa [#allocation7], 0  ;;  %s11252_s0 = inlined_call_operand.hbm [shape: f32[2,256,8], index: 0, kind: input, shape index: {}]   ;;  %s11253_s1 = inlined_call_operand.hbm [shape: f32[1,1], index: 1, kind: output, shape index: {0}]   ;;  %s11254_s2 = inlined_call_operand.hbm [shape: f32[8,256], index: 2, kind: output, shape index: {1}]  }
   0x1   :  { %9 = vsyncpa [#allocation9], 0 }
   0x2   :  { %10 = vsyncpa [#allocation8], 0  ;;  %s7624_s9 = smov [#allocation6]   ;;  %s7556_s13 = scalar_lea.hbm %s11252_s0, 8192 }
   0x3   :  { %s16_s10 = sshll.u32 %s7624_s9, 4  ;;  %p7557_p0 = scmp.ne.s32.totalorder %s11252_s0, %s7556_s13  ;;  %s17_s10 = int_to_ptr.vmem [resolvable:$true] %s16_s10 }
   0x4   :  { %p7560_p1 = scmp.lt.u32.totalorder %s7556_s13, %s11252_s0 }
   0x6   :  { %p7562_p2 = pnand %p7560_p1, %p7557_p0 }
   0x8   :  { %7565 = shalt.err (!%p7562_p2)
}
   0x9   :  { %s7566_s18 = scalar_lea.vmem %s17_s10, 8192  ;;  %p7571_p4 = scmp.lt.s32.totalorder %s17_s10, %s17_s10 }
   0xa   :  { %p7567_p3 = scmp.ne.s32.totalorder %s17_s10, %s7566_s18  ;;  %p7572_p5 = scmp.lt.s32.totalorder %s7566_s18, %s7566_s18 }
   0xc   :  { %p7573_p6 = por %p7572_p5, %p7571_p4 }
   0xe   :  { %p7574_p7 = pnand %p7573_p6, %p7567_p3 }
  0x10   :  { %7577 = shalt.err (!%p7574_p7)
}
  0x11   :  { %s7625_s19 = smov 128   ;;  %s7626_s20 = smov 8  }
  0x12   :  { %22 = dma.hbm_to_vmem [thread:$0]  %s11252_s0, 8192, %s17_s10, [#allocation7], %s7625_s19, %s7625_s19, %s7626_s20  }
  0x13   :  { %7614 = dma.done.wait [#allocation7], 8192  }
  0x14   :  { %7615 = vsyncadd [#allocation7], 4294959104  ;;  %vm124_vm0 = vcmask 64512   ;;  %v7627_v0 = vmov 1.0   ;;  %v76_v1 = vld [vmem:[#allocation6 + $0x180] sm:$0xff]  ;;  %v77_v2 = vld [vmem:[#allocation6 + $0x188] sm:$0xff] }
  0x15   :  { %6358 = vmatprep.mubr.msk.f32.mxu0 %vm124_vm0, %v7627_v0  ;;  %v60_v3 = vld [vmem:[#allocation6 + $0x100] sm:$0xff]  ;;  %v302_v4 = vmul.f32 %v76_v1, %v76_v1  ;;  %v303_v5 = vmul.f32 %v77_v2, %v77_v2  ;;  %v61_v6 = vld [vmem:[#allocation6 + $0x108] sm:$0xff]  ;;  %v78_v8 = vld [vmem:[#allocation6 + $0x190] sm:$0xff]  ;;  %v11349_v10 = vmov 0  ;;  %vm253_vm2 = vcmask 7168   ;;  %s7851_s0 = smov 0  }
  0x16   :  { %v286_v7 = vmul.f32 %v60_v3, %v60_v3  ;;  %v79_v9 = vld [vmem:[#allocation6 + $0x198] sm:$0xff]  ;;  %vm7667_vm1 = vmpackc.low %vm124_vm0, %vm124_vm0  ;;  %v287_v11 = vmul.f32 %v61_v6, %v61_v6  ;;  %v304_v12 = vmul.f32 %v78_v8, %v78_v8  ;;  %v62_v15 = vld [vmem:[#allocation6 + $0x110] sm:$0xff] }
  0x17   :  { %v11350_v10 = vsel %vm7667_vm1, 4294967295, %v11349_v10  ;;  %v305_v13 = vmul.f32 %v79_v9, %v79_v9  ;;  %v6682_v14 = vpack.c.bf16 %v303_v5, %v302_v4  ;;  %v63_v16 = vld [vmem:[#allocation6 + $0x118] sm:$0xff]  ;;  %v80_v19 = vld [vmem:[#allocation6 + $0x1a0] sm:$0xff]  ;;  %v81_v20 = vld [vmem:[#allocation6 + $0x1a8] sm:$0xff]  ;;  %v288_v21 = vmul.f32 %v62_v15, %v62_v15 }
  0x18   :  { %11351 = vst [vmem:[#allocation15_spill] sm:$0xff] %v11350_v10  ;;  %v6685_v17 = vpack.c.bf16 %v287_v11, %v286_v7  ;;  %v289_v22 = vmul.f32 %v63_v16, %v63_v16  ;;  %v306_v23 = vmul.f32 %v80_v19, %v80_v19  ;;  %v307_v24 = vmul.f32 %v81_v20, %v81_v20  ;;  %v64_v26 = vld [vmem:[#allocation6 + $0x120] sm:$0xff]  ;;  %v65_v27 = vld [vmem:[#allocation6 + $0x128] sm:$0xff]  ;;  %v28_v28 = vld [vmem:[#allocation6 + $0x10] sm:$0xff] }
  0x19   :  { %v6688_v18 = vpack.c.bf16 %v305_v13, %v304_v12  ;;  %6684 = vmatprep.subr.msk.bf16.mxu0 %vm7667_vm1, %v6682_v14  ;;  %v26_v30 = vld [vmem:[#allocation6] sm:$0xff]  ;;  %v29_v31 = vld [vmem:[#allocation6 + $0x18] sm:$0xff]  ;;  %v27_v32 = vld [vmem:[#allocation6 + $0x8] sm:$0xff]  ;;  %v94_v35 = vmul.f32 %v28_v28, %v28_v28  ;;  %v290_v39 = vmul.f32 %v64_v26, %v64_v26  ;;  %v291_v40 = vmul.f32 %v65_v27, %v65_v27 }
  0x1a   :  { %6687 = vmatpush3.bf16.xpose.msk.msra.mxu0 %vm7667_vm1, %v6685_v17  ;;  %v6691_v25 = vpack.c.bf16 %v289_v22, %v288_v21  ;;  %v6694_v29 = vpack.c.bf16 %v307_v24, %v306_v23  ;;  %v82_v33 = vld [vmem:[#allocation6 + $0x1b0] sm:$0xff]  ;;  %v83_v34 = vld [vmem:[#allocation6 + $0x1b8] sm:$0xff]  ;;  %v92_v36 = vmul.f32 %v26_v30, %v26_v30  ;;  %v95_v37 = vmul.f32 %v29_v31, %v29_v31  ;;  %v31_v38 = vld [vmem:[#allocation6 + $0x28] sm:$0xff] }
  0x1b   :  { %6690 = vmatprep.subr.msk.bf16.mxu0 %vm7667_vm1, %v6688_v18  ;;  %v131_v41 = vsel %vm124_vm0, %v94_v35, 0.0  ;;  %v93_v42 = vmul.f32 %v27_v32, %v27_v32  ;;  %v30_v43 = vld [vmem:[#allocation6 + $0x20] sm:$0xff]  ;;  %v308_v44 = vmul.f32 %v82_v33, %v82_v33  ;;  %v309_v45 = vmul.f32 %v83_v34, %v83_v34  ;;  %v33_v51 = vld [vmem:[#allocation6 + $0x38] sm:$0xff]  ;;  %v32_v53 = vld [vmem:[#allocation6 + $0x30] sm:$0xff] }
  0x1c   :  { %132 = vadd.xlane.f32.xlu1 %v131_v41  ;;  %v125_v46 = vsel %vm124_vm0, %v92_v36, 0.0  ;;  %v134_v47 = vsel %vm124_vm0, %v95_v37, 0.0  ;;  %v97_v48 = vmul.f32 %v31_v38, %v31_v38  ;;  %v96_v50 = vmul.f32 %v30_v43, %v30_v43  ;;  %v66_v55 = vld [vmem:[#allocation6 + $0x130] sm:$0xff]  ;;  %v67_v56 = vld [vmem:[#allocation6 + $0x138] sm:$0xff]  ;;  %v84_v57 = vld [vmem:[#allocation6 + $0x1c0] sm:$0xff] }
  0x1d   :  { %126 = vadd.xlane.f32.xlu0 %v125_v46  ;;  %v128_v49 = vsel %vm124_vm0, %v93_v42, 0.0  ;;  %v6697_v52 = vpack.c.bf16 %v291_v40, %v290_v39  ;;  %v6700_v54 = vpack.c.bf16 %v309_v45, %v308_v44  ;;  %v85_v58 = vld [vmem:[#allocation6 + $0x1c8] sm:$0xff]  ;;  %v99_v60 = vmul.f32 %v33_v51, %v33_v51  ;;  %v34_v3 = vld [vmem:[#allocation6 + $0x40] sm:$0xff]  ;;  %v37_v11 = vld [vmem:[#allocation6 + $0x58] sm:$0xff] }
  0x1e   :  { %v140_v59 = vsel %vm124_vm0, %v97_v48, 0.0  ;;  %v137_v61 = vsel %vm124_vm0, %v96_v50, 0.0  ;;  %v98_v62 = vmul.f32 %v32_v53, %v32_v53  ;;  %v35_v63 = vld [vmem:[#allocation6 + $0x48] sm:$0xff]  ;;  %v292_v1 = vmul.f32 %v66_v55, %v66_v55  ;;  %v36_v13 = vld [vmem:[#allocation6 + $0x50] sm:$0xff]  ;;  %v68_v15 = vld [vmem:[#allocation6 + $0x140] sm:$0xff] }
  0x1f   :  { %v293_v2 = vmul.f32 %v67_v56, %v67_v56  ;;  %v310_v4 = vmul.f32 %v84_v57, %v84_v57  ;;  %v311_v5 = vmul.f32 %v85_v58, %v85_v58  ;;  %v146_v6 = vsel %vm124_vm0, %v99_v60, 0.0  ;;  %v69_v16 = vld [vmem:[#allocation6 + $0x148] sm:$0xff]  ;;  %v86_v17 = vld [vmem:[#allocation6 + $0x1d0] sm:$0xff]  ;;  %v87_v18 = vld [vmem:[#allocation6 + $0x1d8] sm:$0xff] }
  0x20   :  { %135 = vadd.xlane.f32.xlu1 %v134_v47  ;;  %v101_v7 = vmul.f32 %v35_v63, %v35_v63  ;;  %v143_v8 = vsel %vm124_vm0, %v98_v62, 0.0  ;;  %v100_v9 = vmul.f32 %v34_v3, %v34_v3  ;;  %v103_v20 = vmul.f32 %v37_v11, %v37_v11  ;;  %v39_v23 = vld [vmem:[#allocation6 + $0x68] sm:$0xff]  ;;  %v38_v26 = vld [vmem:[#allocation6 + $0x60] sm:$0xff]  ;;  %v41_v33 = vld [vmem:[#allocation6 + $0x78] sm:$0xff] }
  0x21   :  { %129 = vadd.xlane.f32.xlu0 %v128_v49  ;;  %v6703_v12 = vpack.c.bf16 %v293_v2, %v292_v1  ;;  %v6706_v14 = vpack.c.bf16 %v311_v5, %v310_v4  ;;  %v102_v22 = vmul.f32 %v36_v13, %v36_v13  ;;  %v294_v24 = vmul.f32 %v68_v15, %v68_v15  ;;  %v40_v35 = vld [vmem:[#allocation6 + $0x70] sm:$0xff]  ;;  %v71_v38 = vld [vmem:[#allocation6 + $0x158] sm:$0xff]  ;;  %v88_v39 = vld [vmem:[#allocation6 + $0x1e0] sm:$0xff] }
  0x22   :  { %6693 = vmatpush3.bf16.xpose.msk.msra.mxu0 %vm7667_vm1, %v6691_v25  ;;  %v152_v19 = vsel %vm124_vm0, %v101_v7, 0.0  ;;  %v149_v21 = vsel %vm124_vm0, %v100_v9, 0.0  ;;  %v295_v25 = vmul.f32 %v69_v16, %v69_v16  ;;  %v312_v27 = vmul.f32 %v86_v17, %v86_v17  ;;  %v70_v37 = vld [vmem:[#allocation6 + $0x150] sm:$0xff]  ;;  %v89_v40 = vld [vmem:[#allocation6 + $0x1e8] sm:$0xff]  ;;  %v42_v48 = vld [vmem:[#allocation6 + $0x80] sm:$0xff] }
  0x23   :  { %6696 = vmatprep.subr.msk.bf16.mxu0 %vm7667_vm1, %v6694_v29  ;;  %v313_v28 = vmul.f32 %v87_v18, %v87_v18  ;;  %v158_v29 = vsel %vm124_vm0, %v103_v20, 0.0  ;;  %v105_v30 = vmul.f32 %v39_v23, %v39_v23  ;;  %v155_v31 = vsel %vm124_vm0, %v102_v22, 0.0  ;;  %v43_v45 = vld [vmem:[#allocation6 + $0x88] sm:$0xff]  ;;  %v45_v55 = vld [vmem:[#allocation6 + $0x98] sm:$0xff]  ;;  %v44_v57 = vld [vmem:[#allocation6 + $0x90] sm:$0xff] }
  0x24   :  { %141 = vadd.xlane.f32.xlu1 %v140_v59  ;;  %v104_v32 = vmul.f32 %v38_v26, %v38_v26  ;;  %v6709_v34 = vpack.c.bf16 %v295_v25, %v294_v24  ;;  %v107_v42 = vmul.f32 %v41_v33, %v41_v33  ;;  %v106_v44 = vmul.f32 %v40_v35, %v40_v35  ;;  %v72_v59 = vld [vmem:[#allocation6 + $0x160] sm:$0xff]  ;;  %v73_v60 = vld [vmem:[#allocation6 + $0x168] sm:$0xff]  ;;  %v91_v62 = vld [vmem:[#allocation6 + $0x1f8] sm:$0xff] }
  0x25   :  { %138 = vadd.xlane.f32.xlu0 %v137_v61  ;;  %v6712_v36 = vpack.c.bf16 %v313_v28, %v312_v27  ;;  %v164_v41 = vsel %vm124_vm0, %v105_v30, 0.0  ;;  %v296_v46 = vmul.f32 %v70_v37, %v70_v37  ;;  %v297_v47 = vmul.f32 %v71_v38, %v71_v38  ;;  %v90_v61 = vld [vmem:[#allocation6 + $0x1f0] sm:$0xff]  ;;  %v47_v4 = vld [vmem:[#allocation6 + $0xa8] sm:$0xff]  ;;  %v46_v7 = vld [vmem:[#allocation6 + $0xa0] sm:$0xff] }
  0x26   :  { %v161_v43 = vsel %vm124_vm0, %v104_v32, 0.0  ;;  %v314_v49 = vmul.f32 %v88_v39, %v88_v39  ;;  %v315_v50 = vmul.f32 %v89_v40, %v89_v40  ;;  %v170_v51 = vsel %vm124_vm0, %v107_v42, 0.0  ;;  %v49_v15 = vld [vmem:[#allocation6 + $0xb8] sm:$0xff]  ;;  %v48_v17 = vld [vmem:[#allocation6 + $0xb0] sm:$0xff]  ;;  %v51_v25 = vld [vmem:[#allocation6 + $0xc8] sm:$0xff] }
  0x27   :  { %v167_v53 = vsel %vm124_vm0, %v106_v44, 0.0  ;;  %v6715_v56 = vpack.c.bf16 %v297_v47, %v296_v46  ;;  %v111_v1 = vmul.f32 %v45_v55, %v45_v55  ;;  %v110_v3 = vmul.f32 %v44_v57, %v44_v57  ;;  %v75_v20 = vld [vmem:[#allocation6 + $0x178] sm:$0xff]  ;;  %v50_v28 = vld [vmem:[#allocation6 + $0xc0] sm:$0xff]  ;;  %v52_v35 = vld [vmem:[#allocation6 + $0xd0] sm:$0xff] }
  0x28   :  { %147 = vadd.xlane.f32.xlu1 %v146_v6  ;;  %v6718_v58 = vpack.c.bf16 %v315_v50, %v314_v49  ;;  %v298_v5 = vmul.f32 %v72_v59, %v72_v59  ;;  %v299_v6 = vmul.f32 %v73_v60, %v73_v60  ;;  %v317_v9 = vmul.f32 %v91_v62, %v91_v62  ;;  %v53_v33 = vld [vmem:[#allocation6 + $0xd8] sm:$0xff]  ;;  %v55_v40 = vld [vmem:[#allocation6 + $0xe8] sm:$0xff]  ;;  %v56_v47 = vld [vmem:[#allocation6 + $0xf0] sm:$0xff] }
  0x29   :  { %144 = vadd.xlane.f32.xlu0 %v143_v8  ;;  %v316_v8 = vmul.f32 %v90_v61, %v90_v61  ;;  %v182_v11 = vsel %vm124_vm0, %v111_v1, 0.0  ;;  %v179_v13 = vsel %vm124_vm0, %v110_v3, 0.0  ;;  %v115_v22 = vmul.f32 %v49_v15, %v49_v15  ;;  %v57_v46 = vld [vmem:[#allocation6 + $0xf8] sm:$0xff] }
  0x2a   :  { %6699 = vmatpush3.bf16.xpose.msk.msra.mxu0 %vm7667_vm1, %v6697_v52  ;;  %v109_v52 = vmul.f32 %v43_v45, %v43_v45  ;;  %v6721_v16 = vpack.c.bf16 %v299_v6, %v298_v5  ;;  %v114_v24 = vmul.f32 %v48_v17, %v48_v17  ;;  %v301_v27 = vmul.f32 %v75_v20, %v75_v20 }
  0x2b   :  { %6702 = vmatprep.subr.msk.bf16.mxu0 %vm7667_vm1, %v6700_v54  ;;  %v108_v54 = vmul.f32 %v42_v48, %v42_v48  ;;  %v6724_v18 = vpack.c.bf16 %v317_v9, %v316_v8  ;;  %v117_v30 = vmul.f32 %v51_v25, %v51_v25  ;;  %v116_v32 = vmul.f32 %v50_v28, %v50_v28 }
  0x2c   :  { %153 = vadd.xlane.f32.xlu1 %v152_v19  ;;  %v176_v63 = vsel %vm124_vm0, %v109_v52, 0.0  ;;  %v74_v19 = vld [vmem:[#allocation6 + $0x170] sm:$0xff]  ;;  %v119_v37 = vmul.f32 %v53_v33, %v53_v33  ;;  %v118_v39 = vmul.f32 %v52_v35, %v52_v35  ;;  %v123_v49 = vmul.f32 %v57_v46, %v57_v46 }
  0x2d   :  { %150 = vadd.xlane.f32.xlu0 %v149_v21  ;;  %v173_v2 = vsel %vm124_vm0, %v108_v54, 0.0  ;;  %v300_v26 = vmul.f32 %v74_v19, %v74_v19  ;;  %v197_v38 = vsel %vm124_vm0, %v116_v32, 0.0  ;;  %v11352_v59 = vmov 0 }
  0x2e   :  { %v206_v42 = vsel %vm124_vm0, %v119_v37, 0.0  ;;  %v203_v44 = vsel %vm124_vm0, %v118_v39, 0.0  ;;  %v218_v52 = vsel %vm124_vm0, %v123_v49, 0.0 }
  0x30   :  { %159 = vadd.xlane.f32.xlu1 %v158_v29  ;;  %v194_v29 = vsel %vm124_vm0, %v115_v22, 0.0 }
  0x31   :  { %156 = vadd.xlane.f32.xlu0 %v155_v31  ;;  %v191_v31 = vsel %vm124_vm0, %v114_v24, 0.0 }
  0x32   :  { %6705 = vmatpush3.bf16.xpose.msk.msra.mxu0 %vm7667_vm1, %v6703_v12  ;;  %v113_v12 = vmul.f32 %v47_v4, %v47_v4 }
  0x33   :  { %6708 = vmatprep.subr.msk.bf16.mxu0 %vm7667_vm1, %v6706_v14  ;;  %v112_v14 = vmul.f32 %v46_v7, %v46_v7 }
  0x34   :  { %165 = vadd.xlane.f32.xlu1 %v164_v41  ;;  %v188_v21 = vsel %vm124_vm0, %v113_v12, 0.0  ;;  %v54_v41 = vld [vmem:[#allocation6 + $0xe0] sm:$0xff] }
  0x35   :  { %162 = vadd.xlane.f32.xlu0 %v161_v43  ;;  %v185_v23 = vsel %vm124_vm0, %v112_v14, 0.0  ;;  %v121_v43 = vmul.f32 %v55_v40, %v55_v40  ;;  %v120_v45 = vmul.f32 %v54_v41, %v54_v41 }
  0x37   :  { %v212_v48 = vsel %vm124_vm0, %v121_v43, 0.0  ;;  %v209_v50 = vsel %vm124_vm0, %v120_v45, 0.0 }
  0x38   :  { %171 = vadd.xlane.f32.xlu1 %v170_v51  ;;  %v122_v51 = vmul.f32 %v56_v47, %v56_v47 }
  0x39   :  { %168 = vadd.xlane.f32.xlu0 %v167_v53 }
  0x3a   :  { %6711 = vmatpush3.bf16.xpose.msk.msra.mxu0 %vm7667_vm1, %v6709_v34  ;;  %v6727_v34 = vpack.c.bf16 %v301_v27, %v300_v26  ;;  %v215_v53 = vsel %vm124_vm0, %v122_v51, 0.0 }
  0x3b   :  { %6714 = vmatprep.subr.msk.bf16.mxu0 %vm7667_vm1, %v6712_v36  ;;  %v200_v36 = vsel %vm124_vm0, %v117_v30, 0.0 }
  0x3c   :  { %177 = vadd.xlane.f32.xlu1 %v176_v63  ;;  %v11255_v63 = vmov 0.0  }
  0x3d   :  { %174 = vadd.xlane.f32.xlu0 %v173_v2  ;;  %513 = vst.msk [vmem:[#allocation2] sm:$0xff] %vm253_vm2, %v11255_v63  ;;  %514 = vst.msk [vmem:[#allocation2 + $0x8] sm:$0xff] %vm253_vm2, %v11255_v63 }
  0x3e   :  { %515 = vst.msk [vmem:[#allocation2 + $0x10] sm:$0xff] %vm253_vm2, %v11255_v63  ;;  %516 = vst.msk [vmem:[#allocation2 + $0x18] sm:$0xff] %vm253_vm2, %v11255_v63 }
  0x3f   :  { %517 = vst.msk [vmem:[#allocation2 + $0x20] sm:$0xff] %vm253_vm2, %v11255_v63  ;;  %518 = vst.msk [vmem:[#allocation2 + $0x28] sm:$0xff] %vm253_vm2, %v11255_v63 }
  0x40   :  { %183 = vadd.xlane.f32.xlu1 %v182_v11  ;;  %519 = vst.msk [vmem:[#allocation2 + $0x30] sm:$0xff] %vm253_vm2, %v11255_v63  ;;  %520 = vst.msk [vmem:[#allocation2 + $0x38] sm:$0xff] %vm253_vm2, %v11255_v63 }
  0x41   :  { %180 = vadd.xlane.f32.xlu0 %v179_v13  ;;  %521 = vst.msk [vmem:[#allocation2 + $0x40] sm:$0xff] %vm253_vm2, %v11255_v63  ;;  %522 = vst.msk [vmem:[#allocation2 + $0x48] sm:$0xff] %vm253_vm2, %v11255_v63 }
  0x42   :  { %6717 = vmatpush3.bf16.xpose.msk.msra.mxu0 %vm7667_vm1, %v6715_v56  ;;  %523 = vst.msk [vmem:[#allocation2 + $0x50] sm:$0xff] %vm253_vm2, %v11255_v63  ;;  %524 = vst.msk [vmem:[#allocation2 + $0x58] sm:$0xff] %vm253_vm2, %v11255_v63 }
  0x43   :  { %6720 = vmatprep.subr.msk.bf16.mxu0 %vm7667_vm1, %v6718_v58  ;;  %v11256_v58 = vlaneseq  ;;  %525 = vst.msk [vmem:[#allocation2 + $0x60] sm:$0xff] %vm253_vm2, %v11255_v63  ;;  %526 = vst.msk [vmem:[#allocation2 + $0x68] sm:$0xff] %vm253_vm2, %v11255_v63 }
  0x44   :  { %189 = vadd.xlane.f32.xlu1 %v188_v21  ;;  %527 = vst.msk [vmem:[#allocation2 + $0x70] sm:$0xff] %vm253_vm2, %v11255_v63  ;;  %528 = vst.msk [vmem:[#allocation2 + $0x78] sm:$0xff] %vm253_vm2, %v11255_v63 }
  0x45   :  { %186 = vadd.xlane.f32.xlu0 %v185_v23  ;;  %vm7740_vm3 = vcmp.lt.s32.totalorder %v11256_v58, 256  ;;  %529 = vst.msk [vmem:[#allocation2 + $0x80] sm:$0xff] %vm253_vm2, %v11255_v63  ;;  %530 = vst.msk [vmem:[#allocation2 + $0x88] sm:$0xff] %vm253_vm2, %v11255_v63 }
  0x46   :  { %v11353_v59 = vsel %vm7740_vm3, 4294967295, %v11352_v59  ;;  %531 = vst.msk [vmem:[#allocation2 + $0x90] sm:$0xff] %vm253_vm2, %v11255_v63  ;;  %532 = vst.msk [vmem:[#allocation2 + $0x98] sm:$0xff] %vm253_vm2, %v11255_v63 }
  0x47   :  { %11354 = vst [vmem:[#allocation16_spill] sm:$0xff] %v11353_v59  ;;  %533 = vst.msk [vmem:[#allocation2 + $0xa0] sm:$0xff] %vm253_vm2, %v11255_v63 }
  0x48   :  { %195 = vadd.xlane.f32.xlu1 %v194_v29  ;;  %534 = vst.msk [vmem:[#allocation2 + $0xa8] sm:$0xff] %vm253_vm2, %v11255_v63  ;;  %535 = vst.msk [vmem:[#allocation2 + $0xb0] sm:$0xff] %vm253_vm2, %v11255_v63 }
  0x49   :  { %192 = vadd.xlane.f32.xlu0 %v191_v31  ;;  %536 = vst.msk [vmem:[#allocation2 + $0xb8] sm:$0xff] %vm253_vm2, %v11255_v63  ;;  %537 = vst.msk [vmem:[#allocation2 + $0xc0] sm:$0xff] %vm253_vm2, %v11255_v63 }
  0x4a   :  { %6723 = vmatpush3.bf16.xpose.msk.msra.mxu0 %vm7667_vm1, %v6721_v16  ;;  %538 = vst.msk [vmem:[#allocation2 + $0xc8] sm:$0xff] %vm253_vm2, %v11255_v63  ;;  %539 = vst.msk [vmem:[#allocation2 + $0xd0] sm:$0xff] %vm253_vm2, %v11255_v63 }
  0x4b   :  { %6726 = vmatprep.subr.msk.bf16.mxu0 %vm7667_vm1, %v6724_v18  ;;  %540 = vst.msk [vmem:[#allocation2 + $0xd8] sm:$0xff] %vm253_vm2, %v11255_v63  ;;  %541 = vst.msk [vmem:[#allocation2 + $0xe0] sm:$0xff] %vm253_vm2, %v11255_v63 }
  0x4c   :  { %201 = vadd.xlane.f32.xlu1 %v200_v36  ;;  %542 = vst.msk [vmem:[#allocation2 + $0xe8] sm:$0xff] %vm253_vm2, %v11255_v63  ;;  %543 = vst.msk [vmem:[#allocation2 + $0xf0] sm:$0xff] %vm253_vm2, %v11255_v63 }
  0x4d   :  { %198 = vadd.xlane.f32.xlu0 %v197_v38  ;;  %544 = vst.msk [vmem:[#allocation2 + $0xf8] sm:$0xff] %vm253_vm2, %v11255_v63 }
  0x4e   :  { %545 = vst.msk [vmem:[#allocation3] sm:$0x3] %vm7740_vm3, %v11255_v63 }
  0x50   :  { %207 = vadd.xlane.f32.xlu1 %v206_v42 }
  0x51   :  { %204 = vadd.xlane.f32.xlu0 %v203_v44 }
  0x52   :  { %6729 = vmatpush3.bf16.xpose.msk.msra.mxu0 %vm7667_vm1, %v6727_v34 }
  0x54   :  { %213 = vadd.xlane.f32.xlu1 %v212_v48 }
  0x55   :  { %210 = vadd.xlane.f32.xlu0 %v209_v50 }
  0x58   :  { %219 = vadd.xlane.f32.xlu1 %v218_v52 }
  0x59   :  { %6359 = vmatmul.mubr.msk.f32.vlgmr.msra.gmra.mrb[0].mxu0 %vm124_vm0, %v7627_v0  ;;  %216 = vadd.xlane.f32.xlu0 %v215_v53 }
  0xa9   :  { %v133_v54 = vpop.xlane.xlu1 %132 }
  0xaa   :  { %v223_v55 = vmul.f32 0.5, %v133_v54  ;;  %v127_v56 = vpop.xlane.xlu0 %126 }
  0xab   :  { %v221_v57 = vmul.f32 0.5, %v127_v56 }
  0xac   :  { %256 = vst.msk [vmem:[#allocation4 + $0x10] sm:$0xff] %vm253_vm2, %v223_v55 }
  0xad   :  { %254 = vst.msk [vmem:[#allocation4] sm:$0xff] %vm253_vm2, %v221_v57  ;;  %v136_v0 = vpop.xlane.xlu1 %135 }
  0xae   :  { %v224_v60 = vmul.f32 0.5, %v136_v0  ;;  %v130_v61 = vpop.xlane.xlu0 %129  ;;  %v7629_v0 = vmov 1966171168  }
  0xaf   :  { %v222_v62 = vmul.f32 0.5, %v130_v61 }
  0xb0   :  { %257 = vst.msk [vmem:[#allocation4 + $0x18] sm:$0xff] %vm253_vm2, %v224_v60  ;;  %v494_v60 = vunpack.c.l.s4 %v7629_v0 }
  0xb1   :  { %255 = vst.msk [vmem:[#allocation4 + $0x8] sm:$0xff] %vm253_vm2, %v222_v62  ;;  %v142_v1 = vpop.xlane.xlu1 %141  ;;  %v7842_v62 = vshrl.u32 %v11256_v58, 7 }
  0xb2   :  { %v226_v2 = vmul.f32 0.5, %v142_v1  ;;  %v139_v3 = vpop.xlane.xlu0 %138  ;;  %v495_v61 = vunpack.c.0.s8 %v494_v60 }
  0xb3   :  { %v225_v4 = vmul.f32 0.5, %v139_v3  ;;  %11355 = vst [vmem:[#allocation17_spill] sm:$0xff] %v7842_v62 }
  0xb4   :  { %259 = vst.msk [vmem:[#allocation4 + $0x28] sm:$0xff] %vm253_vm2, %v226_v2 }
  0xb5   :  { %258 = vst.msk [vmem:[#allocation4 + $0x20] sm:$0xff] %vm253_vm2, %v225_v4  ;;  %v148_v5 = vpop.xlane.xlu1 %147 }
  0xb6   :  { %v228_v6 = vmul.f32 0.5, %v148_v5  ;;  %v145_v7 = vpop.xlane.xlu0 %144  ;;  %v7845_v5 = vsub.s32 %v495_v61, %v7842_v62 }
  0xb7   :  { %v227_v8 = vmul.f32 0.5, %v145_v7 }
  0xb8   :  { %261 = vst.msk [vmem:[#allocation4 + $0x38] sm:$0xff] %vm253_vm2, %v228_v6  ;;  %11356 = vst [vmem:[#allocation18_spill] sm:$0xff] %v7845_v5 }
  0xb9   :  { %260 = vst.msk [vmem:[#allocation4 + $0x30] sm:$0xff] %vm253_vm2, %v227_v8  ;;  %v154_v9 = vpop.xlane.xlu1 %153 }
  0xba   :  { %v230_v11 = vmul.f32 0.5, %v154_v9  ;;  %v151_v12 = vpop.xlane.xlu0 %150 }
  0xbb   :  { %v229_v13 = vmul.f32 0.5, %v151_v12 }
  0xbc   :  { %263 = vst.msk [vmem:[#allocation4 + $0x48] sm:$0xff] %vm253_vm2, %v230_v11 }
  0xbd   :  { %262 = vst.msk [vmem:[#allocation4 + $0x40] sm:$0xff] %vm253_vm2, %v229_v13  ;;  %v160_v14 = vpop.xlane.xlu1 %159 }
  0xbe   :  { %v232_v15 = vmul.f32 0.5, %v160_v14  ;;  %v157_v16 = vpop.xlane.xlu0 %156 }
  0xbf   :  { %v231_v17 = vmul.f32 0.5, %v157_v16 }
  0xc0   :  { %265 = vst.msk [vmem:[#allocation4 + $0x58] sm:$0xff] %vm253_vm2, %v232_v15 }
  0xc1   :  { %264 = vst.msk [vmem:[#allocation4 + $0x50] sm:$0xff] %vm253_vm2, %v231_v17  ;;  %v166_v18 = vpop.xlane.xlu1 %165 }
  0xc2   :  { %v234_v19 = vmul.f32 0.5, %v166_v18  ;;  %v163_v20 = vpop.xlane.xlu0 %162 }
  0xc3   :  { %v233_v21 = vmul.f32 0.5, %v163_v20 }
  0xc4   :  { %267 = vst.msk [vmem:[#allocation4 + $0x68] sm:$0xff] %vm253_vm2, %v234_v19 }
  0xc5   :  { %266 = vst.msk [vmem:[#allocation4 + $0x60] sm:$0xff] %vm253_vm2, %v233_v21  ;;  %v172_v22 = vpop.xlane.xlu1 %171 }
  0xc6   :  { %v236_v23 = vmul.f32 0.5, %v172_v22  ;;  %v169_v24 = vpop.xlane.xlu0 %168 }
  0xc7   :  { %v235_v25 = vmul.f32 0.5, %v169_v24 }
  0xc8   :  { %269 = vst.msk [vmem:[#allocation4 + $0x78] sm:$0xff] %vm253_vm2, %v236_v23 }
  0xc9   :  { %268 = vst.msk [vmem:[#allocation4 + $0x70] sm:$0xff] %vm253_vm2, %v235_v25  ;;  %v178_v26 = vpop.xlane.xlu1 %177 }
  0xca   :  { %v238_v27 = vmul.f32 0.5, %v178_v26  ;;  %v175_v28 = vpop.xlane.xlu0 %174 }
  0xcb   :  { %v237_v29 = vmul.f32 0.5, %v175_v28 }
  0xcc   :  { %271 = vst.msk [vmem:[#allocation4 + $0x88] sm:$0xff] %vm253_vm2, %v238_v27 }
  0xcd   :  { %270 = vst.msk [vmem:[#allocation4 + $0x80] sm:$0xff] %vm253_vm2, %v237_v29  ;;  %v184_v30 = vpop.xlane.xlu1 %183 }
  0xce   :  { %v240_v31 = vmul.f32 0.5, %v184_v30  ;;  %v181_v32 = vpop.xlane.xlu0 %180 }
  0xcf   :  { %v239_v33 = vmul.f32 0.5, %v181_v32 }
  0xd0   :  { %273 = vst.msk [vmem:[#allocation4 + $0x98] sm:$0xff] %vm253_vm2, %v240_v31 }
  0xd1   :  { %272 = vst.msk [vmem:[#allocation4 + $0x90] sm:$0xff] %vm253_vm2, %v239_v33  ;;  %v190_v34 = vpop.xlane.xlu1 %189 }
  0xd2   :  { %v242_v35 = vmul.f32 0.5, %v190_v34  ;;  %v187_v36 = vpop.xlane.xlu0 %186 }
  0xd3   :  { %v241_v37 = vmul.f32 0.5, %v187_v36 }
  0xd4   :  { %275 = vst.msk [vmem:[#allocation4 + $0xa8] sm:$0xff] %vm253_vm2, %v242_v35 }
  0xd5   :  { %274 = vst.msk [vmem:[#allocation4 + $0xa0] sm:$0xff] %vm253_vm2, %v241_v37  ;;  %v196_v38 = vpop.xlane.xlu1 %195 }
  0xd6   :  { %v244_v39 = vmul.f32 0.5, %v196_v38  ;;  %v193_v40 = vpop.xlane.xlu0 %192 }
  0xd7   :  { %v243_v41 = vmul.f32 0.5, %v193_v40 }
  0xd8   :  { %277 = vst.msk [vmem:[#allocation4 + $0xb8] sm:$0xff] %vm253_vm2, %v244_v39 }
  0xd9   :  { %276 = vst.msk [vmem:[#allocation4 + $0xb0] sm:$0xff] %vm253_vm2, %v243_v41  ;;  %v202_v42 = vpop.xlane.xlu1 %201 }
  0xda   :  { %v246_v43 = vmul.f32 0.5, %v202_v42  ;;  %v199_v44 = vpop.xlane.xlu0 %198 }
  0xdb   :  { %v245_v45 = vmul.f32 0.5, %v199_v44 }
  0xdc   :  { %279 = vst.msk [vmem:[#allocation4 + $0xc8] sm:$0xff] %vm253_vm2, %v246_v43 }
  0xdd   :  { %278 = vst.msk [vmem:[#allocation4 + $0xc0] sm:$0xff] %vm253_vm2, %v245_v45  ;;  %v208_v46 = vpop.xlane.xlu1 %207 }
  0xde   :  { %v248_v47 = vmul.f32 0.5, %v208_v46  ;;  %v205_v48 = vpop.xlane.xlu0 %204 }
  0xdf   :  { %v247_v49 = vmul.f32 0.5, %v205_v48 }
  0xe0   :  { %281 = vst.msk [vmem:[#allocation4 + $0xd8] sm:$0xff] %vm253_vm2, %v248_v47 }
  0xe1   :  { %280 = vst.msk [vmem:[#allocation4 + $0xd0] sm:$0xff] %vm253_vm2, %v247_v49  ;;  %v214_v50 = vpop.xlane.xlu1 %213 }
  0xe2   :  { %v250_v51 = vmul.f32 0.5, %v214_v50  ;;  %v211_v52 = vpop.xlane.xlu0 %210 }
  0xe3   :  { %v249_v53 = vmul.f32 0.5, %v211_v52 }
  0xe4   :  { %283 = vst.msk [vmem:[#allocation4 + $0xe8] sm:$0xff] %vm253_vm2, %v250_v51 }
  0xe5   :  { %282 = vst.msk [vmem:[#allocation4 + $0xe0] sm:$0xff] %vm253_vm2, %v249_v53  ;;  %v220_v54 = vpop.xlane.xlu1 %219 }
  0xe6   :  { %v252_v55 = vmul.f32 0.5, %v220_v54  ;;  %v217_v56 = vpop.xlane.xlu0 %216 }
  0xe7   :  { %v251_v57 = vmul.f32 0.5, %v217_v56 }
  0xe8   :  { %285 = vst.msk [vmem:[#allocation4 + $0xf8] sm:$0xff] %vm253_vm2, %v252_v55 }
  0xe9   :  { %284 = vst.msk [vmem:[#allocation4 + $0xf0] sm:$0xff] %vm253_vm2, %v251_v57 }
 0x12c   :  { %v483_v1 = vpop.f32.mrb[0].mxu0 }
 0x12d   :  { %v488_v2 = vmul.f32 0.5, %v483_v1  ;;  %v485_v3 = vpop.f32.mrb[1].mxu0 }
 0x12e   :  { %v489_v4 = vmul.f32 0.5, %v485_v3 }
 0x130   :  { %v492_v6 = vcombine.low %v488_v2, %v489_v4 }
 0x132   :  { %v499_v7 = vrot.slane %v492_v6, %v7845_v5 }
 0x134   :  { %v506_v8 = vrot.slane %v499_v7, %v7845_v5 }
 0x136   :  { %512 = vst.msk [vmem:[#allocation5] sm:$0x3] %vm7740_vm3, %v506_v8 }
 0x137 LB: > { %v11358_v62 = vld [vmem:[#allocation17_spill] sm:$0xff]  ;;  %v7856_v9 = vld [vmem:[#allocation4 + $0x10] sm:$0xff]  ;;  %v7630_v13 = vmov 0   ;;  %v7862_v19 = vld [vmem:[#allocation4 + $0x18] sm:$0xff]  ;;  %s552_s23 = scvt.s32.f32 %s7622_s0  ;;  %s7631_s27 = smov 0.0001   ;;  %s7622_s0 = sphi %s7851_s0, %s551_s0  }
 0x138   : > { %v7858_v11 = vld [vmem:[#allocation4] sm:$0xff]  ;;  %6997 = vset.pattern.permute.xlu1 %v7630_v13  ;;  %6996 = vset.pattern.permute.xlu0 %v7630_v13  ;;  %v580_v14 = vld [vmem:[#allocation6 + $0x188] sm:$0xff]  ;;  %v581_v21 = vld [vmem:[#allocation6 + $0x190] sm:$0xff]  ;;  %s551_s0 = sadd.s32 1, %s7622_s0  }
 0x139   : > { %v579_v12 = vld [vmem:[#allocation6 + $0x180] sm:$0xff]  ;;  %v564_v16 = vld [vmem:[#allocation6 + $0x108] sm:$0xff]  ;;  %704 = vperm.xlu1 %6997, %v7856_v9   ;;  %694 = vperm.xlu0 %6996, %v7858_v11   ;;  %v582_v22 = vld [vmem:[#allocation6 + $0x198] sm:$0xff]  ;;  %s553_s24 = ssub.f32 0.0, %s552_s23  ;;  %p548_p8 = scmp.ge.s32.totalorder %s551_s0, 18  }
 0x13a   : > { %v563_v15 = vld [vmem:[#allocation6 + $0x100] sm:$0xff]  ;;  %v6730_v17 = vpack.c.bf16 %v580_v14, %v579_v12  ;;  %v6736_v23 = vpack.c.bf16 %v582_v22, %v581_v21  ;;  %v565_v24 = vld [vmem:[#allocation6 + $0x110] sm:$0xff]  ;;  %v566_v25 = vld [vmem:[#allocation6 + $0x118] sm:$0xff]  ;;  %s7578_s7 = scalar_lea.hbm (%p548_p8), %s11253_s1, 16 }
 0x13b   : > { %v6733_v18 = vpack.c.bf16 %v564_v16, %v563_v15  ;;  %v7864_v20 = vld [vmem:[#allocation4 + $0x8] sm:$0xff]  ;;  %v7878_v27 = vld [vmem:[#allocation4 + $0x20] sm:$0xff]  ;;  %v6739_v30 = vpack.c.bf16 %v566_v25, %v565_v24  ;;  %v7886_v31 = vld [vmem:[#allocation4 + $0x38] sm:$0xff]  ;;  %v554_v55 = vstv %s553_s24  ;;  %p7579_p9 = scmp.ne.s32.totalorder (%p548_p8), %s11253_s1, %s7578_s7  ;;  %p7582_p10 = scmp.lt.u32.totalorder (%p548_p8), %s7578_s7, %s11253_s1 }
 0x13c   : > { %6732 = vmatprep.subr.msk.bf16.mxu0 %vm7667_vm1, %v6730_v17  ;;  %6780 = vmatprep.subr.msk.bf16.mxu1 %vm7667_vm1, %v6730_v17  ;;  %v7876_v26 = vld [vmem:[#allocation4 + $0x28] sm:$0xff]  ;;  %v7888_v32 = vld [vmem:[#allocation4 + $0x30] sm:$0xff]  ;;  %v7898_v37 = vld [vmem:[#allocation4 + $0x40] sm:$0xff]  ;;  %6998 = vpow2.f32 %v554_v55 }
 0x13d   : > { %6735 = vmatpush3.bf16.xpose.msk.msra.mxu0 %vm7667_vm1, %v6733_v18  ;;  %6783 = vmatpush3.bf16.xpose.msk.msra.mxu1 %vm7667_vm1, %v6733_v18  ;;  %v583_v28 = vld [vmem:[#allocation6 + $0x1a0] sm:$0xff]  ;;  %v584_v29 = vld [vmem:[#allocation6 + $0x1a8] sm:$0xff]  ;;  %v585_v38 = vld [vmem:[#allocation6 + $0x1b0] sm:$0xff]  ;;  %p7584_p11 = pnand (%p548_p8), %p7582_p10, %p7579_p9 }
 0x13e   : > { %709 = vperm.xlu1 %6997, %v7862_v19   ;;  %699 = vperm.xlu0 %6996, %v7864_v20   ;;  %v6742_v33 = vpack.c.bf16 %v584_v29, %v583_v28  ;;  %v567_v34 = vld [vmem:[#allocation6 + $0x120] sm:$0xff]  ;;  %v568_v35 = vld [vmem:[#allocation6 + $0x128] sm:$0xff]  ;;  %v586_v39 = vld [vmem:[#allocation6 + $0x1b8] sm:$0xff] }
 0x13f   : > { %6738 = vmatprep.subr.msk.bf16.mxu0 %vm7667_vm1, %v6736_v23  ;;  %6786 = vmatprep.subr.msk.bf16.mxu1 %vm7667_vm1, %v6736_v23  ;;  %v7896_v36 = vld [vmem:[#allocation4 + $0x48] sm:$0xff]  ;;  %v6745_v40 = vpack.c.bf16 %v568_v35, %v567_v34  ;;  %v7906_v41 = vld [vmem:[#allocation4 + $0x58] sm:$0xff]  ;;  %v7908_v42 = vld [vmem:[#allocation4 + $0x50] sm:$0xff]  ;;  %v6748_v43 = vpack.c.bf16 %v586_v39, %v585_v38 }
 0x140   : > { %v7914_v44 = vld [vmem:[#allocation6] sm:$0xff]  ;;  %v569_v45 = vld [vmem:[#allocation6 + $0x130] sm:$0xff]  ;;  %v570_v46 = vld [vmem:[#allocation6 + $0x138] sm:$0xff] }
 0x141   : > { %v7918_v47 = vld [vmem:[#allocation4 + $0x68] sm:$0xff]  ;;  %v7920_v48 = vld [vmem:[#allocation4 + $0x60] sm:$0xff]  ;;  %6488 = vmatprep.mubr.msk.f32.mxu1 %vm124_vm0, %v7914_v44  ;;  %6392 = vmatprep.mubr.msk.f32.mxu0 %vm124_vm0, %v7914_v44  ;;  %v6751_v51 = vpack.c.bf16 %v570_v46, %v569_v45  ;;  %v7933_v52 = vld [vmem:[#allocation4 + $0x78] sm:$0xff] }
 0x142   : > { %719 = vperm.xlu1 %6997, %v7876_v26   ;;  %714 = vperm.xlu0 %6996, %v7878_v27   ;;  %v587_v49 = vld [vmem:[#allocation6 + $0x1c0] sm:$0xff]  ;;  %v588_v50 = vld [vmem:[#allocation6 + $0x1c8] sm:$0xff]  ;;  %v589_v61 = vld [vmem:[#allocation6 + $0x1d0] sm:$0xff] }
 0x143   : > { %v7935_v53 = vld [vmem:[#allocation4 + $0x70] sm:$0xff]  ;;  %v6754_v54 = vpack.c.bf16 %v588_v50, %v587_v49  ;;  %v571_v56 = vld [vmem:[#allocation6 + $0x140] sm:$0xff]  ;;  %v590_v1 = vld [vmem:[#allocation6 + $0x1d8] sm:$0xff] }
 0x144   : > { %v572_v57 = vld [vmem:[#allocation6 + $0x148] sm:$0xff]  ;;  %v7945_v60 = vld [vmem:[#allocation4 + $0x80] sm:$0xff]  ;;  %v7953_v3 = vld [vmem:[#allocation4 + $0x98] sm:$0xff]  ;;  %v6760_v6 = vpack.c.bf16 %v590_v1, %v589_v61 }
 0x145   : > { %6741 = vmatpush3.bf16.xpose.msk.msra.mxu0 %vm7667_vm1, %v6739_v30  ;;  %6789 = vmatpush3.bf16.xpose.msk.msra.mxu1 %vm7667_vm1, %v6739_v30  ;;  %v7943_v0 = vld [vmem:[#allocation4 + $0x88] sm:$0xff]  ;;  %v6757_v2 = vpack.c.bf16 %v572_v57, %v571_v56  ;;  %v7955_v4 = vld [vmem:[#allocation4 + $0x90] sm:$0xff]  ;;  %v574_v8 = vld [vmem:[#allocation6 + $0x158] sm:$0xff] }
 0x146   : > { %729 = vperm.xlu1 %6997, %v7886_v31   ;;  %724 = vperm.xlu0 %6996, %v7888_v32   ;;  %v573_v7 = vld [vmem:[#allocation6 + $0x150] sm:$0xff]  ;;  %v6999_v12 = vpop.eup %6998  ;;  %v7963_v13 = vld [vmem:[#allocation4 + $0xa8] sm:$0xff]  ;;  %v7965_v14 = vld [vmem:[#allocation4 + $0xa0] sm:$0xff] }
 0x147   : > { %6744 = vmatprep.subr.msk.bf16.mxu0 %vm7667_vm1, %v6742_v33  ;;  %6792 = vmatprep.subr.msk.bf16.mxu1 %vm7667_vm1, %v6742_v33  ;;  %v591_v15 = vld [vmem:[#allocation6 + $0x1e0] sm:$0xff]  ;;  %v592_v16 = vld [vmem:[#allocation6 + $0x1e8] sm:$0xff]  ;;  %6970 = vpush %v6999_v12  ;;  %v6763_v17 = vpack.c.bf16 %v574_v8, %v573_v7  ;;  %v7973_v18 = vld [vmem:[#allocation4 + $0xb8] sm:$0xff] }
 0x148   : > { %v7975_v21 = vld [vmem:[#allocation4 + $0xb0] sm:$0xff]  ;;  %v6766_v22 = vpack.c.bf16 %v592_v16, %v591_v15  ;;  %v575_v23 = vld [vmem:[#allocation6 + $0x160] sm:$0xff]  ;;  %v594_v30 = vld [vmem:[#allocation6 + $0x1f8] sm:$0xff] }
 0x149   : > { %v576_v24 = vld [vmem:[#allocation6 + $0x168] sm:$0xff]  ;;  %v660_v25 = vld [vmem:[#allocation2] sm:$0xff]  ;;  %v593_v29 = vld [vmem:[#allocation6 + $0x1f0] sm:$0xff] }
 0x14a   : > { %739 = vperm.xlu1 %6997, %v7896_v36   ;;  %734 = vperm.xlu0 %6996, %v7898_v37   ;;  %v7983_v28 = vld [vmem:[#allocation4 + $0xc0] sm:$0xff]  ;;  %v6769_v33 = vpack.c.bf16 %v576_v24, %v575_v23  ;;  %v662_v34 = vld [vmem:[#allocation2 + $0x10] sm:$0xff]  ;;  %v6772_v38 = vpack.c.bf16 %v594_v30, %v593_v29  ;;  %v663_v45 = vld [vmem:[#allocation2 + $0x18] sm:$0xff] }
 0x14b   : > { %v661_v35 = vld [vmem:[#allocation2 + $0x8] sm:$0xff]  ;;  %v577_v39 = vld [vmem:[#allocation6 + $0x170] sm:$0xff]  ;;  %v672_v1 = vld [vmem:[#allocation2 + $0x60] sm:$0xff] }
 0x14c   : > { %v666_v49 = vld [vmem:[#allocation2 + $0x30] sm:$0xff]  ;;  %v665_v50 = vld [vmem:[#allocation2 + $0x28] sm:$0xff]  ;;  %v676_v12 = vld [vmem:[#allocation2 + $0x80] sm:$0xff] }
 0x14d   : > { %6747 = vmatpush3.bf16.xpose.msk.msra.mxu0 %vm7667_vm1, %v6745_v40  ;;  %6795 = vmatpush3.bf16.xpose.msk.msra.mxu1 %vm7667_vm1, %v6745_v40  ;;  %v578_v40 = vld [vmem:[#allocation6 + $0x178] sm:$0xff]  ;;  %v2110_v55 = vld [vmem:[#allocation6 + $0x8] sm:$0xff]  ;;  %v2111_v61 = vld [vmem:[#allocation6 + $0x10] sm:$0xff] }
 0x14e   : > { %749 = vperm.xlu1 %6997, %v7906_v41   ;;  %744 = vperm.xlu0 %6996, %v7908_v42   ;;  %v6775_v46 = vpack.c.bf16 %v578_v40, %v577_v39  ;;  %v670_v56 = vld [vmem:[#allocation2 + $0x50] sm:$0xff]  ;;  %v669_v57 = vld [vmem:[#allocation2 + $0x48] sm:$0xff]  ;;  %v675_v15 = vld [vmem:[#allocation2 + $0x78] sm:$0xff] }
 0x14f   : > { %6750 = vmatprep.subr.msk.bf16.mxu0 %vm7667_vm1, %v6748_v43  ;;  %6798 = vmatprep.subr.msk.bf16.mxu1 %vm7667_vm1, %v6748_v43  ;;  %v664_v43 = vld [vmem:[#allocation2 + $0x20] sm:$0xff]  ;;  %v673_v7 = vld [vmem:[#allocation2 + $0x68] sm:$0xff]  ;;  %v2115_v23 = vld [vmem:[#allocation6 + $0x30] sm:$0xff] }
 0x150   : > { %v2113_v8 = vld [vmem:[#allocation6 + $0x20] sm:$0xff]  ;;  %v2114_v16 = vld [vmem:[#allocation6 + $0x28] sm:$0xff]  ;;  %v2116_v29 = vld [vmem:[#allocation6 + $0x38] sm:$0xff] }
 0x151   : > { %v8024_v24 = vld [vmem:[#allocation4 + $0xc8] sm:$0xff]  ;;  %v8040_v39 = vld [vmem:[#allocation4 + $0xd0] sm:$0xff] }
 0x152   : > { %759 = vperm.xlu1 %6997, %v7918_v47   ;;  %754 = vperm.xlu0 %6996, %v7920_v48   ;;  %v681_v30 = vld [vmem:[#allocation2 + $0xa8] sm:$0xff] }
 0x153   : > { %v2118_v40 = vld [vmem:[#allocation6 + $0x48] sm:$0xff] }
 0x155   : > { %6753 = vmatpush3.bf16.xpose.msk.msra.mxu0 %vm7667_vm1, %v6751_v51  ;;  %6801 = vmatpush3.bf16.xpose.msk.msra.mxu1 %vm7667_vm1, %v6751_v51  ;;  %v668_v51 = vld [vmem:[#allocation2 + $0x40] sm:$0xff] }
 0x156   : > { %769 = vperm.xlu1 %6997, %v7933_v52   ;;  %764 = vperm.xlu0 %6996, %v7935_v53  }
 0x157   : > { %6756 = vmatprep.subr.msk.bf16.mxu0 %vm7667_vm1, %v6754_v54  ;;  %6804 = vmatprep.subr.msk.bf16.mxu1 %vm7667_vm1, %v6754_v54  ;;  %v667_v54 = vld [vmem:[#allocation2 + $0x38] sm:$0xff] }
 0x15a   : > { %779 = vperm.xlu1 %6997, %v7943_v0   ;;  %774 = vperm.xlu0 %6996, %v7945_v60  }
 0x15d   : > { %6759 = vmatpush3.bf16.xpose.msk.msra.mxu0 %vm7667_vm1, %v6757_v2  ;;  %6807 = vmatpush3.bf16.xpose.msk.msra.mxu1 %vm7667_vm1, %v6757_v2  ;;  %v671_v2 = vld [vmem:[#allocation2 + $0x58] sm:$0xff] }
 0x15e   : > { %789 = vperm.xlu1 %6997, %v7953_v3   ;;  %784 = vperm.xlu0 %6996, %v7955_v4  }
 0x15f   : > { %6762 = vmatprep.subr.msk.bf16.mxu0 %vm7667_vm1, %v6760_v6  ;;  %6810 = vmatprep.subr.msk.bf16.mxu1 %vm7667_vm1, %v6760_v6  ;;  %v674_v6 = vld [vmem:[#allocation2 + $0x70] sm:$0xff] }
 0x162   : > { %799 = vperm.xlu1 %6997, %v7963_v13   ;;  %794 = vperm.xlu0 %6996, %v7965_v14  }
 0x165   : > { %6765 = vmatpush3.bf16.xpose.msk.msra.mxu0 %vm7667_vm1, %v6763_v17  ;;  %6813 = vmatpush3.bf16.xpose.msk.msra.mxu1 %vm7667_vm1, %v6763_v17  ;;  %v678_v17 = vld [vmem:[#allocation2 + $0x90] sm:$0xff] }
 0x166   : > { %809 = vperm.xlu1 %6997, %v7973_v18   ;;  %804 = vperm.xlu0 %6996, %v7975_v21  }
 0x167   : > { %6768 = vmatprep.subr.msk.bf16.mxu0 %vm7667_vm1, %v6766_v22  ;;  %6816 = vmatprep.subr.msk.bf16.mxu1 %vm7667_vm1, %v6766_v22  ;;  %v677_v22 = vld [vmem:[#allocation2 + $0x88] sm:$0xff] }
 0x16a   : > { %1442 = vperm.xlu1 %6997, %v660_v25   ;;  %814 = vperm.xlu0 %6996, %v7983_v28   ;;  %v679_v25 = vld [vmem:[#allocation2 + $0x98] sm:$0xff] }
 0x16d   : > { %6771 = vmatpush3.bf16.xpose.msk.msra.mxu0 %vm7667_vm1, %v6769_v33  ;;  %6819 = vmatpush3.bf16.xpose.msk.msra.mxu1 %vm7667_vm1, %v6769_v33  ;;  %v680_v33 = vld [vmem:[#allocation2 + $0xa0] sm:$0xff] }
 0x16e   : > { %1452 = vperm.xlu1 %6997, %v662_v34   ;;  %1447 = vperm.xlu0 %6996, %v661_v35   ;;  %v2117_v35 = vld [vmem:[#allocation6 + $0x40] sm:$0xff] }
 0x16f   : > { %6774 = vmatprep.subr.msk.bf16.mxu0 %vm7667_vm1, %v6772_v38  ;;  %6822 = vmatprep.subr.msk.bf16.mxu1 %vm7667_vm1, %v6772_v38  ;;  %v8038_v38 = vld [vmem:[#allocation4 + $0xd8] sm:$0xff] }
 0x172   : > { %1462 = vperm.xlu1 %6997, %v664_v43   ;;  %1457 = vperm.xlu0 %6996, %v663_v45   ;;  %v683_v43 = vld [vmem:[#allocation2 + $0xb8] sm:$0xff]  ;;  %v682_v45 = vld [vmem:[#allocation2 + $0xb0] sm:$0xff] }
 0x175   : > { %6777 = vmatpush3.bf16.xpose.msk.msra.mxu0 %vm7667_vm1, %v6775_v46  ;;  %6825 = vmatpush3.bf16.xpose.msk.msra.mxu1 %vm7667_vm1, %v6775_v46  ;;  %v2119_v46 = vld [vmem:[#allocation6 + $0x50] sm:$0xff] }
 0x176   : > { %1472 = vperm.xlu1 %6997, %v666_v49   ;;  %1467 = vperm.xlu0 %6996, %v665_v50   ;;  %v8052_v49 = vld [vmem:[#allocation4 + $0xe8] sm:$0xff]  ;;  %v8054_v50 = vld [vmem:[#allocation4 + $0xe0] sm:$0xff] }
 0x178   : > { %s6971_s25 = spop %6970 }
 0x179   : > { %s557_s26 = smul.f32 4.0, %s6971_s25 }
 0x17a   : > { %1482 = vperm.xlu1 %6997, %v668_v51   ;;  %1477 = vperm.xlu0 %6996, %v667_v54   ;;  %v2120_v54 = vld [vmem:[#allocation6 + $0x58] sm:$0xff] }
 0x17b   : > { %s8033_s28 = smax.f32 %s7631_s27, %s557_s26 }
 0x17c   : > { %6393 = vmatmul.mubr.msk.f32.vlgmr.msra.gmra.mrb[0].mxu0 %vm124_vm0, %v7914_v44  ;;  %6489 = vmatmul.mubr.msk.f32.vlgmr.msra.gmra.mrb[0].mxu1 %vm124_vm0, %v7914_v44  ;;  %v2112_v44 = vld [vmem:[#allocation6 + $0x18] sm:$0xff]  ;;  %v559_v34 = vstv %s8033_s28  ;;  %s562_s30 = ssub.f32 0.0, %s8033_s28 }
 0x17d   : > { %6490 = vmatprep.mubr.msk.f32.mxu1 %vm124_vm0, %v2110_v55  ;;  %6394 = vmatprep.mubr.msk.f32.mxu0 %vm124_vm0, %v2110_v55  ;;  %7000 = vrcp.f32 %v559_v34 }
 0x17e   : > { %1492 = vperm.xlu1 %6997, %v670_v56   ;;  %1487 = vperm.xlu0 %6996, %v669_v57   ;;  %v684_v56 = vld [vmem:[#allocation2 + $0xc0] sm:$0xff] }
 0x17f   : > { %v2121_v57 = vld [vmem:[#allocation6 + $0x60] sm:$0xff] }
 0x180   : > { %6395 = vmatmul.mubr.msk.f32.gmra.mrb[2].mxu0 %vm124_vm0, %v2110_v55  ;;  %6491 = vmatmul.mubr.msk.f32.gmra.mrb[2].mxu1 %vm124_vm0, %v2110_v55  ;;  %v685_v55 = vld [vmem:[#allocation2 + $0xc8] sm:$0xff] }
 0x181   : > { %6492 = vmatprep.mubr.msk.f32.mxu1 %vm124_vm0, %v2111_v61  ;;  %6396 = vmatprep.mubr.msk.f32.mxu0 %vm124_vm0, %v2111_v61 }
 0x182   : > { %1502 = vperm.xlu1 %6997, %v672_v1   ;;  %1497 = vperm.xlu0 %6996, %v671_v2   ;;  %v8068_v1 = vld [vmem:[#allocation4 + $0xf0] sm:$0xff] }
 0x183   : > { %v2122_v2 = vld [vmem:[#allocation6 + $0x68] sm:$0xff] }
 0x184   : > { %6397 = vmatmul.mubr.msk.f32.gmra.mrb[4].mxu0 %vm124_vm0, %v2111_v61  ;;  %6493 = vmatmul.mubr.msk.f32.gmra.mrb[4].mxu1 %vm124_vm0, %v2111_v61  ;;  %v8066_v61 = vld [vmem:[#allocation4 + $0xf8] sm:$0xff] }
 0x185   : > { %6494 = vmatprep.mubr.msk.f32.mxu1 %vm124_vm0, %v2112_v44  ;;  %6398 = vmatprep.mubr.msk.f32.mxu0 %vm124_vm0, %v2112_v44 }
 0x186   : > { %1512 = vperm.xlu1 %6997, %v674_v6   ;;  %1507 = vperm.xlu0 %6996, %v673_v7   ;;  %v686_v6 = vld [vmem:[#allocation2 + $0xd0] sm:$0xff] }
 0x187   : > { %v7001_v51 = vpop.eup %7000  ;;  %v2123_v7 = vld [vmem:[#allocation6 + $0x70] sm:$0xff] }
 0x188   : > { %6399 = vmatmul.mubr.msk.f32.gmra.mrb[6].mxu0 %vm124_vm0, %v2112_v44  ;;  %6495 = vmatmul.mubr.msk.f32.gmra.mrb[6].mxu1 %vm124_vm0, %v2112_v44  ;;  %6972 = vpush %v7001_v51  ;;  %v687_v44 = vld [vmem:[#allocation2 + $0xd8] sm:$0xff] }
 0x189   : > { %6496 = vmatprep.mubr.msk.f32.mxu1 %vm124_vm0, %v2113_v8  ;;  %6400 = vmatprep.mubr.msk.f32.mxu0 %vm124_vm0, %v2113_v8 }
 0x18a   : > { %1522 = vperm.xlu1 %6997, %v676_v12   ;;  %1517 = vperm.xlu0 %6996, %v675_v15   ;;  %v688_v12 = vld [vmem:[#allocation2 + $0xe0] sm:$0xff] }
 0x18b   : > { %v2124_v15 = vld [vmem:[#allocation6 + $0x78] sm:$0xff] }
 0x18c   : > { %6401 = vmatmul.mubr.msk.f32.gmra.mrb[8].mxu0 %vm124_vm0, %v2113_v8  ;;  %6497 = vmatmul.mubr.msk.f32.gmra.mrb[8].mxu1 %vm124_vm0, %v2113_v8  ;;  %v689_v8 = vld [vmem:[#allocation2 + $0xe8] sm:$0xff] }
 0x18d   : > { %6498 = vmatprep.mubr.msk.f32.mxu1 %vm124_vm0, %v2114_v16  ;;  %6402 = vmatprep.mubr.msk.f32.mxu0 %vm124_vm0, %v2114_v16 }
 0x18e   : > { %1532 = vperm.xlu1 %6997, %v678_v17   ;;  %1527 = vperm.xlu0 %6996, %v677_v22   ;;  %v690_v17 = vld [vmem:[#allocation2 + $0xf0] sm:$0xff]  ;;  %v2125_v22 = vld [vmem:[#allocation6 + $0x80] sm:$0xff] }
 0x190   : > { %6403 = vmatmul.mubr.msk.f32.gmra.mrb[10].mxu0 %vm124_vm0, %v2114_v16  ;;  %6499 = vmatmul.mubr.msk.f32.gmra.mrb[10].mxu1 %vm124_vm0, %v2114_v16  ;;  %v691_v16 = vld [vmem:[#allocation2 + $0xf8] sm:$0xff] }
 0x191   : > { %6500 = vmatprep.mubr.msk.f32.mxu1 %vm124_vm0, %v2115_v23  ;;  %6404 = vmatprep.mubr.msk.f32.mxu0 %vm124_vm0, %v2115_v23 }
 0x192   : > { %819 = vperm.xlu1 %6997, %v8024_v24   ;;  %1537 = vperm.xlu0 %6996, %v679_v25   ;;  %v2126_v25 = vld [vmem:[#allocation6 + $0x88] sm:$0xff] }
 0x194   : > { %6405 = vmatmul.mubr.msk.f32.gmra.mrb[12].mxu0 %vm124_vm0, %v2115_v23  ;;  %6501 = vmatmul.mubr.msk.f32.gmra.mrb[12].mxu1 %vm124_vm0, %v2115_v23 }
 0x195   : > { %6502 = vmatprep.mubr.msk.f32.mxu1 %vm124_vm0, %v2116_v29  ;;  %6406 = vmatprep.mubr.msk.f32.mxu0 %vm124_vm0, %v2116_v29 }
 0x196   : > { %1547 = vperm.xlu1 %6997, %v681_v30   ;;  %1542 = vperm.xlu0 %6996, %v680_v33   ;;  %v2127_v30 = vld [vmem:[#allocation6 + $0x90] sm:$0xff]  ;;  %v2140_v33 = vld [vmem:[#allocation6 + $0xf8] sm:$0xff] }
 0x198   : > { %6407 = vmatmul.mubr.msk.f32.gmra.mrb[14].mxu0 %vm124_vm0, %v2116_v29  ;;  %6503 = vmatmul.mubr.msk.f32.gmra.mrb[14].mxu1 %vm124_vm0, %v2116_v29 }
 0x199   : > { %6504 = vmatprep.mubr.msk.f32.mxu1 %vm124_vm0, %v2117_v35  ;;  %6408 = vmatprep.mubr.msk.f32.mxu0 %vm124_vm0, %v2117_v35 }
 0x19a   : > { %829 = vperm.xlu1 %6997, %v8038_v38   ;;  %824 = vperm.xlu0 %6996, %v8040_v39  }
 0x19c   : > { %6409 = vmatmul.mubr.msk.f32.gmra.mrb[16].mxu0 %vm124_vm0, %v2117_v35  ;;  %6505 = vmatmul.mubr.msk.f32.gmra.mrb[16].mxu1 %vm124_vm0, %v2117_v35 }
 0x19d   : > { %6506 = vmatprep.mubr.msk.f32.mxu1 %vm124_vm0, %v2118_v40  ;;  %6410 = vmatprep.mubr.msk.f32.mxu0 %vm124_vm0, %v2118_v40 }
 0x19e   : > { %1557 = vperm.xlu1 %6997, %v683_v43   ;;  %1552 = vperm.xlu0 %6996, %v682_v45  }
 0x1a0   : > { %6411 = vmatmul.mubr.msk.f32.gmra.mrb[18].mxu0 %vm124_vm0, %v2118_v40  ;;  %6507 = vmatmul.mubr.msk.f32.gmra.mrb[18].mxu1 %vm124_vm0, %v2118_v40 }
 0x1a1   : > { %6508 = vmatprep.mubr.msk.f32.mxu1 %vm124_vm0, %v2119_v46  ;;  %6412 = vmatprep.mubr.msk.f32.mxu0 %vm124_vm0, %v2119_v46 }
 0x1a2   : > { %839 = vperm.xlu1 %6997, %v8052_v49   ;;  %834 = vperm.xlu0 %6996, %v8054_v50  }
 0x1a4   : > { %6413 = vmatmul.mubr.msk.f32.gmra.mrb[20].mxu0 %vm124_vm0, %v2119_v46  ;;  %6509 = vmatmul.mubr.msk.f32.gmra.mrb[20].mxu1 %vm124_vm0, %v2119_v46 }
 0x1a5   : > { %6510 = vmatprep.mubr.msk.f32.mxu1 %vm124_vm0, %v2120_v54  ;;  %6414 = vmatprep.mubr.msk.f32.mxu0 %vm124_vm0, %v2120_v54 }
 0x1a6   : > { %1567 = vperm.xlu1 %6997, %v685_v55   ;;  %1562 = vperm.xlu0 %6996, %v684_v56  }
 0x1a8   : > { %6415 = vmatmul.mubr.msk.f32.gmra.mrb[22].mxu0 %vm124_vm0, %v2120_v54  ;;  %6511 = vmatmul.mubr.msk.f32.gmra.mrb[22].mxu1 %vm124_vm0, %v2120_v54 }
 0x1a9   : > { %6512 = vmatprep.mubr.msk.f32.mxu1 %vm124_vm0, %v2121_v57  ;;  %6416 = vmatprep.mubr.msk.f32.mxu0 %vm124_vm0, %v2121_v57 }
 0x1aa   : > { %849 = vperm.xlu1 %6997, %v8066_v61   ;;  %844 = vperm.xlu0 %6996, %v8068_v1  }
 0x1ac   : > { %6417 = vmatmul.mubr.msk.f32.gmra.mrb[24].mxu0 %vm124_vm0, %v2121_v57  ;;  %6513 = vmatmul.mubr.msk.f32.gmra.mrb[24].mxu1 %vm124_vm0, %v2121_v57 }
 0x1ad   : > { %6514 = vmatprep.mubr.msk.f32.mxu1 %vm124_vm0, %v2122_v2  ;;  %6418 = vmatprep.mubr.msk.f32.mxu0 %vm124_vm0, %v2122_v2 }
 0x1ae   : > { %1577 = vperm.xlu1 %6997, %v687_v44   ;;  %1572 = vperm.xlu0 %6996, %v686_v6  }
 0x1b0   : > { %6419 = vmatmul.mubr.msk.f32.gmra.mrb[26].mxu0 %vm124_vm0, %v2122_v2  ;;  %6515 = vmatmul.mubr.msk.f32.gmra.mrb[26].mxu1 %vm124_vm0, %v2122_v2 }
 0x1b1   : > { %6516 = vmatprep.mubr.msk.f32.mxu1 %vm124_vm0, %v2123_v7  ;;  %6420 = vmatprep.mubr.msk.f32.mxu0 %vm124_vm0, %v2123_v7 }
 0x1b2   : > { %1587 = vperm.xlu1 %6997, %v689_v8   ;;  %1582 = vperm.xlu0 %6996, %v688_v12  }
 0x1b4   : > { %6421 = vmatmul.mubr.msk.f32.gmra.mrb[28].mxu0 %vm124_vm0, %v2123_v7  ;;  %6517 = vmatmul.mubr.msk.f32.gmra.mrb[28].mxu1 %vm124_vm0, %v2123_v7 }
 0x1b5   : > { %6518 = vmatprep.mubr.msk.f32.mxu1 %vm124_vm0, %v2124_v15  ;;  %6422 = vmatprep.mubr.msk.f32.mxu0 %vm124_vm0, %v2124_v15 }
 0x1b6   : > { %1597 = vperm.xlu1 %6997, %v691_v16   ;;  %1592 = vperm.xlu0 %6996, %v690_v17  }
 0x1b8   : > { %6423 = vmatmul.mubr.msk.f32.gmra.mrb[30].mxu0 %vm124_vm0, %v2124_v15  ;;  %6519 = vmatmul.mubr.msk.f32.gmra.mrb[30].mxu1 %vm124_vm0, %v2124_v15  ;;  %v8090_v23 = vpop.permute.xlu1 %704 }
 0x1b9   : > { %6520 = vmatprep.mubr.msk.f32.mxu1 %vm124_vm0, %v2125_v22  ;;  %6424 = vmatprep.mubr.msk.f32.mxu0 %vm124_vm0, %v2125_v22  ;;  %s6973_s29 = spop %6972 }
 0x1ba   : > { %2214 = vperm.xlu1 %6997, %v7864_v20   ;;  %2209 = vperm.xlu0 %6996, %v7858_v11   ;;  %v2128_v20 = vld [vmem:[#allocation6 + $0x98] sm:$0xff] }
 0x1bc   : > { %6425 = vmatmul.mubr.msk.f32.gmra.mrb[32].mxu0 %vm124_vm0, %v2125_v22  ;;  %6521 = vmatmul.mubr.msk.f32.gmra.mrb[32].mxu1 %vm124_vm0, %v2125_v22 }
 0x1bd   : > { %v8098_v29 = vpop.permute.xlu1 %709  ;;  %6522 = vmatprep.mubr.msk.f32.mxu1 %vm124_vm0, %v2126_v25  ;;  %6426 = vmatprep.mubr.msk.f32.mxu0 %vm124_vm0, %v2126_v25 }
 0x1be   : > { %2224 = vperm.xlu1 %6997, %v7862_v19   ;;  %2219 = vperm.xlu0 %6996, %v7856_v9   ;;  %v2129_v19 = vld [vmem:[#allocation6 + $0xa0] sm:$0xff] }
 0x1c0   : > { %6427 = vmatmul.mubr.msk.f32.gmra.mrb[34].mxu0 %vm124_vm0, %v2126_v25  ;;  %6523 = vmatmul.mubr.msk.f32.gmra.mrb[34].mxu1 %vm124_vm0, %v2126_v25 }
 0x1c1   : > { %v8106_v11 = vpop.permute.xlu1 %719  ;;  %6524 = vmatprep.mubr.msk.f32.mxu1 %vm124_vm0, %v2127_v30  ;;  %6428 = vmatprep.mubr.msk.f32.mxu0 %vm124_vm0, %v2127_v30 }
 0x1c2   : > { %2234 = vperm.xlu1 %6997, %v7876_v26   ;;  %2229 = vperm.xlu0 %6996, %v7878_v27   ;;  %v2130_v27 = vld [vmem:[#allocation6 + $0xa8] sm:$0xff] }
 0x1c4   : > { %6429 = vmatmul.mubr.msk.f32.gmra.mrb[36].mxu0 %vm124_vm0, %v2127_v30  ;;  %6525 = vmatmul.mubr.msk.f32.gmra.mrb[36].mxu1 %vm124_vm0, %v2127_v30 }
 0x1c5   : > { %v8114_v9 = vpop.permute.xlu1 %729  ;;  %6526 = vmatprep.mubr.msk.f32.mxu1 %vm124_vm0, %v2128_v20  ;;  %6430 = vmatprep.mubr.msk.f32.mxu0 %vm124_vm0, %v2128_v20 }
 0x1c6   : > { %2244 = vperm.xlu1 %6997, %v7886_v31   ;;  %2239 = vperm.xlu0 %6996, %v7888_v32   ;;  %v2131_v32 = vld [vmem:[#allocation6 + $0xb0] sm:$0xff] }
 0x1c8   : > { %6431 = vmatmul.mubr.msk.f32.gmra.mrb[38].mxu0 %vm124_vm0, %v2128_v20  ;;  %6527 = vmatmul.mubr.msk.f32.gmra.mrb[38].mxu1 %vm124_vm0, %v2128_v20 }
 0x1c9   : > { %v8122_v26 = vpop.permute.xlu1 %739  ;;  %6528 = vmatprep.mubr.msk.f32.mxu1 %vm124_vm0, %v2129_v19  ;;  %6432 = vmatprep.mubr.msk.f32.mxu0 %vm124_vm0, %v2129_v19 }
 0x1ca   : > { %2254 = vperm.xlu1 %6997, %v7896_v36   ;;  %2249 = vperm.xlu0 %6996, %v7898_v37   ;;  %v2132_v37 = vld [vmem:[#allocation6 + $0xb8] sm:$0xff] }
 0x1cc   : > { %6433 = vmatmul.mubr.msk.f32.gmra.mrb[40].mxu0 %vm124_vm0, %v2129_v19  ;;  %6529 = vmatmul.mubr.msk.f32.gmra.mrb[40].mxu1 %vm124_vm0, %v2129_v19 }
 0x1cd   : > { %v8130_v31 = vpop.permute.xlu1 %749  ;;  %6530 = vmatprep.mubr.msk.f32.mxu1 %vm124_vm0, %v2130_v27  ;;  %6434 = vmatprep.mubr.msk.f32.mxu0 %vm124_vm0, %v2130_v27 }
 0x1ce   : > { %2264 = vperm.xlu1 %6997, %v7906_v41   ;;  %2259 = vperm.xlu0 %6996, %v7908_v42   ;;  %v2133_v42 = vld [vmem:[#allocation6 + $0xc0] sm:$0xff] }
 0x1d0   : > { %6435 = vmatmul.mubr.msk.f32.gmra.mrb[42].mxu0 %vm124_vm0, %v2130_v27  ;;  %6531 = vmatmul.mubr.msk.f32.gmra.mrb[42].mxu1 %vm124_vm0, %v2130_v27  ;;  %v8273_v27 = vsub.s32 0, %v11358_v62 }
 0x1d1   : > { %v8138_v36 = vpop.permute.xlu1 %759  ;;  %6532 = vmatprep.mubr.msk.f32.mxu1 %vm124_vm0, %v2131_v32  ;;  %6436 = vmatprep.mubr.msk.f32.mxu0 %vm124_vm0, %v2131_v32 }
 0x1d2   : > { %2274 = vperm.xlu1 %6997, %v7918_v47   ;;  %2269 = vperm.xlu0 %6996, %v7920_v48   ;;  %v2134_v48 = vld [vmem:[#allocation6 + $0xc8] sm:$0xff]  ;;  %11364 = vst [vmem:[#allocation24_spill] sm:$0xff] %v8273_v27 }
 0x1d4   : > { %6437 = vmatmul.mubr.msk.f32.gmra.mrb[44].mxu0 %vm124_vm0, %v2131_v32  ;;  %6533 = vmatmul.mubr.msk.f32.gmra.mrb[44].mxu1 %vm124_vm0, %v2131_v32  ;;  %v8276_v32 = vsub.s32 1, %v11358_v62 }
 0x1d5   : > { %v8146_v41 = vpop.permute.xlu1 %769  ;;  %6534 = vmatprep.mubr.msk.f32.mxu1 %vm124_vm0, %v2132_v37  ;;  %6438 = vmatprep.mubr.msk.f32.mxu0 %vm124_vm0, %v2132_v37 }
 0x1d6   : > { %2284 = vperm.xlu1 %6997, %v7933_v52   ;;  %2279 = vperm.xlu0 %6996, %v7935_v53   ;;  %v2135_v53 = vld [vmem:[#allocation6 + $0xd0] sm:$0xff]  ;;  %11365 = vst [vmem:[#allocation25_spill] sm:$0xff] %v8276_v32 }
 0x1d8   : > { %6439 = vmatmul.mubr.msk.f32.gmra.mrb[46].mxu0 %vm124_vm0, %v2132_v37  ;;  %6535 = vmatmul.mubr.msk.f32.gmra.mrb[46].mxu1 %vm124_vm0, %v2132_v37  ;;  %v595_v37 = vld [vmem:[#allocation5] sm:$0x3] }
 0x1d9   : > { %v8154_v47 = vpop.permute.xlu1 %779  ;;  %6536 = vmatprep.mubr.msk.f32.mxu1 %vm124_vm0, %v2133_v42  ;;  %6440 = vmatprep.mubr.msk.f32.mxu0 %vm124_vm0, %v2133_v42 }
 0x1da   : > { %2294 = vperm.xlu1 %6997, %v7943_v0   ;;  %2289 = vperm.xlu0 %6996, %v7945_v60   ;;  %v2136_v60 = vld [vmem:[#allocation6 + $0xd8] sm:$0xff] }
 0x1dc   : > { %6441 = vmatmul.mubr.msk.f32.gmra.mrb[48].mxu0 %vm124_vm0, %v2133_v42  ;;  %6537 = vmatmul.mubr.msk.f32.gmra.mrb[48].mxu1 %vm124_vm0, %v2133_v42 }
 0x1dd   : > { %v8162_v52 = vpop.permute.xlu1 %789  ;;  %6538 = vmatprep.mubr.msk.f32.mxu1 %vm124_vm0, %v2134_v48  ;;  %6442 = vmatprep.mubr.msk.f32.mxu0 %vm124_vm0, %v2134_v48 }
 0x1de   : > { %2304 = vperm.xlu1 %6997, %v7953_v3   ;;  %2299 = vperm.xlu0 %6996, %v7955_v4   ;;  %v2137_v4 = vld [vmem:[#allocation6 + $0xe0] sm:$0xff] }
 0x1e0   : > { %6443 = vmatmul.mubr.msk.f32.gmra.mrb[50].mxu0 %vm124_vm0, %v2134_v48  ;;  %6539 = vmatmul.mubr.msk.f32.gmra.mrb[50].mxu1 %vm124_vm0, %v2134_v48  ;;  %v8281_v48 = vrot.slane %v595_v37, %v8273_v27 }
 0x1e1   : > { %v8170_v0 = vpop.permute.xlu1 %799  ;;  %6540 = vmatprep.mubr.msk.f32.mxu1 %vm124_vm0, %v2135_v53  ;;  %6444 = vmatprep.mubr.msk.f32.mxu0 %vm124_vm0, %v2135_v53 }
 0x1e2   : > { %2314 = vperm.xlu1 %6997, %v7963_v13   ;;  %2309 = vperm.xlu0 %6996, %v7965_v14   ;;  %v2138_v14 = vld [vmem:[#allocation6 + $0xe8] sm:$0xff] }
 0x1e4   : > { %6445 = vmatmul.mubr.msk.f32.gmra.mrb[52].mxu0 %vm124_vm0, %v2135_v53  ;;  %6541 = vmatmul.mubr.msk.f32.gmra.mrb[52].mxu1 %vm124_vm0, %v2135_v53  ;;  %v8284_v53 = vrot.slane %v595_v37, %v8276_v32 }
 0x1e5   : > { %v8178_v3 = vpop.permute.xlu1 %809  ;;  %6542 = vmatprep.mubr.msk.f32.mxu1 %vm124_vm0, %v2136_v60  ;;  %6446 = vmatprep.mubr.msk.f32.mxu0 %vm124_vm0, %v2136_v60 }
 0x1e6   : > { %2324 = vperm.xlu1 %6997, %v7973_v18   ;;  %2319 = vperm.xlu0 %6996, %v7975_v21   ;;  %v2139_v21 = vld [vmem:[#allocation6 + $0xf0] sm:$0xff] }
 0x1e8   : > { %6447 = vmatmul.mubr.msk.f32.gmra.mrb[54].mxu0 %vm124_vm0, %v2136_v60  ;;  %6543 = vmatmul.mubr.msk.f32.gmra.mrb[54].mxu1 %vm124_vm0, %v2136_v60 }
 0x1e9   : > { %v8186_v13 = vpop.permute.xlu1 %1442  ;;  %6544 = vmatprep.mubr.msk.f32.mxu1 %vm124_vm0, %v2137_v4  ;;  %6448 = vmatprep.mubr.msk.f32.mxu0 %vm124_vm0, %v2137_v4 }
 0x1ea   : > { %2334 = vperm.xlu1 %6997, %v8024_v24   ;;  %2329 = vperm.xlu0 %6996, %v7983_v28   ;;  %v695_v24 = vpop.permute.xlu0 %694 }
 0x1eb   : > { %v864_v58 = vadd.f32 %v8284_v53, %v695_v24 }
 0x1ec   : > { %6449 = vmatmul.mubr.msk.f32.gmra.mrb[56].mxu0 %vm124_vm0, %v2137_v4  ;;  %6545 = vmatmul.mubr.msk.f32.gmra.mrb[56].mxu1 %vm124_vm0, %v2137_v4 }
 0x1ed   : > { %v8194_v18 = vpop.permute.xlu1 %1452  ;;  %6546 = vmatprep.mubr.msk.f32.mxu1 %vm124_vm0, %v2138_v14  ;;  %6450 = vmatprep.mubr.msk.f32.mxu0 %vm124_vm0, %v2138_v14 }
 0x1ee   : > { %2344 = vperm.xlu1 %6997, %v8038_v38   ;;  %2339 = vperm.xlu0 %6996, %v8040_v39   ;;  %v700_v35 = vpop.permute.xlu0 %699 }
 0x1ef   : > { %v865_v37 = vadd.f32 %v8281_v48, %v700_v35 }
 0x1f0   : > { %6451 = vmatmul.mubr.msk.f32.gmra.mrb[58].mxu0 %vm124_vm0, %v2138_v14  ;;  %6547 = vmatmul.mubr.msk.f32.gmra.mrb[58].mxu1 %vm124_vm0, %v2138_v14 }
 0x1f1   : > { %v8202_v28 = vpop.permute.xlu1 %1462  ;;  %6548 = vmatprep.mubr.msk.f32.mxu1 %vm124_vm0, %v2139_v21  ;;  %6452 = vmatprep.mubr.msk.f32.mxu0 %vm124_vm0, %v2139_v21 }
 0x1f2   : > { %2354 = vperm.xlu1 %6997, %v8052_v49   ;;  %2349 = vperm.xlu0 %6996, %v8054_v50   ;;  %v8222_v40 = vpop.permute.xlu0 %714 }
 0x1f4   : > { %6453 = vmatmul.mubr.msk.f32.gmra.mrb[60].mxu0 %vm124_vm0, %v2139_v21  ;;  %6549 = vmatmul.mubr.msk.f32.gmra.mrb[60].mxu1 %vm124_vm0, %v2139_v21  ;;  %v863_v21 = vadd.f32 %v8281_v48, %v695_v24  ;;  %v867_v24 = vadd.f32 %v8281_v48, %v8090_v23 }
 0x1f5   : > { %v8210_v34 = vpop.permute.xlu1 %1472  ;;  %6550 = vmatprep.mubr.msk.f32.mxu1 %vm124_vm0, %v2140_v33  ;;  %6454 = vmatprep.mubr.msk.f32.mxu0 %vm124_vm0, %v2140_v33 }
 0x1f6   : > { %2364 = vperm.xlu1 %6997, %v8066_v61   ;;  %2359 = vperm.xlu0 %6996, %v8068_v1   ;;  %v8226_v45 = vpop.permute.xlu0 %724 }
 0x1f8   : > { %6455 = vmatmul.mubr.msk.f32.gmra.mrb[62].mxu0 %vm124_vm0, %v2140_v33  ;;  %6551 = vmatmul.mubr.msk.f32.gmra.mrb[62].mxu1 %vm124_vm0, %v2140_v33 }
 0x1f9   : > { %v8218_v38 = vpop.permute.xlu1 %1482 }
 0x1fa   : > { %v8232_v50 = vpop.permute.xlu0 %734 }
 0x1fd   : > { %v8220_v39 = vpop.permute.xlu1 %1492 }
 0x1fe   : > { %v8236_v54 = vpop.permute.xlu0 %744 }
 0x201   : > { %v8224_v43 = vpop.permute.xlu1 %1502 }
 0x202   : > { %v8240_v56 = vpop.permute.xlu0 %754 }
 0x205   : > { %v8228_v46 = vpop.permute.xlu1 %1512 }
 0x206   : > { %v8244_v61 = vpop.permute.xlu0 %764 }
 0x209   : > { %v8230_v49 = vpop.permute.xlu1 %1522 }
 0x20a   : > { %v8248_v2 = vpop.permute.xlu0 %774 }
 0x20d   : > { %v8234_v51 = vpop.permute.xlu1 %1532 }
 0x20e   : > { %v8252_v6 = vpop.permute.xlu0 %784 }
 0x211   : > { %v8238_v55 = vpop.permute.xlu1 %819 }
 0x212   : > { %v8256_v8 = vpop.permute.xlu0 %794 }
 0x215   : > { %v8242_v57 = vpop.permute.xlu1 %1547 }
 0x216   : > { %v8260_v15 = vpop.permute.xlu0 %804 }
 0x219   : > { %v8246_v1 = vpop.permute.xlu1 %829 }
 0x21a   : > { %v8264_v17 = vpop.permute.xlu0 %814 }
 0x21d   : > { %v8250_v44 = vpop.permute.xlu1 %1557 }
 0x21e   : > { %v1448_v25 = vpop.permute.xlu0 %1447 }
 0x221   : > { %v8254_v7 = vpop.permute.xlu1 %839 }
 0x222   : > { %11359 = vst [vmem:[#allocation19_spill] sm:$0xff] %v8254_v7  ;;  %v1458_v20 = vpop.permute.xlu0 %1457 }
 0x225   : > { %v8258_v12 = vpop.permute.xlu1 %1567 }
 0x226   : > { %v8278_v42 = vpop.permute.xlu0 %1467 }
 0x229   : > { %v8262_v16 = vpop.permute.xlu1 %849 }
 0x22a   : > { %11360 = vst [vmem:[#allocation20_spill] sm:$0xff] %v8262_v16  ;;  %v8294_v62 = vpop.permute.xlu0 %1477 }
 0x22d   : > { %v8266_v22 = vpop.permute.xlu1 %1577 }
 0x22e   : > { %11361 = vst [vmem:[#allocation21_spill] sm:$0xff] %v8266_v22  ;;  %v8316_v22 = vpop.permute.xlu0 %1487 }
 0x231   : > { %v8268_v30 = vpop.permute.xlu1 %1587 }
 0x232   : > { %11362 = vst [vmem:[#allocation22_spill] sm:$0xff] %v8268_v30 }
 0x235   : > { %v8270_v19 = vpop.permute.xlu1 %1597 }
 0x236   : > { %11363 = vst [vmem:[#allocation23_spill] sm:$0xff] %v8270_v19 }
 0x239   : > { %v8286_v60 = vpop.permute.xlu1 %2214 }
 0x23a   : > { %11366 = vst [vmem:[#allocation26_spill] sm:$0xff] %v8286_v60 }
 0x23d   : > { %v8302_v32 = vpop.permute.xlu1 %2224 }
 0x23e   : > { %11371 = vst [vmem:[#allocation31_spill] sm:$0xff] %v8302_v32 }
 0x24f   : > { %v1185_v4 = vpop.f32.mrb[0].mxu0  ;;  %v8288_v14 = vpop.f32.mrb[0].mxu1 }
 0x250   : > { %11367 = vst [vmem:[#allocation27_spill] sm:$0xff] %v8288_v14  ;;  %v1187_v33 = vpop.f32.mrb[1].mxu0  ;;  %v8291_v63 = vpop.f32.mrb[1].mxu1  ;;  %v1376_v5 = vsub.f32 %v863_v21, %v1185_v4  ;;  %v866_v14 = vadd.f32 %v8284_v53, %v700_v35  ;;  %v868_v4 = vadd.f32 %v8284_v53, %v8090_v23  ;;  %v869_v23 = vadd.f32 %v8281_v48, %v8098_v29 }
 0x251   : > { %11368 = vst [vmem:[#allocation28_spill] sm:$0xff] %v8291_v63  ;;  %v1377_v16 = vsub.f32 %v864_v58, %v1187_v33  ;;  %v8314_v33 = vstv %s6973_s29 }
 0x252   : > { %v1600_v21 = vsub.f32 %v8186_v13, %v1376_v5 }
 0x253   : > { %v1191_v10 = vpop.f32.mrb[2].mxu0  ;;  %v8296_v59 = vpop.f32.mrb[2].mxu1  ;;  %v1601_v35 = vsub.f32 %v8186_v13, %v1377_v16 }
 0x254   : > { %11369 = vst [vmem:[#allocation29_spill] sm:$0xff] %v8296_v59  ;;  %v1193_v19 = vpop.f32.mrb[3].mxu0  ;;  %v8299_v60 = vpop.f32.mrb[3].mxu1  ;;  %v1378_v59 = vsub.f32 %v865_v37, %v1191_v10  ;;  %v870_v37 = vadd.f32 %v8284_v53, %v8098_v29  ;;  %v8327_v13 = vmul.f32 %v8314_v33, %v1600_v21 }
 0x255   : > { %11370 = vst [vmem:[#allocation30_spill] sm:$0xff] %v8299_v60  ;;  %v1379_v32 = vsub.f32 %v866_v14, %v1193_v19  ;;  %v8340_v29 = vpop.permute.xlu1 %2234 }
 0x256   : > { %v1602_v16 = vsub.f32 %v1448_v25, %v1378_v59  ;;  %11377 = vst [vmem:[#allocation37_spill] sm:$0xff] %v8340_v29 }
 0x257   : > { %v1197_v63 = vpop.f32.mrb[4].mxu0  ;;  %v8306_v27 = vpop.f32.mrb[4].mxu1 }
 0x258   : > { %11372 = vst [vmem:[#allocation32_spill] sm:$0xff] %v8306_v27  ;;  %v1380_v30 = vsub.f32 %v867_v24, %v1197_v63  ;;  %v1199_v60 = vpop.f32.mrb[5].mxu0  ;;  %v8311_v58 = vpop.f32.mrb[5].mxu1  ;;  %v8335_v24 = vmul.f32 %v8314_v33, %v1601_v35 }
 0x259   : > { %11373 = vst [vmem:[#allocation33_spill] sm:$0xff] %v8311_v58  ;;  %v1381_v7 = vsub.f32 %v868_v4, %v1199_v60 }
 0x25a   : > { %v1604_v27 = vsub.f32 %v8194_v18, %v1380_v30 }
 0x25b   : > { %v1605_v5 = vsub.f32 %v8194_v18, %v1381_v7  ;;  %v1203_v10 = vpop.f32.mrb[6].mxu0  ;;  %v8322_v63 = vpop.f32.mrb[6].mxu1  ;;  %v1603_v18 = vsub.f32 %v1448_v25, %v1379_v32  ;;  %v872_v25 = vadd.f32 %v8284_v53, %v8222_v40  ;;  %v8353_v32 = vmul.f32 %v8314_v33, %v1602_v16 }
 0x25c   : > { %11374 = vst [vmem:[#allocation34_spill] sm:$0xff] %v8322_v63  ;;  %v8330_v19 = vmul.f32 %v8314_v33, %v1604_v27  ;;  %v1382_v60 = vsub.f32 %v869_v23, %v1203_v10  ;;  %v1205_v30 = vpop.f32.mrb[7].mxu0  ;;  %v8332_v14 = vpop.f32.mrb[7].mxu1  ;;  %v871_v27 = vadd.f32 %v8281_v48, %v8222_v40 }
 0x25d   : > { %11375 = vst [vmem:[#allocation35_spill] sm:$0xff] %v8332_v14  ;;  %v8338_v7 = vmul.f32 %v8314_v33, %v1605_v5  ;;  %v1383_v4 = vsub.f32 %v870_v37, %v1205_v30  ;;  %v8361_v63 = vmul.f32 %v8314_v33, %v1603_v18 }
 0x25e   : > { %v1729_v59 = vmax.f32 %v8327_v13, %v8330_v19  ;;  %v1606_v21 = vsub.f32 %v1458_v20, %v1382_v60 }
 0x25f   : > { %11376 = vst [vmem:[#allocation36_spill] sm:$0xff] %v8338_v7  ;;  %v1766_v23 = vmax.f32 %v8335_v24, %v8338_v7  ;;  %v1607_v10 = vsub.f32 %v1458_v20, %v1383_v4  ;;  %v1209_v35 = vpop.f32.mrb[8].mxu0  ;;  %v8348_v14 = vpop.f32.mrb[8].mxu1 }
 0x260   : > { %11378 = vst [vmem:[#allocation38_spill] sm:$0xff] %v8348_v14  ;;  %v8356_v5 = vmul.f32 %v8314_v33, %v1606_v21  ;;  %v1384_v37 = vsub.f32 %v871_v27, %v1209_v35  ;;  %v1211_v60 = vpop.f32.mrb[9].mxu0  ;;  %v8358_v30 = vpop.f32.mrb[9].mxu1  ;;  %v873_v21 = vadd.f32 %v8281_v48, %v8106_v11 }
 0x261   : > { %11379 = vst [vmem:[#allocation39_spill] sm:$0xff] %v8358_v30  ;;  %v8364_v20 = vmul.f32 %v8314_v33, %v1607_v10  ;;  %v1385_v4 = vsub.f32 %v872_v25, %v1211_v60  ;;  %v8366_v14 = vpop.permute.xlu0 %1497  ;;  %v874_v10 = vadd.f32 %v8284_v53, %v8106_v11  ;;  %v875_v11 = vadd.f32 %v8281_v48, %v8226_v45 }
 0x262   : > { %v1730_v40 = vmax.f32 %v8353_v32, %v8356_v5  ;;  %v1608_v16 = vsub.f32 %v8202_v28, %v1384_v37 }
 0x263   : > { %11380 = vst [vmem:[#allocation40_spill] sm:$0xff] %v8364_v20  ;;  %v1767_v27 = vmax.f32 %v8361_v63, %v8364_v20  ;;  %v1609_v18 = vsub.f32 %v8202_v28, %v1385_v4  ;;  %v1215_v35 = vpop.f32.mrb[10].mxu0  ;;  %v8376_v30 = vpop.f32.mrb[10].mxu1 }
 0x264   : > { %11381 = vst [vmem:[#allocation41_spill] sm:$0xff] %v8376_v30  ;;  %v8381_v25 = vmul.f32 %v8314_v33, %v1608_v16  ;;  %v1386_v60 = vsub.f32 %v873_v21, %v1215_v35  ;;  %v1217_v58 = vpop.f32.mrb[11].mxu0  ;;  %v8383_v37 = vpop.f32.mrb[11].mxu1 }
 0x265   : > { %11382 = vst [vmem:[#allocation42_spill] sm:$0xff] %v8383_v37  ;;  %v8386_v29 = vmul.f32 %v8314_v33, %v1609_v18  ;;  %v1387_v7 = vsub.f32 %v874_v10, %v1217_v58  ;;  %v8388_v20 = vpop.permute.xlu1 %2244  ;;  %v876_v18 = vadd.f32 %v8284_v53, %v8226_v45  ;;  %v877_v45 = vadd.f32 %v8281_v48, %v8114_v9 }
 0x266   : > { %11384 = vst [vmem:[#allocation44_spill] sm:$0xff] %v8388_v20  ;;  %v1731_v28 = vmax.f32 %v1729_v59, %v8381_v25  ;;  %v1610_v4 = vsub.f32 %v8278_v42, %v1386_v60 }
 0x267   : > { %11383 = vst [vmem:[#allocation43_spill] sm:$0xff] %v8386_v29  ;;  %v1768_v16 = vmax.f32 %v1766_v23, %v8386_v29  ;;  %v1611_v21 = vsub.f32 %v8278_v42, %v1387_v7  ;;  %v1221_v35 = vpop.f32.mrb[12].mxu0  ;;  %v8396_v30 = vpop.f32.mrb[12].mxu1 }
 0x268   : > { %11385 = vst [vmem:[#allocation45_spill] sm:$0xff] %v8396_v30  ;;  %v8401_v58 = vmul.f32 %v8314_v33, %v1610_v4  ;;  %v1388_v10 = vsub.f32 %v875_v11, %v1221_v35  ;;  %v1223_v59 = vpop.f32.mrb[13].mxu0  ;;  %v8403_v37 = vpop.f32.mrb[13].mxu1 }
 0x269   : > { %11386 = vst [vmem:[#allocation46_spill] sm:$0xff] %v8403_v37  ;;  %v8406_v60 = vmul.f32 %v8314_v33, %v1611_v21  ;;  %v1389_v20 = vsub.f32 %v876_v18, %v1223_v59  ;;  %v8408_v23 = vpop.permute.xlu0 %1507  ;;  %v878_v21 = vadd.f32 %v8284_v53, %v8114_v9  ;;  %v879_v9 = vadd.f32 %v8281_v48, %v8232_v50 }
 0x26a   : > { %v1732_v42 = vmax.f32 %v1730_v40, %v8401_v58  ;;  %v1612_v7 = vsub.f32 %v8210_v34, %v1388_v10 }
 0x26b   : > { %v1769_v4 = vmax.f32 %v1767_v27, %v8406_v60  ;;  %v1613_v11 = vsub.f32 %v8210_v34, %v1389_v20  ;;  %v1227_v35 = vpop.f32.mrb[14].mxu0  ;;  %v8416_v30 = vpop.f32.mrb[14].mxu1 }
 0x26c   : > { %11387 = vst [vmem:[#allocation47_spill] sm:$0xff] %v8416_v30  ;;  %v8421_v18 = vmul.f32 %v8314_v33, %v1612_v7  ;;  %v1390_v59 = vsub.f32 %v877_v45, %v1227_v35  ;;  %v1229_v40 = vpop.f32.mrb[15].mxu0  ;;  %v8423_v37 = vpop.f32.mrb[15].mxu1 }
 0x26d   : > { %11388 = vst [vmem:[#allocation48_spill] sm:$0xff] %v8423_v37  ;;  %v8426_v10 = vmul.f32 %v8314_v33, %v1613_v11  ;;  %v1391_v29 = vsub.f32 %v878_v21, %v1229_v40  ;;  %v8428_v27 = vpop.permute.xlu1 %2254  ;;  %v880_v11 = vadd.f32 %v8284_v53, %v8232_v50  ;;  %v881_v50 = vadd.f32 %v8281_v48, %v8122_v26 }
 0x26e   : > { %11390 = vst [vmem:[#allocation50_spill] sm:$0xff] %v8428_v27  ;;  %v1733_v34 = vmax.f32 %v1731_v28, %v8421_v18  ;;  %v1614_v20 = vsub.f32 %v8294_v62, %v1390_v59 }
 0x26f   : > { %11389 = vst [vmem:[#allocation49_spill] sm:$0xff] %v8426_v10  ;;  %v1770_v7 = vmax.f32 %v1768_v16, %v8426_v10  ;;  %v1615_v45 = vsub.f32 %v8294_v62, %v1391_v29  ;;  %v1233_v35 = vpop.f32.mrb[16].mxu0  ;;  %v8436_v30 = vpop.f32.mrb[16].mxu1 }
 0x270   : > { %11391 = vst [vmem:[#allocation51_spill] sm:$0xff] %v8436_v30  ;;  %v8441_v21 = vmul.f32 %v8314_v33, %v1614_v20  ;;  %v1392_v40 = vsub.f32 %v879_v9, %v1233_v35  ;;  %v1235_v28 = vpop.f32.mrb[17].mxu0  ;;  %v8443_v37 = vpop.f32.mrb[17].mxu1 }
 0x271   : > { %11392 = vst [vmem:[#allocation52_spill] sm:$0xff] %v8443_v37  ;;  %v8446_v59 = vmul.f32 %v8314_v33, %v1615_v45  ;;  %v1393_v27 = vsub.f32 %v880_v11, %v1235_v28  ;;  %v8448_v16 = vpop.permute.xlu0 %1517  ;;  %v882_v45 = vadd.f32 %v8284_v53, %v8122_v26  ;;  %v883_v26 = vadd.f32 %v8281_v48, %v8236_v54 }
 0x272   : > { %v1734_v62 = vmax.f32 %v1732_v42, %v8441_v21  ;;  %v1616_v29 = vsub.f32 %v8218_v38, %v1392_v40 }
 0x273   : > { %11393 = vst [vmem:[#allocation53_spill] sm:$0xff] %v8446_v59  ;;  %v1771_v20 = vmax.f32 %v1769_v4, %v8446_v59  ;;  %v1617_v9 = vsub.f32 %v8218_v38, %v1393_v27  ;;  %v1239_v35 = vpop.f32.mrb[18].mxu0  ;;  %v8456_v30 = vpop.f32.mrb[18].mxu1 }
 0x274   : > { %11394 = vst [vmem:[#allocation54_spill] sm:$0xff] %v8456_v30  ;;  %v8461_v11 = vmul.f32 %v8314_v33, %v1616_v29  ;;  %v1394_v28 = vsub.f32 %v881_v50, %v1239_v35  ;;  %v1241_v42 = vpop.f32.mrb[19].mxu0  ;;  %v8463_v37 = vpop.f32.mrb[19].mxu1 }
 0x275   : > { %11395 = vst [vmem:[#allocation55_spill] sm:$0xff] %v8463_v37  ;;  %v8466_v40 = vmul.f32 %v8314_v33, %v1617_v9  ;;  %v1395_v10 = vsub.f32 %v882_v45, %v1241_v42  ;;  %v8468_v4 = vpop.permute.xlu1 %2264  ;;  %v884_v9 = vadd.f32 %v8284_v53, %v8236_v54  ;;  %v885_v54 = vadd.f32 %v8281_v48, %v8130_v31 }
 0x276   : > { %11397 = vst [vmem:[#allocation57_spill] sm:$0xff] %v8468_v4  ;;  %v1735_v38 = vmax.f32 %v1733_v34, %v8461_v11  ;;  %v1618_v27 = vsub.f32 %v8316_v22, %v1394_v28 }
 0x277   : > { %11396 = vst [vmem:[#allocation56_spill] sm:$0xff] %v8466_v40  ;;  %v1772_v29 = vmax.f32 %v1770_v7, %v8466_v40  ;;  %v1619_v50 = vsub.f32 %v8316_v22, %v1395_v10  ;;  %v1245_v35 = vpop.f32.mrb[20].mxu0  ;;  %v8476_v30 = vpop.f32.mrb[20].mxu1 }
 0x278   : > { %11398 = vst [vmem:[#allocation58_spill] sm:$0xff] %v8476_v30  ;;  %v8481_v45 = vmul.f32 %v8314_v33, %v1618_v27  ;;  %v1396_v42 = vsub.f32 %v883_v26, %v1245_v35  ;;  %v1247_v34 = vpop.f32.mrb[21].mxu0  ;;  %v8483_v37 = vpop.f32.mrb[21].mxu1 }
 0x279   : > { %11399 = vst [vmem:[#allocation59_spill] sm:$0xff] %v8483_v37  ;;  %v8486_v28 = vmul.f32 %v8314_v33, %v1619_v50  ;;  %v1397_v4 = vsub.f32 %v884_v9, %v1247_v34  ;;  %v8488_v7 = vpop.permute.xlu0 %1527  ;;  %v886_v50 = vadd.f32 %v8284_v53, %v8130_v31  ;;  %v887_v31 = vadd.f32 %v8281_v48, %v8240_v56 }
 0x27a   : > { %v1736_v22 = vmax.f32 %v1734_v62, %v8481_v45  ;;  %v1620_v10 = vsub.f32 %v8220_v39, %v1396_v42 }
 0x27b   : > { %11400 = vst [vmem:[#allocation60_spill] sm:$0xff] %v8486_v28  ;;  %v1773_v27 = vmax.f32 %v1771_v20, %v8486_v28  ;;  %v1621_v26 = vsub.f32 %v8220_v39, %v1397_v4  ;;  %v1251_v35 = vpop.f32.mrb[22].mxu0  ;;  %v8496_v30 = vpop.f32.mrb[22].mxu1  ;;  %v908_v28 = vadd.f32 %v8284_v53, %v8260_v15 }
 0x27c   : > { %11401 = vst [vmem:[#allocation61_spill] sm:$0xff] %v8496_v30  ;;  %v8501_v9 = vmul.f32 %v8314_v33, %v1620_v10  ;;  %v1398_v34 = vsub.f32 %v885_v54, %v1251_v35  ;;  %v1253_v62 = vpop.f32.mrb[23].mxu0  ;;  %v8503_v37 = vpop.f32.mrb[23].mxu1 }
 0x27d   : > { %11402 = vst [vmem:[#allocation62_spill] sm:$0xff] %v8503_v37  ;;  %v8506_v42 = vmul.f32 %v8314_v33, %v1621_v26  ;;  %v1399_v40 = vsub.f32 %v886_v50, %v1253_v62  ;;  %v8508_v20 = vpop.permute.xlu1 %2274  ;;  %v888_v26 = vadd.f32 %v8284_v53, %v8240_v56  ;;  %v889_v56 = vadd.f32 %v8281_v48, %v8138_v36 }
 0x27e   : > { %11404 = vst [vmem:[#allocation64_spill] sm:$0xff] %v8508_v20  ;;  %v1737_v39 = vmax.f32 %v1735_v38, %v8501_v9  ;;  %v1622_v4 = vsub.f32 %v8366_v14, %v1398_v34 }
 0x27f   : > { %11403 = vst [vmem:[#allocation63_spill] sm:$0xff] %v8506_v42  ;;  %v1774_v10 = vmax.f32 %v1772_v29, %v8506_v42  ;;  %v1623_v54 = vsub.f32 %v8366_v14, %v1399_v40  ;;  %v1257_v35 = vpop.f32.mrb[24].mxu0  ;;  %v8516_v30 = vpop.f32.mrb[24].mxu1 }
 0x280   : > { %11405 = vst [vmem:[#allocation65_spill] sm:$0xff] %v8516_v30  ;;  %v8521_v50 = vmul.f32 %v8314_v33, %v1622_v4  ;;  %v1400_v62 = vsub.f32 %v887_v31, %v1257_v35  ;;  %v1259_v38 = vpop.f32.mrb[25].mxu0  ;;  %v8523_v37 = vpop.f32.mrb[25].mxu1 }
 0x281   : > { %11406 = vst [vmem:[#allocation66_spill] sm:$0xff] %v8523_v37  ;;  %v8526_v34 = vmul.f32 %v8314_v33, %v1623_v54  ;;  %v1401_v20 = vsub.f32 %v888_v26, %v1259_v38  ;;  %v8528_v29 = vpop.permute.xlu0 %1537  ;;  %v890_v54 = vadd.f32 %v8284_v53, %v8138_v36  ;;  %v891_v36 = vadd.f32 %v8281_v48, %v8244_v61 }
 0x282   : > { %v1738_v14 = vmax.f32 %v1736_v22, %v8521_v50  ;;  %v1624_v40 = vsub.f32 %v8224_v43, %v1400_v62 }
 0x283   : > { %11407 = vst [vmem:[#allocation67_spill] sm:$0xff] %v8526_v34  ;;  %v1775_v4 = vmax.f32 %v1773_v27, %v8526_v34  ;;  %v1625_v31 = vsub.f32 %v8224_v43, %v1401_v20  ;;  %v1263_v35 = vpop.f32.mrb[26].mxu0  ;;  %v8536_v30 = vpop.f32.mrb[26].mxu1 }
 0x284   : > { %11408 = vst [vmem:[#allocation68_spill] sm:$0xff] %v8536_v30  ;;  %v8541_v26 = vmul.f32 %v8314_v33, %v1624_v40  ;;  %v1402_v38 = vsub.f32 %v889_v56, %v1263_v35  ;;  %v1265_v22 = vpop.f32.mrb[27].mxu0  ;;  %v8543_v37 = vpop.f32.mrb[27].mxu1 }
 0x285   : > { %11409 = vst [vmem:[#allocation69_spill] sm:$0xff] %v8543_v37  ;;  %v8546_v62 = vmul.f32 %v8314_v33, %v1625_v31  ;;  %v1403_v42 = vsub.f32 %v890_v54, %v1265_v22  ;;  %v8548_v27 = vpop.permute.xlu1 %2284  ;;  %v892_v31 = vadd.f32 %v8284_v53, %v8244_v61  ;;  %v893_v61 = vadd.f32 %v8281_v48, %v8146_v41 }
 0x286   : > { %11411 = vst [vmem:[#allocation71_spill] sm:$0xff] %v8548_v27  ;;  %v1739_v43 = vmax.f32 %v1737_v39, %v8541_v26  ;;  %v1626_v20 = vsub.f32 %v8408_v23, %v1402_v38 }
 0x287   : > { %11410 = vst [vmem:[#allocation70_spill] sm:$0xff] %v8546_v62  ;;  %v1776_v40 = vmax.f32 %v1774_v10, %v8546_v62  ;;  %v1627_v56 = vsub.f32 %v8408_v23, %v1403_v42  ;;  %v1269_v35 = vpop.f32.mrb[28].mxu0  ;;  %v8556_v30 = vpop.f32.mrb[28].mxu1 }
 0x288   : > { %11412 = vst [vmem:[#allocation72_spill] sm:$0xff] %v8556_v30  ;;  %v8561_v54 = vmul.f32 %v8314_v33, %v1626_v20  ;;  %v1404_v22 = vsub.f32 %v891_v36, %v1269_v35  ;;  %v1271_v39 = vpop.f32.mrb[29].mxu0  ;;  %v8563_v37 = vpop.f32.mrb[29].mxu1 }
 0x289   : > { %11413 = vst [vmem:[#allocation73_spill] sm:$0xff] %v8563_v37  ;;  %v8566_v38 = vmul.f32 %v8314_v33, %v1627_v56  ;;  %v1405_v27 = vsub.f32 %v892_v31, %v1271_v39  ;;  %v8568_v10 = vpop.permute.xlu0 %1542  ;;  %v894_v56 = vadd.f32 %v8284_v53, %v8146_v41  ;;  %v895_v41 = vadd.f32 %v8281_v48, %v8248_v2 }
 0x28a   : > { %v1740_v23 = vmax.f32 %v1738_v14, %v8561_v54  ;;  %v1628_v42 = vsub.f32 %v8228_v46, %v1404_v22 }
 0x28b   : > { %11414 = vst [vmem:[#allocation74_spill] sm:$0xff] %v8566_v38  ;;  %v1777_v20 = vmax.f32 %v1775_v4, %v8566_v38  ;;  %v1629_v36 = vsub.f32 %v8228_v46, %v1405_v27  ;;  %v1275_v35 = vpop.f32.mrb[30].mxu0  ;;  %v8576_v30 = vpop.f32.mrb[30].mxu1  ;;  %v906_v38 = vadd.f32 %v8284_v53, %v8170_v0 }
 0x28c   : > { %11415 = vst [vmem:[#allocation75_spill] sm:$0xff] %v8576_v30  ;;  %v8581_v31 = vmul.f32 %v8314_v33, %v1628_v42  ;;  %v1406_v39 = vsub.f32 %v893_v61, %v1275_v35  ;;  %v1277_v14 = vpop.f32.mrb[31].mxu0  ;;  %v8583_v37 = vpop.f32.mrb[31].mxu1 }
 0x28d   : > { %11416 = vst [vmem:[#allocation76_spill] sm:$0xff] %v8583_v37  ;;  %v8586_v22 = vmul.f32 %v8314_v33, %v1629_v36  ;;  %v1407_v62 = vsub.f32 %v894_v56, %v1277_v14  ;;  %v8588_v4 = vpop.permute.xlu1 %2294  ;;  %v896_v36 = vadd.f32 %v8284_v53, %v8248_v2  ;;  %v897_v2 = vadd.f32 %v8281_v48, %v8154_v47 }
 0x28e   : > { %11418 = vst [vmem:[#allocation78_spill] sm:$0xff] %v8588_v4  ;;  %v1741_v46 = vmax.f32 %v1739_v43, %v8581_v31  ;;  %v1630_v27 = vsub.f32 %v8448_v16, %v1406_v39 }
 0x28f   : > { %11417 = vst [vmem:[#allocation77_spill] sm:$0xff] %v8586_v22  ;;  %v1778_v42 = vmax.f32 %v1776_v40, %v8586_v22  ;;  %v1631_v61 = vsub.f32 %v8448_v16, %v1407_v62  ;;  %v1281_v35 = vpop.f32.mrb[32].mxu0  ;;  %v8596_v30 = vpop.f32.mrb[32].mxu1 }
 0x290   : > { %11419 = vst [vmem:[#allocation79_spill] sm:$0xff] %v8596_v30  ;;  %v8601_v56 = vmul.f32 %v8314_v33, %v1630_v27  ;;  %v1408_v14 = vsub.f32 %v895_v41, %v1281_v35  ;;  %v1283_v43 = vpop.f32.mrb[33].mxu0  ;;  %v8603_v37 = vpop.f32.mrb[33].mxu1 }
 0x291   : > { %11420 = vst [vmem:[#allocation80_spill] sm:$0xff] %v8603_v37  ;;  %v8606_v39 = vmul.f32 %v8314_v33, %v1631_v61  ;;  %v1409_v4 = vsub.f32 %v896_v36, %v1283_v43  ;;  %v8608_v40 = vpop.permute.xlu0 %824  ;;  %v898_v61 = vadd.f32 %v8284_v53, %v8154_v47  ;;  %v899_v47 = vadd.f32 %v8281_v48, %v8252_v6 }
 0x292   : > { %v1742_v16 = vmax.f32 %v1740_v23, %v8601_v56  ;;  %v1632_v62 = vsub.f32 %v8230_v49, %v1408_v14 }
 0x293   : > { %11421 = vst [vmem:[#allocation81_spill] sm:$0xff] %v8606_v39  ;;  %v1779_v27 = vmax.f32 %v1777_v20, %v8606_v39  ;;  %v1633_v41 = vsub.f32 %v8230_v49, %v1409_v4  ;;  %v1287_v35 = vpop.f32.mrb[34].mxu0  ;;  %v8616_v30 = vpop.f32.mrb[34].mxu1 }
 0x294   : > { %11422 = vst [vmem:[#allocation82_spill] sm:$0xff] %v8616_v30  ;;  %v8621_v36 = vmul.f32 %v8314_v33, %v1632_v62  ;;  %v1410_v43 = vsub.f32 %v897_v2, %v1287_v35  ;;  %v1289_v23 = vpop.f32.mrb[35].mxu0  ;;  %v8623_v37 = vpop.f32.mrb[35].mxu1 }
 0x295   : > { %11423 = vst [vmem:[#allocation83_spill] sm:$0xff] %v8623_v37  ;;  %v8626_v14 = vmul.f32 %v8314_v33, %v1633_v41  ;;  %v1411_v22 = vsub.f32 %v898_v61, %v1289_v23  ;;  %v8628_v20 = vpop.permute.xlu1 %2304  ;;  %v900_v41 = vadd.f32 %v8284_v53, %v8252_v6  ;;  %v901_v6 = vadd.f32 %v8281_v48, %v8162_v52 }
 0x296   : > { %11425 = vst [vmem:[#allocation85_spill] sm:$0xff] %v8628_v20  ;;  %v1743_v49 = vmax.f32 %v1741_v46, %v8621_v36  ;;  %v1634_v4 = vsub.f32 %v8488_v7, %v1410_v43 }
 0x297   : > { %11424 = vst [vmem:[#allocation84_spill] sm:$0xff] %v8626_v14  ;;  %v1780_v62 = vmax.f32 %v1778_v42, %v8626_v14  ;;  %v1635_v2 = vsub.f32 %v8488_v7, %v1411_v22  ;;  %v1293_v35 = vpop.f32.mrb[36].mxu0  ;;  %v8636_v30 = vpop.f32.mrb[36].mxu1  ;;  %v909_v14 = vadd.f32 %v8281_v48, %v8178_v3 }
 0x298   : > { %11426 = vst [vmem:[#allocation86_spill] sm:$0xff] %v8636_v30  ;;  %v8641_v61 = vmul.f32 %v8314_v33, %v1634_v4  ;;  %v1412_v23 = vsub.f32 %v899_v47, %v1293_v35  ;;  %v1295_v46 = vpop.f32.mrb[37].mxu0  ;;  %v8643_v37 = vpop.f32.mrb[37].mxu1 }
 0x299   : > { %11427 = vst [vmem:[#allocation87_spill] sm:$0xff] %v8643_v37  ;;  %v8646_v43 = vmul.f32 %v8314_v33, %v1635_v2  ;;  %v1413_v20 = vsub.f32 %v900_v41, %v1295_v46  ;;  %v8648_v42 = vpop.permute.xlu0 %1552  ;;  %v902_v2 = vadd.f32 %v8284_v53, %v8162_v52  ;;  %v903_v52 = vadd.f32 %v8281_v48, %v8256_v8 }
 0x29a   : > { %v1744_v7 = vmax.f32 %v1742_v16, %v8641_v61  ;;  %v1636_v22 = vsub.f32 %v8234_v51, %v1412_v23 }
 0x29b   : > { %11428 = vst [vmem:[#allocation88_spill] sm:$0xff] %v8646_v43  ;;  %v8655_v4 = vmax.f32 %v1779_v27, %v8646_v43  ;;  %v1637_v47 = vsub.f32 %v8234_v51, %v1413_v20  ;;  %v1299_v35 = vpop.f32.mrb[38].mxu0  ;;  %v8658_v37 = vpop.f32.mrb[38].mxu1 }
 0x29c   : > { %11429 = vst [vmem:[#allocation89_spill] sm:$0xff] %v8658_v37  ;;  %v8663_v41 = vmul.f32 %v8314_v33, %v1636_v22  ;;  %v1414_v16 = vsub.f32 %v901_v6, %v1299_v35  ;;  %v1301_v46 = vpop.f32.mrb[39].mxu0  ;;  %v8665_v23 = vpop.f32.mrb[39].mxu1 }
 0x29d   : > { %11430 = vst [vmem:[#allocation90_spill] sm:$0xff] %v8665_v23  ;;  %v8668_v30 = vmul.f32 %v8314_v33, %v1637_v47  ;;  %v1415_v27 = vsub.f32 %v902_v2, %v1301_v46  ;;  %v8670_v43 = vpop.permute.xlu1 %2314  ;;  %v904_v47 = vadd.f32 %v8284_v53, %v8256_v8  ;;  %v905_v8 = vadd.f32 %v8281_v48, %v8170_v0 }
 0x29e   : > { %11432 = vst [vmem:[#allocation92_spill] sm:$0xff] %v8670_v43  ;;  %v1745_v51 = vmax.f32 %v1743_v49, %v8663_v41  ;;  %v1638_v20 = vsub.f32 %v8528_v29, %v1414_v16 }
 0x29f   : > { %11431 = vst [vmem:[#allocation91_spill] sm:$0xff] %v8668_v30  ;;  %v1782_v22 = vmax.f32 %v1780_v62, %v8668_v30  ;;  %v1639_v6 = vsub.f32 %v8528_v29, %v1415_v27  ;;  %v1305_v35 = vpop.f32.mrb[40].mxu0  ;;  %v8678_v37 = vpop.f32.mrb[40].mxu1 }
 0x2a0   : > { %11433 = vst [vmem:[#allocation93_spill] sm:$0xff] %v8678_v37  ;;  %v8683_v2 = vmul.f32 %v8314_v33, %v1638_v20  ;;  %v1416_v46 = vsub.f32 %v903_v52, %v1305_v35  ;;  %v1307_v49 = vpop.f32.mrb[41].mxu0  ;;  %v8685_v23 = vpop.f32.mrb[41].mxu1 }
 0x2a1   : > { %11434 = vst [vmem:[#allocation94_spill] sm:$0xff] %v8685_v23  ;;  %v8688_v16 = vmul.f32 %v8314_v33, %v1639_v6  ;;  %v1417_v43 = vsub.f32 %v904_v47, %v1307_v49  ;;  %v8690_v62 = vpop.permute.xlu0 %834 }
 0x2a2   : > { %v1746_v29 = vmax.f32 %v1744_v7, %v8683_v2  ;;  %v1640_v27 = vsub.f32 %v8568_v10, %v1416_v46  ;;  %v8709_v46 = vpop.permute.xlu1 %2324 }
 0x2a3   : > { %v1641_v52 = vsub.f32 %v8568_v10, %v1417_v43  ;;  %v1311_v35 = vpop.f32.mrb[42].mxu0  ;;  %v8699_v23 = vpop.f32.mrb[42].mxu1  ;;  %11438 = vst [vmem:[#allocation98_spill] sm:$0xff] %v8709_v46  ;;  %v907_v10 = vadd.f32 %v8281_v48, %v8260_v15 }
 0x2a4   : > { %11435 = vst [vmem:[#allocation95_spill] sm:$0xff] %v8699_v23  ;;  %v8702_v6 = vmul.f32 %v8314_v33, %v1640_v27  ;;  %v1418_v47 = vsub.f32 %v905_v8, %v1311_v35  ;;  %v1313_v49 = vpop.f32.mrb[43].mxu0  ;;  %v8704_v37 = vpop.f32.mrb[43].mxu1 }
 0x2a5   : > { %11436 = vst [vmem:[#allocation96_spill] sm:$0xff] %v8704_v37  ;;  %v8707_v7 = vmul.f32 %v8314_v33, %v1641_v52  ;;  %v1563_v46 = vpop.permute.xlu0 %1562 }
 0x2a6   : > { %v1747_v30 = vmax.f32 %v1745_v51, %v8702_v6  ;;  %v1642_v20 = vsub.f32 %v8242_v57, %v1418_v47 }
 0x2a7   : > { %11437 = vst [vmem:[#allocation97_spill] sm:$0xff] %v8707_v7  ;;  %v8716_v43 = vmax.f32 %v1782_v22, %v8707_v7  ;;  %v1317_v27 = vpop.f32.mrb[44].mxu0  ;;  %v8718_v8 = vpop.f32.mrb[44].mxu1 }
 0x2a8   : > { %11439 = vst [vmem:[#allocation99_spill] sm:$0xff] %v8718_v8  ;;  %v8721_v35 = vmul.f32 %v8314_v33, %v1642_v20  ;;  %v1420_v52 = vsub.f32 %v907_v10, %v1317_v27  ;;  %v1319_v37 = vpop.f32.mrb[45].mxu0  ;;  %v8723_v23 = vpop.f32.mrb[45].mxu1 }
 0x2a9   : > { %11440 = vst [vmem:[#allocation100_spill] sm:$0xff] %v8723_v23  ;;  %v8736_v27 = vpop.permute.xlu1 %2334 }
 0x2aa   : > { %v1748_v51 = vmax.f32 %v1746_v29, %v8721_v35  ;;  %v1644_v47 = vsub.f32 %v8648_v42, %v1420_v52  ;;  %11444 = vst [vmem:[#allocation104_spill] sm:$0xff] %v8736_v27  ;;  %v911_v52 = vadd.f32 %v8281_v48, %v8264_v17  ;;  %v1419_v27 = vsub.f32 %v906_v38, %v1313_v49 }
 0x2ab   : > { %v1323_v22 = vpop.f32.mrb[46].mxu0  ;;  %v8729_v7 = vpop.f32.mrb[46].mxu1  ;;  %v914_v38 = vadd.f32 %v8284_v53, %v8238_v55  ;;  %v1421_v49 = vsub.f32 %v908_v28, %v1319_v37  ;;  %v915_v37 = vadd.f32 %v8281_v48, %v8608_v40 }
 0x2ac   : > { %11441 = vst [vmem:[#allocation101_spill] sm:$0xff] %v8729_v7  ;;  %v8732_v8 = vmul.f32 %v8314_v33, %v1644_v47  ;;  %v1422_v20 = vsub.f32 %v909_v14, %v1323_v22  ;;  %v1325_v39 = vpop.f32.mrb[47].mxu0  ;;  %v8734_v10 = vpop.f32.mrb[47].mxu1 }
 0x2ad   : > { %11443 = vst [vmem:[#allocation103_spill] sm:$0xff] %v8734_v10 }
 0x2ae   : > { %11442 = vst [vmem:[#allocation102_spill] sm:$0xff] %v8732_v8  ;;  %v1749_v23 = vmax.f32 %v1747_v30, %v8732_v8  ;;  %v1646_v29 = vsub.f32 %v8250_v44, %v1422_v20  ;;  %v910_v30 = vadd.f32 %v8284_v53, %v8178_v3  ;;  %v8753_v20 = vpop.permute.xlu0 %844 }
 0x2af   : > { %v1329_v7 = vpop.f32.mrb[48].mxu0  ;;  %v8744_v34 = vpop.f32.mrb[48].mxu1 }
 0x2b0   : > { %11445 = vst [vmem:[#allocation105_spill] sm:$0xff] %v8744_v34  ;;  %v8747_v14 = vmul.f32 %v8314_v33, %v1646_v29  ;;  %v1424_v47 = vsub.f32 %v911_v52, %v1329_v7  ;;  %v1331_v22 = vpop.f32.mrb[49].mxu0  ;;  %v8749_v10 = vpop.f32.mrb[49].mxu1  ;;  %v913_v29 = vadd.f32 %v8281_v48, %v8238_v55  ;;  %v1423_v34 = vsub.f32 %v910_v30, %v1325_v39 }
 0x2b1   : > { %11446 = vst [vmem:[#allocation106_spill] sm:$0xff] %v8749_v10  ;;  %v8772_v30 = vpop.permute.xlu1 %2344 }
 0x2b2   : > { %v1750_v0 = vmax.f32 %v1748_v51, %v8747_v14  ;;  %v1648_v59 = vsub.f32 %v1563_v46, %v1424_v47  ;;  %v1643_v51 = vsub.f32 %v8242_v57, %v1419_v27  ;;  %v912_v47 = vadd.f32 %v8284_v53, %v8264_v17  ;;  %11449 = vst [vmem:[#allocation109_spill] sm:$0xff] %v8772_v30 }
 0x2b3   : > { %v1335_v7 = vpop.f32.mrb[50].mxu0  ;;  %v8760_v52 = vpop.f32.mrb[50].mxu1  ;;  %v916_v57 = vadd.f32 %v8284_v53, %v8608_v40  ;;  %v1645_v17 = vsub.f32 %v8648_v42, %v1421_v49  ;;  %v917_v42 = vadd.f32 %v8281_v48, %v8246_v1 }
 0x2b4   : > { %11447 = vst [vmem:[#allocation107_spill] sm:$0xff] %v8760_v52  ;;  %v8765_v3 = vmul.f32 %v8314_v33, %v1648_v59  ;;  %v1426_v10 = vsub.f32 %v913_v29, %v1335_v7  ;;  %v1337_v8 = vpop.f32.mrb[51].mxu0  ;;  %v8767_v15 = vpop.f32.mrb[51].mxu1  ;;  %v1647_v59 = vsub.f32 %v8250_v44, %v1423_v34  ;;  %v1425_v28 = vsub.f32 %v912_v47, %v1331_v22 }
 0x2b5   : > { %11448 = vst [vmem:[#allocation108_spill] sm:$0xff] %v8767_v15  ;;  %v1427_v39 = vsub.f32 %v914_v38, %v1337_v8  ;;  %v1573_v38 = vpop.permute.xlu0 %1572  ;;  %v8792_v15 = vmul.f32 %v8314_v33, %v1643_v51  ;;  %v918_v51 = vadd.f32 %v8284_v53, %v8246_v1 }
 0x2b6   : > { %v8775_v52 = vmax.f32 %v1749_v23, %v8765_v3  ;;  %v1650_v55 = vsub.f32 %v8258_v12, %v1426_v10  ;;  %v8801_v49 = vmul.f32 %v8314_v33, %v1647_v59  ;;  %v1649_v47 = vsub.f32 %v1563_v46, %v1425_v28 }
 0x2b7   : > { %v1341_v29 = vpop.f32.mrb[52].mxu0  ;;  %v8781_v7 = vpop.f32.mrb[52].mxu1  ;;  %v1651_v44 = vsub.f32 %v8258_v12, %v1427_v39  ;;  %v8808_v12 = vmul.f32 %v8314_v33, %v1645_v17  ;;  %v11454_v46 = vmax.f32 %v8655_v4, %v8688_v16 }
 0x2b8   : > { %11450 = vst [vmem:[#allocation110_spill] sm:$0xff] %v8781_v7  ;;  %v8787_v8 = vmul.f32 %v8314_v33, %v1650_v55  ;;  %v1428_v23 = vsub.f32 %v915_v37, %v1341_v29  ;;  %v1343_v27 = vpop.f32.mrb[53].mxu0  ;;  %v8789_v10 = vpop.f32.mrb[53].mxu1  ;;  %v8831_v4 = vmul.f32 %v8314_v33, %v1649_v47 }
 0x2b9   : > { %11451 = vst [vmem:[#allocation111_spill] sm:$0xff] %v8789_v10  ;;  %v1429_v34 = vsub.f32 %v916_v57, %v1343_v27  ;;  %v1785_v59 = vmax.f32 %v11454_v46, %v8792_v15  ;;  %v8820_v28 = vmul.f32 %v8314_v33, %v1651_v44  ;;  %v8822_v27 = vpop.permute.xlu1 %2354  ;;  %v1583_v47 = vpop.permute.xlu0 %1582 }
 0x2ba   : > { %v8796_v22 = vmax.f32 %v1750_v0, %v8787_v8  ;;  %v1652_v40 = vsub.f32 %v1573_v38, %v1428_v23  ;;  %11456 = vst [vmem:[#allocation115_spill] sm:$0xff] %v8822_v27 }
 0x2bb   : > { %v1347_v55 = vpop.f32.mrb[54].mxu0  ;;  %v8803_v37 = vpop.f32.mrb[54].mxu1  ;;  %11455 = vst [vmem:[#allocation114_spill] sm:$0xff] %v8820_v28  ;;  %v1653_v23 = vsub.f32 %v1573_v38, %v1429_v34  ;;  %v920_v34 = vadd.f32 %v8284_v53, %v8690_v62 }
 0x2bc   : > { %11452 = vst [vmem:[#allocation112_spill] sm:$0xff] %v8803_v37  ;;  %v8811_v0 = vmul.f32 %v8314_v33, %v1652_v40  ;;  %v1430_v39 = vsub.f32 %v917_v42, %v1347_v55  ;;  %v1349_v29 = vpop.f32.mrb[55].mxu0  ;;  %v8813_v57 = vpop.f32.mrb[55].mxu1  ;;  %v11457_v40 = vld [vmem:[#allocation21_spill] sm:$0xff]  ;;  %v919_v55 = vadd.f32 %v8281_v48, %v8690_v62 }
 0x2bd   : > { %11453 = vst [vmem:[#allocation113_spill] sm:$0xff] %v8813_v57  ;;  %v1431_v1 = vsub.f32 %v918_v51, %v1349_v29  ;;  %v1787_v57 = vmax.f32 %v1785_v59, %v8801_v49 }
 0x2be   : > { %v1753_v17 = vmax.f32 %v8775_v52, %v8811_v0  ;;  %v1654_v42 = vsub.f32 %v11457_v40, %v1430_v39  ;;  %v1786_v52 = vmax.f32 %v8716_v43, %v8808_v12 }
 0x2bf   : > { %v1655_v44 = vsub.f32 %v11457_v40, %v1431_v1  ;;  %v1353_v46 = vpop.f32.mrb[56].mxu0  ;;  %v8834_v38 = vpop.f32.mrb[56].mxu1  ;;  %v1789_v27 = vmax.f32 %v1787_v57, %v8820_v28  ;;  %v8847_v1 = vmul.f32 %v8314_v33, %v1653_v23 }
 0x2c0   : > { %11458 = vst [vmem:[#allocation21_spill] sm:$0xff] %v8834_v38  ;;  %v8841_v51 = vmul.f32 %v8314_v33, %v1654_v42  ;;  %v1432_v39 = vsub.f32 %v919_v55, %v1353_v46  ;;  %v1355_v29 = vpop.f32.mrb[57].mxu0  ;;  %v8843_v59 = vpop.f32.mrb[57].mxu1  ;;  %v11462_v42 = vld [vmem:[#allocation19_spill] sm:$0xff]  ;;  %v1788_v46 = vmax.f32 %v1786_v52, %v8831_v4 }
 0x2c1   : > { %11459 = vst [vmem:[#allocation116_spill] sm:$0xff] %v8843_v59  ;;  %11460 = vst [vmem:[#allocation117_spill] sm:$0xff] %v8847_v1  ;;  %v8850_v40 = vmul.f32 %v8314_v33, %v1655_v44  ;;  %v1433_v62 = vsub.f32 %v920_v34, %v1355_v29  ;;  %v921_v55 = vadd.f32 %v8281_v48, %v11462_v42  ;;  %v2205_v29 = vld [vmem:[#allocation5] sm:$0x3] }
 0x2c2   : > { %v1754_v43 = vmax.f32 %v8796_v22, %v8841_v51  ;;  %v1656_v38 = vsub.f32 %v1583_v47, %v1432_v39  ;;  %v922_v23 = vadd.f32 %v8284_v53, %v11462_v42  ;;  %v1790_v7 = vmax.f32 %v1788_v46, %v8847_v1  ;;  %v11468_v46 = vld [vmem:[#allocation24_spill] sm:$0xff]  ;;  %v1593_v1 = vpop.permute.xlu0 %1592 }
 0x2c3   : > { %11461 = vst [vmem:[#allocation118_spill] sm:$0xff] %v8850_v40  ;;  %v1791_v59 = vmax.f32 %v1789_v27, %v8850_v40  ;;  %v1657_v37 = vsub.f32 %v1583_v47, %v1433_v62  ;;  %v1359_v57 = vpop.f32.mrb[58].mxu0  ;;  %v8858_v10 = vpop.f32.mrb[58].mxu1 }
 0x2c4   : > { %11463 = vst [vmem:[#allocation19_spill] sm:$0xff] %v8858_v10  ;;  %v8863_v44 = vmul.f32 %v8314_v33, %v1656_v38  ;;  %v1434_v34 = vsub.f32 %v921_v55, %v1359_v57  ;;  %v1361_v22 = vpop.f32.mrb[59].mxu0  ;;  %v8865_v39 = vpop.f32.mrb[59].mxu1  ;;  %v11466_v10 = vld [vmem:[#allocation22_spill] sm:$0xff]  ;;  %v923_v38 = vadd.f32 %v8281_v48, %v8753_v20 }
 0x2c5   : > { %11464 = vst [vmem:[#allocation119_spill] sm:$0xff] %v8865_v39  ;;  %v8869_v52 = vmul.f32 %v8314_v33, %v1657_v37  ;;  %v1435_v27 = vsub.f32 %v922_v23, %v1361_v22  ;;  %v2365_v47 = vpop.permute.xlu1 %2364  ;;  %v924_v37 = vadd.f32 %v8284_v53, %v8753_v20  ;;  %v8882_v23 = vrot.slane %v2205_v29, %v11468_v46 }
 0x2c6   : > { %v1755_v62 = vmax.f32 %v1753_v17, %v8863_v44  ;;  %v1658_v30 = vsub.f32 %v11466_v10, %v1434_v34 }
 0x2c7   : > { %11465 = vst [vmem:[#allocation120_spill] sm:$0xff] %v8869_v52  ;;  %v1792_v42 = vmax.f32 %v1790_v7, %v8869_v52  ;;  %v1659_v55 = vsub.f32 %v11466_v10, %v1435_v27  ;;  %v1365_v57 = vpop.f32.mrb[60].mxu0  ;;  %v8877_v39 = vpop.f32.mrb[60].mxu1  ;;  %v11470_v7 = vld [vmem:[#allocation25_spill] sm:$0xff]  ;;  %v8896_v20 = vadd.f32 %v8882_v23, %v2365_v47 }
 0x2c8   : > { %11467 = vst [vmem:[#allocation22_spill] sm:$0xff] %v8877_v39  ;;  %v8885_v17 = vmul.f32 %v8314_v33, %v1658_v30  ;;  %v1436_v34 = vsub.f32 %v923_v38, %v1365_v57  ;;  %v1367_v22 = vpop.f32.mrb[61].mxu0  ;;  %v8887_v40 = vpop.f32.mrb[61].mxu1  ;;  %v8890_v52 = vrot.slane %v2205_v29, %v11470_v7  ;;  %v11471_v30 = vld [vmem:[#allocation20_spill] sm:$0xff] }
 0x2c9   : > { %11469 = vst [vmem:[#allocation121_spill] sm:$0xff] %v8887_v40  ;;  %v8893_v10 = vmul.f32 %v8314_v33, %v1659_v55  ;;  %v1437_v27 = vsub.f32 %v924_v37, %v1367_v22  ;;  %v925_v38 = vadd.f32 %v8281_v48, %v11471_v30  ;;  %v926_v55 = vadd.f32 %v8284_v53, %v11471_v30  ;;  %v11475_v53 = vld [vmem:[#allocation23_spill] sm:$0xff] }
 0x2ca   : > { %v1756_v39 = vmax.f32 %v1754_v43, %v8885_v17  ;;  %v1660_v46 = vsub.f32 %v1593_v1, %v1436_v34  ;;  %v8902_v57 = vadd.f32 %v8890_v52, %v2365_v47 }
 0x2cb   : > { %v1793_v40 = vmax.f32 %v1791_v59, %v8893_v10  ;;  %v1661_v29 = vsub.f32 %v1593_v1, %v1437_v27  ;;  %v1371_v7 = vpop.f32.mrb[62].mxu0  ;;  %v8905_v28 = vpop.f32.mrb[62].mxu1 }
 0x2cc   : > { %11472 = vst [vmem:[#allocation20_spill] sm:$0xff] %v8902_v57  ;;  %11473 = vst [vmem:[#allocation122_spill] sm:$0xff] %v8905_v28  ;;  %v8910_v37 = vmul.f32 %v8314_v33, %v1660_v46  ;;  %v1438_v43 = vsub.f32 %v925_v38, %v1371_v7  ;;  %v1373_v48 = vpop.f32.mrb[63].mxu0  ;;  %v8914_v22 = vpop.f32.mrb[63].mxu1 }
 0x2cd   : > { %11474 = vst [vmem:[#allocation123_spill] sm:$0xff] %v8914_v22  ;;  %v8917_v47 = vmul.f32 %v8314_v33, %v1661_v29  ;;  %v1439_v59 = vsub.f32 %v926_v55, %v1373_v48 }
 0x2ce   : > { %v1757_v27 = vmax.f32 %v1755_v62, %v8910_v37  ;;  %v1662_v30 = vsub.f32 %v11475_v53, %v1438_v43 }
 0x2cf   : > { %v1794_v46 = vmax.f32 %v1792_v42, %v8917_v47  ;;  %v1663_v7 = vsub.f32 %v11475_v53, %v1439_v59 }
 0x2d0   : > { %v8926_v38 = vmul.f32 %v8314_v33, %v1662_v30 }
 0x2d1   : > { %v8929_v34 = vmul.f32 %v8314_v33, %v1663_v7 }
 0x2d2   : > { %v1758_v29 = vmax.f32 %v1756_v39, %v8926_v38 }
 0x2d3   : > { %v1795_v55 = vmax.f32 %v1793_v40, %v8929_v34 }
 0x2d4   : > { %v1759_v48 = vmax.f32 %v1757_v27, %v1758_v29 }
 0x2d5   : > { %v1796_v1 = vmax.f32 %v1794_v46, %v1795_v55 }
 0x2d6   : > { %v1760_v22 = vrot.slane %v1759_v48, 4 }
 0x2d7   : > { %v1797_v46 = vrot.slane %v1796_v1, 4 }
 0x2d8   : > { %v1761_v62 = vmax.f32 %v1759_v48, %v1760_v22 }
 0x2da   : > { %v1762_v57 = vrot.slane %v1761_v62, 2 }
 0x2dc   : > { %v1763_v43 = vmax.f32 %v1761_v62, %v1762_v57 }
 0x2de   : > { %v1764_v28 = vrot.slane %v1763_v43, 1 }
 0x2e0   : > { %v8933_v42 = vmax.f32 %v1763_v43, %v1764_v28 }
 0x2e2   : > { %v1811_v59 = vsub.f32 %v8327_v13, %v8933_v42  ;;  %v1813_v53 = vsub.f32 %v8353_v32, %v8933_v42  ;;  %v1815_v39 = vsub.f32 %v8330_v19, %v8933_v42  ;;  %v1817_v40 = vsub.f32 %v8356_v5, %v8933_v42 }
 0x2e3   : > { %v1819_v22 = vsub.f32 %v8381_v25, %v8933_v42  ;;  %v1821_v28 = vsub.f32 %v8401_v58, %v8933_v42  ;;  %v1823_v32 = vsub.f32 %v8421_v18, %v8933_v42  ;;  %v1825_v5 = vsub.f32 %v8441_v21, %v8933_v42 }
 0x2e4   : > { %v1875_v27 = vmul.f32 1.442695, %v1811_v59  ;;  %v1879_v57 = vmul.f32 1.442695, %v1813_v53  ;;  %v1883_v30 = vmul.f32 1.442695, %v1815_v39  ;;  %v1798_v25 = vmax.f32 %v1796_v1, %v1797_v46 }
 0x2e5   : > { %v1887_v13 = vmul.f32 1.442695, %v1817_v40  ;;  %v1891_v19 = vmul.f32 1.442695, %v1819_v22  ;;  %v1895_v7 = vmul.f32 1.442695, %v1821_v28  ;;  %v1827_v29 = vsub.f32 %v8461_v11, %v8933_v42 }
 0x2e6   : > { %7002 = vpow2.f32 %v1875_v27  ;;  %v1899_v55 = vmul.f32 1.442695, %v1823_v32  ;;  %v1829_v58 = vsub.f32 %v8481_v45, %v8933_v42  ;;  %v1903_v48 = vmul.f32 1.442695, %v1825_v5 }
 0x2e7   : > { %7004 = vpow2.f32 %v1879_v57  ;;  %v1799_v62 = vrot.slane %v1798_v25, 2  ;;  %v1831_v59 = vsub.f32 %v8501_v9, %v8933_v42  ;;  %v1907_v21 = vmul.f32 1.442695, %v1827_v29 }
 0x2e8   : > { %7006 = vpow2.f32 %v1883_v30  ;;  %v1833_v11 = vsub.f32 %v8521_v50, %v8933_v42  ;;  %v1911_v39 = vmul.f32 1.442695, %v1829_v58  ;;  %v1835_v22 = vsub.f32 %v8541_v26, %v8933_v42 }
 0x2e9   : > { %7008 = vpow2.f32 %v1887_v13  ;;  %v1800_v40 = vmax.f32 %v1798_v25, %v1799_v62  ;;  %v1915_v57 = vmul.f32 1.442695, %v1831_v59  ;;  %v1837_v9 = vsub.f32 %v8561_v54, %v8933_v42 }
 0x2ea   : > { %7010 = vpow2.f32 %v1891_v19  ;;  %v1919_v13 = vmul.f32 1.442695, %v1833_v11  ;;  %v1839_v19 = vsub.f32 %v8581_v31, %v8933_v42  ;;  %v1923_v5 = vmul.f32 1.442695, %v1835_v22 }
 0x2eb   : > { %7012 = vpow2.f32 %v1895_v7  ;;  %v1801_v46 = vrot.slane %v1800_v40, 1  ;;  %v1841_v26 = vsub.f32 %v8601_v56, %v8933_v42  ;;  %v1927_v29 = vmul.f32 1.442695, %v1837_v9 }
 0x2ec   : > { %7014 = vpow2.f32 %v1899_v55  ;;  %v1931_v62 = vmul.f32 1.442695, %v1839_v19  ;;  %v1845_v31 = vsub.f32 %v8641_v61, %v8933_v42  ;;  %v11476_v61 = vld [vmem:[#allocation36_spill] sm:$0xff]  ;;  %v1849_v22 = vsub.f32 %v8683_v2, %v8933_v42 }
 0x2ed   : > { %7016 = vpow2.f32 %v1903_v48  ;;  %v8967_v55 = vmax.f32 %v1800_v40, %v1801_v46  ;;  %v1843_v48 = vsub.f32 %v8621_v36, %v8933_v42  ;;  %v1935_v59 = vmul.f32 1.442695, %v1841_v26 }
 0x2ee   : > { %7018 = vpow2.f32 %v1907_v21  ;;  %v1847_v36 = vsub.f32 %v8663_v41, %v8933_v42  ;;  %v1851_v41 = vsub.f32 %v8702_v6, %v8933_v42 }
 0x2ef   : > { %7020 = vpow2.f32 %v1911_v39  ;;  %v1812_v56 = vsub.f32 %v8335_v24, %v8967_v55  ;;  %v1939_v11 = vmul.f32 1.442695, %v1843_v48  ;;  %v1943_v39 = vmul.f32 1.442695, %v1845_v31  ;;  %v11480_v31 = vld [vmem:[#allocation49_spill] sm:$0xff] }
 0x2f0   : > { %v7003_v18 = vpop.eup %7002  ;;  %7022 = vpow2.f32 %v1915_v57  ;;  %v1822_v26 = vsub.f32 %v8406_v60, %v8967_v55  ;;  %v1955_v48 = vmul.f32 1.442695, %v1851_v41  ;;  %v1863_v41 = vsub.f32 %v8811_v0, %v8933_v42  ;;  %v11485_v0 = vld [vmem:[#allocation67_spill] sm:$0xff] }
 0x2f1   : > { %v7005_v43 = vpop.eup %7004  ;;  %7024 = vpow2.f32 %v1919_v13  ;;  %v1877_v24 = vmul.f32 1.442695, %v1812_v56  ;;  %v1947_v13 = vmul.f32 1.442695, %v1847_v36 }
 0x2f2   : > { %v2003_v53 = vadd.f32 %v7005_v43, %v7003_v18  ;;  %v7007_v1 = vpop.eup %7006  ;;  %7026 = vpow2.f32 %v1923_v5  ;;  %v1853_v5 = vsub.f32 %v8721_v35, %v8933_v42 }
 0x2f3   : > { %v7009_v45 = vpop.eup %7008  ;;  %7028 = vpow2.f32 %v1927_v29 }
 0x2f4   : > { %v2004_v27 = vadd.f32 %v7007_v1, %v2003_v53  ;;  %v7011_v28 = vpop.eup %7010  ;;  %v1814_v53 = vsub.f32 %v8361_v63, %v8967_v55  ;;  %7030 = vpow2.f32 %v1931_v62  ;;  %v11477_v63 = vld [vmem:[#allocation40_spill] sm:$0xff]  ;;  %v1959_v60 = vmul.f32 1.442695, %v1853_v5 }
 0x2f5   : > { %v7013_v50 = vpop.eup %7012  ;;  %7032 = vpow2.f32 %v1935_v59  ;;  %v1857_v59 = vsub.f32 %v8747_v14, %v8933_v42  ;;  %v1865_v5 = vsub.f32 %v8841_v51, %v8933_v42  ;;  %v11486_v51 = vld [vmem:[#allocation70_spill] sm:$0xff] }
 0x2f6   : > { %v2005_v30 = vadd.f32 %v7009_v45, %v2004_v27  ;;  %v7015_v25 = vpop.eup %7014  ;;  %v1816_v27 = vsub.f32 %v11476_v61, %v8967_v55  ;;  %7034 = vpow2.f32 %v1939_v11  ;;  %v1859_v11 = vsub.f32 %v8765_v3, %v8933_v42  ;;  %v11482_v61 = vld [vmem:[#allocation56_spill] sm:$0xff] }
 0x2f7   : > { %v7017_v58 = vpop.eup %7016  ;;  %7036 = vpow2.f32 %v1943_v39 }
 0x2f8   : > { %v2006_v32 = vadd.f32 %v7011_v28, %v2005_v30  ;;  %v7019_v43 = vpop.eup %7018  ;;  %v1818_v30 = vsub.f32 %v11477_v63, %v8967_v55  ;;  %v1881_v28 = vmul.f32 1.442695, %v1814_v53  ;;  %v1885_v19 = vmul.f32 1.442695, %v1816_v27 }
 0x2f9   : > { %v7021_v1 = vpop.eup %7020  ;;  %7038 = vpow2.f32 %v1877_v24  ;;  %v1828_v27 = vsub.f32 %v11482_v61, %v8967_v55  ;;  %v1967_v24 = vmul.f32 1.442695, %v1857_v59  ;;  %v1871_v61 = vsub.f32 %v8910_v37, %v8933_v42  ;;  %v11489_v37 = vld [vmem:[#allocation81_spill] sm:$0xff] }
 0x2fa   : > { %v2007_v7 = vadd.f32 %v7013_v50, %v2006_v32  ;;  %v7023_v45 = vpop.eup %7022  ;;  %v11478_v32 = vld [vmem:[#allocation43_spill] sm:$0xff]  ;;  %7040 = vpow2.f32 %v1881_v28  ;;  %v1889_v6 = vmul.f32 1.442695, %v1818_v30  ;;  %v11483_v30 = vld [vmem:[#allocation60_spill] sm:$0xff] }
 0x2fb   : > { %v7025_v9 = vpop.eup %7024  ;;  %v1820_v50 = vsub.f32 %v11478_v32, %v8967_v55  ;;  %7042 = vpow2.f32 %v1947_v13  ;;  %v1830_v28 = vsub.f32 %v11483_v30, %v8967_v55  ;;  %v1971_v13 = vmul.f32 1.442695, %v1859_v11 }
 0x2fc   : > { %v2008_v54 = vadd.f32 %v7015_v25, %v2007_v7  ;;  %v7027_v2 = vpop.eup %7026  ;;  %v1951_v7 = vmul.f32 1.442695, %v1849_v22  ;;  %7044 = vpow2.f32 %v1885_v19  ;;  %v1861_v22 = vsub.f32 %v8787_v8, %v8933_v42 }
 0x2fd   : > { %v7029_v29 = vpop.eup %7028  ;;  %v1893_v35 = vmul.f32 1.442695, %v1820_v50  ;;  %v11484_v50 = vld [vmem:[#allocation63_spill] sm:$0xff]  ;;  %v1909_v19 = vmul.f32 1.442695, %v1828_v27  ;;  %v1873_v30 = vsub.f32 %v8926_v38, %v8933_v42 }
 0x2fe   : > { %v2009_v18 = vadd.f32 %v7017_v58, %v2008_v54  ;;  %v11479_v54 = vld [vmem:[#allocation102_spill] sm:$0xff]  ;;  %7046 = vpow2.f32 %v1951_v7  ;;  %v1832_v8 = vsub.f32 %v11484_v50, %v8967_v55  ;;  %v1975_v7 = vmul.f32 1.442695, %v1861_v22 }
 0x2ff   : > { %v1855_v58 = vsub.f32 %v11479_v54, %v8933_v42  ;;  %7048 = vpow2.f32 %v1889_v6  ;;  %v1913_v54 = vmul.f32 1.442695, %v1830_v28  ;;  %v1995_v50 = vmul.f32 1.442695, %v1871_v61  ;;  %v11493_v61 = vld [vmem:[#allocation97_spill] sm:$0xff] }
 0x300   : > { %v2010_v21 = vadd.f32 %v7019_v43, %v2009_v18  ;;  %v1824_v18 = vsub.f32 %v11480_v31, %v8967_v55  ;;  %v7031_v43 = vpop.eup %7030  ;;  %7050 = vpow2.f32 %v1955_v48  ;;  %v1867_v48 = vsub.f32 %v8863_v44, %v8933_v42  ;;  %v11487_v44 = vld [vmem:[#allocation74_spill] sm:$0xff] }
 0x301   : > { %v7033_v36 = vpop.eup %7032  ;;  %v1963_v39 = vmul.f32 1.442695, %v1855_v58  ;;  %7052 = vpow2.f32 %v1893_v35  ;;  %v1917_v59 = vmul.f32 1.442695, %v1832_v8  ;;  %v1838_v11 = vsub.f32 %v11487_v44, %v8967_v55 }
 0x302   : > { %v2011_v40 = vadd.f32 %v7021_v1, %v2010_v21  ;;  %v11481_v21 = vld [vmem:[#allocation53_spill] sm:$0xff]  ;;  %v1897_v1 = vmul.f32 1.442695, %v1822_v26  ;;  %v1901_v14 = vmul.f32 1.442695, %v1824_v18  ;;  %7054 = vpow2.f32 %v1959_v60 }
 0x303   : > { %v1826_v53 = vsub.f32 %v11481_v21, %v8967_v55  ;;  %v1983_v21 = vmul.f32 1.442695, %v1865_v5  ;;  %v1987_v27 = vmul.f32 1.442695, %v1867_v48  ;;  %v11490_v5 = vld [vmem:[#allocation84_spill] sm:$0xff] }
 0x304   : > { %v2012_v57 = vadd.f32 %v7023_v45, %v2011_v40  ;;  %v7035_v45 = vpop.eup %7034  ;;  %7056 = vpow2.f32 %v1897_v1 }
 0x305   : > { %v1905_v3 = vmul.f32 1.442695, %v1826_v53  ;;  %7058 = vpow2.f32 %v1963_v39 }
 0x306   : > { %v2013_v46 = vadd.f32 %v7025_v9, %v2012_v57  ;;  %v7037_v57 = vpop.eup %7036  ;;  %7060 = vpow2.f32 %v1901_v14 }
 0x307   : > { %v7039_v9 = vpop.eup %7038  ;;  %7062 = vpow2.f32 %v1967_v24 }
 0x308   : > { %v2014_v25 = vadd.f32 %v7027_v2, %v2013_v46  ;;  %v7041_v46 = vpop.eup %7040  ;;  %7064 = vpow2.f32 %v1905_v3 }
 0x309   : > { %v7043_v2 = vpop.eup %7042  ;;  %7066 = vpow2.f32 %v1971_v13  ;;  %v1842_v13 = vsub.f32 %v11489_v37, %v8967_v55 }
 0x30a   : > { %v2015_v62 = vadd.f32 %v7029_v29, %v2014_v25  ;;  %v2040_v25 = vadd.f32 %v7041_v46, %v7039_v9  ;;  %v7045_v26 = vpop.eup %7044  ;;  %v1834_v29 = vsub.f32 %v11485_v0, %v8967_v55  ;;  %7068 = vpow2.f32 %v1909_v19 }
 0x30b   : > { %v7047_v58 = vpop.eup %7046  ;;  %7070 = vpow2.f32 %v1975_v7  ;;  %v1929_v46 = vmul.f32 1.442695, %v1838_v11  ;;  %v1844_v7 = vsub.f32 %v11490_v5, %v8967_v55  ;;  %v1937_v48 = vmul.f32 1.442695, %v1842_v13 }
 0x30c   : > { %v2016_v56 = vadd.f32 %v7031_v43, %v2015_v62  ;;  %v1979_v62 = vmul.f32 1.442695, %v1863_v41  ;;  %v2041_v31 = vadd.f32 %v7045_v26, %v2040_v25  ;;  %v7049_v18 = vpop.eup %7048  ;;  %v1836_v43 = vsub.f32 %v11486_v51, %v8967_v55  ;;  %v11492_v51 = vld [vmem:[#allocation91_spill] sm:$0xff] }
 0x30d   : > { %v7051_v60 = vpop.eup %7050  ;;  %7072 = vpow2.f32 %v1913_v54  ;;  %v1921_v39 = vmul.f32 1.442695, %v1834_v29  ;;  %v1999_v26 = vmul.f32 1.442695, %v1873_v30  ;;  %v11491_v54 = vld [vmem:[#allocation88_spill] sm:$0xff] }
 0x30e   : > { %v2017_v40 = vadd.f32 %v7033_v36, %v2016_v56  ;;  %v1869_v56 = vsub.f32 %v8885_v17, %v8933_v42  ;;  %v2042_v53 = vadd.f32 %v7049_v18, %v2041_v31  ;;  %v7053_v1 = vpop.eup %7052  ;;  %7074 = vpow2.f32 %v1979_v62  ;;  %v11488_v17 = vld [vmem:[#allocation77_spill] sm:$0xff] }
 0x30f   : > { %v1840_v24 = vsub.f32 %v11488_v17, %v8967_v55  ;;  %7076 = vpow2.f32 %v1917_v59  ;;  %v1941_v59 = vmul.f32 1.442695, %v1844_v7  ;;  %v1860_v7 = vsub.f32 %v8831_v4, %v8967_v55  ;;  %v11496_v4 = vld [vmem:[#allocation118_spill] sm:$0xff] }
 0x310   : > { %v2018_v63 = vadd.f32 %v7035_v45, %v2017_v40  ;;  %v7055_v40 = vpop.eup %7054  ;;  %v2043_v14 = vadd.f32 %v7053_v1, %v2042_v53  ;;  %7078 = vpow2.f32 %v1983_v21  ;;  %v1991_v28 = vmul.f32 1.442695, %v1869_v56 }
 0x311   : > { %v7057_v45 = vpop.eup %7056  ;;  %7080 = vpow2.f32 %v1921_v39  ;;  %v1933_v38 = vmul.f32 1.442695, %v1840_v24  ;;  %v1850_v1 = vsub.f32 %v8688_v16, %v8967_v55 }
 0x312   : > { %v2019_v32 = vadd.f32 %v7037_v57, %v2018_v63  ;;  %v1925_v57 = vmul.f32 1.442695, %v1836_v43  ;;  %v7059_v63 = vpop.eup %7058  ;;  %v2044_v3 = vadd.f32 %v7057_v45, %v2043_v14  ;;  %7082 = vpow2.f32 %v1987_v27 }
 0x313   : > { %v7061_v9 = vpop.eup %7060  ;;  %v1848_v43 = vsub.f32 %v11492_v51, %v8967_v55  ;;  %v1852_v27 = vsub.f32 %v11493_v61, %v8967_v55  ;;  %v1953_v16 = vmul.f32 1.442695, %v1850_v1  ;;  %v1870_v1 = vsub.f32 %v8893_v10, %v8967_v55 }
 0x314   : > { %v2020_v6 = vadd.f32 %v7043_v2, %v2019_v32  ;;  %v7063_v32 = vpop.eup %7062  ;;  %v2045_v8 = vadd.f32 %v7061_v9, %v2044_v3  ;;  %7084 = vpow2.f32 %v1925_v57  ;;  %v1854_v57 = vsub.f32 %v8792_v15, %v8967_v55 }
 0x315   : > { %v7065_v19 = vpop.eup %7064  ;;  %7086 = vpow2.f32 %v1991_v28  ;;  %v1949_v14 = vmul.f32 1.442695, %v1848_v43  ;;  %v1856_v9 = vsub.f32 %v8808_v12, %v8967_v55  ;;  %v1872_v61 = vsub.f32 %v8917_v47, %v8967_v55 }
 0x316   : > { %v2021_v35 = vadd.f32 %v7047_v58, %v2020_v6  ;;  %v7067_v25 = vpop.eup %7066  ;;  %v2046_v6 = vadd.f32 %v7065_v19, %v2045_v8  ;;  %v1846_v58 = vsub.f32 %v11491_v54, %v8967_v55  ;;  %7088 = vpow2.f32 %v1929_v46  ;;  %v11495_v54 = vld [vmem:[#allocation117_spill] sm:$0xff] }
 0x317   : > { %v7069_v0 = vpop.eup %7068  ;;  %7090 = vpow2.f32 %v1995_v50  ;;  %v1858_v50 = vsub.f32 %v8801_v49, %v8967_v55  ;;  %v1961_v15 = vmul.f32 1.442695, %v1854_v57  ;;  %v1965_v12 = vmul.f32 1.442695, %v1856_v9 }
 0x318   : > { %v2022_v36 = vadd.f32 %v7051_v60, %v2021_v35  ;;  %v7071_v62 = vpop.eup %7070  ;;  %v2047_v31 = vadd.f32 %v7069_v0, %v2046_v6  ;;  %7092 = vpow2.f32 %v1933_v38 }
 0x319   : > { %v7073_v18 = vpop.eup %7072  ;;  %7094 = vpow2.f32 %v1999_v26  ;;  %v11494_v26 = vld [vmem:[#allocation114_spill] sm:$0xff]  ;;  %v1969_v0 = vmul.f32 1.442695, %v1858_v50  ;;  %v1804_v50 = vsub.f32 -inf, %v8967_v55 }
 0x31a   : > { %v2023_v22 = vadd.f32 %v7055_v40, %v2022_v36  ;;  %v7075_v60 = vpop.eup %7074  ;;  %v2048_v56 = vadd.f32 %v7073_v18, %v2047_v31  ;;  %7096 = vpow2.f32 %v1937_v48  ;;  %v1945_v36 = vmul.f32 1.442695, %v1846_v58 }
 0x31b   : > { %v7077_v21 = vpop.eup %7076  ;;  %7098 = vpow2.f32 %v1941_v59  ;;  %v1862_v6 = vsub.f32 %v11494_v26, %v8967_v55  ;;  %v1864_v58 = vsub.f32 %v11495_v54, %v8967_v55  ;;  %v1973_v48 = vmul.f32 1.442695, %v1860_v7  ;;  %v11497_v59 = vld [vmem:[#allocation120_spill] sm:$0xff] }
 0x31c   : > { %v2024_v41 = vadd.f32 %v7059_v63, %v2023_v22  ;;  %v7079_v44 = vpop.eup %7078  ;;  %v2049_v11 = vadd.f32 %v7077_v21, %v2048_v56  ;;  %7100 = vpow2.f32 %v1945_v36  ;;  %v1866_v18 = vsub.f32 %v11496_v4, %v8967_v55 }
 0x31d   : > { %v7081_v39 = vpop.eup %7080  ;;  %7102 = vpow2.f32 %v1949_v14  ;;  %v1981_v56 = vmul.f32 1.442695, %v1864_v58  ;;  %v1807_v7 = vmul.f32 1.442695, %v1804_v50  ;;  %v11504_v50 = vld [vmem:[#allocation31_spill] sm:$0xff] }
 0x31e   : > { %v2025_v2 = vadd.f32 %v7063_v32, %v2024_v41  ;;  %v7083_v45 = vpop.eup %7082  ;;  %v2050_v22 = vadd.f32 %v7081_v39, %v2049_v11  ;;  %v1957_v41 = vmul.f32 1.442695, %v1852_v27  ;;  %7104 = vpow2.f32 %v1953_v16 }
 0x31f   : > { %v7085_v17 = vpop.eup %7084  ;;  %v1985_v36 = vmul.f32 1.442695, %v1866_v18  ;;  %v2210_v18 = vpop.permute.xlu0 %2209 }
 0x320   : > { %v2026_v29 = vadd.f32 %v7067_v25, %v2025_v2  ;;  %v7087_v63 = vpop.eup %7086  ;;  %v2051_v30 = vadd.f32 %v7085_v17, %v2050_v22  ;;  %7106 = vpow2.f32 %v1957_v41  ;;  %v1874_v22 = vsub.f32 %v8929_v34, %v8967_v55 }
 0x321   : > { %v7089_v28 = vpop.eup %7088  ;;  %7108 = vpow2.f32 %v1961_v15  ;;  %v1993_v17 = vmul.f32 1.442695, %v1870_v1 }
 0x322   : > { %v2027_v35 = vadd.f32 %v7071_v62, %v2026_v29  ;;  %v7091_v37 = vpop.eup %7090  ;;  %v2052_v13 = vadd.f32 %v7089_v28, %v2051_v30  ;;  %7110 = vpow2.f32 %v1965_v12 }
 0x323   : > { %v7093_v46 = vpop.eup %7092  ;;  %7112 = vpow2.f32 %v1969_v0 }
 0x324   : > { %v2028_v53 = vadd.f32 %v7075_v60, %v2027_v35  ;;  %v7095_v8 = vpop.eup %7094  ;;  %v2053_v19 = vadd.f32 %v7093_v46, %v2052_v13  ;;  %v1977_v35 = vmul.f32 1.442695, %v1862_v6  ;;  %v1868_v60 = vsub.f32 %v11497_v59, %v8967_v55 }
 0x325   : > { %v7097_v2 = vpop.eup %7096  ;;  %7114 = vpow2.f32 %v1973_v48 }
 0x326   : > { %v2029_v40 = vadd.f32 %v7079_v44, %v2028_v53  ;;  %v2054_v38 = vadd.f32 %v7097_v2, %v2053_v19  ;;  %v7099_v25 = vpop.eup %7098  ;;  %7116 = vpow2.f32 %v1977_v35  ;;  %v1803_v44 = vsub.f32 -inf, %v8933_v42 }
 0x327   : > { %v7101_v49 = vpop.eup %7100  ;;  %7118 = vpow2.f32 %v1981_v56  ;;  %v1989_v27 = vmul.f32 1.442695, %v1868_v60  ;;  %v2220_v56 = vpop.permute.xlu0 %2219 }
 0x328   : > { %v2030_v24 = vadd.f32 %v7083_v45, %v2029_v40  ;;  %v2055_v29 = vadd.f32 %v7099_v25, %v2054_v38  ;;  %v7103_v31 = vpop.eup %7102  ;;  %7120 = vpow2.f32 %v1985_v36  ;;  %v1805_v10 = vmul.f32 1.442695, %v1803_v44 }
 0x329   : > { %v7105_v43 = vpop.eup %7104  ;;  %7122 = vpow2.f32 %v1989_v27 }
 0x32a   : > { %v2031_v3 = vadd.f32 %v7087_v63, %v2030_v24  ;;  %v2056_v62 = vadd.f32 %v7101_v49, %v2055_v29  ;;  %v7107_v53 = vpop.eup %7106  ;;  %v1997_v63 = vmul.f32 1.442695, %v1872_v61  ;;  %7124 = vpow2.f32 %v1993_v17 }
 0x32b   : > { %v7109_v40 = vpop.eup %7108  ;;  %7126 = vpow2.f32 %v1805_v10  ;;  %v9070_v61 = vstv %s562_s30  ;;  %v11499_v10 = vld [vmem:[#allocation18_spill] sm:$0xff] }
 0x32c   : > { %v2032_v32 = vadd.f32 %v7091_v37, %v2031_v3  ;;  %v2057_v51 = vadd.f32 %v7103_v31, %v2056_v62  ;;  %v7111_v45 = vpop.eup %7110  ;;  %v2001_v3 = vmul.f32 1.442695, %v1874_v22  ;;  %7128 = vpow2.f32 %v1997_v63  ;;  %11498 = vst [vmem:[#allocation23_spill] sm:$0xff] %v9070_v61 }
 0x32d   : > { %v7113_v16 = vpop.eup %7112 }
 0x32e   : > { %v2033_v5 = vadd.f32 %v7095_v8, %v2032_v32  ;;  %v2058_v21 = vadd.f32 %v7105_v43, %v2057_v51  ;;  %7130 = vpow2.f32 %v2001_v3  ;;  %v11501_v3 = vld [vmem:[#allocation24_spill] sm:$0xff] }
 0x32f   : > { %v7115_v28 = vpop.eup %7114  ;;  %7132 = vpow2.f32 %v1807_v7  ;;  %v11505_v7 = vld [vmem:[#allocation37_spill] sm:$0xff] }
 0x330   : > { %v2034_v11 = vrot.slane %v2033_v5, 4  ;;  %v2059_v39 = vadd.f32 %v7107_v53, %v2058_v21  ;;  %v7117_v41 = vpop.eup %7116  ;;  %v2230_v53 = vpop.permute.xlu0 %2229 }
 0x331   : > { %v7119_v13 = vpop.eup %7118 }
 0x332   : > { %v2060_v14 = vadd.f32 %v7109_v40, %v2059_v39  ;;  %v2035_v24 = vadd.f32 %v2034_v11, %v2033_v5  ;;  %v7121_v32 = vpop.eup %7120 }
 0x333   : > { %v7123_v8 = vpop.eup %7122 }
 0x334   : > { %v2061_v57 = vadd.f32 %v7111_v45, %v2060_v14  ;;  %v2036_v47 = vrot.slane %v2035_v24, 2  ;;  %v7125_v5 = vpop.eup %7124  ;;  %v2240_v39 = vpop.permute.xlu0 %2239 }
 0x335   : > { %v7127_v12 = vpop.eup %7126 }
 0x336   : > { %v2062_v30 = vadd.f32 %v7113_v16, %v2061_v57  ;;  %v2037_v34 = vadd.f32 %v2036_v47, %v2035_v24  ;;  %v7129_v25 = vpop.eup %7128  ;;  %v1809_v29 = vmul.f32 0.0, %v7127_v12  ;;  %v9108_v12 = vadd.f32 %v8882_v23, %v11505_v7  ;;  %v11520_v16 = vld [vmem:[#allocation30_spill] sm:$0xff] }
 0x338   : > { %v2063_v9 = vadd.f32 %v7115_v28, %v2062_v30  ;;  %v2038_v19 = vrot.slane %v2037_v34, 1  ;;  %v7131_v0 = vpop.eup %7130  ;;  %v2250_v22 = vpop.permute.xlu0 %2249 }
 0x339   : > { %v7133_v4 = vpop.eup %7132 }
 0x33a   : > { %v2064_v37 = vadd.f32 %v7117_v41, %v2063_v9  ;;  %v2039_v26 = vadd.f32 %v2038_v19, %v2037_v34  ;;  %v1810_v51 = vmul.f32 0.0, %v7133_v4  ;;  %v11502_v9 = vld [vmem:[#allocation25_spill] sm:$0xff]  ;;  %v9103_v19 = vadd.f32 %v8882_v23, %v2220_v56 }
 0x33c   : > { %v2065_v46 = vadd.f32 %v7119_v13, %v2064_v37  ;;  %v2077_v54 = vadd.f32 %v2039_v26, %v1809_v29  ;;  %v2260_v57 = vpop.permute.xlu0 %2259  ;;  %v11503_v37 = vld [vmem:[#allocation26_spill] sm:$0xff]  ;;  %v2387_v26 = vadd.f32 %v8890_v52, %v2230_v53 }
 0x33d   : > { %v9086_v13 = vadd.f32 %v8882_v23, %v11503_v37  ;;  %v9090_v34 = vadd.f32 %v8890_v52, %v11503_v37  ;;  %v11507_v29 = vld [vmem:[#allocation122_spill] sm:$0xff] }
 0x33e   : > { %v2066_v15 = vadd.f32 %v7121_v32, %v2065_v46  ;;  %7134 = vlog2.f32 %v2077_v54  ;;  %v2378_v46 = vadd.f32 %v8882_v23, %v2210_v18  ;;  %v2379_v32 = vadd.f32 %v8890_v52, %v2210_v18 }
 0x33f   : > { %v9137_v18 = vadd.f32 %v8882_v23, %v2240_v39 }
 0x340   : > { %v2067_v2 = vadd.f32 %v7123_v8, %v2066_v15  ;;  %v2270_v63 = vpop.permute.xlu0 %2269  ;;  %v9096_v15 = vadd.f32 %v8882_v23, %v11504_v50  ;;  %v9100_v8 = vadd.f32 %v8890_v52, %v11504_v50  ;;  %v11523_v50 = vld [vmem:[#allocation33_spill] sm:$0xff] }
 0x342   : > { %v2068_v38 = vadd.f32 %v7125_v5, %v2067_v2  ;;  %v2383_v5 = vadd.f32 %v8890_v52, %v2220_v56  ;;  %v11515_v56 = vld [vmem:[#allocation57_spill] sm:$0xff] }
 0x344   : > { %v2069_v6 = vadd.f32 %v7129_v25, %v2068_v38  ;;  %v2280_v30 = vpop.permute.xlu0 %2279  ;;  %v9112_v38 = vadd.f32 %v8890_v52, %v11505_v7  ;;  %v2386_v25 = vadd.f32 %v8882_v23, %v2230_v53  ;;  %v9162_v53 = vadd.f32 %v8890_v52, %v11515_v56 }
 0x345   : > { %v2896_v7 = vsub.f32 %v2383_v5, %v11523_v50 }
 0x346   : > { %v2070_v49 = vadd.f32 %v7131_v0, %v2069_v6  ;;  %v11506_v6 = vld [vmem:[#allocation44_spill] sm:$0xff] }
 0x347   : > { %v9118_v0 = vadd.f32 %v8882_v23, %v11506_v6  ;;  %v9134_v4 = vadd.f32 %v8890_v52, %v11506_v6 }
 0x348   : > { %v2071_v58 = vrot.slane %v2070_v49, 4  ;;  %v7135_v60 = vpop.eup %7134 }
 0x349   : > { %v2080_v21 = vmul.f32 0.6931472, %v7135_v60  ;;  %v9154_v60 = vadd.f32 %v8890_v52, %v2250_v22 }
 0x34a   : > { %v2072_v48 = vadd.f32 %v2071_v58, %v2070_v49  ;;  %v11508_v49 = vsub.f32 %v8896_v20, %v11507_v29  ;;  %v11510_v58 = vld [vmem:[#allocation20_spill] sm:$0xff] }
 0x34b   : > { %v2083_v1 = vadd.f32 %v2080_v21, %v8933_v42  ;;  %v11514_v20 = vld [vmem:[#allocation50_spill] sm:$0xff]  ;;  %v9158_v21 = vadd.f32 %v8882_v23, %v11515_v56 }
 0x34c   : > { %v2073_v62 = vrot.slane %v2072_v48, 2 }
 0x34d   : > { %v2085_v44 = vadd.f32 -5.5451775, %v2083_v1  ;;  %v9165_v1 = vadd.f32 %v8882_v23, %v2260_v57 }
 0x34e   : > { %v2074_v31 = vadd.f32 %v2073_v62, %v2072_v48  ;;  %v11511_v48 = vld [vmem:[#allocation123_spill] sm:$0xff] }
 0x34f   : > { %v2088_v27 = vmul.f32 %v9070_v61, %v2085_v44  ;;  %v11512_v62 = vsub.f32 %v11510_v58, %v11511_v48  ;;  %v11516_v44 = vld [vmem:[#allocation27_spill] sm:$0xff] }
 0x350   : > { %v2075_v35 = vrot.slane %v2074_v31, 1 }
 0x352   : > { %v2076_v43 = vadd.f32 %v2075_v35, %v2074_v31  ;;  %v9140_v35 = vadd.f32 %v8890_v52, %v2240_v39  ;;  %v11517_v39 = vld [vmem:[#allocation28_spill] sm:$0xff] }
 0x354   : > { %v2078_v59 = vadd.f32 %v2076_v43, %v1810_v51  ;;  %v9144_v51 = vadd.f32 %v8882_v23, %v11514_v20  ;;  %v9148_v43 = vadd.f32 %v8890_v52, %v11514_v20 }
 0x356   : > { %7136 = vlog2.f32 %v2078_v59  ;;  %v9151_v59 = vadd.f32 %v8882_v23, %v2250_v22  ;;  %v9181_v22 = vadd.f32 %v8882_v23, %v2270_v63 }
 0x360   : > { %v7137_v36 = vpop.eup %7136 }
 0x361   : > { %v2082_v11 = vmul.f32 0.6931472, %v7137_v36  ;;  %v9168_v36 = vadd.f32 %v8890_v52, %v2260_v57 }
 0x363   : > { %v2084_v40 = vadd.f32 %v2082_v11, %v8967_v55  ;;  %v2290_v55 = vpop.permute.xlu0 %2289  ;;  %v2891_v11 = vsub.f32 %v2378_v46, %v11516_v44  ;;  %v9199_v46 = vadd.f32 %v8882_v23, %v2280_v30 }
 0x364   : > { %v9219_v58 = vadd.f32 %v8890_v52, %v2290_v55 }
 0x365   : > { %v2086_v14 = vadd.f32 -5.5451775, %v2084_v40  ;;  %v2892_v40 = vsub.f32 %v2379_v32, %v11517_v39  ;;  %v11522_v32 = vld [vmem:[#allocation32_spill] sm:$0xff]  ;;  %v11528_v39 = vld [vmem:[#allocation38_spill] sm:$0xff] }
 0x367   : > { %v2089_v45 = vmul.f32 %v9070_v61, %v2086_v14  ;;  %v2300_v2 = vpop.permute.xlu0 %2299  ;;  %v11536_v61 = vld [vmem:[#allocation46_spill] sm:$0xff] }
 0x368   : > { %v9234_v44 = vadd.f32 %v8882_v23, %v2300_v2 }
 0x369   : > { %v2092_v17 = vcombine.low %v2088_v27, %v2089_v45  ;;  %v11518_v27 = vld [vmem:[#allocation64_spill] sm:$0xff] }
 0x36a   : > { %v9174_v14 = vadd.f32 %v8882_v23, %v11518_v27  ;;  %v9178_v45 = vadd.f32 %v8890_v52, %v11518_v27  ;;  %v2899_v27 = vsub.f32 %v2386_v25, %v11528_v39 }
 0x36b   : > { %v2099_v24 = vrot.slane %v2092_v17, %v11499_v10  ;;  %v2310_v17 = vpop.permute.xlu0 %2309 }
 0x36d   : > { %v2106_v42 = vrot.slane %v2099_v24, %v11499_v10  ;;  %v9184_v24 = vadd.f32 %v8890_v52, %v2270_v63  ;;  %v9202_v63 = vadd.f32 %v8890_v52, %v2280_v30  ;;  %v11525_v30 = vld [vmem:[#allocation34_spill] sm:$0xff] }
 0x36e   : > { %v2897_v48 = vsub.f32 %v9096_v15, %v11525_v30  ;;  %v11529_v15 = vld [vmem:[#allocation39_spill] sm:$0xff]  ;;  %v11532_v30 = vld [vmem:[#allocation42_spill] sm:$0xff] }
 0x36f   : > { %2108 = vst.msk [vmem:[#allocation3] sm:$0x3] %vm7740_vm3, %v2106_v42  ;;  %v11519_v42 = vld [vmem:[#allocation29_spill] sm:$0xff]  ;;  %v2320_v50 = vpop.permute.xlu0 %2319 }
 0x370   : > { %v2893_v57 = vsub.f32 %v9086_v13, %v11519_v42  ;;  %v2895_v13 = vsub.f32 %v9103_v19, %v11522_v32  ;;  %v11526_v19 = vld [vmem:[#allocation35_spill] sm:$0xff]  ;;  %v2900_v42 = vsub.f32 %v2387_v26, %v11529_v15  ;;  %v9250_v32 = vadd.f32 %v8882_v23, %v2310_v17 }
 0x371   : > { %v2898_v5 = vsub.f32 %v9100_v8, %v11526_v19  ;;  %v2902_v26 = vsub.f32 %v9112_v38, %v11532_v30  ;;  %v11533_v19 = vld [vmem:[#allocation98_spill] sm:$0xff]  ;;  %v9277_v30 = vadd.f32 %v8890_v52, %v2320_v50 }
 0x376   : > { %v2206_v28 = vld [vmem:[#allocation3] sm:$0x3] }
 0x377   : > { %v9079_v47 = vrot.slane %v2206_v28, %v11501_v3  ;;  %v9082_v41 = vrot.slane %v2206_v28, %v11502_v9  ;;  %v2894_v28 = vsub.f32 %v9090_v34, %v11520_v16  ;;  %v11521_v3 = vld [vmem:[#allocation71_spill] sm:$0xff]  ;;  %v11524_v34 = vld [vmem:[#allocation78_spill] sm:$0xff]  ;;  %v11530_v16 = vld [vmem:[#allocation92_spill] sm:$0xff] }
 0x378   : > { %v9192_v9 = vadd.f32 %v8882_v23, %v11521_v3  ;;  %v9196_v37 = vadd.f32 %v8890_v52, %v11521_v3  ;;  %v9209_v6 = vadd.f32 %v8882_v23, %v11524_v34  ;;  %v9213_v29 = vadd.f32 %v8890_v52, %v11524_v34 }
 0x379   : > { %v9124_v54 = vsub.f32 %v9079_v47, %v11508_v49  ;;  %v9130_v31 = vsub.f32 %v9082_v41, %v11512_v62  ;;  %v9216_v49 = vadd.f32 %v8882_v23, %v2290_v55  ;;  %v11527_v62 = vld [vmem:[#allocation85_spill] sm:$0xff]  ;;  %v9237_v55 = vadd.f32 %v8890_v52, %v2300_v2 }
 0x37a   : > { %v9227_v20 = vadd.f32 %v8882_v23, %v11527_v62  ;;  %v9231_v56 = vadd.f32 %v8890_v52, %v11527_v62  ;;  %v9243_v8 = vadd.f32 %v8882_v23, %v11530_v16  ;;  %v9247_v3 = vadd.f32 %v8890_v52, %v11530_v16  ;;  %v11531_v2 = vld [vmem:[#allocation41_spill] sm:$0xff] }
 0x37b   : > { %11509 = vst [vmem:[#allocation36_spill] sm:$0xff] %v9124_v54  ;;  %11513 = vst [vmem:[#allocation40_spill] sm:$0xff] %v9130_v31  ;;  %v9253_v34 = vadd.f32 %v8890_v52, %v2310_v17  ;;  %v2901_v25 = vsub.f32 %v9108_v12, %v11531_v2  ;;  %v9261_v62 = vadd.f32 %v8882_v23, %v11533_v19  ;;  %v11537_v54 = vld [vmem:[#allocation104_spill] sm:$0xff] }
 0x37c   : > { %v2966_v39 = vsub.f32 %v9079_v47, %v2891_v11  ;;  %v2967_v15 = vsub.f32 %v9082_v41, %v2892_v40  ;;  %v2968_v16 = vsub.f32 %v9079_v47, %v2893_v57  ;;  %v2969_v10 = vsub.f32 %v9082_v41, %v2894_v28  ;;  %v11535_v11 = vld [vmem:[#allocation45_spill] sm:$0xff] }
 0x37d   : > { %v9269_v17 = vadd.f32 %v8890_v52, %v11533_v19  ;;  %v9272_v12 = vadd.f32 %v8882_v23, %v2320_v50  ;;  %v2970_v38 = vsub.f32 %v9079_v47, %v2895_v13  ;;  %v2971_v2 = vsub.f32 %v9082_v41, %v2896_v7 }
 0x37e   : > { %v2903_v40 = vsub.f32 %v9137_v18, %v11535_v11  ;;  %v2974_v57 = vsub.f32 %v9079_v47, %v2899_v27  ;;  %v2975_v28 = vsub.f32 %v9082_v41, %v2900_v42  ;;  %v2904_v19 = vsub.f32 %v9140_v35, %v11536_v61 }
 0x37f   : > { %11534 = vst [vmem:[#allocation43_spill] sm:$0xff] %v9269_v17  ;;  %v9287_v31 = vadd.f32 %v8882_v23, %v11537_v54  ;;  %v2972_v13 = vsub.f32 %v9079_v47, %v2897_v48  ;;  %v2973_v7 = vsub.f32 %v9082_v41, %v2898_v5  ;;  %v9292_v50 = vmul.f32 %v2968_v16, %v8314_v33  ;;  %v11547_v17 = vld [vmem:[#allocation48_spill] sm:$0xff] }
 0x380   : > { %v9295_v18 = vmul.f32 %v2969_v10, %v8314_v33  ;;  %v9298_v27 = vmul.f32 %v2966_v39, %v8314_v33  ;;  %v9301_v42 = vmul.f32 %v2967_v15, %v8314_v33  ;;  %v2978_v61 = vsub.f32 %v9079_v47, %v2903_v40  ;;  %v11545_v40 = vld [vmem:[#allocation51_spill] sm:$0xff] }
 0x381   : > { %11538 = vst [vmem:[#allocation102_spill] sm:$0xff] %v9287_v31  ;;  %11539 = vst [vmem:[#allocation49_spill] sm:$0xff] %v9292_v50  ;;  %v2979_v35 = vsub.f32 %v9082_v41, %v2904_v19  ;;  %v9306_v48 = vmul.f32 %v2970_v38, %v8314_v33  ;;  %v9309_v5 = vmul.f32 %v2971_v2, %v8314_v33  ;;  %v11544_v38 = vld [vmem:[#allocation47_spill] sm:$0xff]  ;;  %v11546_v19 = vld [vmem:[#allocation52_spill] sm:$0xff]  ;;  %v2330_v31 = vpop.permute.xlu0 %2329 }
 0x382   : > { %11540 = vst [vmem:[#allocation53_spill] sm:$0xff] %v9295_v18  ;;  %11541 = vst [vmem:[#allocation56_spill] sm:$0xff] %v9301_v42  ;;  %v9312_v16 = vmul.f32 %v2974_v57, %v8314_v33  ;;  %v9315_v10 = vmul.f32 %v2975_v28, %v8314_v33  ;;  %v3097_v39 = vmax.f32 %v9292_v50, %v9295_v18 }
 0x383   : > { %11542 = vst [vmem:[#allocation60_spill] sm:$0xff] %v9306_v48  ;;  %11543 = vst [vmem:[#allocation63_spill] sm:$0xff] %v9309_v5  ;;  %v3094_v15 = vmax.f32 %v9298_v27, %v9301_v42  ;;  %v9323_v11 = vadd.f32 %v8890_v52, %v11537_v54  ;;  %v2905_v2 = vsub.f32 %v9118_v0, %v11544_v38 }
 0x384   : > { %v2907_v57 = vsub.f32 %v9151_v59, %v11545_v40  ;;  %v2908_v28 = vsub.f32 %v9154_v60, %v11546_v19  ;;  %v2906_v18 = vsub.f32 %v9134_v4, %v11547_v17  ;;  %v2976_v50 = vsub.f32 %v9079_v47, %v2901_v25  ;;  %3098 = vmax.xlane.f32.xlu1 %v3097_v39 }
 0x385   : > { %v2977_v42 = vsub.f32 %v9082_v41, %v2902_v26  ;;  %3095 = vmax.xlane.f32.xlu0 %v3094_v15  ;;  %v9338_v38 = vmul.f32 %v2972_v13, %v8314_v33  ;;  %v9341_v59 = vmul.f32 %v2973_v7, %v8314_v33  ;;  %v9344_v60 = vmul.f32 %v2978_v61, %v8314_v33  ;;  %v11548_v13 = vld [vmem:[#allocation54_spill] sm:$0xff]  ;;  %v11550_v61 = vld [vmem:[#allocation59_spill] sm:$0xff] }
 0x386   : > { %v2982_v54 = vsub.f32 %v9079_v47, %v2907_v57  ;;  %v2983_v0 = vsub.f32 %v9082_v41, %v2908_v28  ;;  %v9347_v4 = vmul.f32 %v2979_v35, %v8314_v33  ;;  %v3106_v25 = vmax.f32 %v9312_v16, %v9315_v10  ;;  %v11549_v7 = vld [vmem:[#allocation58_spill] sm:$0xff]  ;;  %v11551_v35 = vld [vmem:[#allocation55_spill] sm:$0xff] }
 0x387   : > { %v3100_v26 = vmax.f32 %v9306_v48, %v9309_v5  ;;  %v9354_v17 = vadd.f32 %v8882_v23, %v2330_v31  ;;  %v2909_v39 = vsub.f32 %v9144_v51, %v11548_v13  ;;  %v2911_v15 = vsub.f32 %v9165_v1, %v11549_v7 }
 0x388   : > { %v2912_v40 = vsub.f32 %v9168_v36, %v11550_v61  ;;  %v2910_v57 = vsub.f32 %v9148_v43, %v11551_v35  ;;  %v2980_v19 = vsub.f32 %v9079_v47, %v2905_v2  ;;  %v2981_v28 = vsub.f32 %v9082_v41, %v2906_v18  ;;  %3107 = vmax.xlane.f32.xlu1 %v3106_v25 }
 0x389   : > { %3101 = vmax.xlane.f32.xlu0 %v3100_v26  ;;  %v2986_v5 = vsub.f32 %v9079_v47, %v2911_v15  ;;  %v9369_v51 = vmul.f32 %v2976_v50, %v8314_v33  ;;  %v9372_v1 = vmul.f32 %v2977_v42, %v8314_v33  ;;  %v9375_v36 = vmul.f32 %v2982_v54, %v8314_v33  ;;  %v11554_v50 = vld [vmem:[#allocation61_spill] sm:$0xff]  ;;  %v11556_v54 = vld [vmem:[#allocation66_spill] sm:$0xff] }
 0x38a   : > { %v2987_v48 = vsub.f32 %v9082_v41, %v2912_v40  ;;  %v9378_v43 = vmul.f32 %v2983_v0, %v8314_v33  ;;  %v3112_v18 = vmax.f32 %v9344_v60, %v9347_v4  ;;  %v3103_v2 = vmax.f32 %v9338_v38, %v9341_v59  ;;  %v11555_v42 = vld [vmem:[#allocation65_spill] sm:$0xff]  ;;  %v11557_v0 = vld [vmem:[#allocation62_spill] sm:$0xff] }
 0x38b   : > { %11552 = vst [vmem:[#allocation67_spill] sm:$0xff] %v9369_v51  ;;  %11553 = vst [vmem:[#allocation70_spill] sm:$0xff] %v9372_v1  ;;  %v9385_v25 = vadd.f32 %v8890_v52, %v2330_v31  ;;  %v2913_v26 = vsub.f32 %v9158_v21, %v11554_v50  ;;  %v2915_v13 = vsub.f32 %v9181_v22, %v11555_v42  ;;  %v11560_v50 = vld [vmem:[#allocation72_spill] sm:$0xff]  ;;  %v11561_v42 = vld [vmem:[#allocation73_spill] sm:$0xff] }
 0x38c   : > { %v2916_v7 = vsub.f32 %v9184_v24, %v11556_v54  ;;  %v2914_v15 = vsub.f32 %v9162_v53, %v11557_v0  ;;  %v2984_v61 = vsub.f32 %v9079_v47, %v2909_v39  ;;  %v2985_v40 = vsub.f32 %v9082_v41, %v2910_v57  ;;  %3113 = vmax.xlane.f32.xlu1 %v3112_v18  ;;  %v11558_v18 = vld [vmem:[#allocation109_spill] sm:$0xff] }
 0x38d   : > { %3104 = vmax.xlane.f32.xlu0 %v3103_v2  ;;  %v2990_v31 = vsub.f32 %v9079_v47, %v2915_v13  ;;  %v9400_v21 = vmul.f32 %v2980_v19, %v8314_v33  ;;  %v9403_v22 = vmul.f32 %v2981_v28, %v8314_v33  ;;  %v9406_v24 = vmul.f32 %v2986_v5, %v8314_v33  ;;  %v11559_v19 = vld [vmem:[#allocation68_spill] sm:$0xff]  ;;  %v11562_v13 = vld [vmem:[#allocation69_spill] sm:$0xff] }
 0x38e   : > { %v2991_v35 = vsub.f32 %v9082_v41, %v2916_v7  ;;  %v9409_v53 = vmul.f32 %v2987_v48, %v8314_v33  ;;  %v3118_v39 = vmax.f32 %v9375_v36, %v9378_v43  ;;  %v3109_v57 = vmax.f32 %v9369_v51, %v9372_v1 }
 0x38f   : > { %v9417_v2 = vadd.f32 %v8882_v23, %v11558_v18  ;;  %v2917_v28 = vsub.f32 %v9174_v14, %v11559_v19  ;;  %v2919_v5 = vsub.f32 %v9199_v46, %v11560_v50  ;;  %v2920_v48 = vsub.f32 %v9202_v63, %v11561_v42  ;;  %v11567_v19 = vld [vmem:[#allocation80_spill] sm:$0xff]  ;;  %v2340_v50 = vpop.permute.xlu0 %2339 }
 0x390   : > { %v2918_v54 = vsub.f32 %v9178_v45, %v11562_v13  ;;  %v2988_v7 = vsub.f32 %v9079_v47, %v2913_v26  ;;  %v2989_v0 = vsub.f32 %v9082_v41, %v2914_v15  ;;  %3119 = vmax.xlane.f32.xlu1 %v3118_v39  ;;  %v9432_v14 = vmul.f32 %v2984_v61, %v8314_v33  ;;  %v11565_v61 = vld [vmem:[#allocation75_spill] sm:$0xff] }
 0x391   : > { %3110 = vmax.xlane.f32.xlu0 %v3109_v57  ;;  %v2994_v1 = vsub.f32 %v9079_v47, %v2919_v5  ;;  %v2995_v51 = vsub.f32 %v9082_v41, %v2920_v48  ;;  %v9435_v46 = vmul.f32 %v2985_v40, %v8314_v33  ;;  %v9438_v63 = vmul.f32 %v2990_v31, %v8314_v33  ;;  %v11566_v57 = vld [vmem:[#allocation79_spill] sm:$0xff]  ;;  %v11568_v5 = vld [vmem:[#allocation76_spill] sm:$0xff] }
 0x392   : > { %11563 = vst [vmem:[#allocation74_spill] sm:$0xff] %v9432_v14  ;;  %v9441_v45 = vmul.f32 %v2991_v35, %v8314_v33  ;;  %v3124_v26 = vmax.f32 %v9406_v24, %v9409_v53  ;;  %v3115_v15 = vmax.f32 %v9400_v21, %v9403_v22  ;;  %v9449_v39 = vadd.f32 %v8890_v52, %v11558_v18 }
 0x393   : > { %11564 = vst [vmem:[#allocation77_spill] sm:$0xff] %v9435_v46  ;;  %v2921_v40 = vsub.f32 %v9192_v9, %v11565_v61  ;;  %v2923_v31 = vsub.f32 %v9216_v49, %v11566_v57  ;;  %v2924_v35 = vsub.f32 %v9219_v58, %v11567_v19  ;;  %v2922_v42 = vsub.f32 %v9196_v37, %v11568_v5 }
 0x394   : > { %v2992_v48 = vsub.f32 %v9079_v47, %v2917_v28  ;;  %v2993_v13 = vsub.f32 %v9082_v41, %v2918_v54  ;;  %3125 = vmax.xlane.f32.xlu1 %v3124_v26  ;;  %v9464_v61 = vmul.f32 %v2988_v7, %v8314_v33  ;;  %v9467_v49 = vmul.f32 %v2989_v0, %v8314_v33  ;;  %v11569_v7 = vld [vmem:[#allocation82_spill] sm:$0xff] }
 0x395   : > { %3116 = vmax.xlane.f32.xlu0 %v3115_v15  ;;  %v2998_v18 = vsub.f32 %v9079_v47, %v2923_v31  ;;  %v2999_v9 = vsub.f32 %v9082_v41, %v2924_v35  ;;  %v9470_v58 = vmul.f32 %v2994_v1, %v8314_v33  ;;  %v9473_v37 = vmul.f32 %v2995_v51, %v8314_v33  ;;  %v11570_v0 = vld [vmem:[#allocation86_spill] sm:$0xff]  ;;  %v11571_v1 = vld [vmem:[#allocation87_spill] sm:$0xff] }
 0x396   : > { %v3130_v28 = vmax.f32 %v9438_v63, %v9441_v45  ;;  %v3121_v54 = vmax.f32 %v9432_v14, %v9435_v46  ;;  %v9480_v26 = vadd.f32 %v8882_v23, %v2340_v50  ;;  %v2925_v15 = vsub.f32 %v9209_v6, %v11569_v7  ;;  %v11572_v51 = vld [vmem:[#allocation83_spill] sm:$0xff] }
 0x397   : > { %v2927_v57 = vsub.f32 %v9234_v44, %v11570_v0  ;;  %v2928_v31 = vsub.f32 %v9237_v55, %v11571_v1  ;;  %v2926_v19 = vsub.f32 %v9213_v29, %v11572_v51  ;;  %v2996_v35 = vsub.f32 %v9079_v47, %v2921_v40 }
 0x398   : > { %v2997_v5 = vsub.f32 %v9082_v41, %v2922_v42  ;;  %3131 = vmax.xlane.f32.xlu1 %v3130_v28  ;;  %v9495_v6 = vmul.f32 %v2992_v48, %v8314_v33  ;;  %v9498_v44 = vmul.f32 %v2993_v13, %v8314_v33  ;;  %v9501_v55 = vmul.f32 %v2998_v18, %v8314_v33  ;;  %v11575_v48 = vld [vmem:[#allocation89_spill] sm:$0xff]  ;;  %v11577_v18 = vld [vmem:[#allocation94_spill] sm:$0xff] }
 0x399   : > { %3122 = vmax.xlane.f32.xlu0 %v3121_v54  ;;  %v3002_v46 = vsub.f32 %v9079_v47, %v2927_v57  ;;  %v3003_v14 = vsub.f32 %v9082_v41, %v2928_v31  ;;  %v9504_v29 = vmul.f32 %v2999_v9, %v8314_v33  ;;  %v3136_v40 = vmax.f32 %v9470_v58, %v9473_v37  ;;  %v11576_v13 = vld [vmem:[#allocation93_spill] sm:$0xff]  ;;  %v2350_v9 = vpop.permute.xlu0 %2349  ;;  %v11578_v57 = vld [vmem:[#allocation90_spill] sm:$0xff] }
 0x39a   : > { %11573 = vst [vmem:[#allocation81_spill] sm:$0xff] %v9495_v6  ;;  %11574 = vst [vmem:[#allocation84_spill] sm:$0xff] %v9498_v44  ;;  %v3127_v42 = vmax.f32 %v9464_v61, %v9467_v49  ;;  %v9511_v28 = vadd.f32 %v8890_v52, %v2340_v50  ;;  %v2929_v54 = vsub.f32 %v9227_v20, %v11575_v48 }
 0x39b   : > { %v2931_v7 = vsub.f32 %v9250_v32, %v11576_v13  ;;  %v2932_v0 = vsub.f32 %v9253_v34, %v11577_v18  ;;  %v2930_v1 = vsub.f32 %v9231_v56, %v11578_v57  ;;  %v3000_v31 = vsub.f32 %v9079_v47, %v2925_v15  ;;  %v11581_v13 = vld [vmem:[#allocation99_spill] sm:$0xff]  ;;  %v11583_v18 = vld [vmem:[#allocation96_spill] sm:$0xff] }
 0x39c   : > { %v3001_v51 = vsub.f32 %v9082_v41, %v2926_v19  ;;  %3137 = vmax.xlane.f32.xlu1 %v3136_v40  ;;  %v9526_v48 = vmul.f32 %v2996_v35, %v8314_v33  ;;  %v9529_v32 = vmul.f32 %v2997_v5, %v8314_v33  ;;  %v9532_v34 = vmul.f32 %v3002_v46, %v8314_v33 }
 0x39d   : > { %3128 = vmax.xlane.f32.xlu0 %v3127_v42  ;;  %v3006_v50 = vsub.f32 %v9079_v47, %v2931_v7  ;;  %v3007_v20 = vsub.f32 %v9082_v41, %v2932_v0  ;;  %v9535_v56 = vmul.f32 %v3003_v14, %v8314_v33  ;;  %v3142_v15 = vmax.f32 %v9501_v55, %v9504_v29  ;;  %v11580_v42 = vld [vmem:[#allocation95_spill] sm:$0xff]  ;;  %v11582_v7 = vld [vmem:[#allocation100_spill] sm:$0xff] }
 0x39e   : > { %v3133_v19 = vmax.f32 %v9495_v6, %v9498_v44  ;;  %v2434_v40 = vadd.f32 %v8882_v23, %v2350_v9  ;;  %v2933_v35 = vsub.f32 %v9243_v8, %v11580_v42  ;;  %v2935_v5 = vsub.f32 %v9272_v12, %v11581_v13  ;;  %v11588_v42 = vld [vmem:[#allocation105_spill] sm:$0xff]  ;;  %v11589_v13 = vld [vmem:[#allocation106_spill] sm:$0xff] }
 0x39f   : > { %11579 = vst [vmem:[#allocation88_spill] sm:$0xff] %v9535_v56  ;;  %v2936_v46 = vsub.f32 %v9277_v30, %v11582_v7  ;;  %v2934_v14 = vsub.f32 %v9247_v3, %v11583_v18  ;;  %v3004_v0 = vsub.f32 %v9079_v47, %v2929_v54  ;;  %v3005_v57 = vsub.f32 %v9082_v41, %v2930_v1  ;;  %v11591_v7 = vld [vmem:[#allocation43_spill] sm:$0xff] }
 0x3a0   : > { %3143 = vmax.xlane.f32.xlu1 %v3142_v15  ;;  %v3010_v44 = vsub.f32 %v9079_v47, %v2935_v5  ;;  %v9555_v8 = vmul.f32 %v3000_v31, %v8314_v33  ;;  %v9558_v12 = vmul.f32 %v3001_v51, %v8314_v33  ;;  %v9561_v30 = vmul.f32 %v3006_v50, %v8314_v33  ;;  %v2360_v5 = vpop.permute.xlu0 %2359 }
 0x3a1   : > { %3134 = vmax.xlane.f32.xlu0 %v3133_v19  ;;  %v3011_v6 = vsub.f32 %v9082_v41, %v2936_v46  ;;  %v9564_v3 = vmul.f32 %v3007_v20, %v8314_v33  ;;  %v3148_v54 = vmax.f32 %v9532_v34, %v9535_v56  ;;  %v3139_v1 = vmax.f32 %v9526_v48, %v9529_v32  ;;  %v11587_v19 = vld [vmem:[#allocation101_spill] sm:$0xff]  ;;  %v11590_v20 = vld [vmem:[#allocation103_spill] sm:$0xff] }
 0x3a2   : > { %11584 = vst [vmem:[#allocation91_spill] sm:$0xff] %v9555_v8  ;;  %11585 = vst [vmem:[#allocation97_spill] sm:$0xff] %v9558_v12  ;;  %v2435_v15 = vadd.f32 %v8890_v52, %v2350_v9  ;;  %v2937_v31 = vsub.f32 %v9261_v62, %v11587_v19  ;;  %v2939_v51 = vsub.f32 %v9354_v17, %v11588_v42 }
 0x3a3   : > { %11586 = vst [vmem:[#allocation114_spill] sm:$0xff] %v9564_v3  ;;  %v2940_v50 = vsub.f32 %v9385_v25, %v11589_v13  ;;  %v2938_v46 = vsub.f32 %v11591_v7, %v11590_v20  ;;  %v3008_v18 = vsub.f32 %v9079_v47, %v2933_v35  ;;  %v3009_v56 = vsub.f32 %v9082_v41, %v2934_v14  ;;  %v11595_v13 = vld [vmem:[#allocation110_spill] sm:$0xff]  ;;  %v11597_v20 = vld [vmem:[#allocation108_spill] sm:$0xff] }
 0x3a4   : > { %3149 = vmax.xlane.f32.xlu1 %v3148_v54  ;;  %v3014_v9 = vsub.f32 %v9079_v47, %v2939_v51  ;;  %v9584_v19 = vmul.f32 %v3004_v0, %v8314_v33  ;;  %v9587_v17 = vmul.f32 %v3005_v57, %v8314_v33  ;;  %v9590_v25 = vmul.f32 %v3010_v44, %v8314_v33  ;;  %v11594_v0 = vld [vmem:[#allocation102_spill] sm:$0xff] }
 0x3a5   : > { %3140 = vmax.xlane.f32.xlu0 %v3139_v1  ;;  %v3015_v62 = vsub.f32 %v9082_v41, %v2940_v50  ;;  %v9593_v42 = vmul.f32 %v3011_v6, %v8314_v33  ;;  %v3154_v35 = vmax.f32 %v9561_v30, %v9564_v3  ;;  %v3145_v14 = vmax.f32 %v9555_v8, %v9558_v12  ;;  %v11593_v1 = vld [vmem:[#allocation107_spill] sm:$0xff] }
 0x3a6   : > { %11592 = vst [vmem:[#allocation117_spill] sm:$0xff] %v9587_v17  ;;  %v2438_v54 = vadd.f32 %v8882_v23, %v2360_v5  ;;  %v2941_v51 = vsub.f32 %v11594_v0, %v11593_v1  ;;  %v2943_v57 = vsub.f32 %v9480_v26, %v11595_v13  ;;  %v11596_v50 = vld [vmem:[#allocation111_spill] sm:$0xff]  ;;  %v2942_v6 = vsub.f32 %v9323_v11, %v11597_v20  ;;  %v11600_v13 = vld [vmem:[#allocation116_spill] sm:$0xff] }
 0x3a7   : > { %v2944_v44 = vsub.f32 %v9511_v28, %v11596_v50  ;;  %v3012_v7 = vsub.f32 %v9079_v47, %v2937_v31  ;;  %v3013_v3 = vsub.f32 %v9082_v41, %v2938_v46  ;;  %v9613_v1 = vmul.f32 %v3008_v18, %v8314_v33  ;;  %v11599_v0 = vld [vmem:[#allocation21_spill] sm:$0xff] }
 0x3a8   : > { %3155 = vmax.xlane.f32.xlu1 %v3154_v35  ;;  %v3018_v12 = vsub.f32 %v9079_v47, %v2943_v57  ;;  %v9616_v26 = vmul.f32 %v3009_v56, %v8314_v33  ;;  %v9619_v28 = vmul.f32 %v3014_v9, %v8314_v33  ;;  %v9622_v11 = vmul.f32 %v3015_v62, %v8314_v33  ;;  %v11601_v9 = vld [vmem:[#allocation113_spill] sm:$0xff] }
 0x3a9   : > { %3146 = vmax.xlane.f32.xlu0 %v3145_v14  ;;  %v3019_v8 = vsub.f32 %v9082_v41, %v2944_v44  ;;  %v3160_v31 = vmax.f32 %v9590_v25, %v9593_v42  ;;  %v3151_v46 = vmax.f32 %v9584_v19, %v9587_v17  ;;  %v2439_v35 = vadd.f32 %v8890_v52, %v2360_v5  ;;  %v11598_v14 = vld [vmem:[#allocation112_spill] sm:$0xff] }
 0x3aa   : > { %v2945_v18 = vsub.f32 %v9417_v2, %v11598_v14  ;;  %v2947_v56 = vsub.f32 %v2434_v40, %v11599_v0  ;;  %v2948_v57 = vsub.f32 %v2435_v15, %v11600_v13  ;;  %v2946_v50 = vsub.f32 %v9449_v39, %v11601_v9  ;;  %v11604_v14 = vld [vmem:[#allocation121_spill] sm:$0xff] }
 0x3ab   : > { %v3016_v62 = vsub.f32 %v9079_v47, %v2941_v51  ;;  %v3017_v44 = vsub.f32 %v9082_v41, %v2942_v6  ;;  %v9640_v17 = vmul.f32 %v3012_v7, %v8314_v33  ;;  %v9643_v2 = vmul.f32 %v3013_v3, %v8314_v33  ;;  %v11602_v6 = vld [vmem:[#allocation115_spill] sm:$0xff]  ;;  %v11603_v7 = vld [vmem:[#allocation22_spill] sm:$0xff]  ;;  %v11605_v9 = vld [vmem:[#allocation19_spill] sm:$0xff] }
 0x3ac   : > { %3161 = vmax.xlane.f32.xlu1 %v3160_v31  ;;  %v3022_v20 = vsub.f32 %v9079_v47, %v2947_v56  ;;  %v3023_v5 = vsub.f32 %v9082_v41, %v2948_v57  ;;  %v9646_v40 = vmul.f32 %v3018_v12, %v8314_v33  ;;  %v9649_v39 = vmul.f32 %v3019_v8, %v8314_v33 }
 0x3ad   : > { %3152 = vmax.xlane.f32.xlu0 %v3151_v46  ;;  %v3166_v15 = vmax.f32 %v9619_v28, %v9622_v11  ;;  %v3157_v51 = vmax.f32 %v9613_v1, %v9616_v26  ;;  %v2436_v31 = vadd.f32 %v8882_v23, %v11602_v6  ;;  %v2951_v46 = vsub.f32 %v2438_v54, %v11603_v7 }
 0x3ae   : > { %v2952_v3 = vsub.f32 %v2439_v35, %v11604_v14  ;;  %v2437_v12 = vadd.f32 %v8890_v52, %v11602_v6  ;;  %v3020_v0 = vsub.f32 %v9079_v47, %v2945_v18  ;;  %v3021_v8 = vsub.f32 %v9082_v41, %v2946_v50 }
 0x3af   : > { %v3026_v56 = vsub.f32 %v9079_v47, %v2951_v46  ;;  %v9666_v57 = vmul.f32 %v3016_v62, %v8314_v33  ;;  %v9669_v23 = vmul.f32 %v3017_v44, %v8314_v33  ;;  %v9672_v54 = vmul.f32 %v3022_v20, %v8314_v33 }
 0x3b0   : > { %3167 = vmax.xlane.f32.xlu1 %v3166_v15  ;;  %v3027_v13 = vsub.f32 %v9082_v41, %v2952_v3  ;;  %v9675_v52 = vmul.f32 %v3023_v5, %v8314_v33  ;;  %v3172_v35 = vmax.f32 %v9646_v40, %v9649_v39  ;;  %v3163_v18 = vmax.f32 %v9640_v17, %v9643_v2  ;;  %v11606_v15 = vld [vmem:[#allocation119_spill] sm:$0xff] }
 0x3b1   : > { %3158 = vmax.xlane.f32.xlu0 %v3157_v51  ;;  %v2949_v50 = vsub.f32 %v2436_v31, %v11605_v9  ;;  %v2950_v62 = vsub.f32 %v2437_v12, %v11606_v15  ;;  %v9686_v51 = vmul.f32 %v3020_v0, %v8314_v33  ;;  %v9689_v5 = vmul.f32 %v3021_v8, %v8314_v33  ;;  %v11607_v12 = vld [vmem:[#allocation40_spill] sm:$0xff] }
 0x3b2   : > { %v9692_v6 = vmul.f32 %v3026_v56, %v8314_v33  ;;  %v9695_v7 = vmul.f32 %v3027_v13, %v8314_v33  ;;  %v3178_v31 = vmax.f32 %v9672_v54, %v9675_v52  ;;  %v9713_v0 = vmul.f32 %v11607_v12, %v8314_v33  ;;  %v11608_v8 = vld [vmem:[#allocation36_spill] sm:$0xff] }
 0x3b3   : > { %v3024_v44 = vsub.f32 %v9079_v47, %v2949_v50  ;;  %v3025_v20 = vsub.f32 %v9082_v41, %v2950_v62  ;;  %v3169_v47 = vmax.f32 %v9666_v57, %v9669_v23  ;;  %v3175_v3 = vmax.f32 %v9686_v51, %v9689_v5  ;;  %v11610_v50 = vld [vmem:[#allocation49_spill] sm:$0xff] }
 0x3b4   : > { %3173 = vmax.xlane.f32.xlu1 %v3172_v35  ;;  %v3184_v14 = vmax.f32 %v9692_v6, %v9695_v7  ;;  %v9717_v56 = vmul.f32 %v11608_v8, %v8314_v33  ;;  %v11611_v62 = vld [vmem:[#allocation53_spill] sm:$0xff] }
 0x3b5   : > { %3164 = vmax.xlane.f32.xlu0 %v3163_v18  ;;  %v9702_v41 = vmul.f32 %v3024_v44, %v8314_v33  ;;  %v9705_v46 = vmul.f32 %v3025_v20, %v8314_v33  ;;  %v11612_v20 = vld [vmem:[#allocation56_spill] sm:$0xff] }
 0x3b6   : > { %v3187_v35 = vmax.f32 %v9717_v56, %v9713_v0 }
 0x3b7   : > { %v3181_v13 = vmax.f32 %v9702_v41, %v9705_v46 }
 0x3b8   : > { %3179 = vmax.xlane.f32.xlu1 %v3178_v31 }
 0x3b9   : > { %3170 = vmax.xlane.f32.xlu0 %v3169_v47 }
 0x3bc   : > { %3185 = vmax.xlane.f32.xlu1 %v3184_v14 }
 0x3bd   : > { %3176 = vmax.xlane.f32.xlu0 %v3175_v3 }
 0x3c1   : > { %3182 = vmax.xlane.f32.xlu0 %v3181_v13 }
 0x3c5   : > { %3188 = vmax.xlane.f32.xlu0 %v3187_v35 }
 0x411   : > { %v9723_v18 = vpop.xlane.xlu1 %3098 }
 0x412   : > { %v9725_v9 = vpop.xlane.xlu0 %3095  ;;  %v3320_v15 = vsub.f32 %v11610_v50, %v9723_v18  ;;  %v3321_v44 = vsub.f32 %v11611_v62, %v9723_v18 }
 0x413   : > { %11609 = vst [vmem:[#allocation118_spill] sm:$0xff] %v9725_v9  ;;  %v3318_v33 = vsub.f32 %v9298_v27, %v9725_v9  ;;  %v3319_v31 = vsub.f32 %v11612_v20, %v9725_v9  ;;  %v11613_v27 = vld [vmem:[#allocation60_spill] sm:$0xff] }
 0x414   : > { %v3386_v47 = vmul.f32 1.442695, %v3320_v15  ;;  %v3388_v14 = vmul.f32 1.442695, %v3321_v44  ;;  %v11614_v15 = vld [vmem:[#allocation63_spill] sm:$0xff] }
 0x415   : > { %v3382_v3 = vmul.f32 1.442695, %v3318_v33  ;;  %v3384_v12 = vmul.f32 1.442695, %v3319_v31  ;;  %v9735_v8 = vpop.xlane.xlu1 %3107 }
 0x416   : > { %v9737_v13 = vpop.xlane.xlu0 %3101  ;;  %7138 = vpow2.f32 %v3386_v47  ;;  %v3326_v35 = vsub.f32 %v9312_v16, %v9735_v8  ;;  %v3327_v50 = vsub.f32 %v9315_v10, %v9735_v8 }
 0x417   : > { %7140 = vpow2.f32 %v3388_v14  ;;  %v3322_v62 = vsub.f32 %v11613_v27, %v9737_v13  ;;  %v3323_v44 = vsub.f32 %v11614_v15, %v9737_v13 }
 0x418   : > { %7142 = vpow2.f32 %v3382_v3  ;;  %v3398_v33 = vmul.f32 1.442695, %v3326_v35  ;;  %v3400_v16 = vmul.f32 1.442695, %v3327_v50 }
 0x419   : > { %7144 = vpow2.f32 %v3384_v12  ;;  %v3390_v20 = vmul.f32 1.442695, %v3322_v62  ;;  %v3392_v31 = vmul.f32 1.442695, %v3323_v44  ;;  %v9747_v9 = vpop.xlane.xlu1 %3113 }
 0x41a   : > { %11615 = vst [vmem:[#allocation120_spill] sm:$0xff] %v9747_v9  ;;  %v9749_v47 = vpop.xlane.xlu0 %3104  ;;  %v3330_v10 = vsub.f32 %v9344_v60, %v9747_v9  ;;  %v3331_v14 = vsub.f32 %v9347_v4, %v9747_v9  ;;  %7146 = vpow2.f32 %v3398_v33  ;;  %v11619_v33 = vld [vmem:[#allocation70_spill] sm:$0xff] }
 0x41b   : > { %v3324_v27 = vsub.f32 %v9338_v38, %v9749_v47  ;;  %v3325_v3 = vsub.f32 %v9341_v59, %v9749_v47  ;;  %7148 = vpow2.f32 %v3390_v20  ;;  %v11618_v59 = vld [vmem:[#allocation67_spill] sm:$0xff] }
 0x41c   : > { %v3406_v12 = vmul.f32 1.442695, %v3330_v10  ;;  %7150 = vpow2.f32 %v3392_v31  ;;  %v3408_v60 = vmul.f32 1.442695, %v3331_v14 }
 0x41d   : > { %v3394_v35 = vmul.f32 1.442695, %v3324_v27  ;;  %v3396_v62 = vmul.f32 1.442695, %v3325_v3  ;;  %v9759_v15 = vpop.xlane.xlu1 %3119  ;;  %7152 = vpow2.f32 %v3400_v16 }
 0x41e   : > { %11616 = vst [vmem:[#allocation26_spill] sm:$0xff] %v9759_v15  ;;  %v9761_v50 = vpop.xlane.xlu0 %3110  ;;  %v3334_v4 = vsub.f32 %v9375_v36, %v9759_v15  ;;  %v3335_v38 = vsub.f32 %v9378_v43, %v9759_v15  ;;  %7154 = vpow2.f32 %v3406_v12 }
 0x41f   : > { %11617 = vst [vmem:[#allocation31_spill] sm:$0xff] %v9761_v50  ;;  %v3328_v44 = vsub.f32 %v11618_v59, %v9761_v50  ;;  %v3329_v20 = vsub.f32 %v11619_v33, %v9761_v50  ;;  %7156 = vpow2.f32 %v3394_v35 }
 0x420   : > { %v7139_v31 = vpop.eup %7138  ;;  %v3414_v10 = vmul.f32 1.442695, %v3334_v4  ;;  %7158 = vpow2.f32 %v3396_v62  ;;  %v3416_v43 = vmul.f32 1.442695, %v3335_v38 }
 0x421   : > { %v7141_v27 = vpop.eup %7140  ;;  %v3402_v16 = vmul.f32 1.442695, %v3328_v44  ;;  %v3404_v14 = vmul.f32 1.442695, %v3329_v20  ;;  %v9771_v3 = vpop.xlane.xlu1 %3125  ;;  %7160 = vpow2.f32 %v3408_v60 }
 0x422   : > { %v9773_v36 = vpop.xlane.xlu0 %3116  ;;  %v7143_v9 = vpop.eup %7142  ;;  %v3338_v12 = vsub.f32 %v9406_v24, %v9771_v3  ;;  %v3339_v59 = vsub.f32 %v9409_v53, %v9771_v3  ;;  %7162 = vpow2.f32 %v3414_v10  ;;  %v3513_v44 = vadd.f32 %v7141_v27, %v7139_v31  ;;  %v11620_v27 = vld [vmem:[#allocation74_spill] sm:$0xff] }
 0x423   : > { %v7145_v33 = vpop.eup %7144  ;;  %v3332_v35 = vsub.f32 %v9400_v21, %v9773_v36  ;;  %v3333_v62 = vsub.f32 %v9403_v22, %v9773_v36  ;;  %7164 = vpow2.f32 %v3402_v16  ;;  %v11621_v16 = vld [vmem:[#allocation77_spill] sm:$0xff] }
 0x424   : > { %v3422_v4 = vmul.f32 1.442695, %v3338_v12  ;;  %v7147_v20 = vpop.eup %7146  ;;  %7166 = vpow2.f32 %v3404_v14  ;;  %v3510_v15 = vadd.f32 %v7145_v33, %v7143_v9  ;;  %v3424_v10 = vmul.f32 1.442695, %v3339_v59  ;;  %3514 = vadd.xlane.f32.xlu0 %v3513_v44 }
 0x425   : > { %v3410_v60 = vmul.f32 1.442695, %v3332_v35  ;;  %v3412_v38 = vmul.f32 1.442695, %v3333_v62  ;;  %v9783_v24 = vpop.xlane.xlu1 %3131  ;;  %v7149_v53 = vpop.eup %7148  ;;  %7168 = vpow2.f32 %v3416_v43 }
 0x426   : > { %v9785_v50 = vpop.xlane.xlu0 %3122  ;;  %v3342_v21 = vsub.f32 %v9438_v63, %v9783_v24  ;;  %v3343_v22 = vsub.f32 %v9441_v45, %v9783_v24  ;;  %v7151_v31 = vpop.eup %7150  ;;  %7170 = vpow2.f32 %v3422_v4  ;;  %3511 = vadd.xlane.f32.xlu1 %v3510_v15 }
 0x427   : > { %v3336_v9 = vsub.f32 %v11620_v27, %v9785_v50  ;;  %v3337_v14 = vsub.f32 %v11621_v16, %v9785_v50  ;;  %v7153_v12 = vpop.eup %7152  ;;  %7172 = vpow2.f32 %v3410_v60  ;;  %v3516_v59 = vadd.f32 %v7151_v31, %v7149_v53 }
 0x428   : > { %v3430_v43 = vmul.f32 1.442695, %v3342_v21  ;;  %v7155_v33 = vpop.eup %7154  ;;  %7174 = vpow2.f32 %v3412_v38  ;;  %v3432_v15 = vmul.f32 1.442695, %v3343_v22  ;;  %v3522_v16 = vadd.f32 %v7153_v12, %v7147_v20  ;;  %v11623_v12 = vld [vmem:[#allocation84_spill] sm:$0xff] }
 0x429   : > { %v3418_v35 = vmul.f32 1.442695, %v3336_v9  ;;  %v3420_v63 = vmul.f32 1.442695, %v3337_v14  ;;  %v9795_v62 = vpop.xlane.xlu1 %3137  ;;  %v7157_v4 = vpop.eup %7156  ;;  %7176 = vpow2.f32 %v3424_v10 }
 0x42a   : > { %v9797_v45 = vpop.xlane.xlu0 %3128  ;;  %v3346_v44 = vsub.f32 %v9470_v58, %v9795_v62  ;;  %v3347_v27 = vsub.f32 %v9473_v37, %v9795_v62  ;;  %v7159_v60 = vpop.eup %7158  ;;  %7178 = vpow2.f32 %v3430_v43  ;;  %3517 = vadd.xlane.f32.xlu1 %v3516_v59 }
 0x42b   : > { %v3340_v38 = vsub.f32 %v9464_v61, %v9797_v45  ;;  %v3341_v53 = vsub.f32 %v9467_v49, %v9797_v45  ;;  %v7161_v21 = vpop.eup %7160  ;;  %7180 = vpow2.f32 %v3418_v35  ;;  %v3519_v10 = vadd.f32 %v7159_v60, %v7157_v4 }
 0x42c   : > { %v3438_v31 = vmul.f32 1.442695, %v3346_v44  ;;  %v7163_v22 = vpop.eup %7162  ;;  %7182 = vpow2.f32 %v3420_v63  ;;  %v3440_v59 = vmul.f32 1.442695, %v3347_v27  ;;  %v11622_v63 = vld [vmem:[#allocation81_spill] sm:$0xff] }
 0x42d   : > { %v3426_v9 = vmul.f32 1.442695, %v3340_v38  ;;  %v3428_v58 = vmul.f32 1.442695, %v3341_v53  ;;  %v9807_v14 = vpop.xlane.xlu1 %3143  ;;  %v7165_v43 = vpop.eup %7164  ;;  %7184 = vpow2.f32 %v3432_v15  ;;  %3520 = vadd.xlane.f32.xlu0 %v3519_v10  ;;  %v3528_v53 = vadd.f32 %v7161_v21, %v7155_v33 }
 0x42e   : > { %v9809_v37 = vpop.xlane.xlu0 %3134  ;;  %v3350_v61 = vsub.f32 %v9501_v55, %v9807_v14  ;;  %v3351_v49 = vsub.f32 %v9504_v29, %v9807_v14  ;;  %v7167_v35 = vpop.eup %7166  ;;  %7186 = vpow2.f32 %v3438_v31  ;;  %3523 = vadd.xlane.f32.xlu1 %v3522_v16 }
 0x42f   : > { %v3344_v20 = vsub.f32 %v11622_v63, %v9809_v37  ;;  %v3345_v4 = vsub.f32 %v11623_v12, %v9809_v37  ;;  %v7169_v44 = vpop.eup %7168  ;;  %7188 = vpow2.f32 %v3426_v9  ;;  %v3525_v27 = vadd.f32 %v7167_v35, %v7165_v43  ;;  %v11624_v9 = vld [vmem:[#allocation88_spill] sm:$0xff] }
 0x430   : > { %v3446_v15 = vmul.f32 1.442695, %v3350_v61  ;;  %v7171_v60 = vpop.eup %7170  ;;  %7190 = vpow2.f32 %v3428_v58  ;;  %v3448_v16 = vmul.f32 1.442695, %v3351_v49  ;;  %v3534_v12 = vadd.f32 %v7169_v44, %v7163_v22  ;;  %v11627_v44 = vld [vmem:[#allocation97_spill] sm:$0xff] }
 0x431   : > { %v3434_v38 = vmul.f32 1.442695, %v3344_v20  ;;  %v3436_v55 = vmul.f32 1.442695, %v3345_v4  ;;  %v9819_v10 = vpop.xlane.xlu1 %3149  ;;  %v7173_v31 = vpop.eup %7172  ;;  %7192 = vpow2.f32 %v3440_v59  ;;  %3526 = vadd.xlane.f32.xlu0 %v3525_v27 }
 0x432   : > { %v9821_v29 = vpop.xlane.xlu0 %3140  ;;  %v3354_v63 = vsub.f32 %v9532_v34, %v9819_v10  ;;  %v3355_v61 = vsub.f32 %v11624_v9, %v9819_v10  ;;  %v7175_v43 = vpop.eup %7174  ;;  %7194 = vpow2.f32 %v3446_v15  ;;  %3529 = vadd.xlane.f32.xlu1 %v3528_v53 }
 0x433   : > { %v3348_v33 = vsub.f32 %v9526_v48, %v9821_v29  ;;  %v3349_v21 = vsub.f32 %v9529_v32, %v9821_v29  ;;  %v7177_v58 = vpop.eup %7176  ;;  %7196 = vpow2.f32 %v3434_v38  ;;  %v3531_v49 = vadd.f32 %v7175_v43, %v7173_v31  ;;  %v11625_v32 = vld [vmem:[#allocation114_spill] sm:$0xff] }
 0x434   : > { %v3454_v59 = vmul.f32 1.442695, %v3354_v63  ;;  %v7179_v35 = vpop.eup %7178  ;;  %7198 = vpow2.f32 %v3436_v55  ;;  %v3456_v53 = vmul.f32 1.442695, %v3355_v61  ;;  %v11626_v55 = vld [vmem:[#allocation91_spill] sm:$0xff] }
 0x435   : > { %v3442_v20 = vmul.f32 1.442695, %v3348_v33  ;;  %v3444_v34 = vmul.f32 1.442695, %v3349_v21  ;;  %v9831_v4 = vpop.xlane.xlu1 %3155  ;;  %v7181_v15 = vpop.eup %7180  ;;  %7200 = vpow2.f32 %v3448_v16  ;;  %3532 = vadd.xlane.f32.xlu0 %v3531_v49  ;;  %v3540_v21 = vadd.f32 %v7177_v58, %v7171_v60  ;;  %v11628_v58 = vld [vmem:[#allocation117_spill] sm:$0xff] }
 0x436   : > { %v9833_v27 = vpop.xlane.xlu0 %3146  ;;  %v3358_v48 = vsub.f32 %v9561_v30, %v9831_v4  ;;  %v3359_v38 = vsub.f32 %v11625_v32, %v9831_v4  ;;  %v7183_v31 = vpop.eup %7182  ;;  %7202 = vpow2.f32 %v3454_v59  ;;  %3535 = vadd.xlane.f32.xlu1 %v3534_v12 }
 0x437   : > { %v3352_v22 = vsub.f32 %v11626_v55, %v9833_v27  ;;  %v3353_v63 = vsub.f32 %v11627_v44, %v9833_v27  ;;  %v7185_v9 = vpop.eup %7184  ;;  %7204 = vpow2.f32 %v3442_v20  ;;  %v3537_v61 = vadd.f32 %v7183_v31, %v7181_v15 }
 0x438   : > { %v3462_v16 = vmul.f32 1.442695, %v3358_v48  ;;  %v7187_v43 = vpop.eup %7186  ;;  %7206 = vpow2.f32 %v3444_v34  ;;  %v3464_v12 = vmul.f32 1.442695, %v3359_v38  ;;  %v3546_v44 = vadd.f32 %v7185_v9, %v7179_v35 }
 0x439   : > { %v3450_v33 = vmul.f32 1.442695, %v3352_v22  ;;  %v3452_v30 = vmul.f32 1.442695, %v3353_v63  ;;  %v9843_v49 = vpop.xlane.xlu1 %3161  ;;  %v7189_v59 = vpop.eup %7188  ;;  %7208 = vpow2.f32 %v3456_v53  ;;  %3538 = vadd.xlane.f32.xlu0 %v3537_v61 }
 0x43a   : > { %v9845_v32 = vpop.xlane.xlu0 %3152  ;;  %v3362_v55 = vsub.f32 %v9590_v25, %v9843_v49  ;;  %v3363_v20 = vsub.f32 %v9593_v42, %v9843_v49  ;;  %v7191_v15 = vpop.eup %7190  ;;  %7210 = vpow2.f32 %v3462_v16  ;;  %3541 = vadd.xlane.f32.xlu1 %v3540_v21 }
 0x43b   : > { %v3356_v60 = vsub.f32 %v9584_v19, %v9845_v32  ;;  %v3357_v34 = vsub.f32 %v11628_v58, %v9845_v32  ;;  %v7193_v48 = vpop.eup %7192  ;;  %7212 = vpow2.f32 %v3450_v33  ;;  %v3543_v38 = vadd.f32 %v7191_v15, %v7189_v59 }
 0x43c   : > { %v3470_v53 = vmul.f32 1.442695, %v3362_v55  ;;  %v7195_v31 = vpop.eup %7194  ;;  %7214 = vpow2.f32 %v3452_v30  ;;  %v3472_v61 = vmul.f32 1.442695, %v3363_v20  ;;  %v3552_v15 = vadd.f32 %v7193_v48, %v7187_v43 }
 0x43d   : > { %v3458_v22 = vmul.f32 1.442695, %v3356_v60  ;;  %v3460_v25 = vmul.f32 1.442695, %v3357_v34  ;;  %v9855_v63 = vpop.xlane.xlu1 %3167  ;;  %v7197_v16 = vpop.eup %7196  ;;  %7216 = vpow2.f32 %v3464_v12  ;;  %3544 = vadd.xlane.f32.xlu0 %v3543_v38 }
 0x43e   : > { %11629 = vst [vmem:[#allocation37_spill] sm:$0xff] %v9855_v63  ;;  %v9857_v42 = vpop.xlane.xlu0 %3158  ;;  %v3366_v19 = vsub.f32 %v9619_v28, %v9855_v63  ;;  %v3367_v33 = vsub.f32 %v9622_v11, %v9855_v63  ;;  %v7199_v21 = vpop.eup %7198  ;;  %7218 = vpow2.f32 %v3470_v53  ;;  %3547 = vadd.xlane.f32.xlu1 %v3546_v44 }
 0x43f   : > { %v3360_v35 = vsub.f32 %v9613_v1, %v9857_v42  ;;  %v3361_v9 = vsub.f32 %v9616_v26, %v9857_v42  ;;  %v7201_v30 = vpop.eup %7200  ;;  %7220 = vpow2.f32 %v3458_v22  ;;  %v3549_v12 = vadd.f32 %v7199_v21, %v7197_v16 }
 0x440   : > { %v3478_v59 = vmul.f32 1.442695, %v3366_v19  ;;  %v7203_v55 = vpop.eup %7202  ;;  %7222 = vpow2.f32 %v3460_v25  ;;  %v3480_v34 = vmul.f32 1.442695, %v3367_v33 }
 0x441   : > { %v3466_v20 = vmul.f32 1.442695, %v3360_v35  ;;  %v3468_v28 = vmul.f32 1.442695, %v3361_v9  ;;  %v9867_v60 = vpop.xlane.xlu1 %3173  ;;  %v7205_v58 = vpop.eup %7204  ;;  %7224 = vpow2.f32 %v3472_v61  ;;  %3550 = vadd.xlane.f32.xlu0 %v3549_v12  ;;  %v3558_v61 = vadd.f32 %v7201_v30, %v7195_v31 }
 0x442   : > { %11630 = vst [vmem:[#allocation44_spill] sm:$0xff] %v9867_v60  ;;  %v9869_v11 = vpop.xlane.xlu0 %3164  ;;  %v3370_v1 = vsub.f32 %v9646_v40, %v9867_v60  ;;  %v3371_v26 = vsub.f32 %v9649_v39, %v9867_v60  ;;  %v7207_v53 = vpop.eup %7206  ;;  %7226 = vpow2.f32 %v3478_v59  ;;  %3553 = vadd.xlane.f32.xlu1 %v3552_v15 }
 0x443   : > { %11631 = vst [vmem:[#allocation122_spill] sm:$0xff] %v9869_v11  ;;  %v3364_v43 = vsub.f32 %v9640_v17, %v9869_v11  ;;  %v3365_v48 = vsub.f32 %v9643_v2, %v9869_v11  ;;  %v7209_v38 = vpop.eup %7208  ;;  %7228 = vpow2.f32 %v3466_v20  ;;  %v3555_v25 = vadd.f32 %v7207_v53, %v7205_v58 }
 0x444   : > { %v3486_v22 = vmul.f32 1.442695, %v3370_v1  ;;  %v7211_v44 = vpop.eup %7210  ;;  %7230 = vpow2.f32 %v3468_v28  ;;  %v3488_v21 = vmul.f32 1.442695, %v3371_v26  ;;  %v3564_v15 = vadd.f32 %v7209_v38, %v7203_v55 }
 0x445   : > { %v3474_v16 = vmul.f32 1.442695, %v3364_v43  ;;  %v3476_v40 = vmul.f32 1.442695, %v3365_v48  ;;  %v9879_v19 = vpop.xlane.xlu1 %3179  ;;  %v7213_v33 = vpop.eup %7212  ;;  %7232 = vpow2.f32 %v3480_v34  ;;  %3556 = vadd.xlane.f32.xlu0 %v3555_v25 }
 0x446   : > { %v9881_v39 = vpop.xlane.xlu0 %3170  ;;  %v3374_v17 = vsub.f32 %v9672_v54, %v9879_v19  ;;  %v3375_v2 = vsub.f32 %v9675_v52, %v9879_v19  ;;  %v7215_v35 = vpop.eup %7214  ;;  %7234 = vpow2.f32 %v3486_v22  ;;  %3559 = vadd.xlane.f32.xlu1 %v3558_v61 }
 0x447   : > { %11632 = vst [vmem:[#allocation20_spill] sm:$0xff] %v9881_v39  ;;  %v3368_v31 = vsub.f32 %v9666_v57, %v9881_v39  ;;  %v3369_v9 = vsub.f32 %v9669_v23, %v9881_v39  ;;  %v7217_v30 = vpop.eup %7216  ;;  %7236 = vpow2.f32 %v3474_v16  ;;  %v3561_v12 = vadd.f32 %v7215_v35, %v7213_v33 }
 0x448   : > { %v3494_v59 = vmul.f32 1.442695, %v3374_v17  ;;  %v7219_v20 = vpop.eup %7218  ;;  %7238 = vpow2.f32 %v3476_v40  ;;  %v3496_v1 = vmul.f32 1.442695, %v3375_v2  ;;  %v3570_v16 = vadd.f32 %v7217_v30, %v7211_v44 }
 0x449   : > { %v3482_v28 = vmul.f32 1.442695, %v3368_v31  ;;  %v3484_v54 = vmul.f32 1.442695, %v3369_v9  ;;  %v9891_v58 = vpop.xlane.xlu1 %3185  ;;  %v7221_v34 = vpop.eup %7220  ;;  %7240 = vpow2.f32 %v3488_v21  ;;  %3562 = vadd.xlane.f32.xlu0 %v3561_v12 }
 0x44a   : > { %v9893_v52 = vpop.xlane.xlu0 %3176  ;;  %v3378_v57 = vsub.f32 %v9692_v6, %v9891_v58  ;;  %v7223_v23 = vpop.eup %7222  ;;  %7242 = vpow2.f32 %v3494_v59  ;;  %3565 = vadd.xlane.f32.xlu1 %v3564_v15  ;;  %v3379_v26 = vsub.f32 %v9695_v7, %v9891_v58 }
 0x44b   : > { %11633 = vst [vmem:[#allocation123_spill] sm:$0xff] %v9893_v52  ;;  %v3372_v55 = vsub.f32 %v9686_v51, %v9893_v52  ;;  %v3373_v53 = vsub.f32 %v9689_v5, %v9893_v52  ;;  %v7225_v43 = vpop.eup %7224  ;;  %7244 = vpow2.f32 %v3482_v28  ;;  %v3567_v38 = vadd.f32 %v7223_v23, %v7221_v34 }
 0x44c   : > { %v3502_v48 = vmul.f32 1.442695, %v3378_v57  ;;  %v7227_v22 = vpop.eup %7226  ;;  %7246 = vpow2.f32 %v3484_v54  ;;  %v3504_v33 = vmul.f32 1.442695, %v3379_v26  ;;  %v3576_v31 = vadd.f32 %v7225_v43, %v7219_v20 }
 0x44d   : > { %v3490_v25 = vmul.f32 1.442695, %v3372_v55  ;;  %v3492_v6 = vmul.f32 1.442695, %v3373_v53  ;;  %v7229_v61 = vpop.eup %7228  ;;  %7248 = vpow2.f32 %v3496_v1  ;;  %3568 = vadd.xlane.f32.xlu0 %v3567_v38 }
 0x44e   : > { %v9903_v40 = vpop.xlane.xlu0 %3182  ;;  %v7231_v7 = vpop.eup %7230  ;;  %7250 = vpow2.f32 %v3502_v48  ;;  %3571 = vadd.xlane.f32.xlu1 %v3570_v16 }
 0x44f   : > { %v3376_v51 = vsub.f32 %v9702_v41, %v9903_v40  ;;  %v3377_v5 = vsub.f32 %v9705_v46, %v9903_v40  ;;  %v7233_v21 = vpop.eup %7232  ;;  %7252 = vpow2.f32 %v3490_v25  ;;  %v3573_v44 = vadd.f32 %v7231_v7, %v7229_v61 }
 0x450   : > { %v7235_v35 = vpop.eup %7234  ;;  %7254 = vpow2.f32 %v3492_v6  ;;  %v3582_v34 = vadd.f32 %v7233_v21, %v7227_v22  ;;  %v3191_v7 = vsub.f32 -inf, %v9723_v18 }
 0x451   : > { %v3498_v17 = vmul.f32 1.442695, %v3376_v51  ;;  %v3500_v2 = vmul.f32 1.442695, %v3377_v5  ;;  %v7237_v30 = vpop.eup %7236  ;;  %3574 = vadd.xlane.f32.xlu0 %v3573_v44 }
 0x452   : > { %v9909_v9 = vpop.xlane.xlu0 %3188  ;;  %v7239_v59 = vpop.eup %7238  ;;  %3577 = vadd.xlane.f32.xlu1 %v3576_v31  ;;  %v3194_v31 = vsub.f32 -inf, %v9735_v8 }
 0x453   : > { %7256 = vpow2.f32 %v3498_v17  ;;  %v3380_v41 = vsub.f32 %v9717_v56, %v9909_v9  ;;  %v3381_v46 = vsub.f32 %v9713_v0, %v9909_v9  ;;  %v7241_v12 = vpop.eup %7240  ;;  %v3579_v15 = vadd.f32 %v7239_v59, %v7237_v30 }
 0x454   : > { %7258 = vpow2.f32 %v3500_v2  ;;  %v7243_v20 = vpop.eup %7242  ;;  %v3588_v0 = vadd.f32 %v7241_v12, %v7235_v35  ;;  %v3224_v17 = vmul.f32 1.442695, %v3191_v7  ;;  %v3192_v2 = vsub.f32 -inf, %v9737_v13  ;;  %v11636_v12 = vld [vmem:[#allocation120_spill] sm:$0xff] }
 0x455   : > { %7260 = vpow2.f32 %v3504_v33  ;;  %v3506_v28 = vmul.f32 1.442695, %v3380_v41  ;;  %v3508_v54 = vmul.f32 1.442695, %v3381_v46  ;;  %v7245_v1 = vpop.eup %7244  ;;  %3580 = vadd.xlane.f32.xlu0 %v3579_v15  ;;  %v11634_v33 = vld [vmem:[#allocation118_spill] sm:$0xff]  ;;  %v3193_v35 = vsub.f32 -inf, %v9749_v47 }
 0x456   : > { %v7247_v57 = vpop.eup %7246  ;;  %3583 = vadd.xlane.f32.xlu1 %v3582_v34  ;;  %v3190_v21 = vsub.f32 -inf, %v11634_v33  ;;  %v3226_v30 = vmul.f32 1.442695, %v3192_v2  ;;  %v11635_v41 = vld [vmem:[#allocation31_spill] sm:$0xff]  ;;  %v11637_v15 = vld [vmem:[#allocation26_spill] sm:$0xff]  ;;  %v3197_v34 = vsub.f32 -inf, %v9773_v36 }
 0x457   : > { %7262 = vpow2.f32 %v3506_v28  ;;  %v7249_v56 = vpop.eup %7248  ;;  %v3585_v23 = vadd.f32 %v7247_v57, %v7245_v1  ;;  %v3195_v46 = vsub.f32 -inf, %v11635_v41  ;;  %v3228_v59 = vmul.f32 1.442695, %v3193_v35 }
 0x458   : > { %7264 = vpow2.f32 %v3508_v54  ;;  %v7251_v26 = vpop.eup %7250  ;;  %v3594_v25 = vadd.f32 %v7249_v56, %v7243_v20  ;;  %v3222_v44 = vmul.f32 1.442695, %v3190_v21  ;;  %v3196_v28 = vsub.f32 -inf, %v11636_v12 }
 0x459   : > { %v7253_v55 = vpop.eup %7252  ;;  %3586 = vadd.xlane.f32.xlu0 %v3585_v23  ;;  %7266 = vpow2.f32 %v3224_v17  ;;  %v3230_v54 = vmul.f32 1.442695, %v3194_v31  ;;  %v3198_v20 = vsub.f32 -inf, %v11637_v15  ;;  %v3232_v1 = vmul.f32 1.442695, %v3195_v46 }
 0x45a   : > { %v7255_v53 = vpop.eup %7254  ;;  %3589 = vadd.xlane.f32.xlu1 %v3588_v0  ;;  %7268 = vpow2.f32 %v3222_v44  ;;  %v3234_v57 = vmul.f32 1.442695, %v3196_v28  ;;  %v3202_v0 = vsub.f32 -inf, %v9783_v24  ;;  %v3210_v21 = vsub.f32 -inf, %v9831_v4 }
 0x45b   : > { %v3591_v48 = vadd.f32 %v7255_v53, %v7253_v55  ;;  %7270 = vpow2.f32 %v3226_v30  ;;  %v3238_v55 = vmul.f32 1.442695, %v3198_v20  ;;  %v3199_v53 = vsub.f32 -inf, %v9785_v50 }
 0x45c   : > { %7272 = vpow2.f32 %v3228_v59  ;;  %v3207_v17 = vsub.f32 -inf, %v9833_v27  ;;  %v3212_v35 = vsub.f32 -inf, %v9843_v49  ;;  %v3209_v46 = vsub.f32 -inf, %v9845_v32 }
 0x45d   : > { %v7257_v43 = vpop.eup %7256  ;;  %3592 = vadd.xlane.f32.xlu0 %v3591_v48  ;;  %7274 = vpow2.f32 %v3230_v54  ;;  %v3236_v48 = vmul.f32 1.442695, %v3197_v34  ;;  %v3240_v30 = vmul.f32 1.442695, %v3199_v53  ;;  %v3214_v59 = vsub.f32 -inf, %v9855_v63 }
 0x45e   : > { %v7259_v38 = vpop.eup %7258  ;;  %3595 = vadd.xlane.f32.xlu1 %v3594_v25  ;;  %7276 = vpow2.f32 %v3232_v1  ;;  %v3206_v25 = vsub.f32 -inf, %v9807_v14  ;;  %v3211_v20 = vsub.f32 -inf, %v9857_v42  ;;  %v3216_v34 = vsub.f32 -inf, %v9867_v60 }
 0x45f   : > { %v7261_v6 = vpop.eup %7260  ;;  %v3597_v22 = vadd.f32 %v7259_v38, %v7257_v43  ;;  %v3204_v43 = vsub.f32 -inf, %v9795_v62  ;;  %v3201_v38 = vsub.f32 -inf, %v9797_v45  ;;  %7278 = vpow2.f32 %v3234_v57 }
 0x460   : > { %v3600_v51 = vadd.f32 %v7261_v6, %v7251_v26  ;;  %v3200_v26 = vsub.f32 -inf, %v9771_v3  ;;  %7280 = vpow2.f32 %v3238_v55  ;;  %v3215_v55 = vsub.f32 -inf, %v9881_v39 }
 0x461   : > { %v7263_v16 = vpop.eup %7262  ;;  %3598 = vadd.xlane.f32.xlu0 %v3597_v22  ;;  %v3203_v22 = vsub.f32 -inf, %v9809_v37  ;;  %7282 = vpow2.f32 %v3236_v48  ;;  %v3246_v48 = vmul.f32 1.442695, %v3202_v0  ;;  %v3250_v39 = vmul.f32 1.442695, %v3204_v43 }
 0x462   : > { %v7265_v61 = vpop.eup %7264  ;;  %3601 = vadd.xlane.f32.xlu1 %v3600_v51  ;;  %v3242_v28 = vmul.f32 1.442695, %v3200_v26  ;;  %v3244_v26 = vmul.f32 1.442695, %v3201_v38 }
 0x463   : > { %v3603_v5 = vadd.f32 %v7265_v61, %v7263_v16  ;;  %v7267_v56 = vpop.eup %7266  ;;  %v3208_v16 = vsub.f32 -inf, %v9819_v10  ;;  %v3205_v61 = vsub.f32 -inf, %v9821_v29 }
 0x464   : > { %v7269_v23 = vpop.eup %7268  ;;  %v3287_v6 = vmul.f32 0.0, %v7267_v56  ;;  %v3213_v56 = vsub.f32 -inf, %v9869_v11 }
 0x465   : > { %3604 = vadd.xlane.f32.xlu0 %v3603_v5  ;;  %v3286_v51 = vmul.f32 0.0, %v7269_v23  ;;  %v7271_v7 = vpop.eup %7270 }
 0x466   : > { %v7273_v54 = vpop.eup %7272  ;;  %v3288_v1 = vmul.f32 0.0, %v7271_v7 }
 0x467   : > { %v7275_v57 = vpop.eup %7274 }
 0x468   : > { %v7277_v7 = vpop.eup %7276  ;;  %v3290_v23 = vmul.f32 0.0, %v7275_v57 }
 0x469   : > { %v7279_v63 = vpop.eup %7278 }
 0x46a   : > { %v3292_v57 = vmul.f32 0.0, %v7279_v63 }
 0x4b1   : > { %v3515_v5 = vpop.xlane.xlu0 %3514 }
 0x4b2   : > { %v3607_v44 = vadd.f32 %v3515_v5, %v3287_v6  ;;  %v3217_v5 = vsub.f32 -inf, %v9893_v52  ;;  %v3258_v6 = vmul.f32 1.442695, %v3208_v16  ;;  %v9947_v52 = vmul.f32 1.442695, %v3210_v21 }
 0x4b3   : > { %v3512_v2 = vpop.xlane.xlu1 %3511  ;;  %v9955_v16 = vmul.f32 1.442695, %v3214_v59 }
 0x4b4   : > { %v3606_v31 = vadd.f32 %v3512_v2, %v3286_v51  ;;  %7284 = vlog2.f32 %v3607_v44  ;;  %v3289_v44 = vmul.f32 0.0, %v7273_v54  ;;  %v7281_v2 = vpop.eup %7280  ;;  %v3256_v54 = vmul.f32 1.442695, %v3207_v17 }
 0x4b6   : > { %7286 = vlog2.f32 %v3606_v31  ;;  %v9949_v31 = vmul.f32 1.442695, %v3209_v46 }
 0x4b7   : > { %v3518_v53 = vpop.xlane.xlu1 %3517  ;;  %7288 = vpow2.f32 %v3240_v30  ;;  %v3254_v30 = vmul.f32 1.442695, %v3206_v25 }
 0x4b8   : > { %v3608_v51 = vadd.f32 %v3518_v53, %v3288_v1  ;;  %7290 = vpow2.f32 %v3242_v28  ;;  %v3248_v1 = vmul.f32 1.442695, %v3203_v22  ;;  %v3252_v53 = vmul.f32 1.442695, %v3205_v61 }
 0x4b9   : > { %v3291_v28 = vmul.f32 0.0, %v7277_v7  ;;  %v9953_v61 = vmul.f32 1.442695, %v3211_v20  ;;  %v9962_v7 = vmul.f32 1.442695, %v3215_v55 }
 0x4ba   : > { %7292 = vlog2.f32 %v3608_v51  ;;  %v3521_v60 = vpop.xlane.xlu0 %3520  ;;  %v7283_v51 = vpop.eup %7282 }
 0x4bb   : > { %v3524_v0 = vpop.xlane.xlu1 %3523  ;;  %v3609_v11 = vadd.f32 %v3521_v60, %v3289_v44  ;;  %7294 = vpow2.f32 %v3246_v48  ;;  %v9951_v60 = vmul.f32 1.442695, %v3212_v35  ;;  %v9957_v48 = vmul.f32 1.442695, %v3213_v56 }
 0x4bc   : > { %v3610_v38 = vadd.f32 %v3524_v0, %v3290_v23  ;;  %7296 = vpow2.f32 %v3244_v26  ;;  %v3293_v46 = vmul.f32 0.0, %v7283_v51  ;;  %v9959_v26 = vmul.f32 1.442695, %v3216_v34 }
 0x4bd   : > { %7298 = vlog2.f32 %v3609_v11  ;;  %v11638_v56 = vsub.f32 -inf, %v9879_v19 }
 0x4be   : > { %7300 = vlog2.f32 %v3610_v38  ;;  %v3527_v43 = vpop.xlane.xlu0 %3526  ;;  %v7285_v22 = vpop.eup %7284 }
 0x4bf   : > { %v3530_v25 = vpop.xlane.xlu1 %3529  ;;  %v3611_v23 = vadd.f32 %v3527_v43, %v3291_v28  ;;  %7302 = vpow2.f32 %v3250_v39  ;;  %v3641_v17 = vmul.f32 0.6931472, %v7285_v22  ;;  %v3294_v39 = vmul.f32 0.0, %v7281_v2 }
 0x4c0   : > { %v7287_v11 = vpop.eup %7286  ;;  %v3612_v21 = vadd.f32 %v3530_v25, %v3292_v57  ;;  %7304 = vpow2.f32 %v3248_v1  ;;  %v9967_v28 = vmul.f32 1.442695, %v11638_v56 }
 0x4c1   : > { %v3639_v63 = vmul.f32 0.6931472, %v7287_v11  ;;  %7306 = vlog2.f32 %v3611_v23  ;;  %v7289_v35 = vpop.eup %7288  ;;  %v3703_v44 = vadd.f32 %v3641_v17, %v9723_v18  ;;  %v9969_v18 = vmul.f32 1.442695, %v3217_v5 }
 0x4c2   : > { %7308 = vlog2.f32 %v3612_v21  ;;  %v3533_v20 = vpop.xlane.xlu0 %3532  ;;  %v7291_v59 = vpop.eup %7290  ;;  %v3295_v22 = vmul.f32 0.0, %v7289_v35  ;;  %v11640_v17 = vsub.f32 -inf, %v9891_v58 }
 0x4c3   : > { %v3702_v0 = vadd.f32 %v3639_v63, %v11634_v33  ;;  %v3536_v38 = vpop.xlane.xlu1 %3535  ;;  %v3613_v1 = vadd.f32 %v3533_v20, %v3293_v46  ;;  %7310 = vpow2.f32 %v3254_v30  ;;  %v3735_v51 = vadd.f32 -5.5451775, %v3703_v44  ;;  %v11639_v33 = vld [vmem:[#allocation23_spill] sm:$0xff] }
 0x4c4   : > { %v7293_v34 = vpop.eup %7292  ;;  %v3614_v57 = vadd.f32 %v3536_v38, %v3294_v39  ;;  %7312 = vpow2.f32 %v3252_v53  ;;  %v3296_v30 = vmul.f32 0.0, %v7291_v59  ;;  %v9974_v21 = vmul.f32 1.442695, %v11640_v17 }
 0x4c5   : > { %v7295_v2 = vpop.eup %7294  ;;  %v3734_v43 = vadd.f32 -5.5451775, %v3702_v0  ;;  %v3643_v55 = vmul.f32 0.6931472, %v7293_v34  ;;  %7314 = vlog2.f32 %v3613_v1  ;;  %v3767_v23 = vmul.f32 %v3735_v51, %v11639_v33 }
 0x4c6   : > { %v7297_v25 = vpop.eup %7296  ;;  %7316 = vlog2.f32 %v3614_v57  ;;  %v3539_v11 = vpop.xlane.xlu0 %3538  ;;  %v11641_v59 = vsub.f32 -inf, %v9903_v40  ;;  %v3298_v51 = vmul.f32 0.0, %v7295_v2 }
 0x4c7   : > { %v7299_v63 = vpop.eup %7298  ;;  %v3766_v53 = vmul.f32 %v3734_v43, %v11639_v33  ;;  %v3704_v5 = vadd.f32 %v3643_v55, %v9737_v13  ;;  %v3542_v46 = vpop.xlane.xlu1 %3541  ;;  %v3615_v44 = vadd.f32 %v3539_v11, %v3295_v22  ;;  %7318 = vpow2.f32 %v3258_v6  ;;  %3799 = vst.msk [vmem:[#allocation2 + $0x8] sm:$0xff] %vm253_vm2, %v3767_v23 }
 0x4c8   : > { %v7301_v39 = vpop.eup %7300  ;;  %v3645_v35 = vmul.f32 0.6931472, %v7299_v63  ;;  %v3616_v20 = vadd.f32 %v3542_v46, %v3296_v30  ;;  %7320 = vpow2.f32 %v3256_v54  ;;  %v9981_v0 = vmul.f32 1.442695, %v11641_v59 }
 0x4c9   : > { %v7303_v38 = vpop.eup %7302  ;;  %3798 = vst.msk [vmem:[#allocation2] sm:$0xff] %vm253_vm2, %v3766_v53  ;;  %v3736_v1 = vadd.f32 -5.5451775, %v3704_v5  ;;  %v3647_v56 = vmul.f32 0.6931472, %v7301_v39  ;;  %7322 = vlog2.f32 %v3615_v44  ;;  %v3297_v13 = vmul.f32 0.0, %v7297_v25 }
 0x4ca   : > { %v7305_v34 = vpop.eup %7304  ;;  %v3705_v6 = vadd.f32 %v3645_v35, %v9749_v47  ;;  %7324 = vlog2.f32 %v3616_v20  ;;  %v3545_v57 = vpop.xlane.xlu0 %3544  ;;  %v11642_v43 = vsub.f32 -inf, %v9909_v9 }
 0x4cb   : > { %v7307_v55 = vpop.eup %7306  ;;  %v3768_v22 = vmul.f32 %v3736_v1, %v11639_v33  ;;  %v3706_v23 = vadd.f32 %v3647_v56, %v9735_v8  ;;  %v3548_v30 = vpop.xlane.xlu1 %3547  ;;  %v3617_v11 = vadd.f32 %v3545_v57, %v3297_v13  ;;  %7326 = vpow2.f32 %v9947_v52 }
 0x4cc   : > { %v9987_v54 = vmul.f32 1.442695, %v11642_v43  ;;  %v7309_v25 = vpop.eup %7308  ;;  %v3737_v17 = vadd.f32 -5.5451775, %v3705_v6  ;;  %v3649_v63 = vmul.f32 0.6931472, %v7307_v55  ;;  %v3618_v47 = vadd.f32 %v3548_v30, %v3298_v51 }
 0x4cd   : > { %7328 = vpow2.f32 %v9949_v31  ;;  %v7311_v2 = vpop.eup %7310  ;;  %3800 = vst.msk [vmem:[#allocation2 + $0x10] sm:$0xff] %vm253_vm2, %v3768_v22  ;;  %v3738_v53 = vadd.f32 -5.5451775, %v3706_v23  ;;  %v3651_v5 = vmul.f32 0.6931472, %v7309_v25  ;;  %v3299_v46 = vmul.f32 0.0, %v7305_v34 }
 0x4ce   : > { %7330 = vlog2.f32 %v3617_v11  ;;  %v7313_v44 = vpop.eup %7312  ;;  %v3769_v8 = vmul.f32 %v3737_v17, %v11639_v33  ;;  %v3707_v39 = vadd.f32 %v3649_v63, %v11635_v41  ;;  %v3300_v52 = vmul.f32 0.0, %v7303_v38  ;;  %v3551_v35 = vpop.xlane.xlu0 %3550 }
 0x4cf   : > { %7332 = vlog2.f32 %v3618_v47  ;;  %v7315_v20 = vpop.eup %7314  ;;  %v3770_v59 = vmul.f32 %v3738_v53, %v11639_v33  ;;  %v3708_v31 = vadd.f32 %v3651_v5, %v11636_v12  ;;  %v3554_v1 = vpop.xlane.xlu1 %3553  ;;  %v3619_v56 = vadd.f32 %v3551_v35, %v3299_v46 }
 0x4d0   : > { %7334 = vpow2.f32 %v9951_v60  ;;  %v7317_v13 = vpop.eup %7316  ;;  %3801 = vst.msk [vmem:[#allocation2 + $0x18] sm:$0xff] %vm253_vm2, %v3769_v8  ;;  %v3739_v34 = vadd.f32 -5.5451775, %v3707_v39  ;;  %v3653_v6 = vmul.f32 0.6931472, %v7315_v20  ;;  %v3620_v51 = vadd.f32 %v3554_v1, %v3300_v52 }
 0x4d1   : > { %7336 = vpow2.f32 %v9953_v61  ;;  %v7319_v41 = vpop.eup %7318  ;;  %3802 = vst.msk [vmem:[#allocation2 + $0x20] sm:$0xff] %vm253_vm2, %v3770_v59  ;;  %v3740_v38 = vadd.f32 -5.5451775, %v3708_v31  ;;  %v3655_v57 = vmul.f32 0.6931472, %v7317_v13  ;;  %v3301_v43 = vmul.f32 0.0, %v7313_v44 }
 0x4d2   : > { %7338 = vlog2.f32 %v3619_v56  ;;  %v7321_v12 = vpop.eup %7320  ;;  %v3771_v55 = vmul.f32 %v3739_v34, %v11639_v33  ;;  %v3709_v60 = vadd.f32 %v3653_v6, %v9773_v36  ;;  %v3302_v22 = vmul.f32 0.0, %v7311_v2  ;;  %v3557_v23 = vpop.xlane.xlu0 %3556 }
 0x4d3   : > { %7340 = vlog2.f32 %v3620_v51  ;;  %v7323_v30 = vpop.eup %7322  ;;  %v3772_v11 = vmul.f32 %v3740_v38, %v11639_v33  ;;  %v3710_v61 = vadd.f32 %v3655_v57, %v11637_v15  ;;  %v3560_v25 = vpop.xlane.xlu1 %3559  ;;  %v3621_v17 = vadd.f32 %v3557_v23, %v3301_v43 }
 0x4d4   : > { %7342 = vpow2.f32 %v9955_v16  ;;  %v7325_v63 = vpop.eup %7324  ;;  %3803 = vst.msk [vmem:[#allocation2 + $0x28] sm:$0xff] %vm253_vm2, %v3771_v55  ;;  %v3741_v47 = vadd.f32 -5.5451775, %v3709_v60  ;;  %v3657_v53 = vmul.f32 0.6931472, %v7323_v30  ;;  %v3622_v5 = vadd.f32 %v3560_v25, %v3302_v22 }
 0x4d5   : > { %7344 = vpow2.f32 %v9957_v48  ;;  %v7327_v36 = vpop.eup %7326  ;;  %3804 = vst.msk [vmem:[#allocation2 + $0x30] sm:$0xff] %vm253_vm2, %v3772_v11  ;;  %v3742_v2 = vadd.f32 -5.5451775, %v3710_v61  ;;  %v3659_v46 = vmul.f32 0.6931472, %v7325_v63  ;;  %v3303_v44 = vmul.f32 0.0, %v7321_v12 }
 0x4d6   : > { %7346 = vlog2.f32 %v3621_v17  ;;  %v3773_v8 = vmul.f32 %v3741_v47, %v11639_v33  ;;  %v3711_v16 = vadd.f32 %v3657_v53, %v9785_v50  ;;  %v3304_v39 = vmul.f32 0.0, %v7319_v41  ;;  %v3563_v52 = vpop.xlane.xlu0 %3562 }
 0x4d7   : > { %v7329_v15 = vpop.eup %7328  ;;  %7348 = vlog2.f32 %v3622_v5  ;;  %v3774_v20 = vmul.f32 %v3742_v2, %v11639_v33  ;;  %v3712_v48 = vadd.f32 %v3659_v46, %v9771_v3  ;;  %v3566_v59 = vpop.xlane.xlu1 %3565  ;;  %v3623_v31 = vadd.f32 %v3563_v52, %v3303_v44 }
 0x4d8   : > { %v7331_v35 = vpop.eup %7330  ;;  %7350 = vpow2.f32 %v9959_v26  ;;  %3805 = vst.msk [vmem:[#allocation2 + $0x38] sm:$0xff] %vm253_vm2, %v3773_v8  ;;  %v3743_v56 = vadd.f32 -5.5451775, %v3711_v16  ;;  %v3624_v34 = vadd.f32 %v3566_v59, %v3304_v39  ;;  %v3305_v41 = vmul.f32 0.0, %v7329_v15 }
 0x4d9   : > { %v7333_v1 = vpop.eup %7332  ;;  %v3661_v13 = vmul.f32 0.6931472, %v7331_v35  ;;  %7352 = vpow2.f32 %v9962_v7  ;;  %3806 = vst.msk [vmem:[#allocation2 + $0x40] sm:$0xff] %vm253_vm2, %v3774_v20  ;;  %v3744_v6 = vadd.f32 -5.5451775, %v3712_v48  ;;  %v3306_v57 = vmul.f32 0.0, %v7327_v36 }
 0x4da   : > { %v7335_v50 = vpop.eup %7334  ;;  %v3663_v51 = vmul.f32 0.6931472, %v7333_v1  ;;  %7354 = vlog2.f32 %v3623_v31  ;;  %v3775_v38 = vmul.f32 %v3743_v56, %v11639_v33  ;;  %v3569_v43 = vpop.xlane.xlu0 %3568 }
 0x4db   : > { %v7337_v3 = vpop.eup %7336  ;;  %v3713_v26 = vadd.f32 %v3661_v13, %v9797_v45  ;;  %7356 = vlog2.f32 %v3624_v34  ;;  %v3776_v55 = vmul.f32 %v3744_v6, %v11639_v33  ;;  %v3572_v60 = vpop.xlane.xlu1 %3571  ;;  %v3625_v22 = vadd.f32 %v3569_v43, %v3305_v41 }
 0x4dc   : > { %v7339_v12 = vpop.eup %7338  ;;  %v3714_v7 = vadd.f32 %v3663_v51, %v9783_v24  ;;  %7358 = vpow2.f32 %v9967_v28  ;;  %3807 = vst.msk [vmem:[#allocation2 + $0x48] sm:$0xff] %vm253_vm2, %v3775_v38  ;;  %v3626_v61 = vadd.f32 %v3572_v60, %v3306_v57  ;;  %v3307_v63 = vmul.f32 0.0, %v7337_v3 }
 0x4dd   : > { %v7341_v23 = vpop.eup %7340  ;;  %v3745_v30 = vadd.f32 -5.5451775, %v3713_v26  ;;  %v3665_v11 = vmul.f32 0.6931472, %v7339_v12  ;;  %7360 = vpow2.f32 %v9969_v18  ;;  %3808 = vst.msk [vmem:[#allocation2 + $0x50] sm:$0xff] %vm253_vm2, %v3776_v55  ;;  %v3308_v53 = vmul.f32 0.0, %v7335_v50 }
 0x4de   : > { %v7343_v45 = vpop.eup %7342  ;;  %v3746_v25 = vadd.f32 -5.5451775, %v3714_v7  ;;  %v3667_v17 = vmul.f32 0.6931472, %v7341_v23  ;;  %7362 = vlog2.f32 %v3625_v22  ;;  %v3575_v5 = vpop.xlane.xlu0 %3574 }
 0x4df   : > { %v7345_v24 = vpop.eup %7344  ;;  %v3777_v47 = vmul.f32 %v3745_v30, %v11639_v33  ;;  %v3715_v28 = vadd.f32 %v3665_v11, %v9809_v37  ;;  %7364 = vlog2.f32 %v3626_v61  ;;  %v3578_v46 = vpop.xlane.xlu1 %3577  ;;  %v3627_v44 = vadd.f32 %v3575_v5, %v3307_v63 }
 0x4e0   : > { %v7347_v36 = vpop.eup %7346  ;;  %v3778_v2 = vmul.f32 %v3746_v25, %v11639_v33  ;;  %v3716_v18 = vadd.f32 %v3667_v17, %v9795_v62  ;;  %7366 = vpow2.f32 %v9974_v21  ;;  %v3628_v39 = vadd.f32 %v3578_v46, %v3308_v53 }
 0x4e1   : > { %v7349_v15 = vpop.eup %7348  ;;  %3809 = vst.msk [vmem:[#allocation2 + $0x58] sm:$0xff] %vm253_vm2, %v3777_v47  ;;  %v3747_v8 = vadd.f32 -5.5451775, %v3715_v28  ;;  %v3669_v16 = vmul.f32 0.6931472, %v7347_v36  ;;  %7368 = vpow2.f32 %v9981_v0  ;;  %v3309_v20 = vmul.f32 0.0, %v7345_v24 }
 0x4e2   : > { %v7351_v37 = vpop.eup %7350  ;;  %3810 = vst.msk [vmem:[#allocation2 + $0x60] sm:$0xff] %vm253_vm2, %v3778_v2  ;;  %v3748_v52 = vadd.f32 -5.5451775, %v3716_v18  ;;  %v3671_v35 = vmul.f32 0.6931472, %v7349_v15  ;;  %7370 = vlog2.f32 %v3627_v44  ;;  %v3310_v59 = vmul.f32 0.0, %v7343_v45  ;;  %v3581_v31 = vpop.xlane.xlu0 %3580 }
 0x4e3   : > { %v7353_v62 = vpop.eup %7352  ;;  %v3779_v48 = vmul.f32 %v3747_v8, %v11639_v33  ;;  %v3717_v21 = vadd.f32 %v3669_v16, %v9821_v29  ;;  %7372 = vlog2.f32 %v3628_v39  ;;  %v3584_v13 = vpop.xlane.xlu1 %3583  ;;  %v3629_v34 = vadd.f32 %v3581_v31, %v3309_v20 }
 0x4e4   : > { %v7355_v1 = vpop.eup %7354  ;;  %v3780_v56 = vmul.f32 %v3748_v52, %v11639_v33  ;;  %v3718_v0 = vadd.f32 %v3671_v35, %v9807_v14  ;;  %v3630_v41 = vadd.f32 %v3584_v13, %v3310_v59  ;;  %7374 = vpow2.f32 %v9987_v54 }
 0x4e5   : > { %v7357_v50 = vpop.eup %7356  ;;  %3811 = vst.msk [vmem:[#allocation2 + $0x68] sm:$0xff] %vm253_vm2, %v3779_v48  ;;  %v3749_v6 = vadd.f32 -5.5451775, %v3717_v21  ;;  %v3673_v51 = vmul.f32 0.6931472, %v7355_v1  ;;  %7376 = vlog2.f32 %v3629_v34  ;;  %v3311_v26 = vmul.f32 0.0, %v7353_v62 }
 0x4e6   : > { %v7359_v3 = vpop.eup %7358  ;;  %3812 = vst.msk [vmem:[#allocation2 + $0x70] sm:$0xff] %vm253_vm2, %v3780_v56  ;;  %v3750_v29 = vadd.f32 -5.5451775, %v3718_v0  ;;  %v3675_v38 = vmul.f32 0.6931472, %v7357_v50  ;;  %7378 = vlog2.f32 %v3630_v41  ;;  %v3312_v12 = vmul.f32 0.0, %v7351_v37  ;;  %v3587_v55 = vpop.xlane.xlu0 %3586 }
 0x4e7   : > { %v7361_v57 = vpop.eup %7360  ;;  %v3781_v14 = vmul.f32 %v3749_v6, %v11639_v33  ;;  %v3719_v43 = vadd.f32 %v3673_v51, %v9833_v27  ;;  %v3590_v22 = vpop.xlane.xlu1 %3589  ;;  %v3631_v23 = vadd.f32 %v3587_v55, %v3311_v26  ;;  %v3314_v28 = vmul.f32 0.0, %v7359_v3  ;;  %v11643_v41 = vld [vmem:[#allocation122_spill] sm:$0xff]  ;;  %v11644_v26 = vld [vmem:[#allocation37_spill] sm:$0xff] }
 0x4e8   : > { %v7363_v7 = vpop.eup %7362  ;;  %v3782_v60 = vmul.f32 %v3750_v29, %v11639_v33  ;;  %v3720_v54 = vadd.f32 %v3675_v38, %v9819_v10  ;;  %v3632_v45 = vadd.f32 %v3590_v22, %v3312_v12  ;;  %v3313_v63 = vmul.f32 0.0, %v7361_v57  ;;  %v11645_v22 = vld [vmem:[#allocation20_spill] sm:$0xff] }
 0x4e9   : > { %v7365_v30 = vpop.eup %7364  ;;  %3813 = vst.msk [vmem:[#allocation2 + $0x78] sm:$0xff] %vm253_vm2, %v3781_v14  ;;  %v3751_v11 = vadd.f32 -5.5451775, %v3719_v43  ;;  %v3677_v61 = vmul.f32 0.6931472, %v7363_v7  ;;  %7380 = vlog2.f32 %v3631_v23 }
 0x4ea   : > { %v7367_v25 = vpop.eup %7366  ;;  %3814 = vst.msk [vmem:[#allocation2 + $0x80] sm:$0xff] %vm253_vm2, %v3782_v60  ;;  %v3752_v27 = vadd.f32 -5.5451775, %v3720_v54  ;;  %v3679_v17 = vmul.f32 0.6931472, %v7365_v30  ;;  %7382 = vlog2.f32 %v3632_v45  ;;  %v3593_v53 = vpop.xlane.xlu0 %3592 }
 0x4eb   : > { %v7369_v24 = vpop.eup %7368  ;;  %v3783_v47 = vmul.f32 %v3751_v11, %v11639_v33  ;;  %v3721_v10 = vadd.f32 %v3677_v61, %v9845_v32  ;;  %v3596_v18 = vpop.xlane.xlu1 %3595  ;;  %v3633_v46 = vadd.f32 %v3593_v53, %v3313_v63  ;;  %v11646_v61 = vld [vmem:[#allocation44_spill] sm:$0xff] }
 0x4ec   : > { %v7371_v5 = vpop.eup %7370  ;;  %v3784_v36 = vmul.f32 %v3752_v27, %v11639_v33  ;;  %v3722_v2 = vadd.f32 %v3679_v17, %v9831_v4  ;;  %v3634_v16 = vadd.f32 %v3596_v18, %v3314_v28  ;;  %v3315_v37 = vmul.f32 0.0, %v7369_v24 }
 0x4ed   : > { %v7373_v44 = vpop.eup %7372  ;;  %3815 = vst.msk [vmem:[#allocation2 + $0x88] sm:$0xff] %vm253_vm2, %v3783_v47  ;;  %v3753_v15 = vadd.f32 -5.5451775, %v3721_v10  ;;  %v3681_v8 = vmul.f32 0.6931472, %v7371_v5  ;;  %7384 = vlog2.f32 %v3633_v46  ;;  %v3316_v4 = vmul.f32 0.0, %v7367_v25 }
 0x4ee   : > { %3816 = vst.msk [vmem:[#allocation2 + $0x90] sm:$0xff] %vm253_vm2, %v3784_v36  ;;  %v3754_v39 = vadd.f32 -5.5451775, %v3722_v2  ;;  %v3683_v32 = vmul.f32 0.6931472, %v7373_v44  ;;  %v7375_v52 = vpop.eup %7374  ;;  %7386 = vlog2.f32 %v3634_v16  ;;  %v3599_v62 = vpop.xlane.xlu0 %3598  ;;  %v11647_v10 = vld [vmem:[#allocation123_spill] sm:$0xff] }
 0x4ef   : > { %v3785_v35 = vmul.f32 %v3753_v15, %v11639_v33  ;;  %v3723_v20 = vadd.f32 %v3681_v8, %v9857_v42  ;;  %v7377_v48 = vpop.eup %7376  ;;  %v3602_v31 = vpop.xlane.xlu1 %3601  ;;  %v3635_v1 = vadd.f32 %v3599_v62, %v3315_v37  ;;  %v3317_v6 = vmul.f32 0.0, %v7375_v52 }
 0x4f0   : > { %v3786_v21 = vmul.f32 %v3754_v39, %v11639_v33  ;;  %v3724_v59 = vadd.f32 %v3683_v32, %v9843_v49  ;;  %v7379_v56 = vpop.eup %7378  ;;  %v3685_v13 = vmul.f32 0.6931472, %v7377_v48  ;;  %v3636_v34 = vadd.f32 %v3602_v31, %v3316_v4  ;;  %v3949_v48 = vld [vmem:[#allocation6 + $0x180] sm:$0xff] (%p548_p8)  ;;  %v3934_v31 = vld [vmem:[#allocation6 + $0x108] sm:$0xff] (%p548_p8) }
 0x4f1   : > { %3817 = vst.msk [vmem:[#allocation2 + $0x98] sm:$0xff] %vm253_vm2, %v3785_v35  ;;  %v3755_v0 = vadd.f32 -5.5451775, %v3723_v20  ;;  %v3687_v42 = vmul.f32 0.6931472, %v7379_v56  ;;  %7388 = vlog2.f32 %v3635_v1  ;;  %v3951_v1 = vld [vmem:[#allocation6 + $0x190] sm:$0xff] (%p548_p8) }
 0x4f2   : > { %3818 = vst.msk [vmem:[#allocation2 + $0xa0] sm:$0xff] %vm253_vm2, %v3786_v21  ;;  %v3756_v50 = vadd.f32 -5.5451775, %v3724_v59  ;;  %v3725_v3 = vadd.f32 %v3685_v13, %v11643_v41  ;;  %7390 = vlog2.f32 %v3636_v34  ;;  %v3605_v49 = vpop.xlane.xlu0 %3604  ;;  %v3950_v21 = vld [vmem:[#allocation6 + $0x188] sm:$0xff] (%p548_p8)  ;;  %v3952_v56 = vld [vmem:[#allocation6 + $0x198] sm:$0xff] (%p548_p8)  ;;  %v3953_v41 = vld [vmem:[#allocation6 + $0x1a0] sm:$0xff] (%p548_p8) }
 0x4f3   : > { %v3787_v51 = vmul.f32 %v3755_v0, %v11639_v33  ;;  %v7381_v29 = vpop.eup %7380  ;;  %v3726_v57 = vadd.f32 %v3687_v42, %v11644_v26  ;;  %v3637_v14 = vadd.f32 %v3605_v49, %v3317_v6  ;;  %v10093_v59 = vpack.c.bf16 (%p548_p8), %v3950_v21, %v3949_v48  ;;  %v3935_v42 = vld [vmem:[#allocation6 + $0x110] sm:$0xff] (%p548_p8)  ;;  %v3936_v6 = vld [vmem:[#allocation6 + $0x118] sm:$0xff] (%p548_p8)  ;;  %v3945_v48 = vld [vmem:[#allocation6 + $0x160] sm:$0xff] (%p548_p8) }
 0x4f4   : > { %v3788_v38 = vmul.f32 %v3756_v50, %v11639_v33  ;;  %v7383_v43 = vpop.eup %7382  ;;  %v3757_v12 = vadd.f32 -5.5451775, %v3725_v3  ;;  %v3689_v55 = vmul.f32 0.6931472, %v7381_v29  ;;  %v7632_v0 = vmov (%p548_p8), 0   ;;  %v3869_v50 = vld [vmem:[#allocation4] sm:$0xff] (%p548_p8) }
 0x4f5   : > { %3819 = vst.msk [vmem:[#allocation2 + $0xa8] sm:$0xff] %vm253_vm2, %v3787_v51  ;;  %v3758_v7 = vadd.f32 -5.5451775, %v3726_v57  ;;  %v3691_v60 = vmul.f32 0.6931472, %v7383_v43  ;;  %7392 = vlog2.f32 %v3637_v14  ;;  %7394 = vset.pattern.permute.xlu0 (%p548_p8), %v7632_v0  ;;  %7395 = vset.pattern.permute.xlu1 (%p548_p8), %v7632_v0  ;;  %v10097_v13 = vpack.c.bf16 (%p548_p8), %v3952_v56, %v3951_v1  ;;  %v3870_v51 = vld [vmem:[#allocation4 + $0x8] sm:$0xff] (%p548_p8) }
 0x4f6   : > { %3820 = vst.msk [vmem:[#allocation2 + $0xb0] sm:$0xff] %vm253_vm2, %v3788_v38  ;;  %v3789_v54 = vmul.f32 %v3757_v12, %v11639_v33  ;;  %v3727_v23 = vadd.f32 %v3689_v55, %v11645_v22  ;;  %6828 = vmatprep.subr.msk.bf16.mxu0 (%p548_p8), %vm7667_vm1, %v10093_v59  ;;  %4204 = vperm.xlu0 (%p548_p8), %7394, %v3869_v50   ;;  %v3954_v3 = vld [vmem:[#allocation6 + $0x1a8] sm:$0xff] (%p548_p8)  ;;  %v3901_v49 = vld [vmem:[#allocation2] sm:$0xff] (%p548_p8)  ;;  %v3955_v55 = vld [vmem:[#allocation6 + $0x1b0] sm:$0xff] (%p548_p8) }
 0x4f7   : > { %v7385_v30 = vpop.eup %7384  ;;  %v3790_v11 = vmul.f32 %v3758_v7, %v11639_v33  ;;  %v3728_v45 = vadd.f32 %v3691_v60, %v11646_v61  ;;  %4209 = vperm.xlu1 (%p548_p8), %7395, %v3870_v51   ;;  %v3902_v29 = vld [vmem:[#allocation2 + $0x8] sm:$0xff] (%p548_p8)  ;;  %v10108_v38 = vpack.c.bf16 (%p548_p8), %v3936_v6, %v3935_v42  ;;  %v10110_v26 = vpack.c.bf16 (%p548_p8), %v3954_v3, %v3953_v41  ;;  %v3871_v57 = vld [vmem:[#allocation4 + $0x10] sm:$0xff] (%p548_p8)  ;;  %v3956_v7 = vld [vmem:[#allocation6 + $0x1b8] sm:$0xff] (%p548_p8) }
 0x4f8   : > { %v7387_v25 = vpop.eup %7386  ;;  %3821 = vst.msk [vmem:[#allocation2 + $0xb8] sm:$0xff] %vm253_vm2, %v3789_v54  ;;  %v3759_v27 = vadd.f32 -5.5451775, %v3727_v23  ;;  %v3693_v17 = vmul.f32 0.6931472, %v7385_v30  ;;  %v3903_v14 = vld [vmem:[#allocation2 + $0x10] sm:$0xff] (%p548_p8)  ;;  %v10120_v23 = vpack.c.bf16 (%p548_p8), %v3956_v7, %v3955_v55 }
 0x4f9   : > { %3822 = vst.msk [vmem:[#allocation2 + $0xc0] sm:$0xff] %vm253_vm2, %v3790_v11  ;;  %v3760_v63 = vadd.f32 -5.5451775, %v3728_v45  ;;  %v3695_v24 = vmul.f32 0.6931472, %v7387_v25  ;;  %v3937_v43 = vld [vmem:[#allocation6 + $0x120] sm:$0xff] (%p548_p8) }
 0x4fa   : > { %v3791_v47 = vmul.f32 %v3759_v27, %v11639_v33  ;;  %v3729_v28 = vadd.f32 %v3693_v17, %v11647_v10  ;;  %3969 = vperm.xlu0 (%p548_p8), %7394, %v3901_v49   ;;  %v3938_v12 = vld [vmem:[#allocation6 + $0x128] sm:$0xff] (%p548_p8)  ;;  %v3872_v60 = vld [vmem:[#allocation4 + $0x18] sm:$0xff] (%p548_p8)  ;;  %v10122_v30 = vld [vmem:[#allocation6] sm:$0xff] (%p548_p8) }
 0x4fb   : > { %v7389_v53 = vpop.eup %7388  ;;  %v3792_v5 = vmul.f32 %v3760_v63, %v11639_v33  ;;  %v3730_v36 = vadd.f32 %v3695_v24, %v9879_v19  ;;  %3974 = vperm.xlu1 (%p548_p8), %7395, %v3902_v29   ;;  %v3904_v54 = vld [vmem:[#allocation2 + $0x18] sm:$0xff] (%p548_p8)  ;;  %v10118_v22 = vpack.c.bf16 (%p548_p8), %v3938_v12, %v3937_v43  ;;  %v3873_v11 = vld [vmem:[#allocation4 + $0x20] sm:$0xff] (%p548_p8)  ;;  %6584 = vmatprep.mubr.msk.f32.mxu0 (%p548_p8), %vm124_vm0, %v10122_v30  ;;  %v3958_v17 = vld [vmem:[#allocation6 + $0x1c8] sm:$0xff] (%p548_p8) }
 0x4fc   : > { %v7391_v2 = vpop.eup %7390  ;;  %3823 = vst.msk [vmem:[#allocation2 + $0xc8] sm:$0xff] %vm253_vm2, %v3791_v47  ;;  %v3761_v18 = vadd.f32 -5.5451775, %v3729_v28  ;;  %v3697_v46 = vmul.f32 0.6931472, %v7389_v53  ;;  %v3905_v61 = vld [vmem:[#allocation2 + $0x20] sm:$0xff] (%p548_p8) }
 0x4fd   : > { %3824 = vst.msk [vmem:[#allocation2 + $0xd0] sm:$0xff] %vm253_vm2, %v3792_v5  ;;  %v3762_v44 = vadd.f32 -5.5451775, %v3730_v36  ;;  %v3699_v15 = vmul.f32 0.6931472, %v7391_v2  ;;  %v3939_v45 = vld [vmem:[#allocation6 + $0x130] sm:$0xff] (%p548_p8) }
 0x4fe   : > { %v3793_v8 = vmul.f32 %v3761_v18, %v11639_v33  ;;  %v3731_v16 = vadd.f32 %v3697_v46, %v9903_v40  ;;  %4214 = vperm.xlu0 (%p548_p8), %7394, %v3871_v57   ;;  %v3940_v25 = vld [vmem:[#allocation6 + $0x138] sm:$0xff] (%p548_p8)  ;;  %v3957_v27 = vld [vmem:[#allocation6 + $0x1c0] sm:$0xff] (%p548_p8)  ;;  %v3875_v28 = vld [vmem:[#allocation4 + $0x30] sm:$0xff] (%p548_p8) }
 0x4ff   : > { %v7393_v39 = vpop.eup %7392  ;;  %v3794_v32 = vmul.f32 %v3762_v44, %v11639_v33  ;;  %v3732_v37 = vadd.f32 %v3699_v15, %v9891_v58  ;;  %3979 = vperm.xlu1 (%p548_p8), %7395, %v3903_v14   ;;  %v3874_v63 = vld [vmem:[#allocation4 + $0x28] sm:$0xff] (%p548_p8)  ;;  %v10132_v47 = vpack.c.bf16 (%p548_p8), %v3940_v25, %v3939_v45  ;;  %v10134_v10 = vpack.c.bf16 (%p548_p8), %v3958_v17, %v3957_v27  ;;  %v3959_v2 = vld [vmem:[#allocation6 + $0x1d0] sm:$0xff] (%p548_p8)  ;;  %v3960_v18 = vld [vmem:[#allocation6 + $0x1d8] sm:$0xff] (%p548_p8) }
 0x500   : > { %3825 = vst.msk [vmem:[#allocation2 + $0xd8] sm:$0xff] %vm253_vm2, %v3793_v8  ;;  %v3763_v19 = vadd.f32 -5.5451775, %v3731_v16  ;;  %v3701_v52 = vmul.f32 0.6931472, %v7393_v39  ;;  %v3906_v24 = vld [vmem:[#allocation2 + $0x28] sm:$0xff] (%p548_p8)  ;;  %v10144_v8 = vpack.c.bf16 (%p548_p8), %v3960_v18, %v3959_v2 }
 0x501   : > { %3826 = vst.msk [vmem:[#allocation2 + $0xe0] sm:$0xff] %vm253_vm2, %v3794_v32  ;;  %v3764_v35 = vadd.f32 -5.5451775, %v3732_v37  ;;  %v3907_v53 = vld [vmem:[#allocation2 + $0x30] sm:$0xff] (%p548_p8)  ;;  %v3941_v5 = vld [vmem:[#allocation6 + $0x140] sm:$0xff] (%p548_p8)  ;;  %v3876_v46 = vld [vmem:[#allocation4 + $0x38] sm:$0xff] (%p548_p8) }
 0x502   : > { %v3795_v20 = vmul.f32 %v3763_v19, %v11639_v33  ;;  %v3733_v4 = vadd.f32 %v3701_v52, %v9909_v9  ;;  %550 = sbr.rel (!%p548_p8) target bundleno = 311 (0x137), region = 45  ;;  %v3933_v9 = vld [vmem:[#allocation6 + $0x100] sm:$0xff] (%p548_p8)  ;;  %4219 = vperm.xlu0 (%p548_p8), %7394, %v3872_v60   ;;  %v3942_v36 = vld [vmem:[#allocation6 + $0x148] sm:$0xff] (%p548_p8)  ;;  %v3908_v44 = vld [vmem:[#allocation2 + $0x38] sm:$0xff] (%p548_p8) }
 0x503   : > { %v3796_v62 = vmul.f32 %v3764_v35, %v11639_v33  ;;  %3984 = vperm.xlu1 (%p548_p8), %7395, %v3904_v54   ;;  %v10142_v15 = vpack.c.bf16 (%p548_p8), %v3942_v36, %v3941_v5  ;;  %v3877_v16 = vld [vmem:[#allocation4 + $0x40] sm:$0xff] (%p548_p8)  ;;  %v3943_v32 = vld [vmem:[#allocation6 + $0x150] sm:$0xff] (%p548_p8)  ;;  %v3962_v52 = vld [vmem:[#allocation6 + $0x1e8] sm:$0xff] (%p548_p8) }
 0x504   : > { %3827 = vst.msk [vmem:[#allocation2 + $0xe8] sm:$0xff] %vm253_vm2, %v3795_v20  ;;  %v3765_v40 = vadd.f32 -5.5451775, %v3733_v4  ;;  %v3909_v39 = vld [vmem:[#allocation2 + $0x40] sm:$0xff] (%p548_p8)  ;;  %v3878_v35 = vld [vmem:[#allocation4 + $0x48] sm:$0xff] (%p548_p8)  ;;  %v3912_v56 = vld [vmem:[#allocation2 + $0x58] sm:$0xff] (%p548_p8) }
 0x505   : > { %3828 = vst.msk [vmem:[#allocation2 + $0xf0] sm:$0xff] %vm253_vm2, %v3796_v62  ;;  %v3944_v37 = vld [vmem:[#allocation6 + $0x158] sm:$0xff] (%p548_p8)  ;;  %v3961_v19 = vld [vmem:[#allocation6 + $0x1e0] sm:$0xff] (%p548_p8)  ;;  %v3946_v21 = vld [vmem:[#allocation6 + $0x168] sm:$0xff] (%p548_p8) }
 0x506   : > { %v3797_v58 = vmul.f32 %v3765_v40, %v11639_v33  ;;  %v10095_v33 = vpack.c.bf16 (%p548_p8), %v3934_v31, %v3933_v9  ;;  %4224 = vperm.xlu0 (%p548_p8), %7394, %v3873_v11   ;;  %v3910_v20 = vld [vmem:[#allocation2 + $0x48] sm:$0xff] (%p548_p8)  ;;  %v10152_v4 = vpack.c.bf16 (%p548_p8), %v3944_v37, %v3943_v32  ;;  %v10154_v62 = vpack.c.bf16 (%p548_p8), %v3962_v52, %v3961_v19  ;;  %v3879_v40 = vld [vmem:[#allocation4 + $0x50] sm:$0xff] (%p548_p8)  ;;  %v3964_v31 = vld [vmem:[#allocation6 + $0x1f8] sm:$0xff] (%p548_p8) }
 0x507   :  { %3989 = vperm.xlu1 (%p548_p8), %7395, %v3905_v61   ;;  %v3963_v9 = vld [vmem:[#allocation6 + $0x1f0] sm:$0xff] (%p548_p8)  ;;  %v10162_v0 = vpack.c.bf16 (%p548_p8), %v3946_v21, %v3945_v48  ;;  %v3881_v42 = vld [vmem:[#allocation4 + $0x60] sm:$0xff] (%p548_p8)  ;;  %v3882_v3 = vld [vmem:[#allocation4 + $0x68] sm:$0xff] (%p548_p8)  ;;  %v7633_v32 = vmov (%p548_p8), 0.0|0.0  }
 0x508   : > { %3829 = vst.msk [vmem:[#allocation2 + $0xf8] sm:$0xff] %vm253_vm2, %v3797_v58  ;;  %6831 = vmatpush3.bf16.xpose.msk.msra.mxu0 (%p548_p8), %vm7667_vm1, %v10095_v33  ;;  %v3911_v58 = vld [vmem:[#allocation2 + $0x50] sm:$0xff] (%p548_p8)  ;;  %v3880_v1 = vld [vmem:[#allocation4 + $0x58] sm:$0xff] (%p548_p8)  ;;  %v10164_v50 = vpack.c.bf16 (%p548_p8), %v3964_v31, %v3963_v9  ;;  %v3914_v49 = vld [vmem:[#allocation2 + $0x68] sm:$0xff] (%p548_p8)  ;;  %6874 = vmatprep.subr.bf16.mxu1 (%p548_p8), %v7633_v32 }
 0x509   :  { %6834 = vmatprep.subr.msk.bf16.mxu0 %vm7667_vm1, %v10097_v13  ;;  %v3913_v6 = vld [vmem:[#allocation2 + $0x60] sm:$0xff]  ;;  %v3947_v51 = vld [vmem:[#allocation6 + $0x170] sm:$0xff]  ;;  %v3838_v55 = vld [vmem:[#allocation6 + $0x8] sm:$0xff]  ;;  %6876 = vmatpush1.bf16.msra.mxu1 %v10095_v33 }
 0x50a   :  { %4229 = vperm.xlu0 %7394, %v3874_v63   ;;  %v3948_v41 = vld [vmem:[#allocation6 + $0x178] sm:$0xff]  ;;  %v3883_v57 = vld [vmem:[#allocation4 + $0x70] sm:$0xff]  ;;  %v3886_v11 = vld [vmem:[#allocation4 + $0x88] sm:$0xff]  ;;  %6877 = vmatprep.subr.bf16.mxu1 %v7633_v32 }
 0x50b   :  { %3994 = vperm.xlu1 %7395, %v3906_v24   ;;  %v10172_v29 = vpack.c.bf16 %v3948_v41, %v3947_v51  ;;  %v3915_v14 = vld [vmem:[#allocation2 + $0x70] sm:$0xff]  ;;  %v3884_v43 = vld [vmem:[#allocation4 + $0x78] sm:$0xff]  ;;  %v3885_v7 = vld [vmem:[#allocation4 + $0x80] sm:$0xff] }
 0x50c   :  { %v3916_v12 = vld [vmem:[#allocation2 + $0x78] sm:$0xff]  ;;  %v3917_v60 = vld [vmem:[#allocation2 + $0x80] sm:$0xff]  ;;  %v3918_v61 = vld [vmem:[#allocation2 + $0x88] sm:$0xff] }
 0x50d   :  { %v3839_v54 = vld [vmem:[#allocation6 + $0x10] sm:$0xff]  ;;  %v3840_v45 = vld [vmem:[#allocation6 + $0x18] sm:$0xff]  ;;  %v3842_v24 = vld [vmem:[#allocation6 + $0x28] sm:$0xff]  ;;  %6879 = vmatpush1.bf16.msra.mxu1 %v10108_v38 }
 0x50e   :  { %4234 = vperm.xlu0 %7394, %v3875_v28   ;;  %v3887_v25 = vld [vmem:[#allocation4 + $0x90] sm:$0xff]  ;;  %v3888_v17 = vld [vmem:[#allocation4 + $0x98] sm:$0xff]  ;;  %v3889_v28 = vld [vmem:[#allocation4 + $0xa0] sm:$0xff]  ;;  %6880 = vmatprep.subr.bf16.mxu1 %v7633_v32 }
 0x50f   :  { %3999 = vperm.xlu1 %7395, %v3907_v53   ;;  %v3919_v27 = vld [vmem:[#allocation2 + $0x90] sm:$0xff]  ;;  %v3920_v63 = vld [vmem:[#allocation2 + $0x98] sm:$0xff]  ;;  %v3921_v53 = vld [vmem:[#allocation2 + $0xa0] sm:$0xff] }
 0x510   :  { %6837 = vmatpush3.bf16.xpose.msk.msra.mxu0 %vm7667_vm1, %v10108_v38  ;;  %v3843_v5 = vld [vmem:[#allocation6 + $0x30] sm:$0xff]  ;;  %v3890_v36 = vld [vmem:[#allocation4 + $0xa8] sm:$0xff]  ;;  %v3844_v18 = vld [vmem:[#allocation6 + $0x38] sm:$0xff] }
 0x511   :  { %6840 = vmatprep.subr.msk.bf16.mxu0 %vm7667_vm1, %v10110_v26  ;;  %v3922_v2 = vld [vmem:[#allocation2 + $0xa8] sm:$0xff]  ;;  %v3924_v37 = vld [vmem:[#allocation2 + $0xb8] sm:$0xff]  ;;  %6882 = vmatpush1.bf16.msra.mxu1 %v10118_v22  ;;  %v3927_v48 = vld [vmem:[#allocation2 + $0xd0] sm:$0xff] }
 0x512   :  { %4239 = vperm.xlu0 %7394, %v3876_v46   ;;  %v3891_v46 = vld [vmem:[#allocation4 + $0xb0] sm:$0xff]  ;;  %v3893_v52 = vld [vmem:[#allocation4 + $0xc0] sm:$0xff]  ;;  %v3894_v33 = vld [vmem:[#allocation4 + $0xc8] sm:$0xff]  ;;  %6883 = vmatprep.subr.bf16.mxu1 %v7633_v32 }
 0x513   :  { %4004 = vperm.xlu1 %7395, %v3908_v44   ;;  %v3923_v44 = vld [vmem:[#allocation2 + $0xb0] sm:$0xff]  ;;  %v3849_v21 = vld [vmem:[#allocation6 + $0x60] sm:$0xff]  ;;  %v3928_v9 = vld [vmem:[#allocation2 + $0xd8] sm:$0xff] }
 0x514   :  { %v3846_v19 = vld [vmem:[#allocation6 + $0x48] sm:$0xff]  ;;  %v3853_v41 = vld [vmem:[#allocation6 + $0x80] sm:$0xff] }
 0x515   :  { %v3895_v38 = vld [vmem:[#allocation4 + $0xd0] sm:$0xff]  ;;  %6885 = vmatpush1.bf16.msra.mxu1 %v10132_v47 }
 0x516   :  { %4244 = vperm.xlu0 %7394, %v3877_v16   ;;  %v3845_v16 = vld [vmem:[#allocation6 + $0x40] sm:$0xff]  ;;  %6886 = vmatprep.subr.bf16.mxu1 %v7633_v32  ;;  %v3850_v31 = vld [vmem:[#allocation6 + $0x68] sm:$0xff] }
 0x517   :  { %4009 = vperm.xlu1 %7395, %v3909_v39   ;;  %v3892_v39 = vld [vmem:[#allocation4 + $0xb8] sm:$0xff]  ;;  %v3931_v51 = vld [vmem:[#allocation2 + $0xf0] sm:$0xff] }
 0x518   :  { %6843 = vmatpush3.bf16.xpose.msk.msra.mxu0 %vm7667_vm1, %v10118_v22  ;;  %v3896_v22 = vld [vmem:[#allocation4 + $0xd8] sm:$0xff] }
 0x519   :  { %6846 = vmatprep.subr.msk.bf16.mxu0 %vm7667_vm1, %v10120_v23  ;;  %6888 = vmatpush1.bf16.msra.mxu1 %v10142_v15 }
 0x51a   :  { %4249 = vperm.xlu0 %7394, %v3878_v35   ;;  %v3925_v35 = vld [vmem:[#allocation2 + $0xc0] sm:$0xff]  ;;  %6889 = vmatprep.subr.bf16.mxu1 %v7633_v32 }
 0x51b   :  { %4014 = vperm.xlu1 %7395, %v3910_v20   ;;  %v3847_v20 = vld [vmem:[#allocation6 + $0x50] sm:$0xff] }
 0x51d   :  { %6891 = vmatpush1.bf16.msra.mxu1 %v10152_v4 }
 0x51e   :  { %4254 = vperm.xlu0 %7394, %v3879_v40   ;;  %v3926_v40 = vld [vmem:[#allocation2 + $0xc8] sm:$0xff]  ;;  %6892 = vmatprep.subr.bf16.mxu1 %v7633_v32 }
 0x51f   :  { %4019 = vperm.xlu1 %7395, %v3911_v58   ;;  %v3848_v58 = vld [vmem:[#allocation6 + $0x58] sm:$0xff] }
 0x520   :  { %6849 = vmatpush3.bf16.xpose.msk.msra.mxu0 %vm7667_vm1, %v10132_v47  ;;  %v3897_v47 = vld [vmem:[#allocation4 + $0xe0] sm:$0xff] }
 0x521   :  { %6852 = vmatprep.subr.msk.bf16.mxu0 %vm7667_vm1, %v10134_v10  ;;  %6894 = vmatpush1.bf16.msra.mxu1 %v10162_v0 }
 0x522   :  { %4259 = vperm.xlu0 %7394, %v3880_v1   ;;  %v3929_v1 = vld [vmem:[#allocation2 + $0xe0] sm:$0xff]  ;;  %6895 = vmatprep.subr.bf16.mxu1 %v7633_v32 }
 0x523   :  { %4024 = vperm.xlu1 %7395, %v3912_v56   ;;  %v3851_v56 = vld [vmem:[#allocation6 + $0x70] sm:$0xff] }
 0x525   :  { %6897 = vmatpush1.bf16.msra.mxu1 %v10172_v29 }
 0x526   :  { %4264 = vperm.xlu0 %7394, %v3881_v42   ;;  %v3930_v42 = vld [vmem:[#allocation2 + $0xe8] sm:$0xff]  ;;  %6898 = vmatprep.subr.bf16.mxu1 %v7633_v32 }
 0x527   :  { %4029 = vperm.xlu1 %7395, %v3913_v6   ;;  %v3852_v6 = vld [vmem:[#allocation6 + $0x78] sm:$0xff] }
 0x528   :  { %6855 = vmatpush3.bf16.xpose.msk.msra.mxu0 %vm7667_vm1, %v10142_v15  ;;  %v3898_v15 = vld [vmem:[#allocation4 + $0xe8] sm:$0xff] }
 0x529   :  { %6858 = vmatprep.subr.msk.bf16.mxu0 %vm7667_vm1, %v10144_v8  ;;  %6900 = vmatpush1.bf16.msra.mxu1 %v10093_v59  ;;  %v3856_v59 = vld [vmem:[#allocation6 + $0x98] sm:$0xff] }
 0x52a   :  { %4269 = vperm.xlu0 %7394, %v3882_v3   ;;  %v3932_v3 = vld [vmem:[#allocation2 + $0xf8] sm:$0xff]  ;;  %6901 = vmatprep.subr.bf16.mxu1 %v7633_v32 }
 0x52b   :  { %4034 = vperm.xlu1 %7395, %v3914_v49   ;;  %v3854_v49 = vld [vmem:[#allocation6 + $0x88] sm:$0xff] }
 0x52d   :  { %6903 = vmatpush1.bf16.msra.mxu1 %v10097_v13  ;;  %v3857_v13 = vld [vmem:[#allocation6 + $0xa0] sm:$0xff] }
 0x52e   :  { %4274 = vperm.xlu0 %7394, %v3883_v57   ;;  %6904 = vmatprep.subr.bf16.mxu1 %v7633_v32 }
 0x52f   :  { %4039 = vperm.xlu1 %7395, %v3915_v14  }
 0x530   :  { %6861 = vmatpush3.bf16.xpose.msk.msra.mxu0 %vm7667_vm1, %v10152_v4  ;;  %v3899_v4 = vld [vmem:[#allocation4 + $0xf0] sm:$0xff] }
 0x531   :  { %6864 = vmatprep.subr.msk.bf16.mxu0 %vm7667_vm1, %v10154_v62  ;;  %6906 = vmatpush1.bf16.msra.mxu1 %v10110_v26  ;;  %v3858_v26 = vld [vmem:[#allocation6 + $0xa8] sm:$0xff] }
 0x532   :  { %4279 = vperm.xlu0 %7394, %v3884_v43   ;;  %6907 = vmatprep.subr.bf16.mxu1 %v7633_v32  ;;  %v3860_v43 = vld [vmem:[#allocation6 + $0xb8] sm:$0xff] }
 0x533   :  { %4044 = vperm.xlu1 %7395, %v3916_v12  }
 0x535   :  { %6909 = vmatpush1.bf16.msra.mxu1 %v10120_v23  ;;  %v3859_v23 = vld [vmem:[#allocation6 + $0xb0] sm:$0xff] }
 0x536   :  { %4284 = vperm.xlu0 %7394, %v3885_v7   ;;  %6910 = vmatprep.subr.bf16.mxu1 %v7633_v32  ;;  %v3862_v7 = vld [vmem:[#allocation6 + $0xc8] sm:$0xff] }
 0x537   :  { %4049 = vperm.xlu1 %7395, %v3917_v60  }
 0x538   :  { %6867 = vmatpush3.bf16.xpose.msk.msra.mxu0 %vm7667_vm1, %v10162_v0  ;;  %v3900_v0 = vld [vmem:[#allocation4 + $0xf8] sm:$0xff] }
 0x539   :  { %6870 = vmatprep.subr.msk.bf16.mxu0 %vm7667_vm1, %v10164_v50  ;;  %6912 = vmatpush1.bf16.msra.mxu1 %v10134_v10 }
 0x53a   :  { %4289 = vperm.xlu0 %7394, %v3886_v11   ;;  %6913 = vmatprep.subr.bf16.mxu1 %v7633_v32 }
 0x53b   :  { %4054 = vperm.xlu1 %7395, %v3918_v61   ;;  %v3864_v61 = vld [vmem:[#allocation6 + $0xd8] sm:$0xff] }
 0x53d   :  { %6915 = vmatpush1.bf16.msra.mxu1 %v10144_v8 }
 0x53e   :  { %4294 = vperm.xlu0 %7394, %v3887_v25   ;;  %6916 = vmatprep.subr.bf16.mxu1 %v7633_v32  ;;  %v3865_v25 = vld [vmem:[#allocation6 + $0xe0] sm:$0xff] }
 0x53f   :  { %4059 = vperm.xlu1 %7395, %v3919_v27  }
 0x540   :  { %6873 = vmatpush3.bf16.xpose.msk.msra.mxu0 %vm7667_vm1, %v10172_v29  ;;  %v3855_v29 = vld [vmem:[#allocation6 + $0x90] sm:$0xff] }
 0x541   :  { %6918 = vmatpush1.bf16.msra.mxu1 %v10154_v62 }
 0x542   :  { %4299 = vperm.xlu0 %7394, %v3888_v17   ;;  %6919 = vmatprep.subr.bf16.mxu1 %v7633_v32 }
 0x543   :  { %4064 = vperm.xlu1 %7395, %v3920_v63  }
 0x545   :  { %6921 = vmatpush1.bf16.msra.mxu1 %v10164_v50 }
 0x546   :  { %4304 = vperm.xlu0 %7394, %v3889_v28  }
 0x547   :  { %6585 = vmatmul.mubr.msk.f32.vlgmr.msra.gmra.mrb[0].mxu0 %vm124_vm0, %v10122_v30  ;;  %v3841_v30 = vld [vmem:[#allocation6 + $0x20] sm:$0xff]  ;;  %4069 = vperm.xlu1 %7395, %v3921_v53   ;;  %v3868_v53 = vld [vmem:[#allocation6 + $0xf8] sm:$0xff] }
 0x548   :  { %6586 = vmatprep.mubr.msk.f32.mxu0 %vm124_vm0, %v3838_v55 }
 0x54a   :  { %4309 = vperm.xlu0 %7394, %v3890_v36  }
 0x54b   :  { %6587 = vmatmul.mubr.msk.f32.gmra.mrb[2].mxu0 %vm124_vm0, %v3838_v55  ;;  %4074 = vperm.xlu1 %7395, %v3922_v2   ;;  %v3861_v55 = vld [vmem:[#allocation6 + $0xc0] sm:$0xff] }
 0x54c   :  { %6588 = vmatprep.mubr.msk.f32.mxu0 %vm124_vm0, %v3839_v54 }
 0x54e   :  { %4314 = vperm.xlu0 %7394, %v3891_v46  }
 0x54f   :  { %6589 = vmatmul.mubr.msk.f32.gmra.mrb[4].mxu0 %vm124_vm0, %v3839_v54  ;;  %4079 = vperm.xlu1 %7395, %v3923_v44   ;;  %v3863_v54 = vld [vmem:[#allocation6 + $0xd0] sm:$0xff] }
 0x550   :  { %6590 = vmatprep.mubr.msk.f32.mxu0 %vm124_vm0, %v3840_v45 }
 0x552   :  { %4319 = vperm.xlu0 %7394, %v3892_v39  }
 0x553   :  { %6591 = vmatmul.mubr.msk.f32.gmra.mrb[6].mxu0 %vm124_vm0, %v3840_v45  ;;  %4084 = vperm.xlu1 %7395, %v3924_v37  }
 0x554   :  { %6592 = vmatprep.mubr.msk.f32.mxu0 %vm124_vm0, %v3841_v30 }
 0x556   :  { %4324 = vperm.xlu0 %7394, %v3893_v52  }
 0x557   :  { %6593 = vmatmul.mubr.msk.f32.gmra.mrb[8].mxu0 %vm124_vm0, %v3841_v30  ;;  %4089 = vperm.xlu1 %7395, %v3925_v35   ;;  %v3866_v30 = vld [vmem:[#allocation6 + $0xe8] sm:$0xff] }
 0x558   :  { %6594 = vmatprep.mubr.msk.f32.mxu0 %vm124_vm0, %v3842_v24 }
 0x55a   :  { %4329 = vperm.xlu0 %7394, %v3894_v33  }
 0x55b   :  { %6595 = vmatmul.mubr.msk.f32.gmra.mrb[10].mxu0 %vm124_vm0, %v3842_v24  ;;  %4094 = vperm.xlu1 %7395, %v3926_v40   ;;  %v3867_v24 = vld [vmem:[#allocation6 + $0xf0] sm:$0xff] }
 0x55c   :  { %6596 = vmatprep.mubr.msk.f32.mxu0 %vm124_vm0, %v3843_v5 }
 0x55e   :  { %4334 = vperm.xlu0 %7394, %v3895_v38  }
 0x55f   :  { %6597 = vmatmul.mubr.msk.f32.gmra.mrb[12].mxu0 %vm124_vm0, %v3843_v5  ;;  %4099 = vperm.xlu1 %7395, %v3927_v48  }
 0x560   :  { %6598 = vmatprep.mubr.msk.f32.mxu0 %vm124_vm0, %v3844_v18 }
 0x562   :  { %4339 = vperm.xlu0 %7394, %v3896_v22  }
 0x563   :  { %6599 = vmatmul.mubr.msk.f32.gmra.mrb[14].mxu0 %vm124_vm0, %v3844_v18  ;;  %4104 = vperm.xlu1 %7395, %v3928_v9  }
 0x564   :  { %6600 = vmatprep.mubr.msk.f32.mxu0 %vm124_vm0, %v3845_v16 }
 0x566   :  { %4344 = vperm.xlu0 %7394, %v3897_v47  }
 0x567   :  { %6601 = vmatmul.mubr.msk.f32.gmra.mrb[16].mxu0 %vm124_vm0, %v3845_v16  ;;  %4109 = vperm.xlu1 %7395, %v3929_v1   ;;  %v3966_v1 = vld [vmem:[#allocation3] sm:$0x3] }
 0x568   :  { %6602 = vmatprep.mubr.msk.f32.mxu0 %vm124_vm0, %v3846_v19 }
 0x56a   :  { %4349 = vperm.xlu0 %7394, %v3898_v15  }
 0x56b   :  { %6603 = vmatmul.mubr.msk.f32.gmra.mrb[18].mxu0 %vm124_vm0, %v3846_v19  ;;  %4114 = vperm.xlu1 %7395, %v3930_v42   ;;  %v11650_v42 = vld [vmem:[#allocation25_spill] sm:$0xff] }
 0x56c   :  { %6604 = vmatprep.mubr.msk.f32.mxu0 %vm124_vm0, %v3847_v20 }
 0x56e   :  { %4354 = vperm.xlu0 %7394, %v3899_v4  }
 0x56f   :  { %6605 = vmatmul.mubr.msk.f32.gmra.mrb[20].mxu0 %vm124_vm0, %v3847_v20  ;;  %4119 = vperm.xlu1 %7395, %v3931_v51  }
 0x570   :  { %6606 = vmatprep.mubr.msk.f32.mxu0 %vm124_vm0, %v3848_v58 }
 0x572   :  { %4359 = vperm.xlu0 %7394, %v3900_v0  }
 0x573   :  { %6607 = vmatmul.mubr.msk.f32.gmra.mrb[22].mxu0 %vm124_vm0, %v3848_v58  ;;  %4124 = vperm.xlu1 %7395, %v3932_v3  }
 0x574   :  { %6608 = vmatprep.mubr.msk.f32.mxu0 %vm124_vm0, %v3849_v21 }
 0x575   :  { %v10245_v57 = vpop.permute.xlu0 %4204 }
 0x576   :  { %v10251_v14 = vpop.permute.xlu1 %4209 }
 0x577   :  { %6609 = vmatmul.mubr.msk.f32.gmra.mrb[24].mxu0 %vm124_vm0, %v3849_v21 }
 0x578   :  { %6610 = vmatprep.mubr.msk.f32.mxu0 %vm124_vm0, %v3850_v31 }
 0x579   :  { %v10254_v10 = vpop.permute.xlu0 %3969 }
 0x57a   :  { %v10260_v8 = vpop.permute.xlu1 %3974 }
 0x57b   :  { %6611 = vmatmul.mubr.msk.f32.gmra.mrb[26].mxu0 %vm124_vm0, %v3850_v31  ;;  %v3965_v31 = vld [vmem:[#allocation5] sm:$0x3] }
 0x57c   :  { %6612 = vmatprep.mubr.msk.f32.mxu0 %vm124_vm0, %v3851_v56 }
 0x57d   :  { %v10264_v12 = vpop.permute.xlu0 %4214 }
 0x57e   :  { %v10268_v62 = vpop.permute.xlu1 %3979 }
 0x57f   :  { %6613 = vmatmul.mubr.msk.f32.gmra.mrb[28].mxu0 %vm124_vm0, %v3851_v56  ;;  %v11649_v56 = vld [vmem:[#allocation24_spill] sm:$0xff] }
 0x580   :  { %6614 = vmatprep.mubr.msk.f32.mxu0 %vm124_vm0, %v3852_v6  ;;  %v10348_v15 = vrot.slane %v3965_v31, %v11649_v56  ;;  %v10354_v4 = vrot.slane %v3966_v1, %v11649_v56 }
 0x581   :  { %v10270_v60 = vpop.permute.xlu0 %4219 }
 0x582   :  { %v10274_v50 = vpop.permute.xlu1 %3984  ;;  %v10365_v3 = vadd.f32 %v10348_v15, %v10245_v57 }
 0x583   :  { %6615 = vmatmul.mubr.msk.f32.gmra.mrb[30].mxu0 %vm124_vm0, %v3852_v6  ;;  %v10351_v6 = vrot.slane %v3965_v31, %v11650_v42 }
 0x584   :  { %6616 = vmatprep.mubr.msk.f32.mxu0 %vm124_vm0, %v3853_v41 }
 0x585   :  { %v10278_v11 = vpop.permute.xlu0 %4224 }
 0x586   :  { %v10282_v45 = vpop.permute.xlu1 %3989 }
 0x587   :  { %6617 = vmatmul.mubr.msk.f32.gmra.mrb[32].mxu0 %vm124_vm0, %v3853_v41  ;;  %v10359_v41 = vrot.slane %v3966_v1, %v11650_v42 }
 0x588   :  { %6618 = vmatprep.mubr.msk.f32.mxu0 %vm124_vm0, %v3854_v49 }
 0x589   :  { %v10284_v27 = vpop.permute.xlu0 %4229 }
 0x58a   :  { %v10288_v17 = vpop.permute.xlu1 %3994 }
 0x58b   :  { %6619 = vmatmul.mubr.msk.f32.gmra.mrb[34].mxu0 %vm124_vm0, %v3854_v49  ;;  %v10369_v49 = vadd.f32 %v10351_v6, %v10245_v57  ;;  %v10389_v57 = vadd.f32 %v10354_v4, %v10260_v8  ;;  %v10461_v31 = vadd.f32 %v10359_v41, %v10288_v17 }
 0x58c   :  { %6620 = vmatprep.mubr.msk.f32.mxu0 %vm124_vm0, %v3855_v29 }
 0x58d   :  { %v10292_v63 = vpop.permute.xlu0 %4234 }
 0x58e   :  { %v10296_v28 = vpop.permute.xlu1 %3999  ;;  %v10469_v1 = vadd.f32 %v10351_v6, %v10292_v63 }
 0x58f   :  { %6621 = vmatmul.mubr.msk.f32.gmra.mrb[36].mxu0 %vm124_vm0, %v3855_v29  ;;  %v10373_v29 = vadd.f32 %v10348_v15, %v10251_v14  ;;  %v10477_v56 = vadd.f32 %v10359_v41, %v10296_v28 }
 0x590   :  { %6622 = vmatprep.mubr.msk.f32.mxu0 %vm124_vm0, %v3856_v59 }
 0x591   :  { %v10298_v5 = vpop.permute.xlu0 %4239  ;;  %11651 = vst [vmem:[#allocation16_spill] sm:$0xff] %v10477_v56 }
 0x592   :  { %v10302_v36 = vpop.permute.xlu1 %4004  ;;  %v10485_v42 = vadd.f32 %v10351_v6, %v10298_v5 }
 0x593   :  { %6623 = vmatmul.mubr.msk.f32.gmra.mrb[38].mxu0 %vm124_vm0, %v3856_v59  ;;  %v10377_v59 = vadd.f32 %v10351_v6, %v10251_v14  ;;  %v10397_v14 = vadd.f32 %v10348_v15, %v10264_v12  ;;  %v10493_v34 = vadd.f32 %v10359_v41, %v10302_v36 }
 0x594   :  { %6624 = vmatprep.mubr.msk.f32.mxu0 %vm124_vm0, %v3857_v13  ;;  %11652 = vst [vmem:[#allocation18_spill] sm:$0xff] %v10485_v42 }
 0x595   :  { %v10305_v2 = vpop.permute.xlu0 %4244  ;;  %11653 = vst [vmem:[#allocation24_spill] sm:$0xff] %v10493_v34 }
 0x596   :  { %v10307_v18 = vpop.permute.xlu1 %4009  ;;  %v10501_v56 = vadd.f32 %v10351_v6, %v10305_v2 }
 0x597   :  { %6625 = vmatmul.mubr.msk.f32.gmra.mrb[40].mxu0 %vm124_vm0, %v3857_v13  ;;  %v10381_v13 = vadd.f32 %v10354_v4, %v10254_v10  ;;  %v10509_v42 = vadd.f32 %v10359_v41, %v10307_v18 }
 0x598   :  { %6626 = vmatprep.mubr.msk.f32.mxu0 %vm124_vm0, %v3858_v26 }
 0x599   :  { %v10309_v46 = vpop.permute.xlu0 %4249 }
 0x59a   :  { %v10311_v44 = vpop.permute.xlu1 %4014 }
 0x59b   :  { %6627 = vmatmul.mubr.msk.f32.gmra.mrb[42].mxu0 %vm124_vm0, %v3858_v26  ;;  %v10385_v26 = vadd.f32 %v10359_v41, %v10254_v10  ;;  %v10405_v10 = vadd.f32 %v10354_v4, %v10268_v62 }
 0x59c   :  { %6628 = vmatprep.mubr.msk.f32.mxu0 %vm124_vm0, %v3859_v23 }
 0x59d   :  { %v10313_v16 = vpop.permute.xlu0 %4254 }
 0x59e   :  { %v10315_v39 = vpop.permute.xlu1 %4019 }
 0x59f   :  { %6629 = vmatmul.mubr.msk.f32.gmra.mrb[44].mxu0 %vm124_vm0, %v3859_v23  ;;  %v10393_v23 = vadd.f32 %v10359_v41, %v10260_v8  ;;  %v10413_v8 = vadd.f32 %v10348_v15, %v10270_v60 }
 0x5a0   :  { %6630 = vmatprep.mubr.msk.f32.mxu0 %vm124_vm0, %v3860_v43 }
 0x5a1   :  { %v10317_v32 = vpop.permute.xlu0 %4259 }
 0x5a2   :  { %v10319_v37 = vpop.permute.xlu1 %4024 }
 0x5a3   :  { %6631 = vmatmul.mubr.msk.f32.gmra.mrb[46].mxu0 %vm124_vm0, %v3860_v43  ;;  %v10401_v43 = vadd.f32 %v10351_v6, %v10264_v12  ;;  %v10423_v12 = vadd.f32 %v10354_v4, %v10274_v50 }
 0x5a4   :  { %6632 = vmatprep.mubr.msk.f32.mxu0 %vm124_vm0, %v3861_v55 }
 0x5a5   :  { %v10321_v19 = vpop.permute.xlu0 %4264 }
 0x5a6   :  { %v10323_v52 = vpop.permute.xlu1 %4029 }
 0x5a7   :  { %6633 = vmatmul.mubr.msk.f32.gmra.mrb[48].mxu0 %vm124_vm0, %v3861_v55  ;;  %v10409_v55 = vadd.f32 %v10359_v41, %v10268_v62  ;;  %v10431_v62 = vadd.f32 %v10348_v15, %v10278_v11 }
 0x5a8   :  { %6634 = vmatprep.mubr.msk.f32.mxu0 %vm124_vm0, %v3862_v7 }
 0x5a9   :  { %v10325_v35 = vpop.permute.xlu0 %4269 }
 0x5aa   :  { %v10327_v20 = vpop.permute.xlu1 %4034 }
 0x5ab   :  { %6635 = vmatmul.mubr.msk.f32.gmra.mrb[50].mxu0 %vm124_vm0, %v3862_v7 }
 0x5ac   :  { %6636 = vmatprep.mubr.msk.f32.mxu0 %vm124_vm0, %v3863_v54 }
 0x5ad   :  { %v10329_v33 = vpop.permute.xlu0 %4274 }
 0x5ae   :  { %v10331_v40 = vpop.permute.xlu1 %4039 }
 0x5af   :  { %6637 = vmatmul.mubr.msk.f32.gmra.mrb[52].mxu0 %vm124_vm0, %v3863_v54  ;;  %v10419_v54 = vadd.f32 %v10351_v6, %v10270_v60  ;;  %v10439_v60 = vadd.f32 %v10354_v4, %v10282_v45 }
 0x5b0   :  { %6638 = vmatprep.mubr.msk.f32.mxu0 %vm124_vm0, %v3864_v61 }
 0x5b1   :  { %v10333_v58 = vpop.permute.xlu0 %4279 }
 0x5b2   :  { %v10335_v38 = vpop.permute.xlu1 %4044 }
 0x5b3   :  { %6639 = vmatmul.mubr.msk.f32.gmra.mrb[54].mxu0 %vm124_vm0, %v3864_v61  ;;  %v10427_v61 = vadd.f32 %v10359_v41, %v10274_v50  ;;  %v10447_v50 = vadd.f32 %v10348_v15, %v10284_v27 }
 0x5b4   :  { %6640 = vmatprep.mubr.msk.f32.mxu0 %vm124_vm0, %v3865_v25 }
 0x5b5   :  { %v10337_v48 = vpop.permute.xlu0 %4284 }
 0x5b6   :  { %v10339_v21 = vpop.permute.xlu1 %4049 }
 0x5b7   :  { %6641 = vmatmul.mubr.msk.f32.gmra.mrb[56].mxu0 %vm124_vm0, %v3865_v25  ;;  %v10435_v25 = vadd.f32 %v10351_v6, %v10278_v11  ;;  %v10457_v11 = vadd.f32 %v10354_v4, %v10288_v17  ;;  %v10481_v17 = vadd.f32 %v10348_v15, %v10298_v5  ;;  %v10505_v5 = vadd.f32 %v10354_v4, %v10307_v18 }
 0x5b8   :  { %6642 = vmatprep.mubr.msk.f32.mxu0 %vm124_vm0, %v3866_v30  ;;  %v10529_v18 = vadd.f32 %v10348_v15, %v10313_v16 }
 0x5b9   :  { %v10341_v22 = vpop.permute.xlu0 %4289  ;;  %11655 = vst [vmem:[#allocation124_spill] sm:$0xff] %v10505_v5  ;;  %v10525_v5 = vadd.f32 %v10359_v41, %v10311_v44 }
 0x5ba   :  { %v10343_v9 = vpop.permute.xlu1 %4054  ;;  %11659 = vst [vmem:[#allocation128_spill] sm:$0xff] %v10529_v18  ;;  %v10549_v18 = vadd.f32 %v10351_v6, %v10317_v32 }
 0x5bb   :  { %6643 = vmatmul.mubr.msk.f32.gmra.mrb[58].mxu0 %vm124_vm0, %v3866_v30  ;;  %v10443_v30 = vadd.f32 %v10359_v41, %v10282_v45  ;;  %v10465_v45 = vadd.f32 %v10348_v15, %v10292_v63  ;;  %v10489_v63 = vadd.f32 %v10354_v4, %v10302_v36  ;;  %v10513_v36 = vadd.f32 %v10348_v15, %v10309_v46 }
 0x5bc   :  { %6644 = vmatprep.mubr.msk.f32.mxu0 %vm124_vm0, %v3867_v24  ;;  %11658 = vst [vmem:[#allocation127_spill] sm:$0xff] %v10525_v5  ;;  %11662 = vst [vmem:[#allocation131_spill] sm:$0xff] %v10549_v18  ;;  %v10573_v18 = vadd.f32 %v10359_v41, %v10323_v52 }
 0x5bd   :  { %v10345_v47 = vpop.permute.xlu0 %4294  ;;  %11656 = vst [vmem:[#allocation125_spill] sm:$0xff] %v10513_v36  ;;  %v10533_v36 = vadd.f32 %v10351_v6, %v10313_v16  ;;  %v10553_v16 = vadd.f32 %v10354_v4, %v10319_v37 }
 0x5be   :  { %v10356_v51 = vpop.permute.xlu1 %4059  ;;  %11665 = vst [vmem:[#allocation134_spill] sm:$0xff] %v10573_v18  ;;  %v10597_v18 = vadd.f32 %v10351_v6, %v10329_v33 }
 0x5bf   :  { %6645 = vmatmul.mubr.msk.f32.gmra.mrb[60].mxu0 %vm124_vm0, %v3867_v24 }
 0x5c0   :  { %6646 = vmatprep.mubr.msk.f32.mxu0 %vm124_vm0, %v3868_v53 }
 0x5c1   :  { %v10361_v0 = vpop.permute.xlu0 %4299 }
 0x5c2   :  { %v10415_v7 = vpop.permute.xlu1 %4064 }
 0x5c3   :  { %6647 = vmatmul.mubr.msk.f32.gmra.mrb[62].mxu0 %vm124_vm0, %v3868_v53  ;;  %v10453_v53 = vadd.f32 %v10351_v6, %v10284_v27  ;;  %v10473_v27 = vadd.f32 %v10354_v4, %v10296_v28  ;;  %v10497_v28 = vadd.f32 %v10348_v15, %v10305_v2  ;;  %v10521_v2 = vadd.f32 %v10354_v4, %v10311_v44 }
 0x5c4   :  { %v10545_v44 = vadd.f32 %v10348_v15, %v10317_v32  ;;  %v10569_v32 = vadd.f32 %v10354_v4, %v10323_v52  ;;  %v10593_v52 = vadd.f32 %v10348_v15, %v10329_v33  ;;  %v10617_v33 = vadd.f32 %v10354_v4, %v10335_v38 }
 0x5c5   :  { %v10449_v24 = vpop.permute.xlu0 %4304  ;;  %11654 = vst [vmem:[#allocation25_spill] sm:$0xff] %v10497_v28  ;;  %v10517_v28 = vadd.f32 %v10351_v6, %v10309_v46  ;;  %v10537_v46 = vadd.f32 %v10354_v4, %v10315_v39 }
 0x5c6   :  { %v4070_v34 = vpop.permute.xlu1 %4069  ;;  %11661 = vst [vmem:[#allocation130_spill] sm:$0xff] %v10545_v44  ;;  %v10565_v44 = vadd.f32 %v10351_v6, %v10321_v19  ;;  %11668 = vst [vmem:[#allocation137_spill] sm:$0xff] %v10593_v52  ;;  %v10613_v52 = vadd.f32 %v10351_v6, %v10333_v58 }
 0x5c7   :  { %11657 = vst [vmem:[#allocation126_spill] sm:$0xff] %v10517_v28  ;;  %11660 = vst [vmem:[#allocation129_spill] sm:$0xff] %v10537_v46  ;;  %v10541_v28 = vadd.f32 %v10359_v41, %v10315_v39  ;;  %v10557_v46 = vadd.f32 %v10359_v41, %v10319_v37  ;;  %v10561_v39 = vadd.f32 %v10348_v15, %v10321_v19 }
 0x5c8   :  { %11664 = vst [vmem:[#allocation133_spill] sm:$0xff] %v10565_v44  ;;  %v10577_v37 = vadd.f32 %v10348_v15, %v10325_v35  ;;  %v10585_v19 = vadd.f32 %v10354_v4, %v10327_v20  ;;  %v10589_v44 = vadd.f32 %v10359_v41, %v10327_v20  ;;  %v10609_v20 = vadd.f32 %v10348_v15, %v10333_v58 }
 0x5c9   :  { %v4310_v5 = vpop.permute.xlu0 %4309  ;;  %11663 = vst [vmem:[#allocation132_spill] sm:$0xff] %v10557_v46  ;;  %v10581_v46 = vadd.f32 %v10351_v6, %v10325_v35  ;;  %v10601_v35 = vadd.f32 %v10354_v4, %v10331_v40  ;;  %11671 = vst [vmem:[#allocation140_spill] sm:$0xff] %v10613_v52  ;;  %v10633_v58 = vadd.f32 %v10354_v4, %v10339_v21 }
 0x5ca   :  { %11667 = vst [vmem:[#allocation136_spill] sm:$0xff] %v10589_v44  ;;  %11670 = vst [vmem:[#allocation139_spill] sm:$0xff] %v10609_v20  ;;  %v4075_v44 = vpop.permute.xlu1 %4074  ;;  %v10629_v20 = vadd.f32 %v10351_v6, %v10337_v48  ;;  %v10637_v52 = vadd.f32 %v10359_v41, %v10339_v21  ;;  %v10657_v21 = vadd.f32 %v10348_v15, %v10345_v47 }
 0x5cb   :  { %11666 = vst [vmem:[#allocation135_spill] sm:$0xff] %v10581_v46  ;;  %11669 = vst [vmem:[#allocation138_spill] sm:$0xff] %v10601_v35  ;;  %v10605_v46 = vadd.f32 %v10359_v41, %v10331_v40  ;;  %v10621_v35 = vadd.f32 %v10359_v41, %v10335_v38  ;;  %v10625_v40 = vadd.f32 %v10348_v15, %v10337_v48 }
 0x5cc   :  { %11674 = vst [vmem:[#allocation143_spill] sm:$0xff] %v10633_v58  ;;  %11675 = vst [vmem:[#allocation144_spill] sm:$0xff] %v10637_v52  ;;  %v10641_v38 = vadd.f32 %v10348_v15, %v10341_v22  ;;  %v10649_v48 = vadd.f32 %v10354_v4, %v10343_v9  ;;  %v10653_v58 = vadd.f32 %v10359_v41, %v10343_v9 }
 0x5cd   :  { %11672 = vst [vmem:[#allocation141_spill] sm:$0xff] %v10621_v35  ;;  %11673 = vst [vmem:[#allocation142_spill] sm:$0xff] %v10625_v40  ;;  %v4315_v35 = vpop.permute.xlu0 %4314  ;;  %v10645_v40 = vadd.f32 %v10351_v6, %v10341_v22  ;;  %v10665_v22 = vadd.f32 %v10354_v4, %v10356_v51 }
 0x5ce   :  { %11676 = vst [vmem:[#allocation145_spill] sm:$0xff] %v10641_v38  ;;  %11678 = vst [vmem:[#allocation147_spill] sm:$0xff] %v10649_v48  ;;  %v10661_v38 = vadd.f32 %v10351_v6, %v10345_v47  ;;  %v10669_v48 = vadd.f32 %v10359_v41, %v10356_v51  ;;  %v10682_v47 = vadd.f32 %v10354_v4, %v10415_v7 }
 0x5cf   :  { %11677 = vst [vmem:[#allocation146_spill] sm:$0xff] %v10645_v40  ;;  %11679 = vst [vmem:[#allocation148_spill] sm:$0xff] %v10653_v58  ;;  %v10674_v40 = vadd.f32 %v10348_v15, %v10361_v0  ;;  %v10687_v51 = vadd.f32 %v10359_v41, %v10415_v7  ;;  %v10705_v7 = vadd.f32 %v10348_v15, %v4310_v5 }
 0x5d0   :  { %11680 = vst [vmem:[#allocation149_spill] sm:$0xff] %v10657_v21  ;;  %11681 = vst [vmem:[#allocation150_spill] sm:$0xff] %v10665_v22  ;;  %v10678_v21 = vadd.f32 %v10351_v6, %v10361_v0  ;;  %v4080_v0 = vpop.permute.xlu1 %4079 }
 0x5d1   :  { %11682 = vst [vmem:[#allocation151_spill] sm:$0xff] %v10674_v40  ;;  %11684 = vst [vmem:[#allocation153_spill] sm:$0xff] %v10687_v51  ;;  %v10699_v40 = vadd.f32 %v10354_v4, %v4070_v34 }
 0x5d2   :  { %11683 = vst [vmem:[#allocation152_spill] sm:$0xff] %v10678_v21  ;;  %11689 = vst [vmem:[#allocation158_spill] sm:$0xff] %v10705_v7 }
 0x5d3   :  { %11687 = vst [vmem:[#allocation156_spill] sm:$0xff] %v10699_v40 }
 0x61a   :  { %v4695_v52 = vpop.f32.mrb[0].mxu0 }
 0x61b   :  { %v4886_v9 = vsub.f32 %v10365_v3, %v4695_v52  ;;  %v4697_v58 = vpop.f32.mrb[1].mxu0  ;;  %v10691_v3 = vadd.f32 %v10348_v15, %v10449_v24  ;;  %v10695_v52 = vadd.f32 %v10351_v6, %v10449_v24  ;;  %v10712_v24 = vadd.f32 %v10354_v4, %v4075_v44 }
 0x61c   :  { %v4887_v22 = vsub.f32 %v10369_v49, %v4697_v58  ;;  %v10702_v49 = vadd.f32 %v10359_v41, %v4070_v34  ;;  %v10716_v34 = vadd.f32 %v10359_v41, %v4075_v44 }
 0x61d   :  { %11685 = vst [vmem:[#allocation154_spill] sm:$0xff] %v10691_v3  ;;  %11686 = vst [vmem:[#allocation155_spill] sm:$0xff] %v10695_v52  ;;  %v4950_v21 = vsub.f32 %v10381_v13, %v4886_v9  ;;  %v10709_v3 = vadd.f32 %v10351_v6, %v4310_v5  ;;  %v4320_v52 = vpop.permute.xlu0 %4319  ;;  %v10723_v5 = vadd.f32 %v10351_v6, %v4315_v35 }
 0x61e   :  { %11688 = vst [vmem:[#allocation157_spill] sm:$0xff] %v10702_v49  ;;  %v4951_v58 = vsub.f32 %v10385_v26, %v4887_v22  ;;  %v4701_v51 = vpop.f32.mrb[2].mxu0  ;;  %11690 = vst [vmem:[#allocation159_spill] sm:$0xff] %v10712_v24  ;;  %v10719_v49 = vadd.f32 %v10348_v15, %v4315_v35  ;;  %v10726_v22 = vadd.f32 %v10354_v4, %v4080_v0  ;;  %v4085_v35 = vpop.permute.xlu1 %4084 }
 0x61f   :  { %v5014_v13 = vmul.f32 10000.0, %v4950_v21  ;;  %v4888_v9 = vsub.f32 %v10373_v29, %v4701_v51  ;;  %v4703_v40 = vpop.f32.mrb[3].mxu0  ;;  %11692 = vst [vmem:[#allocation161_spill] sm:$0xff] %v10723_v5  ;;  %v10730_v29 = vadd.f32 %v10359_v41, %v4080_v0  ;;  %v10733_v44 = vadd.f32 %v10348_v15, %v4320_v52 }
 0x620   :  { %11691 = vst [vmem:[#allocation160_spill] sm:$0xff] %v10719_v49  ;;  %v5015_v7 = vmul.f32 10000.0, %v4951_v58  ;;  %v4889_v26 = vsub.f32 %v10377_v59, %v4703_v40  ;;  %11693 = vst [vmem:[#allocation162_spill] sm:$0xff] %v10726_v22  ;;  %v10737_v59 = vadd.f32 %v10351_v6, %v4320_v52 }
 0x621   :  { %v5078_v24 = vadd.f32 -5.5451775, %v5014_v13  ;;  %v4952_v21 = vsub.f32 %v10389_v57, %v4888_v9  ;;  %11694 = vst [vmem:[#allocation163_spill] sm:$0xff] %v10733_v44  ;;  %v10741_v57 = vadd.f32 %v10354_v4, %v4085_v35 }
 0x622   :  { %v5079_v51 = vadd.f32 -5.5451775, %v5015_v7  ;;  %v4953_v58 = vsub.f32 %v10393_v23, %v4889_v26  ;;  %v4707_v49 = vpop.f32.mrb[4].mxu0  ;;  %11695 = vst [vmem:[#allocation164_spill] sm:$0xff] %v10737_v59  ;;  %v10745_v7 = vadd.f32 %v10359_v41, %v4085_v35  ;;  %v4325_v23 = vpop.permute.xlu0 %4324 }
 0x623   :  { %v5142_v40 = vmin.f32 %v5078_v24, 0.0  ;;  %v5016_v5 = vmul.f32 10000.0, %v4952_v21  ;;  %v4890_v13 = vsub.f32 %v10397_v14, %v4707_v49  ;;  %v4709_v22 = vpop.f32.mrb[5].mxu0  ;;  %11696 = vst [vmem:[#allocation165_spill] sm:$0xff] %v10741_v57  ;;  %v10749_v24 = vadd.f32 %v10348_v15, %v4325_v23 }
 0x624   :  { %v5143_v0 = vmin.f32 %v5079_v51, 0.0  ;;  %v5017_v9 = vmul.f32 10000.0, %v4953_v58  ;;  %v4891_v44 = vsub.f32 %v10401_v43, %v4709_v22 }
 0x625   :  { %v5206_v26 = vmul.f32 1.442695, %v5142_v40  ;;  %v5080_v52 = vadd.f32 -5.5451775, %v5016_v5  ;;  %v4954_v59 = vsub.f32 %v10405_v10, %v4890_v13  ;;  %v10755_v10 = vadd.f32 %v10351_v6, %v4325_v23  ;;  %v4090_v13 = vpop.permute.xlu1 %4089 }
 0x626   :  { %v5208_v14 = vmul.f32 1.442695, %v5143_v0  ;;  %v5081_v49 = vadd.f32 -5.5451775, %v5017_v9  ;;  %v4955_v21 = vsub.f32 %v10409_v55, %v4891_v44  ;;  %v4713_v57 = vpop.f32.mrb[6].mxu0  ;;  %v10759_v44 = vadd.f32 %v10354_v4, %v4090_v13 }
 0x627   :  { %7396 = vpow2.f32 %v5206_v26  ;;  %v5144_v51 = vmin.f32 %v5080_v52, 0.0  ;;  %v5018_v58 = vmul.f32 10000.0, %v4954_v59  ;;  %v4892_v43 = vsub.f32 %v10413_v8, %v4713_v57  ;;  %v4715_v22 = vpop.f32.mrb[7].mxu0 }
 0x628   :  { %7398 = vpow2.f32 %v5208_v14  ;;  %v5145_v35 = vmin.f32 %v5081_v49, 0.0  ;;  %v5019_v40 = vmul.f32 10000.0, %v4955_v21  ;;  %v4893_v5 = vsub.f32 %v10419_v54, %v4715_v22 }
 0x629   :  { %v5210_v0 = vmul.f32 1.442695, %v5144_v51  ;;  %v5082_v9 = vadd.f32 -5.5451775, %v5018_v58  ;;  %v4956_v55 = vsub.f32 %v10423_v12, %v4892_v43  ;;  %v10765_v12 = vadd.f32 %v10359_v41, %v4090_v13  ;;  %v4330_v58 = vpop.permute.xlu0 %4329 }
 0x62a   :  { %v5212_v59 = vmul.f32 1.442695, %v5145_v35  ;;  %v5083_v26 = vadd.f32 -5.5451775, %v5019_v40  ;;  %v4957_v8 = vsub.f32 %v10427_v61, %v4893_v5  ;;  %v4719_v57 = vpop.f32.mrb[8].mxu0  ;;  %v10769_v35 = vadd.f32 %v10348_v15, %v4330_v58 }
 0x62b   :  { %7400 = vpow2.f32 %v5210_v0  ;;  %v5146_v52 = vmin.f32 %v5082_v9, 0.0  ;;  %v5020_v14 = vmul.f32 10000.0, %v4956_v55  ;;  %v4894_v54 = vsub.f32 %v10431_v62, %v4719_v57  ;;  %v4721_v23 = vpop.f32.mrb[9].mxu0 }
 0x62c   :  { %7402 = vpow2.f32 %v5212_v59  ;;  %v5147_v49 = vmin.f32 %v5083_v26, 0.0  ;;  %v5021_v21 = vmul.f32 10000.0, %v4957_v8  ;;  %v4895_v51 = vsub.f32 %v10435_v25, %v4721_v23 }
 0x62d   :  { %v5214_v43 = vmul.f32 1.442695, %v5146_v52  ;;  %v5084_v22 = vadd.f32 -5.5451775, %v5020_v14  ;;  %v4958_v61 = vsub.f32 %v10439_v60, %v4894_v54  ;;  %v10775_v57 = vadd.f32 %v10351_v6, %v4330_v58  ;;  %v4095_v52 = vpop.permute.xlu1 %4094 }
 0x62e   :  { %v5216_v40 = vmul.f32 1.442695, %v5147_v49  ;;  %v5085_v5 = vadd.f32 -5.5451775, %v5021_v21  ;;  %v4959_v62 = vsub.f32 %v10443_v30, %v4895_v51  ;;  %v4725_v0 = vpop.f32.mrb[10].mxu0  ;;  %v10779_v49 = vadd.f32 %v10354_v4, %v4095_v52 }
 0x62f   :  { %7404 = vpow2.f32 %v5214_v43  ;;  %v5148_v9 = vmin.f32 %v5084_v22, 0.0  ;;  %v5022_v55 = vmul.f32 10000.0, %v4958_v61  ;;  %v4896_v25 = vsub.f32 %v10447_v50, %v4725_v0  ;;  %v4727_v13 = vpop.f32.mrb[11].mxu0 }
 0x630   :  { %7406 = vpow2.f32 %v5216_v40  ;;  %v5149_v59 = vmin.f32 %v5085_v5, 0.0  ;;  %v5023_v26 = vmul.f32 10000.0, %v4959_v62  ;;  %v4897_v8 = vsub.f32 %v10453_v53, %v4727_v13 }
 0x631   :  { %v7397_v60 = vpop.eup %7396  ;;  %v5218_v14 = vmul.f32 1.442695, %v5148_v9  ;;  %v5086_v54 = vadd.f32 -5.5451775, %v5022_v55  ;;  %v4960_v30 = vsub.f32 %v10457_v11, %v4896_v25  ;;  %v10788_v13 = vadd.f32 %v10359_v41, %v4095_v52 }
 0x632   :  { %v7399_v23 = vpop.eup %7398  ;;  %v5220_v50 = vmul.f32 1.442695, %v5149_v59  ;;  %v5087_v21 = vadd.f32 -5.5451775, %v5023_v26  ;;  %v4961_v51 = vsub.f32 %v10461_v31, %v4897_v8  ;;  %v4731_v43 = vpop.f32.mrb[12].mxu0  ;;  %v11697_v26 = vld [vmem:[#allocation16_spill] sm:$0xff] }
 0x633   :  { %7408 = vpow2.f32 %v5218_v14  ;;  %v5150_v53 = vmin.f32 %v5086_v54, 0.0  ;;  %v5024_v22 = vmul.f32 10000.0, %v4960_v30  ;;  %v4898_v58 = vsub.f32 %v10465_v45, %v4731_v43  ;;  %v4733_v61 = vpop.f32.mrb[13].mxu0  ;;  %5526 = vmatprep.mubr.f32.mxu1 %v7399_v23 }
 0x634   :  { %7410 = vpow2.f32 %v5220_v50  ;;  %v5151_v40 = vmin.f32 %v5087_v21, 0.0  ;;  %v5025_v5 = vmul.f32 10000.0, %v4961_v51  ;;  %v4899_v11 = vsub.f32 %v10469_v1, %v4733_v61  ;;  %5527 = vmatmul.mubr.f32.vlgmr.msra.gmra.mrb[0].mxu1 %v7397_v60  ;;  %v4335_v51 = vpop.permute.xlu0 %4334 }
 0x635   :  { %v7401_v62 = vpop.eup %7400  ;;  %v5222_v0 = vmul.f32 1.442695, %v5150_v53  ;;  %v5088_v9 = vadd.f32 -5.5451775, %v5024_v22  ;;  %v4962_v55 = vsub.f32 %v10473_v27, %v4898_v58  ;;  %v10785_v31 = vadd.f32 %v7399_v23, %v7397_v60  ;;  %v11698_v23 = vld [vmem:[#allocation18_spill] sm:$0xff] }
 0x636   :  { %v7403_v25 = vpop.eup %7402  ;;  %v5224_v45 = vmul.f32 1.442695, %v5151_v40  ;;  %v5089_v59 = vadd.f32 -5.5451775, %v5025_v5  ;;  %v4963_v8 = vsub.f32 %v11697_v26, %v4899_v11  ;;  %v4737_v14 = vpop.f32.mrb[14].mxu0  ;;  %v10797_v40 = vadd.f32 %v10348_v15, %v4335_v51  ;;  %v11699_v11 = vld [vmem:[#allocation24_spill] sm:$0xff] }
 0x637   :  { %7412 = vpow2.f32 %v5222_v0  ;;  %v5152_v54 = vmin.f32 %v5088_v9, 0.0  ;;  %v5026_v1 = vmul.f32 10000.0, %v4962_v55  ;;  %v4900_v30 = vsub.f32 %v10481_v17, %v4737_v14  ;;  %v4739_v50 = vpop.f32.mrb[15].mxu0  ;;  %5531 = vmatprep.mubr.f32.mxu1 %v7403_v25 }
 0x638   :  { %7414 = vpow2.f32 %v5224_v45  ;;  %v5153_v27 = vmin.f32 %v5089_v59, 0.0  ;;  %v5027_v60 = vmul.f32 10000.0, %v4963_v8  ;;  %v4901_v21 = vsub.f32 %v11698_v23, %v4739_v50  ;;  %5532 = vmatmul.mubr.f32.gmra.mrb[2].mxu1 %v7401_v62  ;;  %v11700_v59 = vld [vmem:[#allocation25_spill] sm:$0xff] }
 0x639   :  { %v7405_v52 = vpop.eup %7404  ;;  %v5226_v43 = vmul.f32 1.442695, %v5152_v54  ;;  %v5090_v53 = vadd.f32 -5.5451775, %v5026_v1  ;;  %v4964_v22 = vsub.f32 %v10489_v63, %v4900_v30  ;;  %v10794_v58 = vadd.f32 %v7403_v25, %v7401_v62  ;;  %v11701_v30 = vld [vmem:[#allocation124_spill] sm:$0xff] }
 0x63a   :  { %v7407_v61 = vpop.eup %7406  ;;  %v5228_v17 = vmul.f32 1.442695, %v5153_v27  ;;  %v5091_v5 = vadd.f32 -5.5451775, %v5027_v60  ;;  %v4965_v0 = vsub.f32 %v11699_v11, %v4901_v21  ;;  %v4743_v9 = vpop.f32.mrb[16].mxu0  ;;  %v10806_v23 = vadd.f32 %v10351_v6, %v4335_v51 }
 0x63b   :  { %7416 = vpow2.f32 %v5226_v43  ;;  %v5154_v55 = vmin.f32 %v5090_v53, 0.0  ;;  %v5028_v45 = vmul.f32 10000.0, %v4964_v22  ;;  %v4902_v26 = vsub.f32 %v11700_v59, %v4743_v9  ;;  %v4745_v8 = vpop.f32.mrb[17].mxu0  ;;  %5536 = vmatprep.mubr.f32.mxu1 %v7407_v61 }
 0x63c   :  { %7418 = vpow2.f32 %v5228_v17  ;;  %v5155_v63 = vmin.f32 %v5091_v5, 0.0  ;;  %v5029_v62 = vmul.f32 10000.0, %v4965_v0  ;;  %v4903_v25 = vsub.f32 %v10501_v56, %v4745_v8  ;;  %5537 = vmatmul.mubr.f32.gmra.mrb[4].mxu1 %v7405_v52  ;;  %v11702_v5 = vld [vmem:[#allocation125_spill] sm:$0xff] }
 0x63d   :  { %v7409_v14 = vpop.eup %7408  ;;  %v5230_v54 = vmul.f32 1.442695, %v5154_v55  ;;  %v5092_v1 = vadd.f32 -5.5451775, %v5028_v45  ;;  %v4966_v50 = vsub.f32 %v11701_v30, %v4902_v26  ;;  %v10803_v27 = vadd.f32 %v7407_v61, %v7405_v52  ;;  %v11703_v61 = vld [vmem:[#allocation126_spill] sm:$0xff]  ;;  %v4100_v45 = vpop.permute.xlu1 %4099 }
 0x63e   :  { %v7411_v60 = vpop.eup %7410  ;;  %v5232_v21 = vmul.f32 1.442695, %v5155_v63  ;;  %v5093_v43 = vadd.f32 -5.5451775, %v5029_v62  ;;  %v4967_v53 = vsub.f32 %v10509_v42, %v4903_v25  ;;  %v4749_v22 = vpop.f32.mrb[18].mxu0  ;;  %v10815_v62 = vadd.f32 %v10354_v4, %v4100_v45 }
 0x63f   :  { %7420 = vpow2.f32 %v5230_v54  ;;  %v5156_v17 = vmin.f32 %v5092_v1, 0.0  ;;  %v5030_v56 = vmul.f32 10000.0, %v4966_v50  ;;  %v4904_v11 = vsub.f32 %v11702_v5, %v4749_v22  ;;  %v4751_v0 = vpop.f32.mrb[19].mxu0  ;;  %5541 = vmatprep.mubr.f32.mxu1 %v7411_v60  ;;  %v11704_v1 = vld [vmem:[#allocation127_spill] sm:$0xff] }
 0x640   :  { %7422 = vpow2.f32 %v5232_v21  ;;  %v5157_v9 = vmin.f32 %v5093_v43, 0.0  ;;  %v5031_v52 = vmul.f32 10000.0, %v4967_v53  ;;  %v4905_v55 = vsub.f32 %v11703_v61, %v4751_v0  ;;  %5542 = vmatmul.mubr.f32.gmra.mrb[6].mxu1 %v7409_v14  ;;  %v11705_v53 = vld [vmem:[#allocation128_spill] sm:$0xff]  ;;  %v11706_v0 = vld [vmem:[#allocation129_spill] sm:$0xff] }
 0x641   :  { %v7413_v51 = vpop.eup %7412  ;;  %v5234_v59 = vmul.f32 1.442695, %v5156_v17  ;;  %v5094_v26 = vadd.f32 -5.5451775, %v5030_v56  ;;  %v4968_v42 = vsub.f32 %v10521_v2, %v4904_v11  ;;  %v10812_v8 = vadd.f32 %v7411_v60, %v7409_v14 }
 0x642   :  { %v7415_v63 = vpop.eup %7414  ;;  %v5236_v25 = vmul.f32 1.442695, %v5157_v9  ;;  %v5095_v54 = vadd.f32 -5.5451775, %v5031_v52  ;;  %v4969_v30 = vsub.f32 %v11704_v1, %v4905_v55  ;;  %v4755_v50 = vpop.f32.mrb[20].mxu0  ;;  %v10824_v55 = vadd.f32 %v10359_v41, %v4100_v45  ;;  %v11707_v1 = vld [vmem:[#allocation130_spill] sm:$0xff] }
 0x643   :  { %7424 = vpow2.f32 %v5234_v59  ;;  %v5158_v21 = vmin.f32 %v5094_v26, 0.0  ;;  %v5032_v43 = vmul.f32 10000.0, %v4968_v42  ;;  %v4906_v22 = vsub.f32 %v11705_v53, %v4755_v50  ;;  %v4757_v17 = vpop.f32.mrb[21].mxu0  ;;  %5546 = vmatprep.mubr.f32.mxu1 %v7415_v63  ;;  %v4340_v53 = vpop.permute.xlu0 %4339 }
 0x644   :  { %7426 = vpow2.f32 %v5236_v25  ;;  %v5159_v2 = vmin.f32 %v5095_v54, 0.0  ;;  %v5033_v14 = vmul.f32 10000.0, %v4969_v30  ;;  %v4907_v60 = vsub.f32 %v10533_v36, %v4757_v17  ;;  %5547 = vmatmul.mubr.f32.gmra.mrb[8].mxu1 %v7413_v51 }
 0x645   :  { %v7417_v56 = vpop.eup %7416  ;;  %v5238_v5 = vmul.f32 1.442695, %v5158_v21  ;;  %v5096_v11 = vadd.f32 -5.5451775, %v5032_v43  ;;  %v4970_v9 = vsub.f32 %v11706_v0, %v4906_v22  ;;  %v10821_v52 = vadd.f32 %v7415_v63, %v7413_v51  ;;  %v11708_v63 = vld [vmem:[#allocation131_spill] sm:$0xff]  ;;  %v11709_v0 = vld [vmem:[#allocation132_spill] sm:$0xff] }
 0x646   :  { %v7419_v61 = vpop.eup %7418  ;;  %v5240_v59 = vmul.f32 1.442695, %v5159_v2  ;;  %v5097_v26 = vadd.f32 -5.5451775, %v5033_v14  ;;  %v4971_v42 = vsub.f32 %v10541_v28, %v4907_v60  ;;  %v4761_v25 = vpop.f32.mrb[22].mxu0  ;;  %v10833_v60 = vadd.f32 %v10348_v15, %v4340_v53 }
 0x647   :  { %7428 = vpow2.f32 %v5238_v5  ;;  %v5160_v54 = vmin.f32 %v5096_v11, 0.0  ;;  %v5034_v36 = vmul.f32 10000.0, %v4970_v9  ;;  %v4908_v30 = vsub.f32 %v11707_v1, %v4761_v25  ;;  %v4763_v50 = vpop.f32.mrb[23].mxu0  ;;  %5551 = vmatprep.mubr.f32.mxu1 %v7419_v61 }
 0x648   :  { %7430 = vpow2.f32 %v5240_v59  ;;  %v5161_v21 = vmin.f32 %v5097_v26, 0.0  ;;  %v5035_v51 = vmul.f32 10000.0, %v4971_v42  ;;  %v4909_v43 = vsub.f32 %v11708_v63, %v4763_v50  ;;  %5552 = vmatmul.mubr.f32.gmra.mrb[10].mxu1 %v7417_v56 }
 0x649   :  { %v7421_v45 = vpop.eup %7420  ;;  %v5242_v22 = vmul.f32 1.442695, %v5160_v54  ;;  %v5098_v17 = vadd.f32 -5.5451775, %v5034_v36  ;;  %v4972_v28 = vsub.f32 %v10553_v16, %v4908_v30  ;;  %v10830_v2 = vadd.f32 %v7419_v61, %v7417_v56  ;;  %v11710_v61 = vld [vmem:[#allocation133_spill] sm:$0xff] }
 0x64a   :  { %v7423_v14 = vpop.eup %7422  ;;  %v5244_v5 = vmul.f32 1.442695, %v5161_v21  ;;  %v5099_v11 = vadd.f32 -5.5451775, %v5035_v51  ;;  %v4973_v9 = vsub.f32 %v11709_v0, %v4909_v43  ;;  %v4767_v59 = vpop.f32.mrb[24].mxu0  ;;  %v10842_v43 = vadd.f32 %v10351_v6, %v4340_v53 }
 0x64b   :  { %7432 = vpow2.f32 %v5242_v22  ;;  %v5162_v26 = vmin.f32 %v5098_v17, 0.0  ;;  %v5036_v42 = vmul.f32 10000.0, %v4972_v28  ;;  %v4910_v25 = vsub.f32 %v10561_v39, %v4767_v59  ;;  %v4769_v54 = vpop.f32.mrb[25].mxu0  ;;  %5556 = vmatprep.mubr.f32.mxu1 %v7423_v14  ;;  %v11711_v17 = vld [vmem:[#allocation134_spill] sm:$0xff] }
 0x64c   :  { %7434 = vpow2.f32 %v5244_v5  ;;  %v5163_v16 = vmin.f32 %v5099_v11, 0.0  ;;  %v5037_v56 = vmul.f32 10000.0, %v4973_v9  ;;  %v4911_v36 = vsub.f32 %v11710_v61, %v4769_v54  ;;  %5557 = vmatmul.mubr.f32.gmra.mrb[12].mxu1 %v7421_v45 }
 0x64d   :  { %v7425_v1 = vpop.eup %7424  ;;  %v5246_v30 = vmul.f32 1.442695, %v5162_v26  ;;  %v5100_v50 = vadd.f32 -5.5451775, %v5036_v42  ;;  %v4974_v21 = vsub.f32 %v10569_v32, %v4910_v25  ;;  %v10839_v51 = vadd.f32 %v7423_v14, %v7421_v45  ;;  %v11712_v14 = vld [vmem:[#allocation135_spill] sm:$0xff]  ;;  %v4105_v42 = vpop.permute.xlu1 %4104 }
 0x64e   :  { %v7427_v63 = vpop.eup %7426  ;;  %v5248_v39 = vmul.f32 1.442695, %v5163_v16  ;;  %v5101_v22 = vadd.f32 -5.5451775, %v5037_v56  ;;  %v4975_v28 = vsub.f32 %v11711_v17, %v4911_v36  ;;  %v4773_v5 = vpop.f32.mrb[26].mxu0  ;;  %v10851_v36 = vadd.f32 %v10354_v4, %v4105_v42 }
 0x64f   :  { %7436 = vpow2.f32 %v5246_v30  ;;  %v5164_v11 = vmin.f32 %v5100_v50, 0.0  ;;  %v5038_v0 = vmul.f32 10000.0, %v4974_v21  ;;  %v4912_v9 = vsub.f32 %v10577_v37, %v4773_v5  ;;  %v4775_v59 = vpop.f32.mrb[27].mxu0  ;;  %5561 = vmatprep.mubr.f32.mxu1 %v7427_v63  ;;  %v11713_v50 = vld [vmem:[#allocation136_spill] sm:$0xff] }
 0x650   :  { %7438 = vpow2.f32 %v5248_v39  ;;  %v5165_v32 = vmin.f32 %v5101_v22, 0.0  ;;  %v5039_v45 = vmul.f32 10000.0, %v4975_v28  ;;  %v4913_v26 = vsub.f32 %v11712_v14, %v4775_v59  ;;  %5562 = vmatmul.mubr.f32.gmra.mrb[14].mxu1 %v7425_v1  ;;  %v11714_v28 = vld [vmem:[#allocation137_spill] sm:$0xff] }
 0x651   :  { %v7429_v53 = vpop.eup %7428  ;;  %v5250_v25 = vmul.f32 1.442695, %v5164_v11  ;;  %v5102_v54 = vadd.f32 -5.5451775, %v5038_v0  ;;  %v4976_v16 = vsub.f32 %v10585_v19, %v4912_v9  ;;  %v10848_v56 = vadd.f32 %v7427_v63, %v7425_v1 }
 0x652   :  { %v7431_v61 = vpop.eup %7430  ;;  %v5252_v37 = vmul.f32 1.442695, %v5165_v32  ;;  %v5103_v30 = vadd.f32 -5.5451775, %v5039_v45  ;;  %v4977_v21 = vsub.f32 %v11713_v50, %v4913_v26  ;;  %v4779_v39 = vpop.f32.mrb[28].mxu0  ;;  %v11715_v32 = vld [vmem:[#allocation138_spill] sm:$0xff] }
 0x653   :  { %7440 = vpow2.f32 %v5250_v25  ;;  %v5166_v22 = vmin.f32 %v5102_v54, 0.0  ;;  %v5040_v17 = vmul.f32 10000.0, %v4976_v16  ;;  %v4914_v5 = vsub.f32 %v11714_v28, %v4779_v39  ;;  %v4781_v11 = vpop.f32.mrb[29].mxu0  ;;  %5566 = vmatprep.mubr.f32.mxu1 %v7431_v61 }
 0x654   :  { %7442 = vpow2.f32 %v5252_v37  ;;  %v5167_v19 = vmin.f32 %v5103_v30, 0.0  ;;  %v5041_v1 = vmul.f32 10000.0, %v4977_v21  ;;  %v4915_v63 = vsub.f32 %v10597_v18, %v4781_v11  ;;  %5567 = vmatmul.mubr.f32.gmra.mrb[16].mxu1 %v7429_v53  ;;  %v11716_v21 = vld [vmem:[#allocation139_spill] sm:$0xff] }
 0x655   :  { %v7433_v0 = vpop.eup %7432  ;;  %v5254_v9 = vmul.f32 1.442695, %v5166_v22  ;;  %v5104_v59 = vadd.f32 -5.5451775, %v5040_v17  ;;  %v4978_v45 = vsub.f32 %v11715_v32, %v4914_v5  ;;  %v10857_v14 = vadd.f32 %v7431_v61, %v7429_v53  ;;  %v11717_v61 = vld [vmem:[#allocation140_spill] sm:$0xff]  ;;  %v4345_v5 = vpop.permute.xlu0 %4344 }
 0x656   :  { %v7435_v26 = vpop.eup %7434  ;;  %v10860_v25 = vadd.f32 %v10359_v41, %v4105_v42  ;;  %v5256_v54 = vmul.f32 1.442695, %v5167_v19  ;;  %v5105_v16 = vadd.f32 -5.5451775, %v5041_v1  ;;  %v4979_v37 = vsub.f32 %v10605_v46, %v4915_v63  ;;  %v4785_v30 = vpop.f32.mrb[30].mxu0 }
 0x657   :  { %7444 = vpow2.f32 %v5254_v9  ;;  %v5168_v50 = vmin.f32 %v5104_v59, 0.0  ;;  %v5042_v18 = vmul.f32 10000.0, %v4978_v45  ;;  %v4916_v39 = vsub.f32 %v11716_v21, %v4785_v30  ;;  %v4787_v22 = vpop.f32.mrb[31].mxu0  ;;  %5571 = vmatprep.mubr.f32.mxu1 %v7435_v26  ;;  %v11719_v45 = vld [vmem:[#allocation141_spill] sm:$0xff]  ;;  %v11720_v21 = vld [vmem:[#allocation142_spill] sm:$0xff] }
 0x658   :  { %7446 = vpow2.f32 %v5256_v54  ;;  %v5169_v17 = vmin.f32 %v5105_v16, 0.0  ;;  %v5043_v53 = vmul.f32 10000.0, %v4979_v37  ;;  %v4917_v28 = vsub.f32 %v11717_v61, %v4787_v22  ;;  %5572 = vmatmul.mubr.f32.gmra.mrb[18].mxu1 %v7433_v0 }
 0x659   :  { %v7437_v42 = vpop.eup %7436  ;;  %v5258_v11 = vmul.f32 1.442695, %v5168_v50  ;;  %v5106_v19 = vadd.f32 -5.5451775, %v5042_v18  ;;  %v4980_v46 = vsub.f32 %v10617_v33, %v4916_v39  ;;  %v10866_v1 = vadd.f32 %v7435_v26, %v7433_v0 }
 0x65a   :  { %v7439_v63 = vpop.eup %7438  ;;  %v10869_v9 = vadd.f32 %v10348_v15, %v4345_v5  ;;  %v5260_v59 = vmul.f32 1.442695, %v5169_v17  ;;  %v5107_v32 = vadd.f32 -5.5451775, %v5043_v53  ;;  %v4981_v54 = vsub.f32 %v11719_v45, %v4917_v28  ;;  %v4791_v16 = vpop.f32.mrb[32].mxu0  ;;  %v11721_v53 = vld [vmem:[#allocation143_spill] sm:$0xff] }
 0x65b   :  { %11718 = vst [vmem:[#allocation16_spill] sm:$0xff] %v10866_v1  ;;  %7448 = vpow2.f32 %v5258_v11  ;;  %v5170_v37 = vmin.f32 %v5106_v19, 0.0  ;;  %v5044_v30 = vmul.f32 10000.0, %v4980_v46  ;;  %v4918_v22 = vsub.f32 %v11720_v21, %v4791_v16  ;;  %v4793_v50 = vpop.f32.mrb[33].mxu0  ;;  %5576 = vmatprep.mubr.f32.mxu1 %v7439_v63  ;;  %v11723_v16 = vld [vmem:[#allocation144_spill] sm:$0xff]  ;;  %v11724_v21 = vld [vmem:[#allocation145_spill] sm:$0xff] }
 0x65c   :  { %7450 = vpow2.f32 %v5260_v59  ;;  %v5171_v33 = vmin.f32 %v5107_v32, 0.0  ;;  %v5045_v0 = vmul.f32 10000.0, %v4981_v54  ;;  %v4919_v26 = vsub.f32 %v10629_v20, %v4793_v50  ;;  %5577 = vmatmul.mubr.f32.gmra.mrb[20].mxu1 %v7437_v42 }
 0x65d   :  { %v7441_v18 = vpop.eup %7440  ;;  %v5262_v39 = vmul.f32 1.442695, %v5170_v37  ;;  %v5108_v17 = vadd.f32 -5.5451775, %v5044_v30  ;;  %v4982_v61 = vsub.f32 %v11721_v53, %v4918_v22  ;;  %v10875_v28 = vadd.f32 %v7439_v63, %v7437_v42  ;;  %v11725_v63 = vld [vmem:[#allocation146_spill] sm:$0xff]  ;;  %v4110_v53 = vpop.permute.xlu1 %4109 }
 0x65e   :  { %v7443_v11 = vpop.eup %7442  ;;  %v10878_v19 = vadd.f32 %v10351_v6, %v4345_v5  ;;  %v5264_v46 = vmul.f32 1.442695, %v5171_v33  ;;  %v5109_v45 = vadd.f32 -5.5451775, %v5045_v0  ;;  %v4983_v59 = vsub.f32 %v11723_v16, %v4919_v26  ;;  %v4797_v32 = vpop.f32.mrb[34].mxu0 }
 0x65f   :  { %11722 = vst [vmem:[#allocation18_spill] sm:$0xff] %v10875_v28  ;;  %7452 = vpow2.f32 %v5262_v39  ;;  %v5172_v54 = vmin.f32 %v5108_v17, 0.0  ;;  %v5046_v20 = vmul.f32 10000.0, %v4982_v61  ;;  %v4920_v50 = vsub.f32 %v11724_v21, %v4797_v32  ;;  %v4799_v37 = vpop.f32.mrb[35].mxu0  ;;  %5581 = vmatprep.mubr.f32.mxu1 %v7443_v11  ;;  %v11726_v28 = vld [vmem:[#allocation147_spill] sm:$0xff] }
 0x660   :  { %7454 = vpow2.f32 %v5264_v46  ;;  %v5173_v30 = vmin.f32 %v5109_v45, 0.0  ;;  %v5047_v42 = vmul.f32 10000.0, %v4983_v59  ;;  %v4921_v22 = vsub.f32 %v11725_v63, %v4799_v37  ;;  %5582 = vmatmul.mubr.f32.gmra.mrb[22].mxu1 %v7441_v18  ;;  %v11728_v46 = vld [vmem:[#allocation148_spill] sm:$0xff]  ;;  %v11729_v63 = vld [vmem:[#allocation149_spill] sm:$0xff] }
 0x661   :  { %v7445_v5 = vpop.eup %7444  ;;  %v5266_v33 = vmul.f32 1.442695, %v5172_v54  ;;  %v5110_v0 = vadd.f32 -5.5451775, %v5046_v20  ;;  %v4984_v26 = vsub.f32 %v11726_v28, %v4920_v50  ;;  %v10884_v16 = vadd.f32 %v7443_v11, %v7441_v18 }
 0x662   :  { %v7447_v39 = vpop.eup %7446  ;;  %v10887_v17 = vadd.f32 %v10354_v4, %v4110_v53  ;;  %v5268_v61 = vmul.f32 1.442695, %v5173_v30  ;;  %v5111_v32 = vadd.f32 -5.5451775, %v5047_v42  ;;  %v4985_v45 = vsub.f32 %v11728_v46, %v4921_v22  ;;  %v4803_v59 = vpop.f32.mrb[36].mxu0  ;;  %v11730_v42 = vld [vmem:[#allocation150_spill] sm:$0xff] }
 0x663   :  { %11727 = vst [vmem:[#allocation24_spill] sm:$0xff] %v10884_v16  ;;  %7456 = vpow2.f32 %v5266_v33  ;;  %v5174_v21 = vmin.f32 %v5110_v0, 0.0  ;;  %v5048_v37 = vmul.f32 10000.0, %v4984_v26  ;;  %v4922_v1 = vsub.f32 %v11729_v63, %v4803_v59  ;;  %v4805_v54 = vpop.f32.mrb[37].mxu0  ;;  %5586 = vmatprep.mubr.f32.mxu1 %v7447_v39  ;;  %v11732_v59 = vld [vmem:[#allocation151_spill] sm:$0xff] }
 0x664   :  { %7458 = vpow2.f32 %v5268_v61  ;;  %v5175_v28 = vmin.f32 %v5111_v32, 0.0  ;;  %v5049_v18 = vmul.f32 10000.0, %v4985_v45  ;;  %v4923_v11 = vsub.f32 %v10661_v38, %v4805_v54  ;;  %5587 = vmatmul.mubr.f32.gmra.mrb[24].mxu1 %v7445_v5  ;;  %v4350_v54 = vpop.permute.xlu0 %4349 }
 0x665   :  { %v7449_v20 = vpop.eup %7448  ;;  %v5270_v50 = vmul.f32 1.442695, %v5174_v21  ;;  %v5112_v30 = vadd.f32 -5.5451775, %v5048_v37  ;;  %v4986_v16 = vsub.f32 %v11730_v42, %v4922_v1  ;;  %v10893_v22 = vadd.f32 %v7447_v39, %v7445_v5  ;;  %v11733_v39 = vld [vmem:[#allocation152_spill] sm:$0xff] }
 0x666   :  { %v7451_v33 = vpop.eup %7450  ;;  %v10896_v0 = vadd.f32 %v10359_v41, %v4110_v53  ;;  %v5272_v26 = vmul.f32 1.442695, %v5175_v28  ;;  %v5113_v46 = vadd.f32 -5.5451775, %v5049_v18  ;;  %v4987_v61 = vsub.f32 %v10669_v48, %v4923_v11  ;;  %v4809_v32 = vpop.f32.mrb[38].mxu0 }
 0x667   :  { %11731 = vst [vmem:[#allocation25_spill] sm:$0xff] %v10893_v22  ;;  %7460 = vpow2.f32 %v5270_v50  ;;  %v5176_v45 = vmin.f32 %v5112_v30, 0.0  ;;  %v5050_v38 = vmul.f32 10000.0, %v4986_v16  ;;  %v4924_v63 = vsub.f32 %v11732_v59, %v4809_v32  ;;  %v4811_v21 = vpop.f32.mrb[39].mxu0  ;;  %5591 = vmatprep.mubr.f32.mxu1 %v7451_v33 }
 0x668   :  { %7462 = vpow2.f32 %v5272_v26  ;;  %v5177_v1 = vmin.f32 %v5113_v46, 0.0  ;;  %v5051_v5 = vmul.f32 10000.0, %v4987_v61  ;;  %v4925_v37 = vsub.f32 %v11733_v39, %v4811_v21  ;;  %5592 = vmatmul.mubr.f32.gmra.mrb[26].mxu1 %v7449_v20  ;;  %v11735_v26 = vld [vmem:[#allocation153_spill] sm:$0xff]  ;;  %v11736_v21 = vld [vmem:[#allocation154_spill] sm:$0xff] }
 0x669   :  { %v7453_v53 = vpop.eup %7452  ;;  %v5274_v28 = vmul.f32 1.442695, %v5176_v45  ;;  %v5114_v18 = vadd.f32 -5.5451775, %v5050_v38  ;;  %v4988_v48 = vsub.f32 %v10682_v47, %v4924_v63  ;;  %v10902_v11 = vadd.f32 %v7451_v33, %v7449_v20  ;;  %v11737_v33 = vld [vmem:[#allocation155_spill] sm:$0xff] }
 0x66a   :  { %v7455_v50 = vpop.eup %7454  ;;  %v10905_v16 = vadd.f32 %v10348_v15, %v4350_v54  ;;  %v5276_v30 = vmul.f32 1.442695, %v5177_v1  ;;  %v5115_v42 = vadd.f32 -5.5451775, %v5051_v5  ;;  %v4989_v46 = vsub.f32 %v11735_v26, %v4925_v37  ;;  %v4815_v61 = vpop.f32.mrb[40].mxu0  ;;  %v11738_v5 = vld [vmem:[#allocation156_spill] sm:$0xff] }
 0x66b   :  { %11734 = vst [vmem:[#allocation124_spill] sm:$0xff] %v10902_v11  ;;  %7464 = vpow2.f32 %v5274_v28  ;;  %v5178_v32 = vmin.f32 %v5114_v18, 0.0  ;;  %v5052_v59 = vmul.f32 10000.0, %v4988_v48  ;;  %v4926_v39 = vsub.f32 %v11736_v21, %v4815_v61  ;;  %v4817_v45 = vpop.f32.mrb[41].mxu0  ;;  %5596 = vmatprep.mubr.f32.mxu1 %v7455_v50  ;;  %v11740_v61 = vld [vmem:[#allocation157_spill] sm:$0xff] }
 0x66c   :  { %7466 = vpow2.f32 %v5276_v30  ;;  %v5179_v47 = vmin.f32 %v5115_v42, 0.0  ;;  %v5053_v20 = vmul.f32 10000.0, %v4989_v46  ;;  %v4927_v38 = vsub.f32 %v11737_v33, %v4817_v45  ;;  %5597 = vmatmul.mubr.f32.gmra.mrb[28].mxu1 %v7453_v53  ;;  %v11741_v45 = vld [vmem:[#allocation158_spill] sm:$0xff] }
 0x66d   :  { %v7457_v63 = vpop.eup %7456  ;;  %v5278_v11 = vmul.f32 1.442695, %v5178_v32  ;;  %v5116_v1 = vadd.f32 -5.5451775, %v5052_v59  ;;  %v4990_v22 = vsub.f32 %v11738_v5, %v4926_v39  ;;  %v10911_v37 = vadd.f32 %v7455_v50, %v7453_v53  ;;  %v4115_v39 = vpop.permute.xlu1 %4114  ;;  %v11742_v5 = vld [vmem:[#allocation159_spill] sm:$0xff] }
 0x66e   :  { %v7459_v28 = vpop.eup %7458  ;;  %v10914_v18 = vadd.f32 %v10351_v6, %v4350_v54  ;;  %v5280_v48 = vmul.f32 1.442695, %v5179_v47  ;;  %v5117_v26 = vadd.f32 -5.5451775, %v5053_v20  ;;  %v4991_v30 = vsub.f32 %v11740_v61, %v4927_v38  ;;  %v4821_v42 = vpop.f32.mrb[42].mxu0 }
 0x66f   :  { %11739 = vst [vmem:[#allocation125_spill] sm:$0xff] %v10911_v37  ;;  %7468 = vpow2.f32 %v5278_v11  ;;  %v5180_v46 = vmin.f32 %v5116_v1, 0.0  ;;  %v5054_v21 = vmul.f32 10000.0, %v4990_v22  ;;  %v4928_v33 = vsub.f32 %v11741_v45, %v4821_v42  ;;  %v4823_v32 = vpop.f32.mrb[43].mxu0  ;;  %5601 = vmatprep.mubr.f32.mxu1 %v7459_v28  ;;  %v11744_v45 = vld [vmem:[#allocation160_spill] sm:$0xff] }
 0x670   :  { %7470 = vpow2.f32 %v5280_v48  ;;  %v5181_v59 = vmin.f32 %v5117_v26, 0.0  ;;  %v5055_v53 = vmul.f32 10000.0, %v4991_v30  ;;  %v4929_v50 = vsub.f32 %v10709_v3, %v4823_v32  ;;  %5602 = vmatmul.mubr.f32.gmra.mrb[30].mxu1 %v7457_v63 }
 0x671   :  { %v7461_v54 = vpop.eup %7460  ;;  %v5282_v47 = vmul.f32 1.442695, %v5180_v46  ;;  %v5118_v20 = vadd.f32 -5.5451775, %v5054_v21  ;;  %v4992_v38 = vsub.f32 %v11742_v5, %v4928_v33  ;;  %v10920_v61 = vadd.f32 %v7459_v28, %v7457_v63  ;;  %v11745_v28 = vld [vmem:[#allocation161_spill] sm:$0xff] }
 0x672   :  { %v7463_v11 = vpop.eup %7462  ;;  %v10923_v22 = vadd.f32 %v10354_v4, %v4115_v39  ;;  %v5284_v1 = vmul.f32 1.442695, %v5181_v59  ;;  %v5119_v42 = vadd.f32 -5.5451775, %v5055_v53  ;;  %v4993_v48 = vsub.f32 %v10716_v34, %v4929_v50  ;;  %v4827_v26 = vpop.f32.mrb[44].mxu0  ;;  %v11746_v53 = vld [vmem:[#allocation162_spill] sm:$0xff] }
 0x673   :  { %11743 = vst [vmem:[#allocation126_spill] sm:$0xff] %v10920_v61  ;;  %7472 = vpow2.f32 %v5282_v47  ;;  %v5182_v3 = vmin.f32 %v5118_v20, 0.0  ;;  %v5056_v30 = vmul.f32 10000.0, %v4992_v38  ;;  %v4930_v32 = vsub.f32 %v11744_v45, %v4827_v26  ;;  %v4829_v46 = vpop.f32.mrb[45].mxu0  ;;  %5606 = vmatprep.mubr.f32.mxu1 %v7463_v11  ;;  %v11747_v45 = vld [vmem:[#allocation163_spill] sm:$0xff] }
 0x674   :  { %7474 = vpow2.f32 %v5284_v1  ;;  %v5183_v21 = vmin.f32 %v5119_v42, 0.0  ;;  %v5057_v63 = vmul.f32 10000.0, %v4993_v48  ;;  %v4931_v33 = vsub.f32 %v11745_v28, %v4829_v46  ;;  %5607 = vmatmul.mubr.f32.gmra.mrb[32].mxu1 %v7461_v54 }
 0x675   :  { %v7465_v5 = vpop.eup %7464  ;;  %v5286_v61 = vmul.f32 1.442695, %v5182_v3  ;;  %v5120_v59 = vadd.f32 -5.5451775, %v5056_v30  ;;  %v4994_v37 = vsub.f32 %v11746_v53, %v4930_v32  ;;  %v5382_v34 = vadd.f32 %v7463_v11, %v7461_v54  ;;  %v11748_v11 = vld [vmem:[#allocation164_spill] sm:$0xff] }
 0x676   :  { %v7467_v50 = vpop.eup %7466  ;;  %v10930_v47 = vadd.f32 %v10359_v41, %v4115_v39  ;;  %v5288_v20 = vmul.f32 1.442695, %v5183_v21  ;;  %v5121_v38 = vadd.f32 -5.5451775, %v5057_v63  ;;  %v4995_v26 = vsub.f32 %v10730_v29, %v4931_v33  ;;  %v4833_v1 = vpop.f32.mrb[46].mxu0  ;;  %v11749_v29 = vld [vmem:[#allocation165_spill] sm:$0xff] }
 0x677   :  { %7476 = vpow2.f32 %v5286_v61  ;;  %v5184_v42 = vmin.f32 %v5120_v59, 0.0  ;;  %v5058_v48 = vmul.f32 10000.0, %v4994_v37  ;;  %5383 = vadd.xlane.f32.xlu0 %v5382_v34  ;;  %v4932_v46 = vsub.f32 %v11747_v45, %v4833_v1  ;;  %v4835_v3 = vpop.f32.mrb[47].mxu0  ;;  %5611 = vmatprep.mubr.f32.mxu1 %v7467_v50  ;;  %v4355_v21 = vpop.permute.xlu0 %4354 }
 0x678   :  { %7478 = vpow2.f32 %v5288_v20  ;;  %v5185_v30 = vmin.f32 %v5121_v38, 0.0  ;;  %v5059_v54 = vmul.f32 10000.0, %v4995_v26  ;;  %v4933_v32 = vsub.f32 %v11748_v11, %v4835_v3  ;;  %5612 = vmatmul.mubr.f32.gmra.mrb[34].mxu1 %v7465_v5 }
 0x679   :  { %v7469_v39 = vpop.eup %7468  ;;  %v5290_v63 = vmul.f32 1.442695, %v5184_v42  ;;  %v5122_v28 = vadd.f32 -5.5451775, %v5058_v48  ;;  %v4996_v33 = vsub.f32 %v11749_v29, %v4932_v46  ;;  %v5385_v61 = vadd.f32 %v7467_v50, %v7465_v5 }
 0x67a   :  { %v7471_v59 = vpop.eup %7470  ;;  %v10937_v37 = vadd.f32 %v10348_v15, %v4355_v21  ;;  %v5292_v53 = vmul.f32 1.442695, %v5185_v30  ;;  %v5123_v34 = vadd.f32 -5.5451775, %v5059_v54  ;;  %v4997_v20 = vsub.f32 %v10745_v7, %v4933_v32  ;;  %v4839_v38 = vpop.f32.mrb[48].mxu0 }
 0x67b   :  { %7480 = vpow2.f32 %v5290_v63  ;;  %v5186_v26 = vmin.f32 %v5122_v28, 0.0  ;;  %v5060_v1 = vmul.f32 10000.0, %v4996_v33  ;;  %5335 = vadd.xlane.f32.xlu0 %v10785_v31  ;;  %5386 = vadd.xlane.f32.xlu1 %v5385_v61  ;;  %v4934_v42 = vsub.f32 %v10749_v24, %v4839_v38  ;;  %v4841_v48 = vpop.f32.mrb[49].mxu0 }
 0x67c   :  { %7482 = vpow2.f32 %v5292_v53  ;;  %v5187_v5 = vmin.f32 %v5123_v34, 0.0  ;;  %v5061_v50 = vmul.f32 10000.0, %v4997_v20  ;;  %v4935_v45 = vsub.f32 %v10755_v10, %v4841_v48  ;;  %5616 = vmatprep.mubr.f32.mxu1 %v7471_v59  ;;  %v4120_v53 = vpop.permute.xlu1 %4119 }
 0x67d   :  { %v7473_v46 = vpop.eup %7472  ;;  %v5294_v3 = vmul.f32 1.442695, %v5186_v26  ;;  %v5124_v30 = vadd.f32 -5.5451775, %v5060_v1  ;;  %v4998_v7 = vsub.f32 %v10759_v44, %v4934_v42  ;;  %5617 = vmatmul.mubr.f32.gmra.mrb[36].mxu1 %v7469_v39  ;;  %v5388_v54 = vadd.f32 %v7471_v59, %v7469_v39 }
 0x67e   :  { %v7475_v11 = vpop.eup %7474  ;;  %v10945_v31 = vadd.f32 %v10351_v6, %v4355_v21  ;;  %v5296_v32 = vmul.f32 1.442695, %v5187_v5  ;;  %v5125_v24 = vadd.f32 -5.5451775, %v5061_v50  ;;  %v4999_v63 = vsub.f32 %v10765_v12, %v4935_v45  ;;  %v4845_v28 = vpop.f32.mrb[50].mxu0 }
 0x67f   :  { %7484 = vpow2.f32 %v5294_v3  ;;  %v5188_v29 = vmin.f32 %v5124_v30, 0.0  ;;  %v5062_v10 = vmul.f32 10000.0, %v4998_v7  ;;  %5338 = vadd.xlane.f32.xlu0 %v10794_v58  ;;  %5389 = vadd.xlane.f32.xlu1 %v5388_v54  ;;  %v4936_v33 = vsub.f32 %v10769_v35, %v4845_v28  ;;  %v4847_v44 = vpop.f32.mrb[51].mxu0 }
 0x680   :  { %7486 = vpow2.f32 %v5296_v32  ;;  %v5189_v39 = vmin.f32 %v5125_v24, 0.0  ;;  %v5063_v61 = vmul.f32 10000.0, %v4999_v63  ;;  %v4937_v21 = vsub.f32 %v10775_v57, %v4847_v44  ;;  %5621 = vmatprep.mubr.f32.mxu1 %v7475_v11 }
 0x681   :  { %v7477_v59 = vpop.eup %7476  ;;  %v5298_v34 = vmul.f32 1.442695, %v5188_v29  ;;  %v5126_v12 = vadd.f32 -5.5451775, %v5062_v10  ;;  %v5000_v20 = vsub.f32 %v10779_v49, %v4936_v33  ;;  %5622 = vmatmul.mubr.f32.gmra.mrb[38].mxu1 %v7473_v46  ;;  %v5391_v38 = vadd.f32 %v7475_v11, %v7473_v46  ;;  %v4360_v29 = vpop.permute.xlu0 %4359 }
 0x682   :  { %v7479_v26 = vpop.eup %7478  ;;  %v10953_v58 = vadd.f32 %v10354_v4, %v4120_v53  ;;  %v5300_v35 = vmul.f32 1.442695, %v5189_v39  ;;  %v5127_v1 = vadd.f32 -5.5451775, %v5063_v61  ;;  %v5001_v42 = vsub.f32 %v10788_v13, %v4937_v21  ;;  %v4851_v48 = vpop.f32.mrb[52].mxu0 }
 0x683   :  { %7488 = vpow2.f32 %v5298_v34  ;;  %v5190_v57 = vmin.f32 %v5126_v12, 0.0  ;;  %v5064_v5 = vmul.f32 10000.0, %v5000_v20  ;;  %5341 = vadd.xlane.f32.xlu1 %v10803_v27  ;;  %5392 = vadd.xlane.f32.xlu0 %v5391_v38  ;;  %v4938_v50 = vsub.f32 %v10797_v40, %v4851_v48  ;;  %v4853_v49 = vpop.f32.mrb[53].mxu0 }
 0x684   :  { %7490 = vpow2.f32 %v5300_v35  ;;  %v5191_v45 = vmin.f32 %v5127_v1, 0.0  ;;  %v5065_v46 = vmul.f32 10000.0, %v5001_v42  ;;  %v4939_v3 = vsub.f32 %v10806_v23, %v4853_v49  ;;  %5626 = vmatprep.mubr.f32.mxu1 %v7479_v26 }
 0x685   :  { %v7481_v30 = vpop.eup %7480  ;;  %v5302_v7 = vmul.f32 1.442695, %v5190_v57  ;;  %v5128_v54 = vadd.f32 -5.5451775, %v5064_v5  ;;  %v5002_v13 = vsub.f32 %v10815_v62, %v4938_v50  ;;  %5627 = vmatmul.mubr.f32.gmra.mrb[40].mxu1 %v7477_v59  ;;  %v5394_v11 = vadd.f32 %v7479_v26, %v7477_v59 }
 0x686   :  { %v7483_v32 = vpop.eup %7482  ;;  %v10961_v27 = vadd.f32 %v10359_v41, %v4120_v53  ;;  %v5304_v24 = vmul.f32 1.442695, %v5191_v45  ;;  %v5129_v40 = vadd.f32 -5.5451775, %v5065_v46  ;;  %v5003_v63 = vsub.f32 %v10824_v55, %v4939_v3  ;;  %v4857_v28 = vpop.f32.mrb[54].mxu0 }
 0x687   :  { %7492 = vpow2.f32 %v5302_v7  ;;  %v5192_v23 = vmin.f32 %v5128_v54, 0.0  ;;  %v5066_v10 = vmul.f32 10000.0, %v5002_v13  ;;  %5344 = vadd.xlane.f32.xlu0 %v10812_v8  ;;  %5395 = vadd.xlane.f32.xlu1 %v5394_v11  ;;  %v4940_v62 = vsub.f32 %v10833_v60, %v4857_v28  ;;  %v4859_v33 = vpop.f32.mrb[55].mxu0  ;;  %v4125_v7 = vpop.permute.xlu1 %4124 }
 0x688   :  { %7494 = vpow2.f32 %v5304_v24  ;;  %v5193_v44 = vmin.f32 %v5129_v40, 0.0  ;;  %v5067_v39 = vmul.f32 10000.0, %v5003_v63  ;;  %v4941_v61 = vsub.f32 %v10842_v43, %v4859_v33  ;;  %5631 = vmatprep.mubr.f32.mxu1 %v7483_v32 }
 0x689   :  { %v7485_v21 = vpop.eup %7484  ;;  %v5306_v59 = vmul.f32 1.442695, %v5192_v23  ;;  %v5130_v55 = vadd.f32 -5.5451775, %v5066_v10  ;;  %v5004_v53 = vsub.f32 %v10851_v36, %v4940_v62  ;;  %5632 = vmatmul.mubr.f32.gmra.mrb[42].mxu1 %v7481_v30  ;;  %v5397_v34 = vadd.f32 %v7483_v32, %v7481_v30 }
 0x68a   :  { %v7487_v12 = vpop.eup %7486  ;;  %v10969_v8 = vadd.f32 %v10348_v15, %v4360_v29  ;;  %v5308_v20 = vmul.f32 1.442695, %v5193_v44  ;;  %v5131_v60 = vadd.f32 -5.5451775, %v5067_v39  ;;  %v5005_v38 = vsub.f32 %v10860_v25, %v4941_v61  ;;  %v4863_v26 = vpop.f32.mrb[56].mxu0 }
 0x68b   :  { %7496 = vpow2.f32 %v5306_v59  ;;  %v5194_v35 = vmin.f32 %v5130_v55, 0.0  ;;  %v5068_v43 = vmul.f32 10000.0, %v5004_v53  ;;  %5347 = vadd.xlane.f32.xlu1 %v10821_v52  ;;  %5398 = vadd.xlane.f32.xlu0 %v5397_v34  ;;  %v4942_v1 = vsub.f32 %v10869_v9, %v4863_v26  ;;  %v4865_v36 = vpop.f32.mrb[57].mxu0 }
 0x68c   :  { %7498 = vpow2.f32 %v5308_v20  ;;  %v5195_v42 = vmin.f32 %v5131_v60, 0.0  ;;  %v5069_v48 = vmul.f32 10000.0, %v5005_v38  ;;  %v4943_v15 = vsub.f32 %v10878_v19, %v4865_v36  ;;  %5636 = vmatprep.mubr.f32.mxu1 %v7487_v12 }
 0x68d   :  { %v7489_v57 = vpop.eup %7488  ;;  %v5310_v5 = vmul.f32 1.442695, %v5194_v35  ;;  %v5132_v50 = vadd.f32 -5.5451775, %v5068_v43  ;;  %v5006_v25 = vsub.f32 %v10887_v17, %v4942_v1  ;;  %5637 = vmatmul.mubr.f32.gmra.mrb[44].mxu1 %v7485_v21  ;;  %v5400_v49 = vadd.f32 %v7487_v12, %v7485_v21 }
 0x68e   :  { %v7491_v45 = vpop.eup %7490  ;;  %v10977_v52 = vadd.f32 %v10351_v6, %v4360_v29  ;;  %v5312_v46 = vmul.f32 1.442695, %v5195_v42  ;;  %v5133_v9 = vadd.f32 -5.5451775, %v5069_v48  ;;  %v5007_v3 = vsub.f32 %v10896_v0, %v4943_v15  ;;  %v4869_v30 = vpop.f32.mrb[58].mxu0 }
 0x68f   :  { %7500 = vpow2.f32 %v5310_v5  ;;  %v5196_v19 = vmin.f32 %v5132_v50, 0.0  ;;  %v5070_v54 = vmul.f32 10000.0, %v5006_v25  ;;  %5350 = vadd.xlane.f32.xlu0 %v10830_v2  ;;  %5401 = vadd.xlane.f32.xlu1 %v5400_v49  ;;  %v4944_v17 = vsub.f32 %v10905_v16, %v4869_v30  ;;  %v4871_v13 = vpop.f32.mrb[59].mxu0 }
 0x690   :  { %7502 = vpow2.f32 %v5312_v46  ;;  %v5197_v11 = vmin.f32 %v5133_v9, 0.0  ;;  %v5071_v32 = vmul.f32 10000.0, %v5007_v3  ;;  %v4945_v6 = vsub.f32 %v10914_v18, %v4871_v13  ;;  %5641 = vmatprep.mubr.f32.mxu1 %v7491_v45 }
 0x691   :  { %v7493_v24 = vpop.eup %7492  ;;  %v5314_v40 = vmul.f32 1.442695, %v5196_v19  ;;  %v5134_v0 = vadd.f32 -5.5451775, %v5070_v54  ;;  %v5008_v63 = vsub.f32 %v10923_v22, %v4944_v17  ;;  %5642 = vmatmul.mubr.f32.gmra.mrb[46].mxu1 %v7489_v57  ;;  %v5403_v28 = vadd.f32 %v7491_v45, %v7489_v57  ;;  %v11750_v54 = vld [vmem:[#allocation16_spill] sm:$0xff] }
 0x692   :  { %v7495_v29 = vpop.eup %7494  ;;  %v4200_v2 = vadd.f32 %v10354_v4, %v4125_v7  ;;  %v5316_v23 = vmul.f32 1.442695, %v5197_v11  ;;  %v5135_v10 = vadd.f32 -5.5451775, %v5071_v32  ;;  %v5009_v16 = vsub.f32 %v10930_v47, %v4945_v6  ;;  %v4875_v62 = vpop.f32.mrb[60].mxu0 }
 0x693   :  { %7504 = vpow2.f32 %v5314_v40  ;;  %v5198_v33 = vmin.f32 %v5134_v0, 0.0  ;;  %v5072_v44 = vmul.f32 10000.0, %v5008_v63  ;;  %5353 = vadd.xlane.f32.xlu1 %v10839_v51  ;;  %5404 = vadd.xlane.f32.xlu0 %v5403_v28  ;;  %v4946_v18 = vsub.f32 %v10937_v37, %v4875_v62  ;;  %v4877_v39 = vpop.f32.mrb[61].mxu0  ;;  %v11752_v28 = vld [vmem:[#allocation24_spill] sm:$0xff] }
 0x694   :  { %7506 = vpow2.f32 %v5316_v23  ;;  %v5199_v22 = vmin.f32 %v5135_v10, 0.0  ;;  %v5073_v61 = vmul.f32 10000.0, %v5009_v16  ;;  %v4947_v21 = vsub.f32 %v10945_v31, %v4877_v39  ;;  %5646 = vmatprep.mubr.f32.mxu1 %v7495_v29  ;;  %v11753_v10 = vld [vmem:[#allocation25_spill] sm:$0xff]  ;;  %v11755_v39 = vld [vmem:[#allocation125_spill] sm:$0xff] }
 0x695   :  { %v7497_v4 = vpop.eup %7496  ;;  %v5318_v59 = vmul.f32 1.442695, %v5198_v33  ;;  %v5136_v55 = vadd.f32 -5.5451775, %v5072_v44  ;;  %v5010_v47 = vsub.f32 %v10953_v58, %v4946_v18  ;;  %5647 = vmatmul.mubr.f32.gmra.mrb[48].mxu1 %v7493_v24  ;;  %v5406_v53 = vadd.f32 %v7495_v29, %v7493_v24  ;;  %v11751_v24 = vld [vmem:[#allocation18_spill] sm:$0xff]  ;;  %v11754_v44 = vld [vmem:[#allocation124_spill] sm:$0xff] }
 0x696   :  { %v7499_v34 = vpop.eup %7498  ;;  %v4201_v51 = vadd.f32 %v10359_v41, %v4125_v7  ;;  %v5320_v12 = vmul.f32 1.442695, %v5199_v22  ;;  %v5137_v20 = vadd.f32 -5.5451775, %v5073_v61  ;;  %v5011_v37 = vsub.f32 %v10961_v27, %v4947_v21  ;;  %v4881_v60 = vpop.f32.mrb[62].mxu0  ;;  %v11756_v22 = vld [vmem:[#allocation126_spill] sm:$0xff] }
 0x697   :  { %7508 = vpow2.f32 %v5318_v59  ;;  %v5200_v38 = vmin.f32 %v5136_v55, 0.0  ;;  %v5074_v26 = vmul.f32 10000.0, %v5010_v47  ;;  %5356 = vadd.xlane.f32.xlu0 %v10848_v56  ;;  %5407 = vadd.xlane.f32.xlu1 %v5406_v53  ;;  %v4948_v31 = vsub.f32 %v10969_v8, %v4881_v60  ;;  %v4883_v35 = vpop.f32.mrb[63].mxu0  ;;  %v7524_v55 = vld [vmem:[#allocation6] sm:$0xff] }
 0x698   :  { %7510 = vpow2.f32 %v5320_v12  ;;  %v5201_v58 = vmin.f32 %v5137_v20, 0.0  ;;  %v5075_v43 = vmul.f32 10000.0, %v5011_v37  ;;  %v4949_v1 = vsub.f32 %v10977_v52, %v4883_v35  ;;  %5651 = vmatprep.mubr.f32.mxu1 %v7499_v34  ;;  %v11758_v35 = vld [vmem:[#allocation17_spill] sm:$0xff] }
 0x699   :  { %v7501_v41 = vpop.eup %7500  ;;  %v5322_v36 = vmul.f32 1.442695, %v5200_v38  ;;  %v5138_v42 = vadd.f32 -5.5451775, %v5074_v26  ;;  %v5012_v27 = vsub.f32 %v4200_v2, %v4948_v31  ;;  %5652 = vmatmul.mubr.f32.gmra.mrb[50].mxu1 %v7497_v4  ;;  %v5409_v48 = vadd.f32 %v7499_v34, %v7497_v4  ;;  %v7525_v38 = vld [vmem:[#allocation6 + $0x8] sm:$0xff] }
 0x69a   :  { %v7503_v15 = vpop.eup %7502  ;;  %v5324_v57 = vmul.f32 1.442695, %v5201_v58  ;;  %v5139_v5 = vadd.f32 -5.5451775, %v5075_v43  ;;  %v5013_v56 = vsub.f32 %v4201_v51, %v4949_v1  ;;  %v11757_v37 = vlaneseq }
 0x69b   :  { %7512 = vpow2.f32 %v5322_v36  ;;  %v5202_v50 = vmin.f32 %v5138_v42, 0.0  ;;  %v5076_v8 = vmul.f32 10000.0, %v5012_v27  ;;  %5359 = vadd.xlane.f32.xlu1 %v10857_v14  ;;  %5410 = vadd.xlane.f32.xlu0 %v5409_v48  ;;  %v5412_v25 = vadd.f32 %v7503_v15, %v7501_v41 }
 0x69c   :  { %7514 = vpow2.f32 %v5324_v57  ;;  %v5203_v49 = vmin.f32 %v5139_v5, 0.0  ;;  %v5077_v45 = vmul.f32 10000.0, %v5013_v56  ;;  %5656 = vmatprep.mubr.f32.mxu1 %v7503_v15  ;;  %v3833_v60 = vand.u32 127, %v11757_v37  ;;  %v7526_v57 = vld [vmem:[#allocation6 + $0x10] sm:$0xff] }
 0x69d   :  { %v7505_v52 = vpop.eup %7504  ;;  %v5326_v46 = vmul.f32 1.442695, %v5202_v50  ;;  %v5140_v9 = vadd.f32 -5.5451775, %v5076_v8  ;;  %5657 = vmatmul.mubr.f32.gmra.mrb[52].mxu1 %v7501_v41  ;;  %v11759_v41 = vmov 0.0  }
 0x69e   :  { %v7507_v3 = vpop.eup %7506  ;;  %v5328_v30 = vmul.f32 1.442695, %v5203_v49  ;;  %v5141_v7 = vadd.f32 -5.5451775, %v5077_v45  ;;  %vm3834_vm4 = vcmp.eq.s32.totalorder %v11758_v35, %v3833_v60 }
 0x69f   :  { %7516 = vpow2.f32 %v5326_v46  ;;  %v5204_v19 = vmin.f32 %v5140_v9, 0.0  ;;  %5362 = vadd.xlane.f32.xlu0 %v11750_v54  ;;  %5413 = vadd.xlane.f32.xlu1 %v5412_v25  ;;  %v5415_v17 = vadd.f32 %v7507_v3, %v7505_v52  ;;  %v11018_v36 = vsel %vm3834_vm4, 1.0, %v11759_v41  ;;  %v7531_v41 = vld [vmem:[#allocation6 + $0x38] sm:$0xff] }
 0x6a0   :  { %7518 = vpow2.f32 %v5328_v30  ;;  %v5205_v14 = vmin.f32 %v5141_v7, 0.0  ;;  %5661 = vmatprep.mubr.f32.mxu1 %v7507_v3  ;;  %6680 = vmatprep.mubr.msk.f32.mxu0 %vm124_vm0, %v11018_v36  ;;  %v7527_v3 = vld [vmem:[#allocation6 + $0x18] sm:$0xff] }
 0x6a1   :  { %v7509_v13 = vpop.eup %7508  ;;  %v5330_v11 = vmul.f32 1.442695, %v5204_v19  ;;  %5662 = vmatmul.mubr.f32.gmra.mrb[54].mxu1 %v7505_v52 }
 0x6a2   :  { %v7511_v32 = vpop.eup %7510  ;;  %v5332_v6 = vmul.f32 1.442695, %v5205_v14 }
 0x6a3   :  { %7520 = vpow2.f32 %v5330_v11  ;;  %5365 = vadd.xlane.f32.xlu1 %v11751_v24  ;;  %5416 = vadd.xlane.f32.xlu0 %v5415_v17  ;;  %v5418_v40 = vadd.f32 %v7511_v32, %v7509_v13  ;;  %v7528_v24 = vld [vmem:[#allocation6 + $0x20] sm:$0xff] }
 0x6a4   :  { %7522 = vpow2.f32 %v5332_v6  ;;  %5666 = vmatprep.mubr.f32.mxu1 %v7511_v32 }
 0x6a5   :  { %v7513_v0 = vpop.eup %7512  ;;  %5667 = vmatmul.mubr.f32.gmra.mrb[56].mxu1 %v7509_v13 }
 0x6a6   :  { %v7515_v63 = vpop.eup %7514 }
 0x6a7   :  { %5368 = vadd.xlane.f32.xlu0 %v11752_v28  ;;  %5419 = vadd.xlane.f32.xlu1 %v5418_v40  ;;  %v5421_v29 = vadd.f32 %v7515_v63, %v7513_v0 }
 0x6a8   :  { %5671 = vmatprep.mubr.f32.mxu1 %v7515_v63 }
 0x6a9   :  { %v7517_v2 = vpop.eup %7516  ;;  %5672 = vmatmul.mubr.f32.gmra.mrb[58].mxu1 %v7513_v0 }
 0x6aa   :  { %v7519_v23 = vpop.eup %7518 }
 0x6ab   :  { %5371 = vadd.xlane.f32.xlu1 %v11753_v10  ;;  %5422 = vadd.xlane.f32.xlu0 %v5421_v29  ;;  %v5424_v16 = vadd.f32 %v7519_v23, %v7517_v2 }
 0x6ac   :  { %5676 = vmatprep.mubr.f32.mxu1 %v7519_v23 }
 0x6ad   :  { %v7521_v62 = vpop.eup %7520  ;;  %5677 = vmatmul.mubr.f32.gmra.mrb[60].mxu1 %v7517_v2 }
 0x6ae   :  { %v7523_v33 = vpop.eup %7522 }
 0x6af   :  { %5374 = vadd.xlane.f32.xlu0 %v11754_v44  ;;  %5425 = vadd.xlane.f32.xlu1 %v5424_v16  ;;  %v5427_v18 = vadd.f32 %v7523_v33, %v7521_v62 }
 0x6b0   :  { %5681 = vmatprep.mubr.f32.mxu1 %v7523_v33 }
 0x6b1   :  { %5682 = vmatmul.mubr.f32.gmra.mrb[62].mxu1 %v7521_v62  ;;  %v7529_v62 = vld [vmem:[#allocation6 + $0x28] sm:$0xff] }
 0x6b3   :  { %5377 = vadd.xlane.f32.xlu1 %v11755_v39  ;;  %5428 = vadd.xlane.f32.xlu0 %v5427_v18 }
 0x6b7   :  { %5380 = vadd.xlane.f32.xlu0 %v11756_v22 }
 0x704   :  { %v11003_v61 = vpop.xlane.xlu0 %5383 }
 0x707   :  { %v5528_v21 = vpop.f32.mrb[0].mxu1 }
 0x708   :  { %v5336_v4 = vpop.xlane.xlu0 %5335  ;;  %v11005_v59 = vpop.xlane.xlu1 %5386 }
 0x709   :  { %v5687_v47 = vmul.f32 %v7524_v55, %v5336_v4  ;;  %v5530_v53 = vpop.f32.mrb[1].mxu1 }
 0x70b   :  { %v11007_v34 = vsub.f32 %v5687_v47, %v5528_v21  ;;  %v5533_v51 = vpop.f32.mrb[2].mxu1 }
 0x70c   :  { %v5339_v12 = vpop.xlane.xlu0 %5338  ;;  %v11009_v20 = vpop.xlane.xlu1 %5389 }
 0x70d   :  { %v5688_v26 = vmul.f32 %v7525_v38, %v5339_v12  ;;  %v5535_v31 = vpop.f32.mrb[3].mxu1  ;;  %v5923_v58 = vmul.f32 %v11007_v34, %v11007_v34 }
 0x70f   :  { %v11015_v43 = vsub.f32 %v5688_v26, %v5533_v51  ;;  %v5538_v1 = vpop.f32.mrb[4].mxu1  ;;  %v5955_v50 = vsel %vm124_vm0, %v5923_v58, 0.0  ;;  %v7530_v51 = vld [vmem:[#allocation6 + $0x30] sm:$0xff] }
 0x710   :  { %v5342_v42 = vpop.xlane.xlu1 %5341  ;;  %v11020_v27 = vpop.xlane.xlu0 %5392 }
 0x711   :  { %v6925_v48 = vpack.c.bf16 %v11015_v43, %v11007_v34  ;;  %v5924_v15 = vmul.f32 %v11015_v43, %v11015_v43  ;;  %v5689_v5 = vmul.f32 %v7526_v57, %v5342_v42  ;;  %v5540_v56 = vpop.f32.mrb[5].mxu1 }
 0x713   :  { %v5956_v8 = vsel %vm124_vm0, %v5924_v15, 0.0  ;;  %v11030_v25 = vsub.f32 %v5689_v5, %v5538_v1  ;;  %v5543_v49 = vpop.f32.mrb[6].mxu1 }
 0x714   :  { %v5957_v45 = vadd.f32 %v5956_v8, %v5955_v50  ;;  %v5345_v52 = vpop.xlane.xlu0 %5344  ;;  %v11032_v46 = vpop.xlane.xlu1 %5395 }
 0x715   :  { %v5925_v9 = vmul.f32 %v11030_v25, %v11030_v25  ;;  %v5690_v30 = vmul.f32 %v7527_v3, %v5345_v52  ;;  %v5545_v7 = vpop.f32.mrb[7].mxu1 }
 0x717   :  { %v5958_v19 = vsel %vm124_vm0, %v5925_v9, 0.0  ;;  %v11037_v54 = vsub.f32 %v5690_v30, %v5543_v49  ;;  %v5548_v17 = vpop.f32.mrb[8].mxu1  ;;  %v7532_v9 = vld [vmem:[#allocation6 + $0x40] sm:$0xff] }
 0x718   :  { %v5959_v14 = vadd.f32 %v5958_v19, %v5957_v45  ;;  %v5348_v13 = vpop.xlane.xlu1 %5347  ;;  %v11039_v11 = vpop.xlane.xlu0 %5398 }
 0x719   :  { %v6931_v32 = vpack.c.bf16 %v11037_v54, %v11030_v25  ;;  %v5926_v6 = vmul.f32 %v11037_v54, %v11037_v54  ;;  %v5691_v40 = vmul.f32 %v7528_v24, %v5348_v13  ;;  %v5550_v0 = vpop.f32.mrb[9].mxu1 }
 0x71b   :  { %v5960_v63 = vsel %vm124_vm0, %v5926_v6, 0.0  ;;  %v11046_v28 = vsub.f32 %v5691_v40, %v5548_v17  ;;  %v5553_v29 = vpop.f32.mrb[10].mxu1  ;;  %v7533_v40 = vld [vmem:[#allocation6 + $0x48] sm:$0xff] }
 0x71c   :  { %v5961_v2 = vadd.f32 %v5960_v63, %v5959_v14  ;;  %v5351_v23 = vpop.xlane.xlu0 %5350  ;;  %v11048_v10 = vpop.xlane.xlu1 %5401 }
 0x71d   :  { %v5927_v16 = vmul.f32 %v11046_v28, %v11046_v28  ;;  %v5692_v33 = vmul.f32 %v7529_v62, %v5351_v23  ;;  %v5555_v44 = vpop.f32.mrb[11].mxu1 }
 0x71f   :  { %v5962_v18 = vsel %vm124_vm0, %v5927_v16, 0.0  ;;  %v11053_v39 = vsub.f32 %v5692_v33, %v5553_v29  ;;  %v5558_v22 = vpop.f32.mrb[12].mxu1 }
 0x720   :  { %v5963_v21 = vadd.f32 %v5962_v18, %v5961_v2  ;;  %v5354_v4 = vpop.xlane.xlu1 %5353  ;;  %v11055_v55 = vpop.xlane.xlu0 %5404 }
 0x721   :  { %v6937_v47 = vpack.c.bf16 %v11053_v39, %v11046_v28  ;;  %v5928_v53 = vmul.f32 %v11053_v39, %v11053_v39  ;;  %v5693_v12 = vmul.f32 %v7530_v51, %v5354_v4  ;;  %v5560_v37 = vpop.f32.mrb[13].mxu1 }
 0x723   :  { %v5964_v60 = vsel %vm124_vm0, %v5928_v53, 0.0  ;;  %v11062_v38 = vsub.f32 %v5693_v12, %v5558_v22  ;;  %v5563_v26 = vpop.f32.mrb[14].mxu1  ;;  %v7534_v22 = vld [vmem:[#allocation6 + $0x50] sm:$0xff] }
 0x724   :  { %v5965_v31 = vadd.f32 %v5964_v60, %v5963_v21  ;;  %v5357_v35 = vpop.xlane.xlu0 %5356  ;;  %v11064_v58 = vpop.xlane.xlu1 %5407 }
 0x725   :  { %v5929_v1 = vmul.f32 %v11062_v38, %v11062_v38  ;;  %v5694_v42 = vmul.f32 %v7531_v41, %v5357_v35  ;;  %v5565_v15 = vpop.f32.mrb[15].mxu1  ;;  %v7535_v35 = vld [vmem:[#allocation6 + $0x58] sm:$0xff] }
 0x727   :  { %v5966_v57 = vsel %vm124_vm0, %v5929_v1, 0.0  ;;  %v11069_v5 = vsub.f32 %v5694_v42, %v5563_v26  ;;  %v5568_v56 = vpop.f32.mrb[16].mxu1 }
 0x728   :  { %v5967_v50 = vadd.f32 %v5966_v57, %v5965_v31  ;;  %v5360_v8 = vpop.xlane.xlu1 %5359  ;;  %v11071_v49 = vpop.xlane.xlu0 %5410 }
 0x729   :  { %v6943_v45 = vpack.c.bf16 %v11069_v5, %v11062_v38  ;;  %v5930_v52 = vmul.f32 %v11069_v5, %v11069_v5  ;;  %v5695_v3 = vmul.f32 %v7532_v9, %v5360_v8  ;;  %v5570_v30 = vpop.f32.mrb[17].mxu1 }
 0x72b   :  { %v5968_v7 = vsel %vm124_vm0, %v5930_v52, 0.0  ;;  %v11078_v19 = vsub.f32 %v5695_v3, %v5568_v56  ;;  %v5573_v17 = vpop.f32.mrb[18].mxu1  ;;  %v7536_v3 = vld [vmem:[#allocation6 + $0x60] sm:$0xff] }
 0x72c   :  { %v5969_v14 = vadd.f32 %v5968_v7, %v5967_v50  ;;  %v5363_v13 = vpop.xlane.xlu0 %5362  ;;  %v11080_v6 = vpop.xlane.xlu1 %5413 }
 0x72d   :  { %v5931_v24 = vmul.f32 %v11078_v19, %v11078_v19  ;;  %v5696_v0 = vmul.f32 %v7533_v40, %v5363_v13  ;;  %v5575_v63 = vpop.f32.mrb[19].mxu1 }
 0x72f   :  { %v5970_v29 = vsel %vm124_vm0, %v5931_v24, 0.0  ;;  %v11085_v2 = vsub.f32 %v5696_v0, %v5573_v17  ;;  %v5578_v23 = vpop.f32.mrb[20].mxu1 }
 0x730   :  { %v5971_v16 = vadd.f32 %v5970_v29, %v5969_v14  ;;  %v5366_v62 = vpop.xlane.xlu1 %5365  ;;  %v11087_v33 = vpop.xlane.xlu0 %5416  ;;  %v7537_v29 = vld [vmem:[#allocation6 + $0x68] sm:$0xff] }
 0x731   :  { %v6949_v44 = vpack.c.bf16 %v11085_v2, %v11078_v19  ;;  %v5932_v18 = vmul.f32 %v11085_v2, %v11085_v2  ;;  %v5697_v21 = vmul.f32 %v7534_v22, %v5366_v62  ;;  %v5580_v4 = vpop.f32.mrb[21].mxu1 }
 0x733   :  { %v5972_v53 = vsel %vm124_vm0, %v5932_v18, 0.0  ;;  %v11094_v51 = vsub.f32 %v5697_v21, %v5578_v23  ;;  %v5583_v12 = vpop.f32.mrb[22].mxu1 }
 0x734   :  { %v5973_v37 = vadd.f32 %v5972_v53, %v5971_v16  ;;  %v5369_v60 = vpop.xlane.xlu0 %5368  ;;  %v11096_v26 = vpop.xlane.xlu1 %5419 }
 0x735   :  { %v5933_v31 = vmul.f32 %v11094_v51, %v11094_v51  ;;  %v5698_v1 = vmul.f32 %v7535_v35, %v5369_v60  ;;  %v5585_v41 = vpop.f32.mrb[23].mxu1  ;;  %v7538_v60 = vld [vmem:[#allocation6 + $0x70] sm:$0xff] }
 0x737   :  { %v5974_v42 = vsel %vm124_vm0, %v5933_v31, 0.0  ;;  %v11101_v15 = vsub.f32 %v5698_v1, %v5583_v12  ;;  %v5588_v57 = vpop.f32.mrb[24].mxu1 }
 0x738   :  { %v5975_v56 = vadd.f32 %v5974_v42, %v5973_v37  ;;  %v5372_v50 = vpop.xlane.xlu1 %5371  ;;  %v11103_v8 = vpop.xlane.xlu0 %5422 }
 0x739   :  { %v6955_v52 = vpack.c.bf16 %v11101_v15, %v11094_v51  ;;  %v5934_v9 = vmul.f32 %v11101_v15, %v11101_v15  ;;  %v5699_v30 = vmul.f32 %v7536_v3, %v5372_v50  ;;  %v5590_v7 = vpop.f32.mrb[25].mxu1  ;;  %v7539_v3 = vld [vmem:[#allocation6 + $0x78] sm:$0xff] }
 0x73a   :  { %v7540_v7 = vld [vmem:[#allocation6 + $0x80] sm:$0xff] }
 0x73b   :  { %v5976_v17 = vsel %vm124_vm0, %v5934_v9, 0.0  ;;  %v11110_v14 = vsub.f32 %v5699_v30, %v5588_v57  ;;  %v5593_v13 = vpop.f32.mrb[26].mxu1 }
 0x73c   :  { %v5977_v24 = vadd.f32 %v5976_v17, %v5975_v56  ;;  %v5375_v40 = vpop.xlane.xlu0 %5374  ;;  %v11112_v0 = vpop.xlane.xlu1 %5425  ;;  %v5703_v17 = vmul.f32 %v7540_v7, %v11003_v61 }
 0x73d   :  { %v5935_v63 = vmul.f32 %v11110_v14, %v11110_v14  ;;  %v5700_v23 = vmul.f32 %v7537_v29, %v5375_v40  ;;  %v5595_v16 = vpop.f32.mrb[27].mxu1 }
 0x73f   :  { %v5978_v62 = vsel %vm124_vm0, %v5935_v63, 0.0  ;;  %v11117_v18 = vsub.f32 %v5700_v23, %v5593_v13  ;;  %v5598_v22 = vpop.f32.mrb[28].mxu1 }
 0x740   :  { %v5979_v21 = vadd.f32 %v5978_v62, %v5977_v24  ;;  %v5378_v4 = vpop.xlane.xlu1 %5377  ;;  %v11119_v53 = vpop.xlane.xlu0 %5428 }
 0x741   :  { %v6961_v12 = vpack.c.bf16 %v11117_v18, %v11110_v14  ;;  %v5936_v37 = vmul.f32 %v11117_v18, %v11117_v18  ;;  %v5701_v31 = vmul.f32 %v7538_v60, %v5378_v4  ;;  %v5600_v35 = vpop.f32.mrb[29].mxu1 }
 0x743   :  { %v5980_v1 = vsel %vm124_vm0, %v5936_v37, 0.0  ;;  %v11126_v41 = vsub.f32 %v5701_v31, %v5598_v22  ;;  %v5603_v42 = vpop.f32.mrb[30].mxu1  ;;  %v7541_v22 = vld [vmem:[#allocation6 + $0x88] sm:$0xff] }
 0x744   :  { %v5981_v57 = vadd.f32 %v5980_v1, %v5979_v21  ;;  %v5381_v56 = vpop.xlane.xlu0 %5380  ;;  %v5605_v50 = vpop.f32.mrb[31].mxu1  ;;  %v5704_v21 = vmul.f32 %v7541_v22, %v11005_v59 }
 0x745   :  { %v5937_v9 = vmul.f32 %v11126_v41, %v11126_v41  ;;  %v5702_v30 = vmul.f32 %v7539_v3, %v5381_v56  ;;  %v7542_v50 = vld [vmem:[#allocation6 + $0x90] sm:$0xff] }
 0x747   :  { %v5982_v13 = vsel %vm124_vm0, %v5937_v9, 0.0  ;;  %v11132_v24 = vsub.f32 %v5702_v30, %v5603_v42  ;;  %v5608_v40 = vpop.f32.mrb[32].mxu1  ;;  %v5705_v9 = vmul.f32 %v7542_v50, %v11009_v20 }
 0x748   :  { %v5983_v63 = vadd.f32 %v5982_v13, %v5981_v57  ;;  %v5735_v29 = vsub.f32 %v5703_v17, %v5608_v40  ;;  %v5610_v23 = vpop.f32.mrb[33].mxu1  ;;  %v7543_v40 = vld [vmem:[#allocation6 + $0x98] sm:$0xff] }
 0x749   :  { %v6967_v16 = vpack.c.bf16 %v11132_v24, %v11126_v41  ;;  %v5938_v62 = vmul.f32 %v11132_v24, %v11132_v24 }
 0x74a   :  { %v5939_v4 = vmul.f32 %v5735_v29, %v5735_v29 }
 0x74b   :  { %v5984_v61 = vsel %vm124_vm0, %v5938_v62, 0.0  ;;  %v5613_v37 = vpop.f32.mrb[34].mxu1 }
 0x74c   :  { %v5985_v60 = vadd.f32 %v5984_v61, %v5983_v63  ;;  %v5986_v31 = vsel %vm124_vm0, %v5939_v4, 0.0  ;;  %v5736_v35 = vsub.f32 %v5704_v21, %v5613_v37  ;;  %v5615_v1 = vpop.f32.mrb[35].mxu1  ;;  %v5706_v63 = vmul.f32 %v7543_v40, %v11020_v27  ;;  %v7544_v4 = vld [vmem:[#allocation6 + $0xa0] sm:$0xff]  ;;  %v7547_v40 = vld [vmem:[#allocation6 + $0xb8] sm:$0xff] }
 0x74d   :  { %v5707_v61 = vmul.f32 %v7544_v4, %v11032_v46 }
 0x74e   :  { %v5987_v42 = vadd.f32 %v5986_v31, %v5985_v60  ;;  %v6922_v57 = vpack.c.bf16 %v5736_v35, %v5735_v29  ;;  %v5940_v56 = vmul.f32 %v5736_v35, %v5736_v35  ;;  %v7545_v35 = vld [vmem:[#allocation6 + $0xa8] sm:$0xff] }
 0x74f   :  { %v5708_v46 = vmul.f32 %v7545_v35, %v11039_v11 }
 0x750   :  { %v5988_v3 = vsel %vm124_vm0, %v5940_v56, 0.0  ;;  %v5618_v30 = vpop.f32.mrb[36].mxu1  ;;  %6924 = vmatprep.subr.msk.bf16.mxu0 %vm7667_vm1, %v6922_v57 }
 0x751   :  { %v5989_v59 = vadd.f32 %v5988_v3, %v5987_v42  ;;  %v5737_v17 = vsub.f32 %v5705_v9, %v5618_v30  ;;  %v5620_v13 = vpop.f32.mrb[37].mxu1  ;;  %6927 = vmatpush3.bf16.xpose.msk.msra.mxu0 %vm7667_vm1, %v6925_v48  ;;  %v7546_v3 = vld [vmem:[#allocation6 + $0xb0] sm:$0xff] }
 0x752   :  { %v5709_v30 = vmul.f32 %v7546_v3, %v11048_v10  ;;  %v5710_v10 = vmul.f32 %v7547_v40, %v11055_v55 }
 0x753   :  { %v5941_v29 = vmul.f32 %v5737_v17, %v5737_v17 }
 0x754   :  { %v5623_v20 = vpop.f32.mrb[38].mxu1 }
 0x755   :  { %v5990_v23 = vsel %vm124_vm0, %v5941_v29, 0.0  ;;  %v5738_v62 = vsub.f32 %v5706_v63, %v5623_v20  ;;  %v5625_v22 = vpop.f32.mrb[39].mxu1 }
 0x756   :  { %v5991_v21 = vadd.f32 %v5990_v23, %v5989_v59 }
 0x757   :  { %v6928_v37 = vpack.c.bf16 %v5738_v62, %v5737_v17  ;;  %v5942_v60 = vmul.f32 %v5738_v62, %v5738_v62 }
 0x758   :  { %v5628_v31 = vpop.f32.mrb[40].mxu1 }
 0x759   :  { %v5992_v34 = vsel %vm124_vm0, %v5942_v60, 0.0  ;;  %v5739_v43 = vsub.f32 %v5707_v61, %v5628_v31  ;;  %v5630_v48 = vpop.f32.mrb[41].mxu1  ;;  %6930 = vmatprep.subr.msk.bf16.mxu0 %vm7667_vm1, %v6928_v37  ;;  %v7549_v31 = vld [vmem:[#allocation6 + $0xc8] sm:$0xff] }
 0x75a   :  { %v5993_v27 = vadd.f32 %v5992_v34, %v5991_v21  ;;  %6933 = vmatpush3.bf16.xpose.msk.msra.mxu0 %vm7667_vm1, %v6931_v32  ;;  %v7548_v21 = vld [vmem:[#allocation6 + $0xc0] sm:$0xff] }
 0x75b   :  { %v5943_v1 = vmul.f32 %v5739_v43, %v5739_v43  ;;  %v5711_v4 = vmul.f32 %v7548_v21, %v11064_v58  ;;  %v5712_v58 = vmul.f32 %v7549_v31, %v11071_v49 }
 0x75c   :  { %v5633_v42 = vpop.f32.mrb[42].mxu1 }
 0x75d   :  { %v5994_v57 = vsel %vm124_vm0, %v5943_v1, 0.0  ;;  %v5740_v56 = vsub.f32 %v5708_v46, %v5633_v42  ;;  %v5635_v50 = vpop.f32.mrb[43].mxu1  ;;  %v7550_v1 = vld [vmem:[#allocation6 + $0xd0] sm:$0xff] }
 0x75e   :  { %v5995_v9 = vadd.f32 %v5994_v57, %v5993_v27  ;;  %v5713_v42 = vmul.f32 %v7550_v1, %v11080_v6 }
 0x75f   :  { %v6934_v59 = vpack.c.bf16 %v5740_v56, %v5739_v43  ;;  %v5944_v17 = vmul.f32 %v5740_v56, %v5740_v56 }
 0x760   :  { %v5638_v13 = vpop.f32.mrb[44].mxu1 }
 0x761   :  { %v5996_v25 = vsel %vm124_vm0, %v5944_v17, 0.0  ;;  %v5741_v54 = vsub.f32 %v5709_v30, %v5638_v13  ;;  %v5640_v32 = vpop.f32.mrb[45].mxu1  ;;  %6936 = vmatprep.subr.msk.bf16.mxu0 %vm7667_vm1, %v6934_v59 }
 0x762   :  { %v5997_v11 = vadd.f32 %v5996_v25, %v5995_v9  ;;  %6939 = vmatpush3.bf16.xpose.msk.msra.mxu0 %vm7667_vm1, %v6937_v47  ;;  %v7551_v9 = vld [vmem:[#allocation6 + $0xd8] sm:$0xff] }
 0x763   :  { %v5945_v63 = vmul.f32 %v5741_v54, %v5741_v54  ;;  %v5714_v6 = vmul.f32 %v7551_v9, %v11087_v33 }
 0x764   :  { %v5643_v29 = vpop.f32.mrb[46].mxu1 }
 0x765   :  { %v5998_v20 = vsel %vm124_vm0, %v5945_v63, 0.0  ;;  %v5742_v23 = vsub.f32 %v5710_v10, %v5643_v29  ;;  %v5645_v62 = vpop.f32.mrb[47].mxu1  ;;  %v7553_v63 = vld [vmem:[#allocation6 + $0xe8] sm:$0xff] }
 0x766   :  { %v5999_v22 = vadd.f32 %v5998_v20, %v5997_v11 }
 0x767   :  { %v6940_v61 = vpack.c.bf16 %v5742_v23, %v5741_v54  ;;  %v5946_v37 = vmul.f32 %v5742_v23, %v5742_v23  ;;  %v7552_v54 = vld [vmem:[#allocation6 + $0xe0] sm:$0xff] }
 0x768   :  { %v5648_v60 = vpop.f32.mrb[48].mxu1  ;;  %v5715_v32 = vmul.f32 %v7552_v54, %v11096_v26  ;;  %v5716_v26 = vmul.f32 %v7553_v63, %v11103_v8 }
 0x769   :  { %v6000_v28 = vsel %vm124_vm0, %v5946_v37, 0.0  ;;  %v5743_v39 = vsub.f32 %v5711_v4, %v5648_v60  ;;  %v5650_v47 = vpop.f32.mrb[49].mxu1  ;;  %6942 = vmatprep.subr.msk.bf16.mxu0 %vm7667_vm1, %v6940_v61  ;;  %v7554_v4 = vld [vmem:[#allocation6 + $0xf0] sm:$0xff] }
 0x76a   :  { %v6001_v55 = vadd.f32 %v6000_v28, %v5999_v22  ;;  %6945 = vmatpush3.bf16.xpose.msk.msra.mxu0 %vm7667_vm1, %v6943_v45  ;;  %v5717_v61 = vmul.f32 %v7554_v4, %v11112_v0 }
 0x76b   :  { %v5947_v34 = vmul.f32 %v5743_v39, %v5743_v39 }
 0x76c   :  { %v5653_v43 = vpop.f32.mrb[50].mxu1 }
 0x76d   :  { %v6002_v48 = vsel %vm124_vm0, %v5947_v34, 0.0  ;;  %v5744_v27 = vsub.f32 %v5712_v58, %v5653_v43  ;;  %v5655_v35 = vpop.f32.mrb[51].mxu1 }
 0x76e   :  { %v6003_v46 = vadd.f32 %v6002_v48, %v6001_v55 }
 0x76f   :  { %v6946_v57 = vpack.c.bf16 %v5744_v27, %v5743_v39  ;;  %v5948_v56 = vmul.f32 %v5744_v27, %v5744_v27  ;;  %v7555_v39 = vld [vmem:[#allocation6 + $0xf8] sm:$0xff] }
 0x770   :  { %v5658_v50 = vpop.f32.mrb[52].mxu1  ;;  %v5718_v0 = vmul.f32 %v7555_v39, %v11119_v53 }
 0x771   :  { %v6004_v38 = vsel %vm124_vm0, %v5948_v56, 0.0  ;;  %v5745_v5 = vsub.f32 %v5713_v42, %v5658_v50  ;;  %v5660_v45 = vpop.f32.mrb[53].mxu1  ;;  %6948 = vmatprep.subr.msk.bf16.mxu0 %vm7667_vm1, %v6946_v57 }
 0x772   :  { %v6005_v49 = vadd.f32 %v6004_v38, %v6003_v46  ;;  %6951 = vmatpush3.bf16.xpose.msk.msra.mxu0 %vm7667_vm1, %v6949_v44 }
 0x773   :  { %v5949_v3 = vmul.f32 %v5745_v5, %v5745_v5 }
 0x774   :  { %v5663_v30 = vpop.f32.mrb[54].mxu1 }
 0x775   :  { %v6006_v59 = vsel %vm124_vm0, %v5949_v3, 0.0  ;;  %v5746_v17 = vsub.f32 %v5714_v6, %v5663_v30  ;;  %v5665_v13 = vpop.f32.mrb[55].mxu1 }
 0x776   :  { %v6007_v25 = vadd.f32 %v6006_v59, %v6005_v49 }
 0x777   :  { %v6952_v11 = vpack.c.bf16 %v5746_v17, %v5745_v5  ;;  %v5950_v40 = vmul.f32 %v5746_v17, %v5746_v17 }
 0x778   :  { %v5668_v10 = vpop.f32.mrb[56].mxu1 }
 0x779   :  { %v6008_v19 = vsel %vm124_vm0, %v5950_v40, 0.0  ;;  %v5747_v2 = vsub.f32 %v5715_v32, %v5668_v10  ;;  %v5670_v44 = vpop.f32.mrb[57].mxu1  ;;  %6954 = vmatprep.subr.msk.bf16.mxu0 %vm7667_vm1, %v6952_v11 }
 0x77a   :  { %v6009_v33 = vadd.f32 %v6008_v19, %v6007_v25  ;;  %6957 = vmatpush3.bf16.xpose.msk.msra.mxu0 %vm7667_vm1, %v6955_v52 }
 0x77b   :  { %v5951_v29 = vmul.f32 %v5747_v2, %v5747_v2 }
 0x77c   :  { %v5673_v20 = vpop.f32.mrb[58].mxu1 }
 0x77d   :  { %v6010_v23 = vsel %vm124_vm0, %v5951_v29, 0.0  ;;  %v5748_v62 = vsub.f32 %v5716_v26, %v5673_v20  ;;  %v5675_v22 = vpop.f32.mrb[59].mxu1 }
 0x77e   :  { %v6011_v21 = vadd.f32 %v6010_v23, %v6009_v33 }
 0x77f   :  { %v6958_v37 = vpack.c.bf16 %v5748_v62, %v5747_v2  ;;  %v5952_v60 = vmul.f32 %v5748_v62, %v5748_v62 }
 0x780   :  { %v5678_v28 = vpop.f32.mrb[60].mxu1 }
 0x781   :  { %v6012_v51 = vsel %vm124_vm0, %v5952_v60, 0.0  ;;  %v5749_v15 = vsub.f32 %v5717_v61, %v5678_v28  ;;  %v5680_v52 = vpop.f32.mrb[61].mxu1  ;;  %6960 = vmatprep.subr.msk.bf16.mxu0 %vm7667_vm1, %v6958_v37 }
 0x782   :  { %v6013_v8 = vadd.f32 %v6012_v51, %v6011_v21  ;;  %6963 = vmatpush3.bf16.xpose.msk.msra.mxu0 %vm7667_vm1, %v6961_v12 }
 0x783   :  { %v5953_v47 = vmul.f32 %v5749_v15, %v5749_v15 }
 0x784   :  { %v5683_v55 = vpop.f32.mrb[62].mxu1 }
 0x785   :  { %v6014_v31 = vsel %vm124_vm0, %v5953_v47, 0.0  ;;  %v5750_v58 = vsub.f32 %v5718_v0, %v5683_v55  ;;  %v5685_v34 = vpop.f32.mrb[63].mxu1 }
 0x786   :  { %v6015_v43 = vadd.f32 %v6014_v31, %v6013_v8 }
 0x787   :  { %v6964_v48 = vpack.c.bf16 %v5750_v58, %v5749_v15  ;;  %v5954_v27 = vmul.f32 %v5750_v58, %v5750_v58 }
 0x789   :  { %6966 = vmatprep.subr.msk.bf16.mxu0 %vm7667_vm1, %v6964_v48  ;;  %v6016_v14 = vsel %vm124_vm0, %v5954_v27, 0.0 }
 0x78a   :  { %6969 = vmatpush3.bf16.xpose.msk.msra.mxu0 %vm7667_vm1, %v6967_v16  ;;  %v6017_v18 = vadd.f32 %v6016_v14, %v6015_v43 }
 0x78c   :  { %6018 = vadd.xlane.f32.xlu1 %v6017_v18 }
 0x791   :  { %6681 = vmatmul.mubr.msk.f32.vlgmr.msra.gmra.mrb[64].mxu0 %vm124_vm0, %v11018_v36 }
 0x819   :  { %v6019_v53 = vpop.xlane.xlu1 %6018 }
 0x81a   :  { %v6020_v12 = vrot.slane %v6019_v53, 4 }
 0x81c   :  { %v6021_v35 = vadd.f32 %v6020_v12, %v6019_v53 }
 0x81e   :  { %v6022_v46 = vrot.slane %v6021_v35, 2 }
 0x820   :  { %v6023_v1 = vadd.f32 %v6022_v46, %v6021_v35 }
 0x822   :  { %v6024_v42 = vrot.slane %v6023_v1, 1 }
 0x824   :  { %v6025_v57 = vadd.f32 %v6024_v42, %v6023_v1 }
 0x826   :  { %6974 = vpush %v6025_v57 }
 0x857   :  { %s6975_s3 = spop %6974 }
 0x858   :  { %s6030_s4 = smul.f32 0.0006510417, %s6975_s3 }
 0x85a   :  { %6032 = sst [smem:[#allocation10]] %s6030_s4 }
 0x85b   :  { %7587 = shalt.err (!%p7584_p11)
}
 0x85c   :  { %s7634_s12 = smov [#allocation10]   ;;  %s7635_s15 = smov [#allocation11]  }
 0x85d   :  { %6040 = dma.smem_to_hbm %s7634_s12, 16, %s11253_s1, [#allocation9]  }
 0x85e   :  { %s6047_s16 = sshll.u32 %s7635_s15, 4  ;;  %s6048_s16 = int_to_ptr.vmem [resolvable:$true] %s6047_s16 }
 0x85f   :  { %s7588_s17 = scalar_lea.vmem %s6048_s16, 256  ;;  %p7593_p13 = scmp.lt.s32.totalorder %s6048_s16, %s6048_s16 }
 0x860   :  { %p7589_p12 = scmp.ne.s32.totalorder %s6048_s16, %s7588_s17  ;;  %p7594_p0 = scmp.lt.s32.totalorder %s7588_s17, %s7588_s17 }
 0x862   :  { %p7595_p1 = por %p7594_p0, %p7593_p13 }
 0x864   :  { %v5916_v36 = vpop.f32.mrb[64].mxu0  ;;  %p7596_p2 = pnand %p7595_p1, %p7589_p12 }
 0x865   :  { %5921 = vst [vmem:[#allocation11] sm:$0xff] %v5916_v36  ;;  %v5918_v41 = vpop.f32.mrb[65].mxu0 }
 0x866   :  { %5922 = vst [vmem:[#allocation11 + $0x8] sm:$0xff] %v5918_v41 }
 0x867   :  { %7599 = shalt.err (!%p7596_p2)
}
 0x868   :  { %s7600_s20 = scalar_lea.hbm %s11254_s2, 256 }
 0x869   :  { %p7601_p3 = scmp.ne.s32.totalorder %s11254_s2, %s7600_s20  ;;  %p7604_p4 = scmp.lt.u32.totalorder %s7600_s20, %s11254_s2 }
 0x86b   :  { %p7606_p5 = pnand %p7604_p4, %p7601_p3 }
 0x86d   :  { %7609 = shalt.err (!%p7606_p5)
}
 0x86e   :  { %6050 = dma.vmem_to_hbm [thread:$0]  %s6048_s16, 256, %s11254_s2, [#allocation8]  }
 0x86f   :  { %7616 = dma.done.wait [#allocation9], 16  }
 0x870   :  { %7617 = vsyncadd [#allocation9], 4294967280 }
 0x871   :  { %7618 = dma.done.wait [#allocation8], 256  }
 0x872   :  { %7619 = vsyncadd [#allocation8], 4294967040 }
 0x873   :  { %6057 = sfence }
 0x874   :  { %6058 = vsyncpa [#allocation7], 1 }
 0x875   :  { %6059 = vsyncpa [#allocation8], 1 }
 0x876   :  { %6060 = vsyncpa [#allocation9], 1 }

</bundles_post_ra>
